<compile_context>
chip_gen: v7x
topology: tpu7x:2x2x1
jax: 0.10.0
libtpu: 0.0.40
codegen_flags: <defaults>
</compile_context>

<pallas_src>
import functools

import jax
import jax.numpy as jnp
from jax.experimental import pallas as pl
from jax.experimental.pallas import tpu as pltpu

EPS = 1e-5      # nn.BatchNorm2d default
LANES = 128     # pad every channel dim to a multiple of the lane width


def _round_up(x, m):
    return (x + m - 1) // m * m


def _pick_vmem_limit():
    # v7x has 64 MiB VMEM per TensorCore -> stay lean; v5e/v6e have 128 MiB ->
    # allow bigger resident blocks.
    try:
        kind = jax.devices()[0].device_kind.lower()
    except Exception:  # pragma: no cover - defensive
        kind = ""
    return (32 if "v7" in kind else 96) * 1024 * 1024


_COMPILER_PARAMS = pltpu.CompilerParams(
    dimension_semantics=("parallel",),          # shard images across TensorCores
    vmem_limit_bytes=_pick_vmem_limit(),
)


# ----------------------------- kernels -----------------------------


def _conv1_kernel(x_ref, w_ref, *rest, ho, wo, stride, cin_p, has_ds):
    """One image: conv1 (3x3, stride 1|2) as 9 accumulating MXU matmuls off the
    halo'd / phase-split block, plus (optionally) the fused downsample 1x1 conv.
    Emits raw conv outputs (bf16) and one-pass per-image BN partials (f32)."""
    if has_ds:
        wd_ref, out_ref, stats_ref, dso_ref, dss_ref = rest
    else:
        out_ref, stats_ref = rest

    mi = ho * wo
    acc = None
    for t in range(9):
        kh, kw = t // 3, t % 3
        if stride == 1:
            tap = x_ref[0, kh:kh + ho, kw:kw + wo, :]
        else:
            # phase-split input (1, 4, Hq, Wq, C): every tap is a unit-stride slice
            tap = x_ref[0, (kh % 2) * 2 + (kw % 2),
                        kh // 2:kh // 2 + ho, kw // 2:kw // 2 + wo, :]
        part = jnp.dot(tap.reshape(mi, cin_p),
                       w_ref[t * cin_p:(t + 1) * cin_p, :],
                       preferred_element_type=jnp.float32)
        acc = part if acc is None else acc + part

    out_ref[0] = acc.astype(out_ref.dtype)
    stats_ref[0] = jnp.concatenate(
        [jnp.sum(acc, axis=0, keepdims=True),
         jnp.sum(acc * acc, axis=0, keepdims=True)], axis=0)

    if has_ds:
        # Downsample input = the stride-sampled original pixels, already present
        # in this block (interior for stride 1, phase (1,1) for stride 2).
        if stride == 1:
            xs = x_ref[0, 1:1 + ho, 1:1 + wo, :]
        else:
            xs = x_ref[0, 3, 0:ho, 0:wo, :]
        dacc = jnp.dot(xs.reshape(mi, cin_p), wd_ref[...],
                       preferred_element_type=jnp.float32)
        dso_ref[0] = dacc.astype(dso_ref.dtype)
        dss_ref[0] = jnp.concatenate(
            [jnp.sum(dacc, axis=0, keepdims=True),
             jnp.sum(dacc * dacc, axis=0, keepdims=True)], axis=0)


def _conv2_kernel(x_ref, w_ref, scale_ref, shift_ref, out_ref, stats_ref,
                  *, ho, wo, cp):
    """One image: bn1-apply + ReLU on the raw conv1 output, zero-halo it entirely
    in VMEM, then conv2 (3x3, stride 1) as 9 accumulating MXU matmuls, emitting
    the raw conv2 output plus bn2 partial statistics."""
    mi = ho * wo

    act = jnp.maximum(
        x_ref[0].astype(jnp.float32) * scale_ref[...] + shift_ref[...],
        0.0).astype(jnp.bfloat16)                         # (Ho, Wo, Cp)

    # Build the zero-padded activation in VMEM (no HBM round-trip, no masking).
    zrow = jnp.zeros((1, wo, cp), jnp.bfloat16)
    zcol = jnp.zeros((ho + 2, 1, cp), jnp.bfloat16)
    padded = jnp.concatenate([zrow, act, zrow], axis=0)    # (Ho+2, Wo, Cp)
    padded = jnp.concatenate([zcol, padded, zcol], axis=1)  # (Ho+2, Wo+2, Cp)

    acc = None
    for t in range(9):
        kh, kw = t // 3, t % 3
        tap = padded[kh:kh + ho, kw:kw + wo, :]
        part = jnp.dot(tap.reshape(mi, cp),
                       w_ref[t * cp:(t + 1) * cp, :],
                       preferred_element_type=jnp.float32)
        acc = part if acc is None else acc + part

    out_ref[0] = acc.astype(out_ref.dtype)
    stats_ref[0] = jnp.concatenate(
        [jnp.sum(acc, axis=0, keepdims=True),
         jnp.sum(acc * acc, axis=0, keepdims=True)], axis=0)


def _bn_add_relu_kernel(a_ref, r_ref, sa_ref, ba_ref, sr_ref, br_ref, o_ref):
    a = a_ref[0].astype(jnp.float32)
    r = r_ref[0].astype(jnp.float32)
    y = a * sa_ref[...] + ba_ref[...] + (r * sr_ref[...] + br_ref[...])
    o_ref[0] = jnp.maximum(y, 0.0).astype(o_ref.dtype)


# ------------------------- pallas_call wrappers -------------------------


def _conv1_call(x_in, w1, wd, *, ho, wo, stride, cin_p, cp):
    n = x_in.shape[0]
    mi = ho * wo
    xblock = (1,) + tuple(x_in.shape[1:])
    xzeros = (0,) * (len(xblock) - 1)
    in_specs = [pl.BlockSpec(xblock, lambda i: (i,) + xzeros),
                pl.BlockSpec(w1.shape, lambda i: (0, 0))]   # constant index: DMA'd once
    inputs = [x_in, w1]
    out_specs = [pl.BlockSpec((1, mi, cp), lambda i: (i, 0, 0)),
                 pl.BlockSpec((1, 2, cp), lambda i: (i, 0, 0))]
    out_shapes = [jax.ShapeDtypeStruct((n, mi, cp), jnp.bfloat16),
                  jax.ShapeDtypeStruct((n, 2, cp), jnp.float32)]
    if wd is not None:
        in_specs.append(pl.BlockSpec(wd.shape, lambda i: (0, 0)))
        inputs.append(wd)
        out_specs += [pl.BlockSpec((1, mi, cp), lambda i: (i, 0, 0)),
                      pl.BlockSpec((1, 2, cp), lambda i: (i, 0, 0))]
        out_shapes += [jax.ShapeDtypeStruct((n, mi, cp), jnp.bfloat16),
                       jax.ShapeDtypeStruct((n, 2, cp), jnp.float32)]
    kernel = functools.partial(_conv1_kernel, ho=ho, wo=wo, stride=stride,
                               cin_p=cin_p, has_ds=(wd is not None))
    return pl.pallas_call(
        kernel,
        grid=(n,),
        in_specs=in_specs,
        out_specs=tuple(out_specs),
        out_shape=tuple(out_shapes),
        compiler_params=_COMPILER_PARAMS,
    )(*inputs)


def _conv2_call(c1_4d, w2, scale1, shift1, *, ho, wo, cp):
    n = c1_4d.shape[0]
    mi = ho * wo
    vec = pl.BlockSpec((1, cp), lambda i: (0, 0))
    return pl.pallas_call(
        functools.partial(_conv2_kernel, ho=ho, wo=wo, cp=cp),
        grid=(n,),
        in_specs=[pl.BlockSpec((1, ho, wo, cp), lambda i: (i, 0, 0, 0)),
                  pl.BlockSpec(w2.shape, lambda i: (0, 0)),
                  vec, vec],
        out_specs=(pl.BlockSpec((1, mi, cp), lambda i: (i, 0, 0)),
                   pl.BlockSpec((1, 2, cp), lambda i: (i, 0, 0))),
        out_shape=(jax.ShapeDtypeStruct((n, mi, cp), jnp.bfloat16),
                   jax.ShapeDtypeStruct((n, 2, cp), jnp.float32)),
        compiler_params=_COMPILER_PARAMS,
    )(c1_4d, w2, scale1, shift1)


def _bn_add_relu_call(a, res, scale_a, shift_a, scale_r, shift_r):
    n, mi, cp = a.shape
    vec = pl.BlockSpec((1, cp), lambda i: (0, 0))
    big = pl.BlockSpec((1, mi, cp), lambda i: (i, 0, 0))
    return pl.pallas_call(
        _bn_add_relu_kernel,
        grid=(n,),
        in_specs=[big, big, vec, vec, vec, vec],
        out_specs=pl.BlockSpec((1, mi, cp), lambda i: (i, 0, 0)),
        out_shape=jax.ShapeDtypeStruct((n, mi, cp), jnp.float32),
        compiler_params=_COMPILER_PARAMS,
    )(a, res, scale_a, shift_a, scale_r, shift_r)


# --------------------- glue: layout / params (plain JAX) ---------------------


def _prep_w3x3(w_oihw, cin_p, cout_p):
    cout, cin = w_oihw.shape[0], w_oihw.shape[1]
    w = jnp.transpose(w_oihw, (2, 3, 1, 0))               # (3, 3, Cin, Cout)
    w = jnp.pad(w, ((0, 0), (0, 0), (0, cin_p - cin), (0, cout_p - cout)))
    return w.reshape(9 * cin_p, cout_p).astype(jnp.bfloat16)


def _prep_w1x1(w_oihw, cin_p, cout_p):
    cout, cin = w_oihw.shape[0], w_oihw.shape[1]
    w = jnp.transpose(w_oihw, (2, 3, 1, 0)).reshape(cin, cout)
    w = jnp.pad(w, ((0, cin_p - cin), (0, cout_p - cout)))
    return w.astype(jnp.bfloat16)


def _bn_scale_shift(stats, count, gamma, beta, cp):
    """Fold batch-statistic BatchNorm into a per-channel scale/shift (f32).
    stats: (N, 2, Cp) per-image [sum, sum_sq] partials from the conv kernels."""
    # TODO(synk): running_mean/running_var updates are a training-time side effect
    # with no functional equivalent here (they do not affect the forward output).
    s = jnp.sum(stats[:, 0, :], axis=0)
    s2 = jnp.sum(stats[:, 1, :], axis=0)
    mean = s / count
    var = jnp.maximum(s2 / count - mean * mean, 0.0)        # biased, clamped >= 0
    g = jnp.pad(gamma, (0, cp - gamma.shape[0]))
    b = jnp.pad(beta, (0, cp - beta.shape[0]))
    scale = g * jax.lax.rsqrt(var + EPS)
    shift = b - mean * scale
    return (scale.reshape(1, cp).astype(jnp.float32),
            shift.reshape(1, cp).astype(jnp.float32))


def basic_block_forward(x_nchw, params, stride):
    n, cin, h, w = x_nchw.shape
    planes = params["w1"].shape[0]
    cin_p = _round_up(cin, LANES)
    cp = _round_up(planes, LANES)

    ho = (h - 1) // stride + 1
    wo = (w - 1) // stride + 1
    mi = ho * wo
    count = n * mi
    has_ds = "wd" in params

    x = jnp.transpose(x_nchw, (0, 2, 3, 1))                 # NCHW -> NHWC

    # ---- conv1 input: single combined (halo + channel) pad, bf16 cast; the
    #      stride-2 case phase-splits so the kernel only does unit-stride slices.
    if stride == 1:
        x1_in = jnp.pad(
            x, ((0, 0), (1, 1), (1, 1), (0, cin_p - cin))).astype(jnp.bfloat16)
    else:
        ph, pw = (h + 2) % 2, (w + 2) % 2
        xp = jnp.pad(
            x, ((0, 0), (1, 1 + ph), (1, 1 + pw), (0, cin_p - cin))
        ).astype(jnp.bfloat16)
        hq, wq = xp.shape[1] // 2, xp.shape[2] // 2
        x1_in = xp.reshape(n, hq, 2, wq, 2, cin_p).transpose(0, 2, 4, 1, 3, 5)
        x1_in = x1_in.reshape(n, 4, hq, wq, cin_p)

    w1 = _prep_w3x3(params["w1"], cin_p, cp)
    wd = _prep_w1x1(params["wd"], cin_p, cp) if has_ds else None

    # ---- conv1 (+ fused downsample 1x1) + per-image BN partials ----
    outs = _conv1_call(x1_in, w1, wd, ho=ho, wo=wo, stride=stride,
                       cin_p=cin_p, cp=cp)
    if has_ds:
        c1_raw, st1, ds_raw, std = outs
    else:
        c1_raw, st1 = outs
    scale1, shift1 = _bn_scale_shift(st1, count, params["g1"], params["b1"], cp)

    # ---- conv2 with bn1-apply + ReLU fused on its input (no padded-act HBM trip)
    w2 = _prep_w3x3(params["w2"], cp, cp)
    c2_raw, st2 = _conv2_call(c1_raw.reshape(n, ho, wo, cp), w2, scale1, shift1,
                              ho=ho, wo=wo, cp=cp)
    scale2, shift2 = _bn_scale_shift(st2, count, params["g2"], params["b2"], cp)

    # ---- residual branch ----
    if has_ds:
        scale_r, shift_r = _bn_scale_shift(std, count, params["gd"], params["bd"], cp)
        res = ds_raw
    else:
        assert cin_p == cp  # identity path implies in_planes == planes
        res = jnp.pad(
            x, ((0, 0), (0, 0), (0, 0), (0, cp - cin))
        ).astype(jnp.bfloat16).reshape(n, mi, cp)            # bf16 residual read
        scale_r = jnp.ones((1, cp), jnp.float32)
        shift_r = jnp.zeros((1, cp), jnp.float32)

    # ---- fused epilogue: bn2 apply + residual-BN apply + add + ReLU ----
    out = _bn_add_relu_call(c2_raw, res, scale2, shift2, scale_r, shift_r)
    # (the PyTorch module prints `bn2 out shape` == (N, planes, Ho, Wo) here)
    out = out.reshape(n, ho, wo, cp)[..., :planes]
    return jnp.transpose(out, (0, 3, 1, 2))                  # back to NCHW


# ---------------- params + pure-JAX reference for validation ----------------


def init_basic_block_params(key, in_planes, planes, stride):
    ks = jax.random.split(key, 9)
    p = {
        "w1": 0.1 * jax.random.normal(ks[0], (planes, in_planes, 3, 3), jnp.float32),
        "g1": 1.0 + 0.1 * jax.random.normal(ks[1], (planes,), jnp.float32),
        "b1": 0.1 * jax.random.normal(ks[2], (planes,), jnp.float32),
        "w2": 0.1 * jax.random.normal(ks[3], (planes, planes, 3, 3), jnp.float32),
        "g2": 1.0 + 0.1 * jax.random.normal(ks[4], (planes,), jnp.float32),
        "b2": 0.1 * jax.random.normal(ks[5], (planes,), jnp.float32),
    }
    if stride != 1 or in_planes != planes:
        p["wd"] = 0.1 * jax.random.normal(ks[6], (planes, in_planes, 1, 1), jnp.float32)
        p["gd"] = 1.0 + 0.1 * jax.random.normal(ks[7], (planes,), jnp.float32)
        p["bd"] = 0.1 * jax.random.normal(ks[8], (planes,), jnp.float32)
    return p


def reference_forward(x, params, stride):
    prec = jax.lax.Precision.HIGHEST

    def conv(x_, w_, s, pad):
        return jax.lax.conv_general_dilated(
            x_, w_, (s, s), [(pad, pad), (pad, pad)],
            dimension_numbers=("NCHW", "OIHW", "NCHW"), precision=prec)

    def bn(x_, g, b):
        m = x_.mean(axis=(0, 2, 3), keepdims=True)
        v = ((x_ - m) ** 2).mean(axis=(0, 2, 3), keepdims=True)
        return (x_ - m) * jax.lax.rsqrt(v + EPS) * g.reshape(1, -1, 1, 1) \
            + b.reshape(1, -1, 1, 1)

    out = jax.nn.relu(bn(conv(x, params["w1"], stride, 1), params["g1"], params["b1"]))
    out = bn(conv(out, params["w2"], 1, 1), params["g2"], params["b2"])
    if "wd" in params:
        res = bn(conv(x, params["wd"], stride, 0), params["gd"], params["bd"])
    else:
        res = x
    return jax.nn.relu(out + res)


if __name__ == "__main__":
    key = jax.random.PRNGKey(0)
    fwd = jax.jit(basic_block_forward, static_argnames=("stride",))
    # cover: channel-change downsample, strided downsample, identity residual
    for idx, (in_planes, planes, stride) in enumerate([(4, 8, 1), (4, 8, 2), (8, 8, 1)]):
        kx, kp = jax.random.split(jax.random.fold_in(key, idx))
        x = jax.random.normal(kx, (2, in_planes, 16, 16), jnp.float32)
        params = init_basic_block_params(kp, in_planes, planes, stride)
        out = jax.block_until_ready(fwd(x, params, stride=stride))
        ref = reference_forward(x, params, stride)
        assert out.shape == ref.shape, (out.shape, ref.shape)
        # tolerance accounts for bf16 MXU inputs (accumulation stays f32)
        if not jnp.allclose(out, ref, rtol=3e-2, atol=3e-2):
            raise AssertionError(
                f"mismatch for cfg={(in_planes, planes, stride)}; "
                f"max abs err = {float(jnp.max(jnp.abs(out - ref)))}")
    print("KERNEL_OK")
</pallas_src>

<mosaic_0001>
module attributes {stable_mosaic.version = 11 : i64} {
  func.func @_conv1_kernel(%arg0: i32, %arg1: memref<1x18x18x128xbf16, #tpu.memory_space<vmem>>, %arg2: memref<1152x128xbf16, #tpu.memory_space<vmem>>, %arg3: memref<128x128xbf16, #tpu.memory_space<vmem>>, %arg4: memref<1x256x128xbf16, #tpu.memory_space<vmem>>, %arg5: memref<1x2x128xf32, #tpu.memory_space<vmem>>, %arg6: memref<1x256x128xbf16, #tpu.memory_space<vmem>>, %arg7: memref<1x2x128xf32, #tpu.memory_space<vmem>>) attributes {dimension_semantics = [#tpu.dimension_semantics<parallel>], iteration_bounds = array<i64: 2>, scalar_prefetch = 0 : i64, scratch_operands = 0 : i64, tpu.core_type = #tpu.core_type<tc>, window_params = [{transform_indices = @transform_0, window_bounds = array<i64: 1, 18, 18, 128>}, {pipeline_mode = #tpu.pipeline_mode<synchronous>, transform_indices = @transform_1, window_bounds = array<i64: 1152, 128>}, {pipeline_mode = #tpu.pipeline_mode<synchronous>, transform_indices = @transform_2, window_bounds = array<i64: 128, 128>}, {transform_indices = @transform_3, window_bounds = array<i64: 1, 256, 128>}, {transform_indices = @transform_4, window_bounds = array<i64: 1, 2, 128>}, {transform_indices = @transform_5, window_bounds = array<i64: 1, 256, 128>}, {transform_indices = @transform_6, window_bounds = array<i64: 1, 2, 128>}]} {
    %c0 = arith.constant 0 : index
    %c0_0 = arith.constant 0 : index
    %c0_1 = arith.constant 0 : index
    %c0_2 = arith.constant 0 : index
    %0 = vector.load %arg1[%c0, %c0_0, %c0_1, %c0_2] : memref<1x18x18x128xbf16, #tpu.memory_space<vmem>>, vector<1x16x16x128xbf16>
    %1 = vector.shape_cast %0 : vector<1x16x16x128xbf16> to vector<16x16x128xbf16>
    %2 = vector.shape_cast %1 : vector<16x16x128xbf16> to vector<256x128xbf16>
    %c0_3 = arith.constant 0 : index
    %c0_4 = arith.constant 0 : index
    %3 = vector.load %arg2[%c0_3, %c0_4] : memref<1152x128xbf16, #tpu.memory_space<vmem>>, vector<128x128xbf16>
    %cst = arith.constant dense<0.000000e+00> : vector<256x128xf32>
    %4 = tpu.matmul %2, %3, %cst {dimension_numbers = #tpu.dot_dimension_numbers<[1], [0], [0], [1], [0, 0, 1, 1], [], []>} : vector<256x128xbf16>, vector<128x128xbf16>, vector<256x128xf32> -> vector<256x128xf32>
    %c0_5 = arith.constant 0 : index
    %c0_6 = arith.constant 0 : index
    %c1 = arith.constant 1 : index
    %c0_7 = arith.constant 0 : index
    %5 = vector.load %arg1[%c0_5, %c0_6, %c1, %c0_7] : memref<1x18x18x128xbf16, #tpu.memory_space<vmem>>, vector<1x16x16x128xbf16>
    %6 = vector.shape_cast %5 : vector<1x16x16x128xbf16> to vector<16x16x128xbf16>
    %7 = vector.shape_cast %6 : vector<16x16x128xbf16> to vector<256x128xbf16>
    %c128 = arith.constant 128 : index
    %c0_8 = arith.constant 0 : index
    %8 = vector.load %arg2[%c128, %c0_8] : memref<1152x128xbf16, #tpu.memory_space<vmem>>, vector<128x128xbf16>
    %cst_9 = arith.constant dense<0.000000e+00> : vector<256x128xf32>
    %9 = tpu.matmul %7, %8, %cst_9 {dimension_numbers = #tpu.dot_dimension_numbers<[1], [0], [0], [1], [0, 0, 1, 1], [], []>} : vector<256x128xbf16>, vector<128x128xbf16>, vector<256x128xf32> -> vector<256x128xf32>
    %10 = arith.addf %4, %9 : vector<256x128xf32>
    %c0_10 = arith.constant 0 : index
    %c0_11 = arith.constant 0 : index
    %c2 = arith.constant 2 : index
    %c0_12 = arith.constant 0 : index
    %11 = vector.load %arg1[%c0_10, %c0_11, %c2, %c0_12] : memref<1x18x18x128xbf16, #tpu.memory_space<vmem>>, vector<1x16x16x128xbf16>
    %12 = vector.shape_cast %11 : vector<1x16x16x128xbf16> to vector<16x16x128xbf16>
    %13 = vector.shape_cast %12 : vector<16x16x128xbf16> to vector<256x128xbf16>
    %c256 = arith.constant 256 : index
    %c0_13 = arith.constant 0 : index
    %14 = vector.load %arg2[%c256, %c0_13] : memref<1152x128xbf16, #tpu.memory_space<vmem>>, vector<128x128xbf16>
    %cst_14 = arith.constant dense<0.000000e+00> : vector<256x128xf32>
    %15 = tpu.matmul %13, %14, %cst_14 {dimension_numbers = #tpu.dot_dimension_numbers<[1], [0], [0], [1], [0, 0, 1, 1], [], []>} : vector<256x128xbf16>, vector<128x128xbf16>, vector<256x128xf32> -> vector<256x128xf32>
    %16 = arith.addf %10, %15 : vector<256x128xf32>
    %c0_15 = arith.constant 0 : index
    %c1_16 = arith.constant 1 : index
    %c0_17 = arith.constant 0 : index
    %c0_18 = arith.constant 0 : index
    %17 = vector.load %arg1[%c0_15, %c1_16, %c0_17, %c0_18] : memref<1x18x18x128xbf16, #tpu.memory_space<vmem>>, vector<1x16x16x128xbf16>
    %18 = vector.shape_cast %17 : vector<1x16x16x128xbf16> to vector<16x16x128xbf16>
    %19 = vector.shape_cast %18 : vector<16x16x128xbf16> to vector<256x128xbf16>
    %c384 = arith.constant 384 : index
    %c0_19 = arith.constant 0 : index
    %20 = vector.load %arg2[%c384, %c0_19] : memref<1152x128xbf16, #tpu.memory_space<vmem>>, vector<128x128xbf16>
    %cst_20 = arith.constant dense<0.000000e+00> : vector<256x128xf32>
    %21 = tpu.matmul %19, %20, %cst_20 {dimension_numbers = #tpu.dot_dimension_numbers<[1], [0], [0], [1], [0, 0, 1, 1], [], []>} : vector<256x128xbf16>, vector<128x128xbf16>, vector<256x128xf32> -> vector<256x128xf32>
    %22 = arith.addf %16, %21 : vector<256x128xf32>
    %c0_21 = arith.constant 0 : index
    %c1_22 = arith.constant 1 : index
    %c1_23 = arith.constant 1 : index
    %c0_24 = arith.constant 0 : index
    %23 = vector.load %arg1[%c0_21, %c1_22, %c1_23, %c0_24] : memref<1x18x18x128xbf16, #tpu.memory_space<vmem>>, vector<1x16x16x128xbf16>
    %24 = vector.shape_cast %23 : vector<1x16x16x128xbf16> to vector<16x16x128xbf16>
    %25 = vector.shape_cast %24 : vector<16x16x128xbf16> to vector<256x128xbf16>
    %c512 = arith.constant 512 : index
    %c0_25 = arith.constant 0 : index
    %26 = vector.load %arg2[%c512, %c0_25] : memref<1152x128xbf16, #tpu.memory_space<vmem>>, vector<128x128xbf16>
    %cst_26 = arith.constant dense<0.000000e+00> : vector<256x128xf32>
    %27 = tpu.matmul %25, %26, %cst_26 {dimension_numbers = #tpu.dot_dimension_numbers<[1], [0], [0], [1], [0, 0, 1, 1], [], []>} : vector<256x128xbf16>, vector<128x128xbf16>, vector<256x128xf32> -> vector<256x128xf32>
    %28 = arith.addf %22, %27 : vector<256x128xf32>
    %c0_27 = arith.constant 0 : index
    %c1_28 = arith.constant 1 : index
    %c2_29 = arith.constant 2 : index
    %c0_30 = arith.constant 0 : index
    %29 = vector.load %arg1[%c0_27, %c1_28, %c2_29, %c0_30] : memref<1x18x18x128xbf16, #tpu.memory_space<vmem>>, vector<1x16x16x128xbf16>
    %30 = vector.shape_cast %29 : vector<1x16x16x128xbf16> to vector<16x16x128xbf16>
    %31 = vector.shape_cast %30 : vector<16x16x128xbf16> to vector<256x128xbf16>
    %c640 = arith.constant 640 : index
    %c0_31 = arith.constant 0 : index
    %32 = vector.load %arg2[%c640, %c0_31] : memref<1152x128xbf16, #tpu.memory_space<vmem>>, vector<128x128xbf16>
    %cst_32 = arith.constant dense<0.000000e+00> : vector<256x128xf32>
    %33 = tpu.matmul %31, %32, %cst_32 {dimension_numbers = #tpu.dot_dimension_numbers<[1], [0], [0], [1], [0, 0, 1, 1], [], []>} : vector<256x128xbf16>, vector<128x128xbf16>, vector<256x128xf32> -> vector<256x128xf32>
    %34 = arith.addf %28, %33 : vector<256x128xf32>
    %c0_33 = arith.constant 0 : index
    %c2_34 = arith.constant 2 : index
    %c0_35 = arith.constant 0 : index
    %c0_36 = arith.constant 0 : index
    %35 = vector.load %arg1[%c0_33, %c2_34, %c0_35, %c0_36] : memref<1x18x18x128xbf16, #tpu.memory_space<vmem>>, vector<1x16x16x128xbf16>
    %36 = vector.shape_cast %35 : vector<1x16x16x128xbf16> to vector<16x16x128xbf16>
    %37 = vector.shape_cast %36 : vector<16x16x128xbf16> to vector<256x128xbf16>
    %c768 = arith.constant 768 : index
    %c0_37 = arith.constant 0 : index
    %38 = vector.load %arg2[%c768, %c0_37] : memref<1152x128xbf16, #tpu.memory_space<vmem>>, vector<128x128xbf16>
    %cst_38 = arith.constant dense<0.000000e+00> : vector<256x128xf32>
    %39 = tpu.matmul %37, %38, %cst_38 {dimension_numbers = #tpu.dot_dimension_numbers<[1], [0], [0], [1], [0, 0, 1, 1], [], []>} : vector<256x128xbf16>, vector<128x128xbf16>, vector<256x128xf32> -> vector<256x128xf32>
    %40 = arith.addf %34, %39 : vector<256x128xf32>
    %c0_39 = arith.constant 0 : index
    %c2_40 = arith.constant 2 : index
    %c1_41 = arith.constant 1 : index
    %c0_42 = arith.constant 0 : index
    %41 = vector.load %arg1[%c0_39, %c2_40, %c1_41, %c0_42] : memref<1x18x18x128xbf16, #tpu.memory_space<vmem>>, vector<1x16x16x128xbf16>
    %42 = vector.shape_cast %41 : vector<1x16x16x128xbf16> to vector<16x16x128xbf16>
    %43 = vector.shape_cast %42 : vector<16x16x128xbf16> to vector<256x128xbf16>
    %c896 = arith.constant 896 : index
    %c0_43 = arith.constant 0 : index
    %44 = vector.load %arg2[%c896, %c0_43] : memref<1152x128xbf16, #tpu.memory_space<vmem>>, vector<128x128xbf16>
    %cst_44 = arith.constant dense<0.000000e+00> : vector<256x128xf32>
    %45 = tpu.matmul %43, %44, %cst_44 {dimension_numbers = #tpu.dot_dimension_numbers<[1], [0], [0], [1], [0, 0, 1, 1], [], []>} : vector<256x128xbf16>, vector<128x128xbf16>, vector<256x128xf32> -> vector<256x128xf32>
    %46 = arith.addf %40, %45 : vector<256x128xf32>
    %c0_45 = arith.constant 0 : index
    %c2_46 = arith.constant 2 : index
    %c2_47 = arith.constant 2 : index
    %c0_48 = arith.constant 0 : index
    %47 = vector.load %arg1[%c0_45, %c2_46, %c2_47, %c0_48] : memref<1x18x18x128xbf16, #tpu.memory_space<vmem>>, vector<1x16x16x128xbf16>
    %48 = vector.shape_cast %47 : vector<1x16x16x128xbf16> to vector<16x16x128xbf16>
    %49 = vector.shape_cast %48 : vector<16x16x128xbf16> to vector<256x128xbf16>
    %c1024 = arith.constant 1024 : index
    %c0_49 = arith.constant 0 : index
    %50 = vector.load %arg2[%c1024, %c0_49] : memref<1152x128xbf16, #tpu.memory_space<vmem>>, vector<128x128xbf16>
    %cst_50 = arith.constant dense<0.000000e+00> : vector<256x128xf32>
    %51 = tpu.matmul %49, %50, %cst_50 {dimension_numbers = #tpu.dot_dimension_numbers<[1], [0], [0], [1], [0, 0, 1, 1], [], []>} : vector<256x128xbf16>, vector<128x128xbf16>, vector<256x128xf32> -> vector<256x128xf32>
    %52 = arith.addf %46, %51 : vector<256x128xf32>
    %53 = arith.truncf %52 : vector<256x128xf32> to vector<256x128xbf16>
    %c0_51 = arith.constant 0 : index
    %c0_52 = arith.constant 0 : index
    %c0_53 = arith.constant 0 : index
    %54 = vector.load %arg4[%c0_51, %c0_52, %c0_53] : memref<1x256x128xbf16, #tpu.memory_space<vmem>>, vector<1x256x128xbf16>
    %55 = vector.shape_cast %54 : vector<1x256x128xbf16> to vector<256x128xbf16>
    %56 = vector.shape_cast %53 : vector<256x128xbf16> to vector<1x256x128xbf16>
    tpu.vector_store %arg4[%c0_51, %c0_52, %c0_53], %56 {strides = array<i32>} : memref<1x256x128xbf16, #tpu.memory_space<vmem>>, vector<1x256x128xbf16>,
    %cst_54 = arith.constant dense<0.000000e+00> : vector<128xf32>
    %57 = vector.multi_reduction <add>, %52, %cst_54 [0] : vector<256x128xf32> to vector<128xf32>
    %58 = vector.shape_cast %57 : vector<128xf32> to vector<1x128xf32>
    %59 = arith.mulf %52, %52 : vector<256x128xf32>
    %cst_55 = arith.constant dense<0.000000e+00> : vector<128xf32>
    %60 = vector.multi_reduction <add>, %59, %cst_55 [0] : vector<256x128xf32> to vector<128xf32>
    %61 = vector.shape_cast %60 : vector<128xf32> to vector<1x128xf32>
    %62 = tpu.concatenate %58, %61 in 0 : vector<1x128xf32>, vector<1x128xf32> -> vector<2x128xf32>
    %c0_56 = arith.constant 0 : index
    %c0_57 = arith.constant 0 : index
    %c0_58 = arith.constant 0 : index
    %63 = vector.load %arg5[%c0_56, %c0_57, %c0_58] : memref<1x2x128xf32, #tpu.memory_space<vmem>>, vector<1x2x128xf32>
    %64 = vector.shape_cast %63 : vector<1x2x128xf32> to vector<2x128xf32>
    %65 = vector.shape_cast %62 : vector<2x128xf32> to vector<1x2x128xf32>
    tpu.vector_store %arg5[%c0_56, %c0_57, %c0_58], %65 {strides = array<i32>} : memref<1x2x128xf32, #tpu.memory_space<vmem>>, vector<1x2x128xf32>,
    %c0_59 = arith.constant 0 : index
    %c1_60 = arith.constant 1 : index
    %c1_61 = arith.constant 1 : index
    %c0_62 = arith.constant 0 : index
    %66 = vector.load %arg1[%c0_59, %c1_60, %c1_61, %c0_62] : memref<1x18x18x128xbf16, #tpu.memory_space<vmem>>, vector<1x16x16x128xbf16>
    %67 = vector.shape_cast %66 : vector<1x16x16x128xbf16> to vector<16x16x128xbf16>
    %68 = vector.shape_cast %67 : vector<16x16x128xbf16> to vector<256x128xbf16>
    %c0_63 = arith.constant 0 : index
    %c0_64 = arith.constant 0 : index
    %69 = vector.load %arg3[%c0_63, %c0_64] : memref<128x128xbf16, #tpu.memory_space<vmem>>, vector<128x128xbf16>
    %cst_65 = arith.constant dense<0.000000e+00> : vector<256x128xf32>
    %70 = tpu.matmul %68, %69, %cst_65 {dimension_numbers = #tpu.dot_dimension_numbers<[1], [0], [0], [1], [0, 0, 1, 1], [], []>} : vector<256x128xbf16>, vector<128x128xbf16>, vector<256x128xf32> -> vector<256x128xf32>
    %71 = arith.truncf %70 : vector<256x128xf32> to vector<256x128xbf16>
    %c0_66 = arith.constant 0 : index
    %c0_67 = arith.constant 0 : index
    %c0_68 = arith.constant 0 : index
    %72 = vector.load %arg6[%c0_66, %c0_67, %c0_68] : memref<1x256x128xbf16, #tpu.memory_space<vmem>>, vector<1x256x128xbf16>
    %73 = vector.shape_cast %72 : vector<1x256x128xbf16> to vector<256x128xbf16>
    %74 = vector.shape_cast %71 : vector<256x128xbf16> to vector<1x256x128xbf16>
    tpu.vector_store %arg6[%c0_66, %c0_67, %c0_68], %74 {strides = array<i32>} : memref<1x256x128xbf16, #tpu.memory_space<vmem>>, vector<1x256x128xbf16>,
    %cst_69 = arith.constant dense<0.000000e+00> : vector<128xf32>
    %75 = vector.multi_reduction <add>, %70, %cst_69 [0] : vector<256x128xf32> to vector<128xf32>
    %76 = vector.shape_cast %75 : vector<128xf32> to vector<1x128xf32>
    %77 = arith.mulf %70, %70 : vector<256x128xf32>
    %cst_70 = arith.constant dense<0.000000e+00> : vector<128xf32>
    %78 = vector.multi_reduction <add>, %77, %cst_70 [0] : vector<256x128xf32> to vector<128xf32>
    %79 = vector.shape_cast %78 : vector<128xf32> to vector<1x128xf32>
    %80 = tpu.concatenate %76, %79 in 0 : vector<1x128xf32>, vector<1x128xf32> -> vector<2x128xf32>
    %c0_71 = arith.constant 0 : index
    %c0_72 = arith.constant 0 : index
    %c0_73 = arith.constant 0 : index
    %81 = vector.load %arg7[%c0_71, %c0_72, %c0_73] : memref<1x2x128xf32, #tpu.memory_space<vmem>>, vector<1x2x128xf32>
    %82 = vector.shape_cast %81 : vector<1x2x128xf32> to vector<2x128xf32>
    %83 = vector.shape_cast %80 : vector<2x128xf32> to vector<1x2x128xf32>
    tpu.vector_store %arg7[%c0_71, %c0_72, %c0_73], %83 {strides = array<i32>} : memref<1x2x128xf32, #tpu.memory_space<vmem>>, vector<1x2x128xf32>,
    return
  }
  func.func @transform_0(%arg0: i32) -> (i32, i32, i32, i32) {
    %c0_i32 = arith.constant 0 : i32
    %c0_i32_0 = arith.constant 0 : i32
    %c0_i32_1 = arith.constant 0 : i32
    %c0_i32_2 = arith.constant 0 : i32
    return %arg0, %c0_i32, %c0_i32_0, %c0_i32_1 : i32, i32, i32, i32
  }
  func.func @transform_1(%arg0: i32) -> (i32, i32) {
    %c0_i32 = arith.constant 0 : i32
    %c0_i32_0 = arith.constant 0 : i32
    %c0_i32_1 = arith.constant 0 : i32
    return %c0_i32, %c0_i32_0 : i32, i32
  }
  func.func @transform_2(%arg0: i32) -> (i32, i32) {
    %c0_i32 = arith.constant 0 : i32
    %c0_i32_0 = arith.constant 0 : i32
    %c0_i32_1 = arith.constant 0 : i32
    return %c0_i32, %c0_i32_0 : i32, i32
  }
  func.func @transform_3(%arg0: i32) -> (i32, i32, i32) {
    %c0_i32 = arith.constant 0 : i32
    %c0_i32_0 = arith.constant 0 : i32
    %c0_i32_1 = arith.constant 0 : i32
    return %arg0, %c0_i32, %c0_i32_0 : i32, i32, i32
  }
  func.func @transform_4(%arg0: i32) -> (i32, i32, i32) {
    %c0_i32 = arith.constant 0 : i32
    %c0_i32_0 = arith.constant 0 : i32
    %c0_i32_1 = arith.constant 0 : i32
    return %arg0, %c0_i32, %c0_i32_0 : i32, i32, i32
  }
  func.func @transform_5(%arg0: i32) -> (i32, i32, i32) {
    %c0_i32 = arith.constant 0 : i32
    %c0_i32_0 = arith.constant 0 : i32
    %c0_i32_1 = arith.constant 0 : i32
    return %arg0, %c0_i32, %c0_i32_0 : i32, i32, i32
  }
  func.func @transform_6(%arg0: i32) -> (i32, i32, i32) {
    %c0_i32 = arith.constant 0 : i32
    %c0_i32_0 = arith.constant 0 : i32
    %c0_i32_1 = arith.constant 0 : i32
    return %arg0, %c0_i32, %c0_i32_0 : i32, i32, i32
  }
}

module attributes {stable_mosaic.version = 11 : i64} {
  func.func @_conv2_kernel(%arg0: i32, %arg1: memref<1x16x16x128xbf16, #tpu.memory_space<vmem>>, %arg2: memref<1152x128xbf16, #tpu.memory_space<vmem>>, %arg3: memref<1x128xf32, #tpu.memory_space<vmem>>, %arg4: memref<1x128xf32, #tpu.memory_space<vmem>>, %arg5: memref<1x256x128xbf16, #tpu.memory_space<vmem>>, %arg6: memref<1x2x128xf32, #tpu.memory_space<vmem>>) attributes {dimension_semantics = [#tpu.dimension_semantics<parallel>], iteration_bounds = array<i64: 2>, scalar_prefetch = 0 : i64, scratch_operands = 0 : i64, tpu.core_type = #tpu.core_type<tc>, window_params = [{transform_indices = @transform_0, window_bounds = array<i64: 1, 16, 16, 128>}, {pipeline_mode = #tpu.pipeline_mode<synchronous>, transform_indices = @transform_1, window_bounds = array<i64: 1152, 128>}, {pipeline_mode = #tpu.pipeline_mode<synchronous>, transform_indices = @transform_2, window_bounds = array<i64: 1, 128>}, {pipeline_mode = #tpu.pipeline_mode<synchronous>, transform_indices = @transform_3, window_bounds = array<i64: 1, 128>}, {transform_indices = @transform_4, window_bounds = array<i64: 1, 256, 128>}, {transform_indices = @transform_5, window_bounds = array<i64: 1, 2, 128>}]} {
    %c0 = arith.constant 0 : index
    %c0_0 = arith.constant 0 : index
    %c0_1 = arith.constant 0 : index
    %c0_2 = arith.constant 0 : index
    %0 = vector.load %arg1[%c0, %c0_0, %c0_1, %c0_2] : memref<1x16x16x128xbf16, #tpu.memory_space<vmem>>, vector<1x16x16x128xbf16>
    %1 = vector.shape_cast %0 : vector<1x16x16x128xbf16> to vector<16x16x128xbf16>
    %2 = arith.extf %1 : vector<16x16x128xbf16> to vector<16x16x128xf32>
    %c0_3 = arith.constant 0 : index
    %c0_4 = arith.constant 0 : index
    %3 = vector.load %arg3[%c0_3, %c0_4] : memref<1x128xf32, #tpu.memory_space<vmem>>, vector<1x128xf32>
    %4 = vector.shape_cast %3 : vector<1x128xf32> to vector<1x1x128xf32>
    %5 = vector.broadcast %4 : vector<1x1x128xf32> to vector<16x16x128xf32>
    %6 = arith.mulf %2, %5 : vector<16x16x128xf32>
    %c0_5 = arith.constant 0 : index
    %c0_6 = arith.constant 0 : index
    %7 = vector.load %arg4[%c0_5, %c0_6] : memref<1x128xf32, #tpu.memory_space<vmem>>, vector<1x128xf32>
    %8 = vector.shape_cast %7 : vector<1x128xf32> to vector<1x1x128xf32>
    %9 = vector.broadcast %8 : vector<1x1x128xf32> to vector<16x16x128xf32>
    %10 = arith.addf %6, %9 : vector<16x16x128xf32>
    %cst = arith.constant 0.000000e+00 : f32
    %11 = vector.broadcast %cst : f32 to vector<16x16x128xf32>
    %12 = arith.maximumf %10, %11 : vector<16x16x128xf32>
    %13 = arith.truncf %12 : vector<16x16x128xf32> to vector<16x16x128xbf16>
    %cst_7 = arith.constant 0.000000e+00 : bf16
    %14 = vector.broadcast %cst_7 : bf16 to vector<1x16x128xbf16>
    %cst_8 = arith.constant 0.000000e+00 : bf16
    %15 = vector.broadcast %cst_8 : bf16 to vector<18x1x128xbf16>
    %16 = tpu.concatenate %14, %13, %14 in 0 : vector<1x16x128xbf16>, vector<16x16x128xbf16>, vector<1x16x128xbf16> -> vector<18x16x128xbf16>
    %17 = tpu.concatenate %15, %16, %15 in 1 : vector<18x1x128xbf16>, vector<18x16x128xbf16>, vector<18x1x128xbf16> -> vector<18x18x128xbf16>
    %18 = vector.extract_strided_slice %17 {offsets = [0, 0, 0], sizes = [16, 16, 128], strides = [1, 1, 1]} : vector<18x18x128xbf16> to vector<16x16x128xbf16>
    %19 = vector.shape_cast %18 : vector<16x16x128xbf16> to vector<256x128xbf16>
    %c0_9 = arith.constant 0 : index
    %c0_10 = arith.constant 0 : index
    %20 = vector.load %arg2[%c0_9, %c0_10] : memref<1152x128xbf16, #tpu.memory_space<vmem>>, vector<128x128xbf16>
    %cst_11 = arith.constant dense<0.000000e+00> : vector<256x128xf32>
    %21 = tpu.matmul %19, %20, %cst_11 {dimension_numbers = #tpu.dot_dimension_numbers<[1], [0], [0], [1], [0, 0, 1, 1], [], []>} : vector<256x128xbf16>, vector<128x128xbf16>, vector<256x128xf32> -> vector<256x128xf32>
    %22 = vector.extract_strided_slice %17 {offsets = [0, 1, 0], sizes = [16, 16, 128], strides = [1, 1, 1]} : vector<18x18x128xbf16> to vector<16x16x128xbf16>
    %23 = vector.shape_cast %22 : vector<16x16x128xbf16> to vector<256x128xbf16>
    %c128 = arith.constant 128 : index
    %c0_12 = arith.constant 0 : index
    %24 = vector.load %arg2[%c128, %c0_12] : memref<1152x128xbf16, #tpu.memory_space<vmem>>, vector<128x128xbf16>
    %cst_13 = arith.constant dense<0.000000e+00> : vector<256x128xf32>
    %25 = tpu.matmul %23, %24, %cst_13 {dimension_numbers = #tpu.dot_dimension_numbers<[1], [0], [0], [1], [0, 0, 1, 1], [], []>} : vector<256x128xbf16>, vector<128x128xbf16>, vector<256x128xf32> -> vector<256x128xf32>
    %26 = arith.addf %21, %25 : vector<256x128xf32>
    %27 = vector.extract_strided_slice %17 {offsets = [0, 2, 0], sizes = [16, 16, 128], strides = [1, 1, 1]} : vector<18x18x128xbf16> to vector<16x16x128xbf16>
    %28 = vector.shape_cast %27 : vector<16x16x128xbf16> to vector<256x128xbf16>
    %c256 = arith.constant 256 : index
    %c0_14 = arith.constant 0 : index
    %29 = vector.load %arg2[%c256, %c0_14] : memref<1152x128xbf16, #tpu.memory_space<vmem>>, vector<128x128xbf16>
    %cst_15 = arith.constant dense<0.000000e+00> : vector<256x128xf32>
    %30 = tpu.matmul %28, %29, %cst_15 {dimension_numbers = #tpu.dot_dimension_numbers<[1], [0], [0], [1], [0, 0, 1, 1], [], []>} : vector<256x128xbf16>, vector<128x128xbf16>, vector<256x128xf32> -> vector<256x128xf32>
    %31 = arith.addf %26, %30 : vector<256x128xf32>
    %32 = vector.extract_strided_slice %17 {offsets = [1, 0, 0], sizes = [16, 16, 128], strides = [1, 1, 1]} : vector<18x18x128xbf16> to vector<16x16x128xbf16>
    %33 = vector.shape_cast %32 : vector<16x16x128xbf16> to vector<256x128xbf16>
    %c384 = arith.constant 384 : index
    %c0_16 = arith.constant 0 : index
    %34 = vector.load %arg2[%c384, %c0_16] : memref<1152x128xbf16, #tpu.memory_space<vmem>>, vector<128x128xbf16>
    %cst_17 = arith.constant dense<0.000000e+00> : vector<256x128xf32>
    %35 = tpu.matmul %33, %34, %cst_17 {dimension_numbers = #tpu.dot_dimension_numbers<[1], [0], [0], [1], [0, 0, 1, 1], [], []>} : vector<256x128xbf16>, vector<128x128xbf16>, vector<256x128xf32> -> vector<256x128xf32>
    %36 = arith.addf %31, %35 : vector<256x128xf32>
    %37 = vector.extract_strided_slice %17 {offsets = [1, 1, 0], sizes = [16, 16, 128], strides = [1, 1, 1]} : vector<18x18x128xbf16> to vector<16x16x128xbf16>
    %38 = vector.shape_cast %37 : vector<16x16x128xbf16> to vector<256x128xbf16>
    %c512 = arith.constant 512 : index
    %c0_18 = arith.constant 0 : index
    %39 = vector.load %arg2[%c512, %c0_18] : memref<1152x128xbf16, #tpu.memory_space<vmem>>, vector<128x128xbf16>
    %cst_19 = arith.constant dense<0.000000e+00> : vector<256x128xf32>
    %40 = tpu.matmul %38, %39, %cst_19 {dimension_numbers = #tpu.dot_dimension_numbers<[1], [0], [0], [1], [0, 0, 1, 1], [], []>} : vector<256x128xbf16>, vector<128x128xbf16>, vector<256x128xf32> -> vector<256x128xf32>
    %41 = arith.addf %36, %40 : vector<256x128xf32>
    %42 = vector.extract_strided_slice %17 {offsets = [1, 2, 0], sizes = [16, 16, 128], strides = [1, 1, 1]} : vector<18x18x128xbf16> to vector<16x16x128xbf16>
    %43 = vector.shape_cast %42 : vector<16x16x128xbf16> to vector<256x128xbf16>
    %c640 = arith.constant 640 : index
    %c0_20 = arith.constant 0 : index
    %44 = vector.load %arg2[%c640, %c0_20] : memref<1152x128xbf16, #tpu.memory_space<vmem>>, vector<128x128xbf16>
    %cst_21 = arith.constant dense<0.000000e+00> : vector<256x128xf32>
    %45 = tpu.matmul %43, %44, %cst_21 {dimension_numbers = #tpu.dot_dimension_numbers<[1], [0], [0], [1], [0, 0, 1, 1], [], []>} : vector<256x128xbf16>, vector<128x128xbf16>, vector<256x128xf32> -> vector<256x128xf32>
    %46 = arith.addf %41, %45 : vector<256x128xf32>
    %47 = vector.extract_strided_slice %17 {offsets = [2, 0, 0], sizes = [16, 16, 128], strides = [1, 1, 1]} : vector<18x18x128xbf16> to vector<16x16x128xbf16>
    %48 = vector.shape_cast %47 : vector<16x16x128xbf16> to vector<256x128xbf16>
    %c768 = arith.constant 768 : index
    %c0_22 = arith.constant 0 : index
    %49 = vector.load %arg2[%c768, %c0_22] : memref<1152x128xbf16, #tpu.memory_space<vmem>>, vector<128x128xbf16>
    %cst_23 = arith.constant dense<0.000000e+00> : vector<256x128xf32>
    %50 = tpu.matmul %48, %49, %cst_23 {dimension_numbers = #tpu.dot_dimension_numbers<[1], [0], [0], [1], [0, 0, 1, 1], [], []>} : vector<256x128xbf16>, vector<128x128xbf16>, vector<256x128xf32> -> vector<256x128xf32>
    %51 = arith.addf %46, %50 : vector<256x128xf32>
    %52 = vector.extract_strided_slice %17 {offsets = [2, 1, 0], sizes = [16, 16, 128], strides = [1, 1, 1]} : vector<18x18x128xbf16> to vector<16x16x128xbf16>
    %53 = vector.shape_cast %52 : vector<16x16x128xbf16> to vector<256x128xbf16>
    %c896 = arith.constant 896 : index
    %c0_24 = arith.constant 0 : index
    %54 = vector.load %arg2[%c896, %c0_24] : memref<1152x128xbf16, #tpu.memory_space<vmem>>, vector<128x128xbf16>
    %cst_25 = arith.constant dense<0.000000e+00> : vector<256x128xf32>
    %55 = tpu.matmul %53, %54, %cst_25 {dimension_numbers = #tpu.dot_dimension_numbers<[1], [0], [0], [1], [0, 0, 1, 1], [], []>} : vector<256x128xbf16>, vector<128x128xbf16>, vector<256x128xf32> -> vector<256x128xf32>
    %56 = arith.addf %51, %55 : vector<256x128xf32>
    %57 = vector.extract_strided_slice %17 {offsets = [2, 2, 0], sizes = [16, 16, 128], strides = [1, 1, 1]} : vector<18x18x128xbf16> to vector<16x16x128xbf16>
    %58 = vector.shape_cast %57 : vector<16x16x128xbf16> to vector<256x128xbf16>
    %c1024 = arith.constant 1024 : index
    %c0_26 = arith.constant 0 : index
    %59 = vector.load %arg2[%c1024, %c0_26] : memref<1152x128xbf16, #tpu.memory_space<vmem>>, vector<128x128xbf16>
    %cst_27 = arith.constant dense<0.000000e+00> : vector<256x128xf32>
    %60 = tpu.matmul %58, %59, %cst_27 {dimension_numbers = #tpu.dot_dimension_numbers<[1], [0], [0], [1], [0, 0, 1, 1], [], []>} : vector<256x128xbf16>, vector<128x128xbf16>, vector<256x128xf32> -> vector<256x128xf32>
    %61 = arith.addf %56, %60 : vector<256x128xf32>
    %62 = arith.truncf %61 : vector<256x128xf32> to vector<256x128xbf16>
    %c0_28 = arith.constant 0 : index
    %c0_29 = arith.constant 0 : index
    %c0_30 = arith.constant 0 : index
    %63 = vector.load %arg5[%c0_28, %c0_29, %c0_30] : memref<1x256x128xbf16, #tpu.memory_space<vmem>>, vector<1x256x128xbf16>
    %64 = vector.shape_cast %63 : vector<1x256x128xbf16> to vector<256x128xbf16>
    %65 = vector.shape_cast %62 : vector<256x128xbf16> to vector<1x256x128xbf16>
    tpu.vector_store %arg5[%c0_28, %c0_29, %c0_30], %65 {strides = array<i32>} : memref<1x256x128xbf16, #tpu.memory_space<vmem>>, vector<1x256x128xbf16>,
    %cst_31 = arith.constant dense<0.000000e+00> : vector<128xf32>
    %66 = vector.multi_reduction <add>, %61, %cst_31 [0] : vector<256x128xf32> to vector<128xf32>
    %67 = vector.shape_cast %66 : vector<128xf32> to vector<1x128xf32>
    %68 = arith.mulf %61, %61 : vector<256x128xf32>
    %cst_32 = arith.constant dense<0.000000e+00> : vector<128xf32>
    %69 = vector.multi_reduction <add>, %68, %cst_32 [0] : vector<256x128xf32> to vector<128xf32>
    %70 = vector.shape_cast %69 : vector<128xf32> to vector<1x128xf32>
    %71 = tpu.concatenate %67, %70 in 0 : vector<1x128xf32>, vector<1x128xf32> -> vector<2x128xf32>
    %c0_33 = arith.constant 0 : index
    %c0_34 = arith.constant 0 : index
    %c0_35 = arith.constant 0 : index
    %72 = vector.load %arg6[%c0_33, %c0_34, %c0_35] : memref<1x2x128xf32, #tpu.memory_space<vmem>>, vector<1x2x128xf32>
    %73 = vector.shape_cast %72 : vector<1x2x128xf32> to vector<2x128xf32>
    %74 = vector.shape_cast %71 : vector<2x128xf32> to vector<1x2x128xf32>
    tpu.vector_store %arg6[%c0_33, %c0_34, %c0_35], %74 {strides = array<i32>} : memref<1x2x128xf32, #tpu.memory_space<vmem>>, vector<1x2x128xf32>,
    return
  }
  func.func @transform_0(%arg0: i32) -> (i32, i32, i32, i32) {
    %c0_i32 = arith.constant 0 : i32
    %c0_i32_0 = arith.constant 0 : i32
    %c0_i32_1 = arith.constant 0 : i32
    %c0_i32_2 = arith.constant 0 : i32
    return %arg0, %c0_i32, %c0_i32_0, %c0_i32_1 : i32, i32, i32, i32
  }
  func.func @transform_1(%arg0: i32) -> (i32, i32) {
    %c0_i32 = arith.constant 0 : i32
    %c0_i32_0 = arith.constant 0 : i32
    %c0_i32_1 = arith.constant 0 : i32
    return %c0_i32, %c0_i32_0 : i32, i32
  }
  func.func @transform_2(%arg0: i32) -> (i32, i32) {
    %c0_i32 = arith.constant 0 : i32
    %c0_i32_0 = arith.constant 0 : i32
    %c0_i32_1 = arith.constant 0 : i32
    return %c0_i32, %c0_i32_0 : i32, i32
  }
  func.func @transform_3(%arg0: i32) -> (i32, i32) {
    %c0_i32 = arith.constant 0 : i32
    %c0_i32_0 = arith.constant 0 : i32
    %c0_i32_1 = arith.constant 0 : i32
    return %c0_i32, %c0_i32_0 : i32, i32
  }
  func.func @transform_4(%arg0: i32) -> (i32, i32, i32) {
    %c0_i32 = arith.constant 0 : i32
    %c0_i32_0 = arith.constant 0 : i32
    %c0_i32_1 = arith.constant 0 : i32
    return %arg0, %c0_i32, %c0_i32_0 : i32, i32, i32
  }
  func.func @transform_5(%arg0: i32) -> (i32, i32, i32) {
    %c0_i32 = arith.constant 0 : i32
    %c0_i32_0 = arith.constant 0 : i32
    %c0_i32_1 = arith.constant 0 : i32
    return %arg0, %c0_i32, %c0_i32_0 : i32, i32, i32
  }
}

module attributes {stable_mosaic.version = 11 : i64} {
  func.func @_bn_add_relu_kernel(%arg0: i32, %arg1: memref<1x256x128xbf16, #tpu.memory_space<vmem>>, %arg2: memref<1x256x128xbf16, #tpu.memory_space<vmem>>, %arg3: memref<1x128xf32, #tpu.memory_space<vmem>>, %arg4: memref<1x128xf32, #tpu.memory_space<vmem>>, %arg5: memref<1x128xf32, #tpu.memory_space<vmem>>, %arg6: memref<1x128xf32, #tpu.memory_space<vmem>>, %arg7: memref<1x256x128xf32, #tpu.memory_space<vmem>>) attributes {dimension_semantics = [#tpu.dimension_semantics<parallel>], iteration_bounds = array<i64: 2>, scalar_prefetch = 0 : i64, scratch_operands = 0 : i64, tpu.core_type = #tpu.core_type<tc>, window_params = [{transform_indices = @transform_0, window_bounds = array<i64: 1, 256, 128>}, {transform_indices = @transform_1, window_bounds = array<i64: 1, 256, 128>}, {pipeline_mode = #tpu.pipeline_mode<synchronous>, transform_indices = @transform_2, window_bounds = array<i64: 1, 128>}, {pipeline_mode = #tpu.pipeline_mode<synchronous>, transform_indices = @transform_3, window_bounds = array<i64: 1, 128>}, {pipeline_mode = #tpu.pipeline_mode<synchronous>, transform_indices = @transform_4, window_bounds = array<i64: 1, 128>}, {pipeline_mode = #tpu.pipeline_mode<synchronous>, transform_indices = @transform_5, window_bounds = array<i64: 1, 128>}, {transform_indices = @transform_6, window_bounds = array<i64: 1, 256, 128>}]} {
    %c0 = arith.constant 0 : index
    %c0_0 = arith.constant 0 : index
    %c0_1 = arith.constant 0 : index
    %0 = vector.load %arg1[%c0, %c0_0, %c0_1] : memref<1x256x128xbf16, #tpu.memory_space<vmem>>, vector<1x256x128xbf16>
    %1 = vector.shape_cast %0 : vector<1x256x128xbf16> to vector<256x128xbf16>
    %2 = arith.extf %1 : vector<256x128xbf16> to vector<256x128xf32>
    %c0_2 = arith.constant 0 : index
    %c0_3 = arith.constant 0 : index
    %c0_4 = arith.constant 0 : index
    %3 = vector.load %arg2[%c0_2, %c0_3, %c0_4] : memref<1x256x128xbf16, #tpu.memory_space<vmem>>, vector<1x256x128xbf16>
    %4 = vector.shape_cast %3 : vector<1x256x128xbf16> to vector<256x128xbf16>
    %5 = arith.extf %4 : vector<256x128xbf16> to vector<256x128xf32>
    %c0_5 = arith.constant 0 : index
    %c0_6 = arith.constant 0 : index
    %6 = vector.load %arg3[%c0_5, %c0_6] : memref<1x128xf32, #tpu.memory_space<vmem>>, vector<1x128xf32>
    %7 = vector.broadcast %6 : vector<1x128xf32> to vector<256x128xf32>
    %8 = arith.mulf %2, %7 : vector<256x128xf32>
    %c0_7 = arith.constant 0 : index
    %c0_8 = arith.constant 0 : index
    %9 = vector.load %arg4[%c0_7, %c0_8] : memref<1x128xf32, #tpu.memory_space<vmem>>, vector<1x128xf32>
    %10 = vector.broadcast %9 : vector<1x128xf32> to vector<256x128xf32>
    %11 = arith.addf %8, %10 : vector<256x128xf32>
    %c0_9 = arith.constant 0 : index
    %c0_10 = arith.constant 0 : index
    %12 = vector.load %arg5[%c0_9, %c0_10] : memref<1x128xf32, #tpu.memory_space<vmem>>, vector<1x128xf32>
    %13 = vector.broadcast %12 : vector<1x128xf32> to vector<256x128xf32>
    %14 = arith.mulf %5, %13 : vector<256x128xf32>
    %c0_11 = arith.constant 0 : index
    %c0_12 = arith.constant 0 : index
    %15 = vector.load %arg6[%c0_11, %c0_12] : memref<1x128xf32, #tpu.memory_space<vmem>>, vector<1x128xf32>
    %16 = vector.broadcast %15 : vector<1x128xf32> to vector<256x128xf32>
    %17 = arith.addf %14, %16 : vector<256x128xf32>
    %18 = arith.addf %11, %17 : vector<256x128xf32>
    %cst = arith.constant 0.000000e+00 : f32
    %19 = vector.broadcast %cst : f32 to vector<256x128xf32>
    %20 = arith.maximumf %18, %19 : vector<256x128xf32>
    %c0_13 = arith.constant 0 : index
    %c0_14 = arith.constant 0 : index
    %c0_15 = arith.constant 0 : index
    %21 = vector.load %arg7[%c0_13, %c0_14, %c0_15] : memref<1x256x128xf32, #tpu.memory_space<vmem>>, vector<1x256x128xf32>
    %22 = vector.shape_cast %21 : vector<1x256x128xf32> to vector<256x128xf32>
    %23 = vector.shape_cast %20 : vector<256x128xf32> to vector<1x256x128xf32>
    tpu.vector_store %arg7[%c0_13, %c0_14, %c0_15], %23 {strides = array<i32>} : memref<1x256x128xf32, #tpu.memory_space<vmem>>, vector<1x256x128xf32>,
    return
  }
  func.func @transform_0(%arg0: i32) -> (i32, i32, i32) {
    %c0_i32 = arith.constant 0 : i32
    %c0_i32_0 = arith.constant 0 : i32
    %c0_i32_1 = arith.constant 0 : i32
    return %arg0, %c0_i32, %c0_i32_0 : i32, i32, i32
  }
  func.func @transform_1(%arg0: i32) -> (i32, i32, i32) {
    %c0_i32 = arith.constant 0 : i32
    %c0_i32_0 = arith.constant 0 : i32
    %c0_i32_1 = arith.constant 0 : i32
    return %arg0, %c0_i32, %c0_i32_0 : i32, i32, i32
  }
  func.func @transform_2(%arg0: i32) -> (i32, i32) {
    %c0_i32 = arith.constant 0 : i32
    %c0_i32_0 = arith.constant 0 : i32
    %c0_i32_1 = arith.constant 0 : i32
    return %c0_i32, %c0_i32_0 : i32, i32
  }
  func.func @transform_3(%arg0: i32) -> (i32, i32) {
    %c0_i32 = arith.constant 0 : i32
    %c0_i32_0 = arith.constant 0 : i32
    %c0_i32_1 = arith.constant 0 : i32
    return %c0_i32, %c0_i32_0 : i32, i32
  }
  func.func @transform_4(%arg0: i32) -> (i32, i32) {
    %c0_i32 = arith.constant 0 : i32
    %c0_i32_0 = arith.constant 0 : i32
    %c0_i32_1 = arith.constant 0 : i32
    return %c0_i32, %c0_i32_0 : i32, i32
  }
  func.func @transform_5(%arg0: i32) -> (i32, i32) {
    %c0_i32 = arith.constant 0 : i32
    %c0_i32_0 = arith.constant 0 : i32
    %c0_i32_1 = arith.constant 0 : i32
    return %c0_i32, %c0_i32_0 : i32, i32
  }
  func.func @transform_6(%arg0: i32) -> (i32, i32, i32) {
    %c0_i32 = arith.constant 0 : i32
    %c0_i32_0 = arith.constant 0 : i32
    %c0_i32_1 = arith.constant 0 : i32
    return %arg0, %c0_i32, %c0_i32_0 : i32, i32, i32
  }
}

</mosaic_0001>

<bundles_post_ra>
// kernel: basic_block_forward.5
= control target key start
LH: loop header
LB: loop body
LE: loop exit
PB: predicated region body
PF: predicated region fallthrough
CT: control target
= control target key end

     0   :  { %s2018_s0 = inlined_call_operand.hbm [shape: bf16[2,256,128], index: 0, kind: input, shape index: {}]   ;;  %s2019_s1 = inlined_call_operand.hbm [shape: bf16[2,256,128], index: 1, kind: input, shape index: {}]   ;;  %s2020_s2 = inlined_call_operand.hbm [shape: f32[1,128], index: 2, kind: input, shape index: {}]   ;;  %s2021_s3 = inlined_call_operand.hbm [shape: f32[1,128], index: 3, kind: input, shape index: {}]   ;;  %s2022_s4 = inlined_call_operand.hbm [shape: f32[1,128], index: 4, kind: input, shape index: {}]   ;;  %s2023_s5 = inlined_call_operand.hbm [shape: f32[1,128], index: 5, kind: input, shape index: {}]   ;;  %s2024_s6 = inlined_call_operand.hbm [shape: f32[2,256,128], index: 6, kind: output, shape index: {}]  }
   0x1   :  { %2028 = sst [smem:[#allocation20_spill]] %s2018_s0 }
   0x2   :  { %2029 = sst [smem:[#allocation21_spill]] %s2020_s2 }
   0x3   :  { %2030 = sst [smem:[#allocation22_spill]] %s2021_s3 }
   0x4   :  { %11 = vsyncpa [#allocation3], 0 }
   0x5   :  { %13 = vsyncpa [#allocation3 + $0x1], 0 }
   0x6   :  { %14 = vsyncpa [#allocation6], 0 }
   0x7   :  { %16 = vsyncpa [#allocation6 + $0x1], 0 }
   0x8   :  { %17 = vsyncpa [#allocation9], 0 }
   0x9   :  { %18 = vsyncpa [#allocation12], 0 }
   0xa   :  { %19 = vsyncpa [#allocation4], 0 }
   0xb   :  { %21 = vsyncpa [#allocation4 + $0x1], 0  ;;  %s1477_s21 = smov 0   ;;  %s1479_s22 = smov 0  }
   0xc   :  { %s1481_s23 = smov 0   ;;  %s1483_s24 = smov 0  }
   0xd LB: > { %s1498_s25 = sadd.s32 4294967295, %s1429_s24   ;;  %s888_s26 = sadd.s32 4294967294, %s1429_s24   ;;  %s1429_s24 = sphi %s1483_s24, %s2055_s24   ;;  %s1425_s23 = sphi %s1481_s23, %s2054_s23   ;;  %s1421_s22 = sphi %s1479_s22, %s2053_s22   ;;  %s1417_s21 = sphi %s1477_s21, %s2052_s21  }
   0xe   : > { %p47_p0 = scmp.ne.s32.totalorder %s1421_s22, %s1417_s21  ;;  %p2025_p1 = scmp.eq.s32.totalorder %s1498_s25, 0 }
   0xf   : > { %p187_p3 = scmp.eq.s32.totalorder %s888_s26, 1  ;;  %p889_p5 = scmp.ge.s32.totalorder %s1429_s24, 1 }
  0x10   : > { %p1507_p4 = por %p2025_p1, %p47_p0  ;;  %p194_p7 = scmp.lt.s32.totalorder %s1429_s24, 3 }
  0x11   : > { %p1512_p6 = por %p187_p3, %p47_p0  ;;  %s1431_s30 = smov [#allocation7]  }
  0x12   : > { %s2031_s27 = scalar_select %p1507_p4, 1, 0 }
  0x13   : > { %s2032_s28 = scalar_select %p1512_p6, 1, 0 }
  0x14   : > { %p1517_p8 = pnand %p889_p5, %p194_p7  ;;  %s207_s7 = sshll.u32 %s1431_s30, 4  ;;  %s208_s7 = int_to_ptr.vmem [resolvable:$true] %s207_s7 }
  0x15   : > { %s1432_s8 = smov [#allocation8]   ;;  %s1433_s11 = smov [#allocation10]  }
  0x16   : > { %s2033_s29 = scalar_select %p1517_p8, 1, 0 }
  0x17   : > { %p1101_p10 = pneg %p1517_p8  ;;  %s218_s9 = sshll.u32 %s1432_s8, 4  ;;  %s1530_s9 = int_to_ptr.vmem [resolvable:$true] %s218_s9 }
  0x18   : > { %s229_s12 = sshll.u32 %s1433_s11, 4  ;;  %s2035_s2 = sld [smem:[#allocation21_spill]]  ;;  %s1532_s12 = int_to_ptr.vmem [resolvable:$true] %s229_s12 }
  0x19   : > { %p1526_p11 = pnand %p1101_p10, %p2025_p1 }
  0x1b   : > { %p1542_p13 = pneg %p1526_p11 }
  0x1e   : > { %s1175_s15 = scalar_lea.hbm %s2035_s2, 16 }
  0x1f   : > { %p1176_p12 = scmp.ne.s32.totalorder %s2035_s2, %s1175_s15  ;;  %p1182_p5 = scmp.lt.u32.totalorder %s1175_s15, %s2035_s2 }
  0x21   : > { %p1178_p0 = pnand %p1542_p13, %p1176_p12 }
  0x23   : > { %p1179_p3 = pneg %p1178_p0 }
  0x25   : > { %p1184_p7 = pnand %p1182_p5, %p1179_p3 }
  0x27   : > { %1187 = shalt.err (!%p1184_p7)
}
  0x28   : > { %s1188_s26 = scalar_lea.vmem %s208_s7, 16  ;;  %s1195_s30 = scalar_lea.vmem %s208_s7, 32 }
  0x29   : > { %p1189_p10 = scmp.ne.s32.totalorder %s208_s7, %s1188_s26  ;;  %p1196_p2 = scmp.lt.s32.totalorder %s208_s7, %s208_s7 }
  0x2a   : > { %p1197_p6 = scmp.lt.s32.totalorder %s1195_s30, %s1188_s26 }
  0x2b   : > { %p1191_p9 = pnand %p1189_p10, %p1542_p13 }
  0x2c   : > { %p1198_p4 = por %p1197_p6, %p1196_p2 }
  0x2d   : > { %p1192_p1 = pneg %p1191_p9 }
  0x2f   : > { %p1199_p8 = pnand %p1198_p4, %p1192_p1 }
  0x31   : > { %1202 = shalt.err (!%p1199_p8)
}
  0x32   : > { %1104 = dma.hbm_to_vmem [thread:$0]  (!%p1526_p11), %s2035_s2, 16, %s208_s7, [#allocation6]  }
  0x33   : > { %s2037_s3 = sld [smem:[#allocation22_spill]] }
  0x39   : > { %s1203_s15 = scalar_lea.hbm %s2037_s3, 16 }
  0x3a   : > { %p1204_p9 = scmp.ne.s32.totalorder %s2037_s3, %s1203_s15  ;;  %p1210_p1 = scmp.lt.u32.totalorder %s1203_s15, %s2037_s3 }
  0x3c   : > { %p1206_p12 = pnand %p1204_p9, %p1542_p13 }
  0x3e   : > { %p1207_p2 = pneg %p1206_p12 }
  0x40   : > { %p1212_p4 = pnand %p1210_p1, %p1207_p2 }
  0x42   : > { %1215 = shalt.err (!%p1212_p4)
}
  0x43   : > { %s1216_s7 = scalar_lea.vmem %s1530_s9, 16  ;;  %s1223_s26 = scalar_lea.vmem %s1530_s9, 32 }
  0x44   : > { %p1217_p6 = scmp.ne.s32.totalorder %s1530_s9, %s1216_s7  ;;  %p1224_p3 = scmp.lt.s32.totalorder %s1530_s9, %s1530_s9 }
  0x45   : > { %p1225_p5 = scmp.lt.s32.totalorder %s1223_s26, %s1216_s7 }
  0x46   : > { %p1219_p8 = pnand %p1217_p6, %p1542_p13 }
  0x47   : > { %p1226_p7 = por %p1225_p5, %p1224_p3 }
  0x48   : > { %p1220_p0 = pneg %p1219_p8 }
  0x4a   : > { %p1227_p10 = pnand %p1226_p7, %p1220_p0 }
  0x4c   : > { %1230 = shalt.err (!%p1227_p10)
}
  0x4d   : > { %1107 = dma.hbm_to_vmem [thread:$0]  (!%p1526_p11), %s2037_s3, 16, %s1530_s9, [#allocation9]  }
  0x4e   : > { %s1231_s14 = scalar_lea.hbm %s2022_s4, 16 }
  0x4f   : > { %p1232_p9 = scmp.ne.s32.totalorder %s2022_s4, %s1231_s14  ;;  %p1238_p1 = scmp.lt.u32.totalorder %s1231_s14, %s2022_s4 }
  0x51   : > { %p1234_p12 = pnand %p1232_p9, %p1542_p13 }
  0x53   : > { %p1235_p2 = pneg %p1234_p12 }
  0x55   : > { %p1240_p4 = pnand %p1238_p1, %p1235_p2 }
  0x57   : > { %1243 = shalt.err (!%p1240_p4)
}
  0x58   : > { %s1244_s9 = scalar_lea.vmem %s1532_s12, 16  ;;  %s1251_s20 = scalar_lea.vmem %s1532_s12, 32 }
  0x59   : > { %p1245_p6 = scmp.ne.s32.totalorder %s1532_s12, %s1244_s9  ;;  %p1252_p3 = scmp.lt.s32.totalorder %s1532_s12, %s1532_s12 }
  0x5a   : > { %p1253_p5 = scmp.lt.s32.totalorder %s1251_s20, %s1244_s9 }
  0x5b   : > { %p1247_p8 = pnand %p1245_p6, %p1542_p13 }
  0x5c   : > { %p1254_p7 = por %p1253_p5, %p1252_p3 }
  0x5d   : > { %p1248_p0 = pneg %p1247_p8 }
  0x5f   : > { %p1255_p10 = pnand %p1254_p7, %p1248_p0 }
  0x61   : > { %1258 = shalt.err (!%p1255_p10)
}
  0x62   : > { %1110 = dma.hbm_to_vmem [thread:$0]  (!%p1526_p11), %s2022_s4, 16, %s1532_s12, [#allocation9]  }
  0x63   : > { %s1434_s30 = smov [#allocation11]   ;;  %s1259_s14 = scalar_lea.hbm %s2023_s5, 16 }
  0x64   : > { %s240_s8 = sshll.u32 %s1434_s30, 4  ;;  %p1260_p9 = scmp.ne.s32.totalorder %s2023_s5, %s1259_s14  ;;  %s241_s8 = int_to_ptr.vmem [resolvable:$true] %s240_s8 }
  0x65   : > { %p1266_p1 = scmp.lt.u32.totalorder %s1259_s14, %s2023_s5 }
  0x66   : > { %p1262_p12 = pnand %p1260_p9, %p1542_p13 }
  0x68   : > { %p1263_p2 = pneg %p1262_p12 }
  0x6a   : > { %p1268_p4 = pnand %p1266_p1, %p1263_p2 }
  0x6c   : > { %1271 = shalt.err (!%p1268_p4)
}
  0x6d   : > { %s1272_s12 = scalar_lea.vmem %s241_s8, 16  ;;  %s1279_s9 = scalar_lea.vmem %s241_s8, 32 }
  0x6e   : > { %p1273_p6 = scmp.ne.s32.totalorder %s241_s8, %s1272_s12  ;;  %p1280_p3 = scmp.lt.s32.totalorder %s241_s8, %s241_s8 }
  0x6f   : > { %p1281_p5 = scmp.lt.s32.totalorder %s1279_s9, %s1272_s12 }
  0x70   : > { %p1275_p8 = pnand %p1273_p6, %p1542_p13 }
  0x71   : > { %p1282_p7 = por %p1281_p5, %p1280_p3 }
  0x72   : > { %p1276_p0 = pneg %p1275_p8 }
  0x74   : > { %p1283_p10 = pnand %p1282_p7, %p1276_p0 }
  0x76   : > { %1286 = shalt.err (!%p1283_p10)
}
  0x77   : > { %1113 = dma.hbm_to_vmem [thread:$0]  (!%p1526_p11), %s2023_s5, 16, %s241_s8, [#allocation12]  }
  0x78   : > { %s1625_s18 = sadd.s32 1, %s1429_s24   ;;  %s34_s10 = sadd.s32 1, %s1425_s23 }
  0x79   : > { %s31_s26 = ssub.s32 %s1429_s24, %s1625_s18  ;;  %p41_p13 = scmp.ne.s32.totalorder %s1425_s23, %s1421_s22 }
  0x7a   : > { %p32_p9 = scmp.eq.s32.totalorder %s31_s26, 0  ;;  %p42_p12 = scmp.eq.s32.totalorder %s1429_s24, 0 }
  0x7b   : > { %p2038_p2 = scmp.eq.s32.totalorder %s1498_s25, 1  ;;  %p1129_p4 = scmp.lt.s32.totalorder %s1429_s24, 2 }
  0x7c   : > { %s1641_s11 = scalar_select %p32_p9, %s1425_s23, %s34_s10  }
  0x7d   : > { %p1635_p1 = por %p2038_p2, %p41_p13  ;;  %p43_p6 = por %p42_p12, %p41_p13 }
  0x7e   : > { %s251_s13 = sand.u32 1, %s1425_s23   ;;  %s918_s8 = sshll.u32 %s1429_s24, 11 }
  0x7f   : > { %s1644_s14 = sshll.u32 %s251_s13, 7  ;;  %s2040_s0 = sld [smem:[#allocation20_spill]] }
  0x80   : > { %s255_s19 = scalar_lea.vmem [#allocation2], %s1644_s14  ;;  %p1657_p11 = pnand %p1129_p4, %p43_p6 }
  0x81   : > { %s262_s12 = sshll.u32 %s255_s19, 4  ;;  %s1661_s20 = scalar_lea.sflag [#allocation3], %s251_s13  ;;  %s1655_s12 = int_to_ptr.vmem [resolvable:$true] %s262_s12 }
  0x82   : > { %p1289_p0 = pneg %p1657_p11 }
  0x85   : > { %s1652_s17 = scalar_lea.hbm %s2040_s0, %s918_s8  ;;  %s1292_s15 = scalar_lea.hbm %s2040_s0, 4096 }
  0x86   : > { %s1287_s7 = scalar_lea.hbm %s1652_s17, 2048  ;;  %p1293_p7 = scmp.lt.u32.totalorder %s1652_s17, %s2040_s0 }
  0x87   : > { %p1288_p8 = scmp.ne.s32.totalorder %s1652_s17, %s1287_s7  ;;  %p1294_p10 = scmp.lt.u32.totalorder %s1292_s15, %s1287_s7 }
  0x88   : > { %p1296_p9 = scmp.lt.u32.totalorder %s1287_s7, %s1652_s17 }
  0x89   : > { %p1290_p3 = pnand %p1289_p0, %p1288_p8  ;;  %p1295_p13 = por %p1294_p10, %p1293_p7 }
  0x8b   : > { %p1291_p5 = pneg %p1290_p3  ;;  %p1297_p12 = por %p1296_p9, %p1295_p13 }
  0x8d   : > { %p1298_p2 = pnand %p1297_p12, %p1291_p5 }
  0x8f   : > { %1301 = shalt.err (!%p1298_p2)
}
  0x90   : > { %s1302_s13 = scalar_lea.vmem %s1655_s12, 2048  ;;  %s1435_s10 = smov [#allocation2]  }
  0x91   : > { %p1303_p4 = scmp.ne.s32.totalorder %s1655_s12, %s1302_s13  ;;  %s1307_s26 = sshll.u32 %s1435_s10, 4  ;;  %s1308_s26 = int_to_ptr.vmem [resolvable:$false] %s1307_s26 }
  0x92   : > { %s1309_s16 = scalar_lea.vmem %s1308_s26, 4096  ;;  %p1310_p3 = scmp.lt.s32.totalorder %s1655_s12, %s1308_s26 }
  0x93   : > { %p1305_p6 = pnand %p1303_p4, %p1289_p0  ;;  %p1311_p7 = scmp.lt.s32.totalorder %s1309_s16, %s1302_s13 }
  0x95   : > { %p1306_p8 = pneg %p1305_p6  ;;  %p1312_p10 = por %p1311_p7, %p1310_p3 }
  0x97   : > { %p1313_p13 = pnand %p1312_p10, %p1306_p8 }
  0x99   : > { %1316 = shalt.err (!%p1313_p13)
}
  0x9a   : > { %s1436_s7 = smov 64   ;;  %s1437_s15 = smov 4  }
  0x9b   : > { %1117 = dma.hbm_to_vmem [thread:$0]  (!%p1657_p11), %s1652_s17, 2048, %s1655_s12, %s1661_s20, %s1436_s7, %s1436_s7, %s1437_s15  }
  0x9c   : > { %s1697_s10 = scalar_lea.hbm %s2019_s1, %s918_s8  ;;  %s276_s26 = scalar_lea.vmem [#allocation5], %s1644_s14 }
  0x9d   : > { %s283_s16 = sshll.u32 %s276_s26, 4  ;;  %s272_s0 = sand.u32 1, %s1429_s24   ;;  %s1700_s16 = int_to_ptr.vmem [resolvable:$true] %s283_s16 }
  0x9e   : > { %s1703_s2 = scalar_lea.sflag [#allocation6], %s272_s0  ;;  %s1317_s3 = scalar_lea.hbm %s1697_s10, 2048 }
  0x9f   : > { %p1318_p5 = scmp.ne.s32.totalorder %s1697_s10, %s1317_s3  ;;  %s1322_s12 = scalar_lea.hbm %s2019_s1, 4096 }
  0xa0   : > { %p1323_p2 = scmp.lt.u32.totalorder %s1697_s10, %s2019_s1  ;;  %p1324_p4 = scmp.lt.u32.totalorder %s1322_s12, %s1317_s3 }
  0xa1   : > { %p1320_p9 = pnand %p1318_p5, %p1289_p0  ;;  %p1326_p8 = scmp.lt.u32.totalorder %s1317_s3, %s1697_s10 }
  0xa2   : > { %p1325_p6 = por %p1324_p4, %p1323_p2 }
  0xa3   : > { %p1321_p12 = pneg %p1320_p9 }
  0xa4   : > { %p1327_p3 = por %p1326_p8, %p1325_p6 }
  0xa6   : > { %p1328_p7 = pnand %p1327_p3, %p1321_p12 }
  0xa8   : > { %1331 = shalt.err (!%p1328_p7)
}
  0xa9   : > { %s1332_s0 = scalar_lea.vmem %s1700_s16, 2048  ;;  %s1438_s14 = smov [#allocation5]  }
  0xaa   : > { %p1333_p10 = scmp.ne.s32.totalorder %s1700_s16, %s1332_s0  ;;  %s1337_s13 = sshll.u32 %s1438_s14, 4  ;;  %s1338_s13 = int_to_ptr.vmem [resolvable:$false] %s1337_s13 }
  0xab   : > { %s1339_s26 = scalar_lea.vmem %s1338_s13, 4096  ;;  %p1340_p9 = scmp.lt.s32.totalorder %s1700_s16, %s1338_s13 }
  0xac   : > { %p1335_p13 = pnand %p1333_p10, %p1289_p0  ;;  %p1341_p2 = scmp.lt.s32.totalorder %s1339_s26, %s1332_s0 }
  0xae   : > { %p1336_p5 = pneg %p1335_p13  ;;  %p1342_p4 = por %p1341_p2, %p1340_p9 }
  0xb0   : > { %p1343_p6 = pnand %p1342_p4, %p1336_p5 }
  0xb2   : > { %1346 = shalt.err (!%p1343_p6)
}
  0xb3   : > { %1120 = dma.hbm_to_vmem [thread:$0]  (!%p1657_p11), %s1697_s10, 2048, %s1700_s16, %s1703_s2, %s1436_s7, %s1436_s7, %s1437_s15  }
  0xb4   : > { %p2042_p0 = scmp.ne.s32.totalorder %s2033_s29, 0 }
  0xb5   : > { %s1735_s3 = sand.u32 (!%p2042_p0), 1, %s1421_s22   ;;  %p2043_p12 = scmp.ne.s32.totalorder (!%p2042_p0), %s2031_s27, 0 }
  0xb6   : > { %295 = sbr.rel (%p2042_p0) target bundleno = 288 (0x120), region = 44  ;;  %s902_s17 = sshll.u32 (!%p2042_p0), %s1735_s3, 7 }
  0xb7   : > { %s298_s8 = scalar_lea.sflag (!%p2042_p0), [#allocation3], %s1735_s3  ;;  %s1739_s12 = scalar_lea.vmem (!%p2042_p0), [#allocation2], %s902_s17 }
  0xbd   : > { %1392 = dma.done.wait (%p2043_p12), %s298_s8, 2048  }
  0xbe   : > { %1394 = vsyncadd (%p2043_p12), %s298_s8, 4294965248  ;;  %s306_s2 = sand.u32 1, %s1498_s25   ;;  %s1746_s9 = scalar_lea.vmem [#allocation5], %s902_s17 }
  0xbf   : > { %s307_s29 = scalar_lea.sflag [#allocation6], %s306_s2 }
  0xc0   : > { %1396 = dma.done.wait (%p2043_p12), %s307_s29, 2048  }
  0xc1   : > { %1398 = vsyncadd (%p2043_p12), %s307_s29, 4294965248  ;;  %p2044_p11 = scmp.eq.s32.totalorder %s1498_s25, 0 }
  0xc3   : > { %1400 = dma.done.wait (%p2044_p11), [#allocation6], 16   ;;  %p2045_p8 = pmov %p2044_p11 }
  0xc5   : > { %1402 = vsyncadd (%p2045_p8), [#allocation6], 4294967280  ;;  %p2046_p3 = pmov %p2045_p8 }
  0xc7   : > { %1404 = dma.done.wait (%p2046_p3), [#allocation9], 32   ;;  %p2047_p7 = pmov %p2046_p3 }
  0xc8   : > { %p2048_p10 = pmov %p2046_p3 }
  0xc9   : > { %1406 = vsyncadd (%p2047_p7), [#allocation9], 4294967264 }
  0xca   : > { %1408 = dma.done.wait (%p2048_p10), [#allocation12], 16   ;;  %p2049_p13 = pmov %p2046_p3 }
  0xcb   : > { %v922_v0 = vld [vmem:[%s1739_s12] sm:$0xff]   ;;  %v1049_v10 = vld [vmem:[%s1739_s12 + $0x8] sm:$0xff]   ;;  %v1050_v20 = vld [vmem:[%s1739_s12 + $0x10] sm:$0xff]   ;;  %s908_s27 = sshll.u32 %s1735_s3, 8  ;;  %s920_s15 = sshll.u32 %s1498_s25, 12 }
  0xcc   : > { %1410 = vsyncadd (%p2049_p13), [#allocation12], 4294967280  ;;  %v986_v1 = vld [vmem:[%s1746_s9] sm:$0xff]   ;;  %v923_v3 = vunpack.c.l.bf16 %v922_v0  ;;  %v924_v7 = vunpack.c.h.bf16 %v922_v0  ;;  %v1064_v11 = vld [vmem:[%s1746_s9 + $0x8] sm:$0xff]   ;;  %v927_v16 = vunpack.c.l.bf16 %v1049_v10  ;;  %v928_v18 = vunpack.c.h.bf16 %v1049_v10  ;;  %s1799_s7 = scalar_lea.vmem [#allocation13], %s908_s27  ;;  %s1970_s19 = scalar_lea.hbm %s2024_s6, %s920_s15 }
  0xcd   : > { %v1766_v2 = vld [vmem:[#allocation7] ss:$0 sm:$0xff]  ;;  %v987_v4 = vunpack.c.l.bf16 %v986_v1  ;;  %v1768_v5 = vld [vmem:[#allocation8] ss:$0 sm:$0xff]  ;;  %v1770_v6 = vld [vmem:[#allocation10] ss:$0 sm:$0xff]  ;;  %v988_v8 = vunpack.c.h.bf16 %v986_v1  ;;  %v991_v17 = vunpack.c.l.bf16 %v1064_v11  ;;  %v992_v19 = vunpack.c.h.bf16 %v1064_v11 }
  0xce   : > { %v1772_v9 = vld [vmem:[#allocation11] ss:$0 sm:$0xff]  ;;  %v495_v12 = vmul.f32 %v923_v3, %v1766_v2  ;;  %v496_v14 = vmul.f32 %v924_v7, %v1766_v2  ;;  %v1065_v21 = vld [vmem:[%s1746_s9 + $0x10] sm:$0xff]   ;;  %v497_v26 = vmul.f32 %v927_v16, %v1766_v2  ;;  %v498_v28 = vmul.f32 %v928_v18, %v1766_v2  ;;  %v1051_v38 = vld [vmem:[%s1739_s12 + $0x18] sm:$0xff]   ;;  %s754_s10 = sshll.u32 %s1799_s7, 4  ;;  %s741_s25 = scalar_lea.sflag [#allocation4], %s1735_s3  ;;  %s1972_s10 = int_to_ptr.vmem [resolvable:$true] %s754_s10 }
  0xcf   : > { %v573_v13 = vmul.f32 %v987_v4, %v1770_v6  ;;  %v574_v15 = vmul.f32 %v988_v8, %v1770_v6  ;;  %v575_v27 = vmul.f32 %v991_v17, %v1770_v6  ;;  %v576_v29 = vmul.f32 %v992_v19, %v1770_v6  ;;  %v1066_v39 = vld [vmem:[%s1746_s9 + $0x18] sm:$0xff]   ;;  %v1052_v52 = vld [vmem:[%s1739_s12 + $0x20] sm:$0xff]   ;;  %v1068_v19 = vld [vmem:[%s1746_s9 + $0x28] sm:$0xff]   ;;  %s1347_s0 = scalar_lea.vmem %s1972_s10, 4096  ;;  %s1439_s14 = smov [#allocation13]  }
  0xd0   : > { %v534_v22 = vadd.f32 %v1768_v5, %v495_v12  ;;  %v535_v24 = vadd.f32 %v1768_v5, %v496_v14  ;;  %v931_v32 = vunpack.c.l.bf16 %v1050_v20  ;;  %v995_v33 = vunpack.c.l.bf16 %v1065_v21  ;;  %v1067_v61 = vld [vmem:[%s1746_s9 + $0x20] sm:$0xff]   ;;  %v1053_v14 = vld [vmem:[%s1739_s12 + $0x28] sm:$0xff]   ;;  %p1348_p5 = scmp.ne.s32.totalorder %s1972_s10, %s1347_s0  ;;  %s1351_s13 = sshll.u32 %s1439_s14, 4  ;;  %s1352_s13 = int_to_ptr.vmem [resolvable:$false] %s1351_s13 }
  0xd1   : > { %v612_v23 = vadd.f32 %v1772_v9, %v573_v13  ;;  %v613_v25 = vadd.f32 %v1772_v9, %v574_v15  ;;  %v536_v34 = vadd.f32 %v1768_v5, %v497_v26  ;;  %v614_v35 = vadd.f32 %v1772_v9, %v575_v27  ;;  %s1353_s26 = scalar_lea.vmem %s1352_s13, 8192  ;;  %p1354_p4 = scmp.lt.s32.totalorder %s1972_s10, %s1352_s13 }
  0xd2   : > { %v537_v36 = vadd.f32 %v1768_v5, %v498_v28  ;;  %v615_v37 = vadd.f32 %v1772_v9, %v576_v29  ;;  %v499_v42 = vmul.f32 %v931_v32, %v1766_v2  ;;  %v577_v43 = vmul.f32 %v995_v33, %v1770_v6  ;;  %v1054_v32 = vld [vmem:[%s1739_s12 + $0x30] sm:$0xff]   ;;  %p1349_p9 = pnand %p1348_p5, %p1635_p1  ;;  %p1355_p6 = scmp.lt.s32.totalorder %s1353_s26, %s1347_s0 }
  0xd3   : > { %v644_v30 = vadd.f32 %v612_v23, %v534_v22  ;;  %v645_v31 = vadd.f32 %v613_v25, %v535_v24  ;;  %v646_v44 = vadd.f32 %v614_v35, %v536_v34  ;;  %v932_v46 = vunpack.c.h.bf16 %v1050_v20 }
  0xd4   : > { %v647_v45 = vadd.f32 %v615_v37, %v537_v36  ;;  %v996_v47 = vunpack.c.h.bf16 %v1065_v21  ;;  %v538_v48 = vadd.f32 %v1768_v5, %v499_v42  ;;  %v616_v49 = vadd.f32 %v1772_v9, %v577_v43  ;;  %v1069_v37 = vld [vmem:[%s1746_s9 + $0x30] sm:$0xff]   ;;  %p1350_p2 = pneg %p1349_p9  ;;  %p1356_p0 = por %p1355_p6, %p1354_p4 }
  0xd5   : > { %v676_v40 = vmax.f32 %v644_v30, 0.0  ;;  %v677_v41 = vmax.f32 %v645_v31, 0.0  ;;  %v935_v50 = vunpack.c.l.bf16 %v1051_v38  ;;  %v999_v51 = vunpack.c.l.bf16 %v1066_v39 }
  0xd6   : > { %v678_v53 = vmax.f32 %v646_v44, 0.0  ;;  %v679_v54 = vmax.f32 %v647_v45, 0.0  ;;  %v500_v55 = vmul.f32 %v932_v46, %v1766_v2  ;;  %v578_v56 = vmul.f32 %v996_v47, %v1770_v6  ;;  %v1055_v46 = vld [vmem:[%s1739_s12 + $0x38] sm:$0xff]   ;;  %p1357_p12 = pnand %p1356_p0, %p1350_p2 }
  0xd7   : > { %708 = vst [vmem:[%s1799_s7] sm:$0xff] %v676_v40  ;;  %709 = vst [vmem:[%s1799_s7 + $0x8] sm:$0xff] %v677_v41  ;;  %v648_v57 = vadd.f32 %v616_v49, %v538_v48  ;;  %v501_v58 = vmul.f32 %v935_v50, %v1766_v2  ;;  %v579_v59 = vmul.f32 %v999_v51, %v1770_v6  ;;  %v936_v60 = vunpack.c.h.bf16 %v1051_v38  ;;  %v1070_v51 = vld [vmem:[%s1746_s9 + $0x38] sm:$0xff]  }
  0xd8   : > { %710 = vst [vmem:[%s1799_s7 + $0x10] sm:$0xff] %v678_v53  ;;  %711 = vst [vmem:[%s1799_s7 + $0x18] sm:$0xff] %v679_v54  ;;  %v539_v62 = vadd.f32 %v1768_v5, %v500_v55  ;;  %v617_v63 = vadd.f32 %v1772_v9, %v578_v56  ;;  %v1000_v0 = vunpack.c.h.bf16 %v1066_v39  ;;  %v939_v1 = vunpack.c.l.bf16 %v1052_v52 }
  0xd9   : > { %v680_v3 = vmax.f32 %v648_v57, 0.0  ;;  %v540_v4 = vadd.f32 %v1768_v5, %v501_v58  ;;  %v618_v7 = vadd.f32 %v1772_v9, %v579_v59  ;;  %v502_v8 = vmul.f32 %v936_v60, %v1766_v2 }
  0xda   : > { %v649_v10 = vadd.f32 %v617_v63, %v539_v62  ;;  %v580_v11 = vmul.f32 %v1000_v0, %v1770_v6  ;;  %v1003_v12 = vunpack.c.l.bf16 %v1067_v61  ;;  %v503_v13 = vmul.f32 %v939_v1, %v1766_v2 }
  0xdb   : > { %712 = vst [vmem:[%s1799_s7 + $0x20] sm:$0xff] %v680_v3  ;;  %v650_v15 = vadd.f32 %v618_v7, %v540_v4  ;;  %v541_v16 = vadd.f32 %v1768_v5, %v502_v8  ;;  %v940_v17 = vunpack.c.h.bf16 %v1052_v52  ;;  %v1004_v18 = vunpack.c.h.bf16 %v1067_v61  ;;  %v1056_v7 = vld [vmem:[%s1739_s12 + $0x40] sm:$0xff]  }
  0xdc   : > { %v681_v20 = vmax.f32 %v649_v10, 0.0  ;;  %v619_v21 = vadd.f32 %v1772_v9, %v580_v11  ;;  %v542_v22 = vadd.f32 %v1768_v5, %v503_v13  ;;  %v581_v23 = vmul.f32 %v1003_v12, %v1770_v6  ;;  %v1071_v8 = vld [vmem:[%s1746_s9 + $0x40] sm:$0xff]  }
  0xdd   : > { %v682_v24 = vmax.f32 %v650_v15, 0.0  ;;  %v504_v25 = vmul.f32 %v940_v17, %v1766_v2  ;;  %v582_v26 = vmul.f32 %v1004_v18, %v1770_v6  ;;  %v943_v27 = vunpack.c.l.bf16 %v1053_v14 }
  0xde   : > { %713 = vst [vmem:[%s1799_s7 + $0x28] sm:$0xff] %v681_v20  ;;  %v651_v28 = vadd.f32 %v619_v21, %v541_v16  ;;  %v620_v29 = vadd.f32 %v1772_v9, %v581_v23  ;;  %v1007_v30 = vunpack.c.l.bf16 %v1068_v19  ;;  %v944_v31 = vunpack.c.h.bf16 %v1053_v14 }
  0xdf   : > { %714 = vst [vmem:[%s1799_s7 + $0x30] sm:$0xff] %v682_v24  ;;  %v543_v33 = vadd.f32 %v1768_v5, %v504_v25  ;;  %v621_v34 = vadd.f32 %v1772_v9, %v582_v26  ;;  %v505_v35 = vmul.f32 %v943_v27, %v1766_v2  ;;  %v1008_v36 = vunpack.c.h.bf16 %v1068_v19  ;;  %v1057_v26 = vld [vmem:[%s1739_s12 + $0x48] sm:$0xff]  }
  0xe0   : > { %v683_v38 = vmax.f32 %v651_v28, 0.0  ;;  %v652_v39 = vadd.f32 %v620_v29, %v542_v22  ;;  %v583_v40 = vmul.f32 %v1007_v30, %v1770_v6  ;;  %v506_v41 = vmul.f32 %v944_v31, %v1766_v2  ;;  %v1072_v31 = vld [vmem:[%s1746_s9 + $0x48] sm:$0xff]  }
  0xe1   : > { %v653_v42 = vadd.f32 %v621_v34, %v543_v33  ;;  %v544_v43 = vadd.f32 %v1768_v5, %v505_v35  ;;  %v584_v44 = vmul.f32 %v1008_v36, %v1770_v6  ;;  %v947_v45 = vunpack.c.l.bf16 %v1054_v32 }
  0xe2   : > { %715 = vst [vmem:[%s1799_s7 + $0x38] sm:$0xff] %v683_v38  ;;  %v684_v47 = vmax.f32 %v652_v39, 0.0  ;;  %v622_v48 = vadd.f32 %v1772_v9, %v583_v40  ;;  %v545_v49 = vadd.f32 %v1768_v5, %v506_v41  ;;  %v1011_v50 = vunpack.c.l.bf16 %v1069_v37  ;;  %v1058_v40 = vld [vmem:[%s1739_s12 + $0x50] sm:$0xff]  }
  0xe3   : > { %v685_v52 = vmax.f32 %v653_v42, 0.0  ;;  %v623_v53 = vadd.f32 %v1772_v9, %v584_v44  ;;  %v507_v54 = vmul.f32 %v947_v45, %v1766_v2  ;;  %v948_v55 = vunpack.c.h.bf16 %v1054_v32 }
  0xe4   : > { %716 = vst [vmem:[%s1799_s7 + $0x40] sm:$0xff] %v684_v47  ;;  %v654_v56 = vadd.f32 %v622_v48, %v544_v43  ;;  %v585_v57 = vmul.f32 %v1011_v50, %v1770_v6  ;;  %v1012_v58 = vunpack.c.h.bf16 %v1069_v37  ;;  %v951_v59 = vunpack.c.l.bf16 %v1055_v46 }
  0xe5   : > { %717 = vst [vmem:[%s1799_s7 + $0x48] sm:$0xff] %v685_v52  ;;  %v655_v60 = vadd.f32 %v623_v53, %v545_v49  ;;  %v546_v61 = vadd.f32 %v1768_v5, %v507_v54  ;;  %v508_v62 = vmul.f32 %v948_v55, %v1766_v2  ;;  %v1015_v63 = vunpack.c.l.bf16 %v1070_v51  ;;  %v1073_v49 = vld [vmem:[%s1746_s9 + $0x50] sm:$0xff]  }
  0xe6   : > { %v686_v0 = vmax.f32 %v654_v56, 0.0  ;;  %v624_v1 = vadd.f32 %v1772_v9, %v585_v57  ;;  %v586_v3 = vmul.f32 %v1012_v58, %v1770_v6  ;;  %v509_v4 = vmul.f32 %v951_v59, %v1766_v2 }
  0xe7   : > { %v687_v10 = vmax.f32 %v655_v60, 0.0  ;;  %v547_v11 = vadd.f32 %v1768_v5, %v508_v62  ;;  %v587_v12 = vmul.f32 %v1015_v63, %v1770_v6  ;;  %v952_v13 = vunpack.c.h.bf16 %v1055_v46  ;;  %v1059_v62 = vld [vmem:[%s1739_s12 + $0x58] sm:$0xff]  }
  0xe8   : > { %718 = vst [vmem:[%s1799_s7 + $0x50] sm:$0xff] %v686_v0  ;;  %v656_v14 = vadd.f32 %v624_v1, %v546_v61  ;;  %v625_v15 = vadd.f32 %v1772_v9, %v586_v3  ;;  %v548_v16 = vadd.f32 %v1768_v5, %v509_v4  ;;  %v1016_v17 = vunpack.c.h.bf16 %v1070_v51  ;;  %v1074_v4 = vld [vmem:[%s1746_s9 + $0x58] sm:$0xff]  }
  0xe9   : > { %719 = vst [vmem:[%s1799_s7 + $0x58] sm:$0xff] %v687_v10  ;;  %v626_v18 = vadd.f32 %v1772_v9, %v587_v12  ;;  %v510_v19 = vmul.f32 %v952_v13, %v1766_v2  ;;  %v955_v20 = vunpack.c.l.bf16 %v1056_v7  ;;  %v1019_v21 = vunpack.c.l.bf16 %v1071_v8 }
  0xea   : > { %v688_v22 = vmax.f32 %v656_v14, 0.0  ;;  %v657_v23 = vadd.f32 %v625_v15, %v547_v11  ;;  %v588_v24 = vmul.f32 %v1016_v17, %v1770_v6  ;;  %v956_v25 = vunpack.c.h.bf16 %v1056_v7 }
  0xeb   : > { %v658_v27 = vadd.f32 %v626_v18, %v548_v16  ;;  %v549_v28 = vadd.f32 %v1768_v5, %v510_v19  ;;  %v511_v29 = vmul.f32 %v955_v20, %v1766_v2  ;;  %v589_v30 = vmul.f32 %v1019_v21, %v1770_v6  ;;  %v1060_v20 = vld [vmem:[%s1739_s12 + $0x60] sm:$0xff]  }
  0xec   : > { %720 = vst [vmem:[%s1799_s7 + $0x60] sm:$0xff] %v688_v22  ;;  %v689_v32 = vmax.f32 %v657_v23, 0.0  ;;  %v627_v33 = vadd.f32 %v1772_v9, %v588_v24  ;;  %v1020_v34 = vunpack.c.h.bf16 %v1071_v8  ;;  %v512_v35 = vmul.f32 %v956_v25, %v1766_v2  ;;  %v1075_v21 = vld [vmem:[%s1746_s9 + $0x60] sm:$0xff]  }
  0xed   : > { %v690_v36 = vmax.f32 %v658_v27, 0.0  ;;  %v550_v37 = vadd.f32 %v1768_v5, %v511_v29  ;;  %v628_v38 = vadd.f32 %v1772_v9, %v589_v30  ;;  %v959_v39 = vunpack.c.l.bf16 %v1057_v26 }
  0xee   : > { %721 = vst [vmem:[%s1799_s7 + $0x68] sm:$0xff] %v689_v32  ;;  %v659_v41 = vadd.f32 %v627_v33, %v549_v28  ;;  %v551_v42 = vadd.f32 %v1768_v5, %v512_v35  ;;  %v590_v43 = vmul.f32 %v1020_v34, %v1770_v6  ;;  %v1023_v44 = vunpack.c.l.bf16 %v1072_v31  ;;  %v1061_v34 = vld [vmem:[%s1739_s12 + $0x68] sm:$0xff]  }
  0xef   : > { %722 = vst [vmem:[%s1799_s7 + $0x70] sm:$0xff] %v690_v36  ;;  %v660_v45 = vadd.f32 %v628_v38, %v550_v37  ;;  %v513_v46 = vmul.f32 %v959_v39, %v1766_v2  ;;  %v960_v47 = vunpack.c.h.bf16 %v1057_v26  ;;  %v1024_v48 = vunpack.c.h.bf16 %v1072_v31  ;;  %v1076_v39 = vld [vmem:[%s1746_s9 + $0x68] sm:$0xff]  }
  0xf0   : > { %v691_v50 = vmax.f32 %v659_v41, 0.0  ;;  %v629_v51 = vadd.f32 %v1772_v9, %v590_v43  ;;  %v591_v52 = vmul.f32 %v1023_v44, %v1770_v6  ;;  %v963_v53 = vunpack.c.l.bf16 %v1058_v40 }
  0xf1   : > { %v692_v54 = vmax.f32 %v660_v45, 0.0  ;;  %v552_v55 = vadd.f32 %v1768_v5, %v513_v46  ;;  %v514_v56 = vmul.f32 %v960_v47, %v1766_v2  ;;  %v592_v57 = vmul.f32 %v1024_v48, %v1770_v6 }
  0xf2   : > { %723 = vst [vmem:[%s1799_s7 + $0x78] sm:$0xff] %v691_v50  ;;  %v661_v58 = vadd.f32 %v629_v51, %v551_v42  ;;  %v630_v59 = vadd.f32 %v1772_v9, %v591_v52  ;;  %v1027_v60 = vunpack.c.l.bf16 %v1073_v49  ;;  %v515_v61 = vmul.f32 %v963_v53, %v1766_v2 }
  0xf3   : > { %724 = vst [vmem:[%s1799_s7 + $0x80] sm:$0xff] %v692_v54  ;;  %v553_v63 = vadd.f32 %v1768_v5, %v514_v56  ;;  %v631_v0 = vadd.f32 %v1772_v9, %v592_v57  ;;  %v964_v1 = vunpack.c.h.bf16 %v1058_v40  ;;  %v1028_v3 = vunpack.c.h.bf16 %v1073_v49  ;;  %v1062_v56 = vld [vmem:[%s1739_s12 + $0x70] sm:$0xff]  }
  0xf4   : > { %v693_v7 = vmax.f32 %v661_v58, 0.0  ;;  %v662_v8 = vadd.f32 %v630_v59, %v552_v55  ;;  %v554_v10 = vadd.f32 %v1768_v5, %v515_v61  ;;  %v593_v11 = vmul.f32 %v1027_v60, %v1770_v6  ;;  %v1077_v61 = vld [vmem:[%s1746_s9 + $0x70] sm:$0xff]  }
  0xf5   : > { %v663_v12 = vadd.f32 %v631_v0, %v553_v63  ;;  %v516_v13 = vmul.f32 %v964_v1, %v1766_v2  ;;  %v594_v14 = vmul.f32 %v1028_v3, %v1770_v6  ;;  %v967_v15 = vunpack.c.l.bf16 %v1059_v62 }
  0xf6   : > { %725 = vst [vmem:[%s1799_s7 + $0x88] sm:$0xff] %v693_v7  ;;  %v694_v16 = vmax.f32 %v662_v8, 0.0  ;;  %v632_v17 = vadd.f32 %v1772_v9, %v593_v11  ;;  %v1031_v18 = vunpack.c.l.bf16 %v1074_v4  ;;  %v968_v19 = vunpack.c.h.bf16 %v1059_v62 }
  0xf7   : > { %v695_v22 = vmax.f32 %v663_v12, 0.0  ;;  %v555_v23 = vadd.f32 %v1768_v5, %v516_v13  ;;  %v633_v24 = vadd.f32 %v1772_v9, %v594_v14  ;;  %v517_v25 = vmul.f32 %v967_v15, %v1766_v2  ;;  %v1063_v14 = vld [vmem:[%s1739_s12 + $0x78] sm:$0xff]  }
  0xf8   : > { %726 = vst [vmem:[%s1799_s7 + $0x90] sm:$0xff] %v694_v16  ;;  %v664_v26 = vadd.f32 %v632_v17, %v554_v10  ;;  %v595_v27 = vmul.f32 %v1031_v18, %v1770_v6  ;;  %v1032_v28 = vunpack.c.h.bf16 %v1074_v4  ;;  %v518_v29 = vmul.f32 %v968_v19, %v1766_v2  ;;  %v1078_v19 = vld [vmem:[%s1746_s9 + $0x78] sm:$0xff]  }
  0xf9   : > { %727 = vst [vmem:[%s1799_s7 + $0x98] sm:$0xff] %v695_v22  ;;  %v665_v30 = vadd.f32 %v633_v24, %v555_v23  ;;  %v556_v31 = vadd.f32 %v1768_v5, %v517_v25  ;;  %v971_v32 = vunpack.c.l.bf16 %v1060_v20  ;;  %v1035_v33 = vunpack.c.l.bf16 %v1075_v21 }
  0xfa   : > { %v696_v35 = vmax.f32 %v664_v26, 0.0  ;;  %v634_v36 = vadd.f32 %v1772_v9, %v595_v27  ;;  %v557_v37 = vadd.f32 %v1768_v5, %v518_v29  ;;  %v596_v38 = vmul.f32 %v1032_v28, %v1770_v6 }
  0xfb   : > { %v697_v40 = vmax.f32 %v665_v30, 0.0  ;;  %v519_v41 = vmul.f32 %v971_v32, %v1766_v2  ;;  %v597_v42 = vmul.f32 %v1035_v33, %v1770_v6  ;;  %v972_v43 = vunpack.c.h.bf16 %v1060_v20 }
  0xfc   : > { %728 = vst [vmem:[%s1799_s7 + $0xa0] sm:$0xff] %v696_v35  ;;  %v666_v44 = vadd.f32 %v634_v36, %v556_v31  ;;  %v635_v45 = vadd.f32 %v1772_v9, %v596_v38  ;;  %v1036_v46 = vunpack.c.h.bf16 %v1075_v21  ;;  %v975_v47 = vunpack.c.l.bf16 %v1061_v34 }
  0xfd   : > { %729 = vst [vmem:[%s1799_s7 + $0xa8] sm:$0xff] %v697_v40  ;;  %v558_v48 = vadd.f32 %v1768_v5, %v519_v41  ;;  %v636_v49 = vadd.f32 %v1772_v9, %v597_v42  ;;  %v520_v50 = vmul.f32 %v972_v43, %v1766_v2  ;;  %v1039_v51 = vunpack.c.l.bf16 %v1076_v39 }
  0xfe   : > { %v698_v52 = vmax.f32 %v666_v44, 0.0  ;;  %v667_v53 = vadd.f32 %v635_v45, %v557_v37  ;;  %v598_v54 = vmul.f32 %v1036_v46, %v1770_v6  ;;  %v521_v55 = vmul.f32 %v975_v47, %v1766_v2 }
  0xff   : > { %v668_v57 = vadd.f32 %v636_v49, %v558_v48  ;;  %v559_v58 = vadd.f32 %v1768_v5, %v520_v50  ;;  %v599_v59 = vmul.f32 %v1039_v51, %v1770_v6  ;;  %v976_v60 = vunpack.c.h.bf16 %v1061_v34 }
 0x100   : > { %730 = vst [vmem:[%s1799_s7 + $0xb0] sm:$0xff] %v698_v52  ;;  %v699_v62 = vmax.f32 %v667_v53, 0.0  ;;  %v637_v63 = vadd.f32 %v1772_v9, %v598_v54  ;;  %v560_v0 = vadd.f32 %v1768_v5, %v521_v55  ;;  %v1040_v1 = vunpack.c.h.bf16 %v1076_v39 }
 0x101   : > { %v700_v3 = vmax.f32 %v668_v57, 0.0  ;;  %v638_v4 = vadd.f32 %v1772_v9, %v599_v59  ;;  %v522_v7 = vmul.f32 %v976_v60, %v1766_v2  ;;  %v979_v8 = vunpack.c.l.bf16 %v1062_v56 }
 0x102   : > { %731 = vst [vmem:[%s1799_s7 + $0xb8] sm:$0xff] %v699_v62  ;;  %v669_v10 = vadd.f32 %v637_v63, %v559_v58  ;;  %v600_v11 = vmul.f32 %v1040_v1, %v1770_v6  ;;  %v1043_v12 = vunpack.c.l.bf16 %v1077_v61  ;;  %v980_v13 = vunpack.c.h.bf16 %v1062_v56 }
 0x103   : > { %732 = vst [vmem:[%s1799_s7 + $0xc0] sm:$0xff] %v700_v3  ;;  %v670_v15 = vadd.f32 %v638_v4, %v560_v0  ;;  %v561_v16 = vadd.f32 %v1768_v5, %v522_v7  ;;  %v523_v17 = vmul.f32 %v979_v8, %v1766_v2  ;;  %v1044_v18 = vunpack.c.h.bf16 %v1077_v61 }
 0x104   : > { %v701_v20 = vmax.f32 %v669_v10, 0.0  ;;  %v639_v21 = vadd.f32 %v1772_v9, %v600_v11  ;;  %v601_v22 = vmul.f32 %v1043_v12, %v1770_v6  ;;  %v524_v23 = vmul.f32 %v980_v13, %v1766_v2 }
 0x105   : > { %v702_v24 = vmax.f32 %v670_v15, 0.0  ;;  %v562_v25 = vadd.f32 %v1768_v5, %v523_v17  ;;  %v602_v26 = vmul.f32 %v1044_v18, %v1770_v6  ;;  %v983_v27 = vunpack.c.l.bf16 %v1063_v14 }
 0x106   : > { %733 = vst [vmem:[%s1799_s7 + $0xc8] sm:$0xff] %v701_v20  ;;  %v671_v28 = vadd.f32 %v639_v21, %v561_v16  ;;  %v640_v29 = vadd.f32 %v1772_v9, %v601_v22  ;;  %v563_v30 = vadd.f32 %v1768_v5, %v524_v23  ;;  %v1047_v31 = vunpack.c.l.bf16 %v1078_v19 }
 0x107   : > { %734 = vst [vmem:[%s1799_s7 + $0xd0] sm:$0xff] %v702_v24  ;;  %v641_v32 = vadd.f32 %v1772_v9, %v602_v26  ;;  %v525_v33 = vmul.f32 %v983_v27, %v1766_v2  ;;  %v984_v34 = vunpack.c.h.bf16 %v1063_v14  ;;  %v1048_v35 = vunpack.c.h.bf16 %v1078_v19 }
 0x108   : > { %v703_v36 = vmax.f32 %v671_v28, 0.0  ;;  %v672_v37 = vadd.f32 %v640_v29, %v562_v25  ;;  %v603_v38 = vmul.f32 %v1047_v31, %v1770_v6 }
 0x109   : > { %v673_v39 = vadd.f32 %v641_v32, %v563_v30  ;;  %v564_v40 = vadd.f32 %v1768_v5, %v525_v33  ;;  %v526_v41 = vmul.f32 %v984_v34, %v1766_v2  ;;  %v604_v42 = vmul.f32 %v1048_v35, %v1770_v6 }
 0x10a   : > { %735 = vst [vmem:[%s1799_s7 + $0xd8] sm:$0xff] %v703_v36  ;;  %v704_v43 = vmax.f32 %v672_v37, 0.0  ;;  %v642_v44 = vadd.f32 %v1772_v9, %v603_v38 }
 0x10b   : > { %v705_v45 = vmax.f32 %v673_v39, 0.0  ;;  %v565_v46 = vadd.f32 %v1768_v5, %v526_v41  ;;  %v643_v47 = vadd.f32 %v1772_v9, %v604_v42 }
 0x10c   : > { %736 = vst [vmem:[%s1799_s7 + $0xe0] sm:$0xff] %v704_v43  ;;  %v674_v48 = vadd.f32 %v642_v44, %v564_v40 }
 0x10d   : > { %737 = vst [vmem:[%s1799_s7 + $0xe8] sm:$0xff] %v705_v45  ;;  %v675_v2 = vadd.f32 %v643_v47, %v565_v46 }
 0x10e   : > { %v706_v6 = vmax.f32 %v674_v48, 0.0 }
 0x10f   : > { %v707_v5 = vmax.f32 %v675_v2, 0.0 }
 0x110   : > { %738 = vst [vmem:[%s1799_s7 + $0xf0] sm:$0xff] %v706_v6 }
 0x111   : > { %739 = vst [vmem:[%s1799_s7 + $0xf8] sm:$0xff] %v707_v5 }
 0x112   : > { %1360 = shalt.err (!%p1357_p12)
}
 0x113   : > { %s1361_s17 = scalar_lea.hbm %s1970_s19, 4096  ;;  %s1365_s2 = scalar_lea.hbm %s2024_s6, 8192 }
 0x114   : > { %p1362_p11 = scmp.ne.s32.totalorder %s1970_s19, %s1361_s17  ;;  %p1366_p7 = scmp.lt.u32.totalorder %s1970_s19, %s2024_s6 }
 0x115   : > { %p1367_p10 = scmp.lt.u32.totalorder %s1365_s2, %s1361_s17  ;;  %p1369_p5 = scmp.lt.u32.totalorder %s1361_s17, %s1970_s19 }
 0x116   : > { %p1363_p8 = pnand %p1362_p11, %p1635_p1 }
 0x117   : > { %p1368_p13 = por %p1367_p10, %p1366_p7 }
 0x118   : > { %p1364_p3 = pneg %p1363_p8 }
 0x119   : > { %p1370_p9 = por %p1369_p5, %p1368_p13 }
 0x11b   : > { %p1371_p2 = pnand %p1370_p9, %p1364_p3 }
 0x11d   : > { %1374 = shalt.err (!%p1371_p2)
}
 0x11e   : > { %s1440_s27 = smov 128   ;;  %s1441_s7 = smov 8  }
 0x11f   : > { %1099 = dma.vmem_to_hbm [thread:$0]  (%p1635_p1), %s1972_s10, 4096, %s1970_s19, %s741_s25, %s1440_s27, %s1440_s27, %s1441_s7  }
 0x120 PF: > { %s769_s15 = sand.u32 1, %s1417_s21   ;;  %p2050_p4 = scmp.ne.s32.totalorder %s2032_s28, 0 }
 0x121   : > { %p2051_p6 = scmp.ge.s32.totalorder %s1429_s24, 2  ;;  %s770_s16 = scalar_lea.sflag [#allocation4], %s769_s15 }
 0x123   : > { %p1122_p0 = pnand %p2051_p6, %p2050_p4 }
 0x125   : > { %1412 = dma.done.wait (!%p1122_p0), %s770_s16, 4096  }
 0x126   : > { %1414 = vsyncadd (!%p1122_p0), %s770_s16, 4294963200  ;;  %p24_p12 = scmp.ge.s32.totalorder %s1625_s18, 4   ;;  %s2052_s21 = smov %s1421_s22 }
 0x127   : > { %s2053_s22 = smov %s1425_s23  ;;  %s2054_s23 = smov %s1641_s11 }
 0x128   : > { %s2055_s24 = smov %s1625_s18  ;;  %26 = sbr.rel (!%p24_p12) target bundleno = 13 (0xd), region = 118 }
 0x12f   :  { %775 = vsyncpa [#allocation3], 1 }
 0x130   :  { %777 = vsyncpa [#allocation3 + $0x1], 1 }
 0x131   :  { %778 = vsyncpa [#allocation6], 1 }
 0x132   :  { %780 = vsyncpa [#allocation6 + $0x1], 1 }
 0x133   :  { %781 = vsyncpa [#allocation9], 1 }
 0x134   :  { %782 = vsyncpa [#allocation12], 1 }
 0x135   :  { %783 = vsyncpa [#allocation4], 1 }
 0x136   :  { %785 = vsyncpa [#allocation4 + $0x1], 1 }

// kernel: basic_block_forward.4
= control target key start
LH: loop header
LB: loop body
LE: loop exit
PB: predicated region body
PF: predicated region fallthrough
CT: control target
= control target key end

     0   :  { %11 = vsyncpa [#allocation3], 0  ;;  %s6284_s0 = inlined_call_operand.hbm [shape: bf16[2,16,16,128], index: 0, kind: input, shape index: {}]   ;;  %s6285_s1 = inlined_call_operand.hbm [shape: bf16[1152,128], index: 1, kind: input, shape index: {}]   ;;  %s6286_s2 = inlined_call_operand.hbm [shape: f32[1,128], index: 2, kind: input, shape index: {}]   ;;  %s6287_s3 = inlined_call_operand.hbm [shape: f32[1,128], index: 3, kind: input, shape index: {}]   ;;  %s6288_s4 = inlined_call_operand.hbm [shape: bf16[2,256,128], index: 4, kind: output, shape index: {0}]   ;;  %s6289_s5 = inlined_call_operand.hbm [shape: f32[2,2,128], index: 5, kind: output, shape index: {1}]  }
   0x1   :  { %13 = vsyncpa [#allocation3 + $0x1], 0 }
   0x2   :  { %14 = vsyncpa [#allocation6], 0 }
   0x3   :  { %15 = vsyncpa [#allocation9], 0 }
   0x4   :  { %16 = vsyncpa [#allocation4], 0 }
   0x5   :  { %18 = vsyncpa [#allocation4 + $0x1], 0 }
   0x6   :  { %19 = vsyncpa [#allocation12], 0 }
   0x7   :  { %21 = vsyncpa [#allocation12 + $0x1], 0  ;;  %s5373_s18 = smov 0   ;;  %s5375_s19 = smov 0  }
   0x8   :  { %s5377_s20 = smov 0   ;;  %s5379_s21 = smov 0  }
   0x9 LB: > { %s5394_s22 = sadd.s32 4294967295, %s5330_s21   ;;  %s3684_s23 = sadd.s32 4294967294, %s5330_s21   ;;  %s5330_s21 = sphi %s5379_s21, %s6333_s21   ;;  %s5326_s20 = sphi %s5377_s20, %s6332_s20   ;;  %s5322_s19 = sphi %s5375_s19, %s6331_s19   ;;  %s5318_s18 = sphi %s5373_s18, %s6330_s18  }
   0xa   : > { %p47_p0 = scmp.ne.s32.totalorder %s5322_s19, %s5318_s18  ;;  %p6290_p1 = scmp.eq.s32.totalorder %s5394_s22, 0 }
   0xb   : > { %p140_p3 = scmp.eq.s32.totalorder %s3684_s23, 1  ;;  %p3685_p5 = scmp.ge.s32.totalorder %s5330_s21, 1 }
   0xc   : > { %p5403_p4 = por %p6290_p1, %p47_p0  ;;  %p173_p7 = scmp.lt.s32.totalorder %s5330_s21, 3 }
   0xd   : > { %p5408_p6 = por %p140_p3, %p47_p0  ;;  %s5332_s27 = smov [#allocation5]  }
   0xe   : > { %s6302_s24 = scalar_select %p5403_p4, 1, 0 }
   0xf   : > { %s6303_s25 = scalar_select %p5408_p6, 1, 0 }
  0x10   : > { %p5413_p8 = pnand %p3685_p5, %p173_p7  ;;  %s185_s28 = sshll.u32 %s5332_s27, 4  ;;  %s5417_s28 = int_to_ptr.vmem [resolvable:$true] %s185_s28 }
  0x11   : > { %s5333_s30 = smov [#allocation7]   ;;  %s5334_s7 = smov [#allocation8]  }
  0x12   : > { %s6304_s26 = scalar_select %p5413_p8, 1, 0 }
  0x13   : > { %p4959_p9 = pneg %p5413_p8  ;;  %s199_s6 = sshll.u32 %s5333_s30, 4  ;;  %s5428_s6 = int_to_ptr.vmem [resolvable:$true] %s199_s6 }
  0x14   : > { %s5430_s8 = sshll.u32 %s5334_s7, 4  ;;  %s5110_s11 = scalar_lea.hbm %s6285_s1, 9216  ;;  %s211_s8 = int_to_ptr.vmem [resolvable:$true] %s5430_s8 }
  0x15   : > { %p5424_p11 = pnand %p4959_p9, %p6290_p1  ;;  %p5111_p12 = scmp.ne.s32.totalorder %s6285_s1, %s5110_s11 }
  0x16   : > { %p5117_p5 = scmp.lt.u32.totalorder %s5110_s11, %s6285_s1 }
  0x17   : > { %p5440_p13 = pneg %p5424_p11 }
  0x19   : > { %p5113_p0 = pnand %p5440_p13, %p5111_p12 }
  0x1b   : > { %p5114_p3 = pneg %p5113_p0 }
  0x1d   : > { %p5119_p7 = pnand %p5117_p5, %p5114_p3 }
  0x1f   : > { %5122 = shalt.err (!%p5119_p7)
}
  0x20   : > { %s5123_s17 = scalar_lea.vmem %s5417_s28, 9216  ;;  %p5131_p2 = scmp.lt.s32.totalorder %s5417_s28, %s5417_s28 }
  0x21   : > { %p5124_p9 = scmp.ne.s32.totalorder %s5417_s28, %s5123_s17  ;;  %p5132_p6 = scmp.lt.s32.totalorder %s5123_s17, %s5123_s17 }
  0x23   : > { %p5126_p10 = pnand %p5124_p9, %p5440_p13  ;;  %p5133_p12 = por %p5132_p6, %p5131_p2 }
  0x25   : > { %p5127_p1 = pneg %p5126_p10 }
  0x27   : > { %p5134_p0 = pnand %p5133_p12, %p5127_p1 }
  0x29   : > { %5137 = shalt.err (!%p5134_p0)
}
  0x2a   : > { %s5335_s23 = smov 64   ;;  %s5336_s27 = smov 4  }
  0x2b   : > { %4962 = dma.hbm_to_vmem [thread:$0]  (!%p5424_p11), %s6285_s1, 9216, %s5417_s28, [#allocation6], %s5335_s23, %s5335_s23, %s5336_s27  }
  0x2c   : > { %s5138_s11 = scalar_lea.hbm %s6286_s2, 16 }
  0x2d   : > { %p5139_p1 = scmp.ne.s32.totalorder %s6286_s2, %s5138_s11  ;;  %p5145_p10 = scmp.lt.u32.totalorder %s5138_s11, %s6286_s2 }
  0x2f   : > { %p5141_p2 = pnand %p5139_p1, %p5440_p13 }
  0x31   : > { %p5142_p6 = pneg %p5141_p2 }
  0x33   : > { %p5147_p3 = pnand %p5145_p10, %p5142_p6 }
  0x35   : > { %5150 = shalt.err (!%p5147_p3)
}
  0x36   : > { %s5151_s28 = scalar_lea.vmem %s5428_s6, 16  ;;  %s5158_s17 = scalar_lea.vmem %s5428_s6, 32 }
  0x37   : > { %p5152_p5 = scmp.ne.s32.totalorder %s5428_s6, %s5151_s28  ;;  %p5159_p12 = scmp.lt.s32.totalorder %s5428_s6, %s5428_s6 }
  0x38   : > { %p5160_p0 = scmp.lt.s32.totalorder %s5158_s17, %s5151_s28 }
  0x39   : > { %p5154_p7 = pnand %p5152_p5, %p5440_p13 }
  0x3a   : > { %p5161_p1 = por %p5160_p0, %p5159_p12 }
  0x3b   : > { %p5155_p9 = pneg %p5154_p7 }
  0x3d   : > { %p5162_p2 = pnand %p5161_p1, %p5155_p9 }
  0x3f   : > { %5165 = shalt.err (!%p5162_p2)
}
  0x40   : > { %4965 = dma.hbm_to_vmem [thread:$0]  (!%p5424_p11), %s6286_s2, 16, %s5428_s6, [#allocation6]  }
  0x41   : > { %s5166_s11 = scalar_lea.hbm %s6287_s3, 16 }
  0x42   : > { %p5167_p6 = scmp.ne.s32.totalorder %s6287_s3, %s5166_s11  ;;  %p5173_p5 = scmp.lt.u32.totalorder %s5166_s11, %s6287_s3 }
  0x44   : > { %p5169_p10 = pnand %p5167_p6, %p5440_p13 }
  0x46   : > { %p5170_p3 = pneg %p5169_p10 }
  0x48   : > { %p5175_p7 = pnand %p5173_p5, %p5170_p3 }
  0x4a   : > { %5178 = shalt.err (!%p5175_p7)
}
  0x4b   : > { %s5179_s28 = scalar_lea.vmem %s211_s8, 16  ;;  %s5186_s6 = scalar_lea.vmem %s211_s8, 32 }
  0x4c   : > { %p5180_p9 = scmp.ne.s32.totalorder %s211_s8, %s5179_s28  ;;  %p5187_p1 = scmp.lt.s32.totalorder %s211_s8, %s211_s8 }
  0x4d   : > { %p5188_p2 = scmp.lt.s32.totalorder %s5186_s6, %s5179_s28 }
  0x4e   : > { %p5182_p12 = pnand %p5180_p9, %p5440_p13 }
  0x4f   : > { %p5189_p4 = por %p5188_p2, %p5187_p1 }
  0x50   : > { %p5183_p0 = pneg %p5182_p12 }
  0x52   : > { %p5190_p8 = pnand %p5189_p4, %p5183_p0 }
  0x54   : > { %5193 = shalt.err (!%p5190_p8)
}
  0x55   : > { %4968 = dma.hbm_to_vmem [thread:$0]  (!%p5424_p11), %s6287_s3, 16, %s211_s8, [#allocation9]  }
  0x56   : > { %s5508_s14 = sadd.s32 1, %s5330_s21   ;;  %s34_s29 = sadd.s32 1, %s5326_s20 }
  0x57   : > { %s31_s7 = ssub.s32 %s5330_s21, %s5508_s14  ;;  %p41_p8 = scmp.ne.s32.totalorder %s5326_s20, %s5322_s19 }
  0x58   : > { %p32_p4 = scmp.eq.s32.totalorder %s31_s7, 0  ;;  %p42_p13 = scmp.eq.s32.totalorder %s5330_s21, 0 }
  0x59   : > { %p4983_p6 = scmp.lt.s32.totalorder %s5330_s21, 2  ;;  %p6307_p3 = scmp.eq.s32.totalorder %s5394_s22, 1 }
  0x5a   : > { %s5518_s9 = scalar_select %p32_p4, %s5326_s20, %s34_s29  }
  0x5b   : > { %p43_p10 = por %p42_p13, %p41_p8  ;;  %p5522_p5 = por %p6307_p3, %p41_p8 }
  0x5c   : > { %s221_s11 = sand.u32 1, %s5326_s20   ;;  %s3813_s12 = sshll.u32 %s5330_s21, 11 }
  0x5d   : > { %s3690_s8 = sshll.u32 %s221_s11, 7  ;;  %s5531_s16 = scalar_lea.hbm %s6284_s0, %s3813_s12 }
  0x5e   : > { %s225_s28 = scalar_lea.vmem [#allocation2], %s3690_s8  ;;  %p5533_p11 = pnand %p4983_p6, %p43_p10 }
  0x5f   : > { %s232_s6 = sshll.u32 %s225_s28, 4  ;;  %s5539_s30 = scalar_lea.sflag [#allocation3], %s221_s11  ;;  %s5537_s6 = int_to_ptr.vmem [resolvable:$true] %s232_s6 }
  0x60   : > { %s5194_s7 = scalar_lea.hbm %s5531_s16, 2048  ;;  %p5196_p9 = pneg %p5533_p11 }
  0x61   : > { %p5195_p7 = scmp.ne.s32.totalorder %s5531_s16, %s5194_s7  ;;  %s5199_s8 = scalar_lea.hbm %s6284_s0, 4096 }
  0x62   : > { %p5200_p1 = scmp.lt.u32.totalorder %s5531_s16, %s6284_s0  ;;  %p5201_p2 = scmp.lt.u32.totalorder %s5199_s8, %s5194_s7 }
  0x63   : > { %p5197_p12 = pnand %p5196_p9, %p5195_p7  ;;  %p5203_p8 = scmp.lt.u32.totalorder %s5194_s7, %s5531_s16 }
  0x64   : > { %p5202_p4 = por %p5201_p2, %p5200_p1 }
  0x65   : > { %p5198_p0 = pneg %p5197_p12 }
  0x66   : > { %p5204_p13 = por %p5203_p8, %p5202_p4 }
  0x68   : > { %p5205_p6 = pnand %p5204_p13, %p5198_p0 }
  0x6a   : > { %5208 = shalt.err (!%p5205_p6)
}
  0x6b   : > { %s5209_s11 = scalar_lea.vmem %s5537_s6, 2048  ;;  %s5337_s28 = smov [#allocation2]  }
  0x6c   : > { %p5210_p10 = scmp.ne.s32.totalorder %s5537_s6, %s5209_s11  ;;  %s5214_s29 = sshll.u32 %s5337_s28, 4  ;;  %s5215_s29 = int_to_ptr.vmem [resolvable:$false] %s5214_s29 }
  0x6d   : > { %s5216_s12 = scalar_lea.vmem %s5215_s29, 4096  ;;  %p5217_p12 = scmp.lt.s32.totalorder %s5537_s6, %s5215_s29 }
  0x6e   : > { %p5212_p3 = pnand %p5210_p10, %p5196_p9  ;;  %p5218_p1 = scmp.lt.s32.totalorder %s5216_s12, %s5209_s11 }
  0x70   : > { %p5213_p7 = pneg %p5212_p3  ;;  %p5219_p2 = por %p5218_p1, %p5217_p12 }
  0x72   : > { %p5220_p4 = pnand %p5219_p2, %p5213_p7 }
  0x74   : > { %5223 = shalt.err (!%p5220_p4)
}
  0x75   : > { %4972 = dma.hbm_to_vmem [thread:$0]  (!%p5533_p11), %s5531_s16, 2048, %s5537_s6, %s5539_s30, %s5335_s23, %s5335_s23, %s5336_s27  }
  0x76   : > { %p6310_p9 = scmp.ne.s32.totalorder %s6304_s26, 0 }
  0x78   : > { %244 = sbr.rel (%p6310_p9) target bundleno = 734 (0x2de), region = 36 }
  0x7f   : > { %s5573_s7 = sand.u32 1, %s5322_s19   ;;  %p6311_p0 = scmp.ne.s32.totalorder %s6302_s24, 0 }
  0x80   : > { %s3694_s8 = sshll.u32 %s5573_s7, 7  ;;  %s247_s13 = scalar_lea.sflag [#allocation3], %s5573_s7 }
  0x81   : > { %s5579_s17 = scalar_lea.vmem [#allocation2], %s3694_s8 }
  0x82   : > { %5297 = dma.done.wait (%p6311_p0), %s247_s13, 2048  }
  0x83   : > { %5299 = vsyncadd (%p6311_p0), %s247_s13, 4294965248  ;;  %p6312_p11 = scmp.eq.s32.totalorder %s5394_s22, 0 }
  0x85   : > { %5301 = dma.done.wait (%p6312_p11), [#allocation6], 9232   ;;  %p6313_p8 = pmov %p6312_p11 }
  0x87   : > { %5303 = vsyncadd (%p6313_p8), [#allocation6], 4294958064  ;;  %p6314_p13 = pmov %p6313_p8 }
  0x88   : > { %p6315_p6 = pmov %p6313_p8 }
  0x89   : > { %5305 = dma.done.wait (%p6314_p13), [#allocation9], 16  }
  0x8a   : > { %5307 = vsyncadd (%p6315_p6), [#allocation9], 4294967280  ;;  %vm638_vm0 = vcmask 1040384   ;;  %vm639_vm1 = vsmask.f32 256  ;;  %v5338_v0 = vmov 0  }
  0x8b   : > { %v488_v1 = vrot.slane %v5338_v0, 7  ;;  %vm5594_vm2 = vmand %vm638_vm0, %vm639_vm1  ;;  %vm691_vm3 = vsmask.f32 7424  ;;  %v5028_v10 = vld [vmem:[#allocation5 + $0x40] sm:$0xff]   ;;  %v5030_v13 = vld [vmem:[#allocation5 + $0x48] sm:$0xff]   ;;  %vm1366_vm4 = vcmask 1046528  }
  0x8c   : > { %v5029_v11 = vld [vmem:[#allocation5 + $0x100] sm:$0xff]   ;;  %4237 = vmatprep.subr.bf16.mxu1 %v5028_v10  ;;  %v5031_v14 = vld [vmem:[#allocation5 + $0x108] sm:$0xff]   ;;  %v5032_v16 = vld [vmem:[#allocation5 + $0x50] sm:$0xff]   ;;  %s6177_s24 = scalar_lea.vmem [#allocation10], %s3694_s8  ;;  %s3846_s26 = sshll.u32 %s5394_s22, 11 }
  0x8d   : > { %v5600_v3 = vsel %vm5594_vm2, 0, %v488_v1  ;;  %v5604_v4 = vsel %vm5594_vm2, %v488_v1, 0  ;;  %4429 = vmatprep.subr.bf16.mxu0 %v5029_v11  ;;  %4238 = vmatpush3.bf16.msra.mxu1 %v5028_v10  ;;  %v5033_v17 = vld [vmem:[#allocation5 + $0x110] sm:$0xff]   ;;  %v5034_v18 = vld [vmem:[#allocation5 + $0x58] sm:$0xff]   ;;  %v5036_v20 = vld [vmem:[#allocation5 + $0x60] sm:$0xff]   ;;  %s3537_s23 = sshll.u32 %s6177_s24, 4  ;;  %s6204_s6 = scalar_lea.hbm %s6288_s4, %s3846_s26  ;;  %s6206_s23 = int_to_ptr.vmem [resolvable:$true] %s3537_s23 }
  0x8e   : > { %v693_v5 = vshrl.u32 %v5600_v3, 16  ;;  %v695_v6 = vshll.u32 %v5600_v3, 16  ;;  %v700_v7 = vshll.u32 %v5604_v4, 16  ;;  %4430 = vmatpush3.bf16.msra.mxu0 %v5029_v11  ;;  %4239 = vmatprep.subr.bf16.mxu1 %v5030_v13  ;;  %v5035_v19 = vld [vmem:[#allocation5 + $0x118] sm:$0xff]   ;;  %v5037_v21 = vld [vmem:[#allocation5 + $0x120] sm:$0xff]   ;;  %v5038_v22 = vld [vmem:[#allocation5 + $0x68] sm:$0xff]  }
  0x8f   : > { %4431 = vmatprep.subr.bf16.mxu0 %v5031_v14  ;;  %v5039_v23 = vld [vmem:[#allocation5 + $0x128] sm:$0xff]   ;;  %v3848_v24 = vld [vmem:[%s5579_s17] sm:$0xff]   ;;  %v5040_v34 = vld [vmem:[#allocation5 + $0x70] sm:$0xff]   ;;  %s3519_s30 = scalar_lea.sflag [#allocation4], %s5573_s7  ;;  %s5224_s15 = scalar_lea.vmem %s6206_s23, 2048 }
  0x90   : > { %v697_v8 = vrot.slane %v695_v6, 1  ;;  %v702_v9 = vrot.slane %v700_v7, 1  ;;  %v5614_v25 = vld [vmem:[#allocation7] ss:$0 sm:$0xff]  ;;  %v3849_v26 = vunpack.c.l.bf16 %v3848_v24  ;;  %v3850_v27 = vunpack.c.h.bf16 %v3848_v24  ;;  %v5616_v28 = vld [vmem:[#allocation8] ss:$0 sm:$0xff]  ;;  %p5225_p10 = scmp.ne.s32.totalorder %s6206_s23, %s5224_s15 }
  0x91   : > { %4240 = vmatpush3.bf16.msra.mxu1 %v5030_v13  ;;  %v3991_v29 = vld [vmem:[%s5579_s17 + $0x8] sm:$0xff]   ;;  %v3992_v35 = vld [vmem:[%s5579_s17 + $0x10] sm:$0xff]   ;;  %v3993_v41 = vld [vmem:[%s5579_s17 + $0x18] sm:$0xff]   ;;  %s5339_s11 = smov [#allocation10]  }
  0x92   : > { %v698_v12 = vor.u32 %v697_v8, %v693_v5  ;;  %4432 = vmatpush3.bf16.msra.mxu0 %v5031_v14  ;;  %4241 = vmatprep.subr.bf16.mxu1 %v5032_v16  ;;  %v366_v30 = vmul.f32 %v3849_v26, %v5614_v25  ;;  %v367_v31 = vmul.f32 %v3850_v27, %v5614_v25  ;;  %v3853_v32 = vunpack.c.l.bf16 %v3991_v29  ;;  %v5041_v36 = vld [vmem:[#allocation5 + $0x130] sm:$0xff]   ;;  %v5042_v50 = vld [vmem:[#allocation5 + $0x78] sm:$0xff]   ;;  %v3994_v54 = vld [vmem:[%s5579_s17 + $0x20] sm:$0xff]   ;;  %p5226_p3 = pnand %p5225_p10, %p5522_p5  ;;  %s5228_s28 = sshll.u32 %s5339_s11, 4  ;;  %s5229_s28 = int_to_ptr.vmem [resolvable:$false] %s5228_s28 }
  0x93   : > { %4433 = vmatprep.subr.bf16.mxu0 %v5033_v17  ;;  %v3854_v33 = vunpack.c.h.bf16 %v3991_v29  ;;  %v3857_v42 = vunpack.c.l.bf16 %v3992_v35  ;;  %v3858_v43 = vunpack.c.h.bf16 %v3992_v35  ;;  %v3861_v44 = vunpack.c.l.bf16 %v3993_v41  ;;  %v5043_v55 = vld [vmem:[#allocation5 + $0x138] sm:$0xff]   ;;  %v5638_v7 = vld [vmem:[#allocation5] sm:$0xff]   ;;  %v5643_v13 = vld [vmem:[%s5579_s17 + $0x28] sm:$0xff]   ;;  %s5230_s29 = scalar_lea.vmem %s5229_s28, 4096  ;;  %p5231_p12 = scmp.lt.s32.totalorder %s6206_s23, %s5229_s28 }
  0x94   : > { %v5610_v15 = vsel %vm691_vm3, %v698_v12, %v702_v9  ;;  %v405_v37 = vadd.f32 %v5616_v28, %v366_v30  ;;  %v406_v38 = vadd.f32 %v5616_v28, %v367_v31  ;;  %v368_v39 = vmul.f32 %v3853_v32, %v5614_v25  ;;  %v5640_v8 = vld [vmem:[#allocation5 + $0x140] sm:$0xff]   ;;  %p5227_p7 = pneg %p5226_p3  ;;  %p5232_p1 = scmp.lt.s32.totalorder %s5230_s29, %s5224_s15 }
  0x95   : > { %6318 = vst [vmem:[#allocation18_spill] sm:$0xff] %v5610_v15  ;;  %4253 = vmatprep.mubr.bf16.mxu1 %v5610_v15  ;;  %4242 = vmatpush3.bf16.msra.mxu1 %v5032_v16  ;;  %v369_v40 = vmul.f32 %v3854_v33, %v5614_v25  ;;  %v3862_v45 = vunpack.c.h.bf16 %v3993_v41  ;;  %v370_v51 = vmul.f32 %v3857_v42, %v5614_v25  ;;  %v3865_v63 = vunpack.c.l.bf16 %v3994_v54  ;;  %v5072_v2 = vld [vmem:[#allocation5 + $0xa0] sm:$0xff]  }
  0x96   : > { %4434 = vmatpush3.bf16.msra.mxu0 %v5033_v17  ;;  %4243 = vmatprep.subr.bf16.mxu1 %v5034_v18  ;;  %v437_v46 = vmax.f32 %v405_v37, 0.0  ;;  %v438_v47 = vmax.f32 %v406_v38, 0.0  ;;  %v407_v48 = vadd.f32 %v5616_v28, %v368_v39  ;;  %v371_v52 = vmul.f32 %v3858_v43, %v5614_v25  ;;  %p5233_p2 = por %p5232_p1, %p5231_p12 }
  0x97   : > { %4435 = vmatprep.subr.bf16.mxu0 %v5035_v19  ;;  %v408_v49 = vadd.f32 %v5616_v28, %v369_v40  ;;  %v372_v53 = vmul.f32 %v3861_v44, %v5614_v25  ;;  %v373_v59 = vmul.f32 %v3862_v45, %v5614_v25  ;;  %v409_v60 = vadd.f32 %v5616_v28, %v370_v51 }
  0x98   : > { %v469_v56 = vpack.c.bf16 %v438_v47, %v437_v46  ;;  %v439_v57 = vmax.f32 %v407_v48, 0.0  ;;  %v410_v61 = vadd.f32 %v5616_v28, %v371_v52  ;;  %v3866_v12 = vunpack.c.h.bf16 %v3994_v54  ;;  %p5234_p4 = pnand %p5233_p2, %p5227_p7 }
  0x99   : > { %4244 = vmatpush3.bf16.msra.mxu1 %v5034_v18  ;;  %v440_v58 = vmax.f32 %v408_v49, 0.0  ;;  %v411_v62 = vadd.f32 %v5616_v28, %v372_v53  ;;  %v412_v6 = vadd.f32 %v5616_v28, %v373_v59  ;;  %v441_v9 = vmax.f32 %v409_v60, 0.0 }
  0x9a   : > { %4436 = vmatpush3.bf16.msra.mxu0 %v5035_v19  ;;  %4245 = vmatprep.subr.bf16.mxu1 %v5036_v20  ;;  %v493_v0 = vshrl.u32 %v469_v56, 16  ;;  %v496_v1 = vshll.u32 %v469_v56, 16  ;;  %v442_v10 = vmax.f32 %v410_v61, 0.0  ;;  %v3869_v31 = vunpack.c.l.bf16 %v5643_v13 }
  0x9b   : > { %4437 = vmatprep.subr.bf16.mxu0 %v5037_v21  ;;  %v470_v5 = vpack.c.bf16 %v440_v58, %v439_v57  ;;  %v443_v11 = vmax.f32 %v411_v62, 0.0  ;;  %v444_v18 = vmax.f32 %v412_v6, 0.0  ;;  %v3996_v57 = vld [vmem:[%s5579_s17 + $0x30] sm:$0xff]  }
  0x9c   : > { %v495_v14 = vrot.slane %v493_v0, 7  ;;  %v471_v19 = vpack.c.bf16 %v442_v10, %v441_v9 }
  0x9d   : > { %4246 = vmatpush3.bf16.msra.mxu1 %v5036_v20  ;;  %v500_v16 = vshrl.u32 %v470_v5, 16  ;;  %v503_v17 = vshll.u32 %v470_v5, 16  ;;  %v374_v20 = vmul.f32 %v3865_v63, %v5614_v25  ;;  %v472_v26 = vpack.c.bf16 %v444_v18, %v443_v11  ;;  %v5046_v5 = vld [vmem:[#allocation5 + $0x148] sm:$0xff]  }
  0x9e   : > { %4438 = vmatpush3.bf16.msra.mxu0 %v5037_v21  ;;  %4247 = vmatprep.subr.bf16.mxu1 %v5038_v22  ;;  %v375_v21 = vmul.f32 %v3866_v12, %v5614_v25  ;;  %v507_v29 = vshrl.u32 %v471_v19, 16  ;;  %v510_v30 = vshll.u32 %v471_v19, 16  ;;  %v3997_v12 = vld [vmem:[%s5579_s17 + $0x38] sm:$0xff]  }
  0x9f   : > { %4439 = vmatprep.subr.bf16.mxu0 %v5039_v23  ;;  %v502_v24 = vrot.slane %v500_v16, 7  ;;  %v514_v35 = vshrl.u32 %v472_v26, 16  ;;  %v413_v39 = vadd.f32 %v5616_v28, %v374_v20  ;;  %v5050_v20 = vld [vmem:[#allocation5 + $0x10] sm:$0xff]  }
  0xa0   : > { %v509_v42 = vrot.slane %v507_v29, 7  ;;  %v414_v60 = vadd.f32 %v5616_v28, %v375_v21  ;;  %v3870_v21 = vunpack.c.h.bf16 %v5643_v13  ;;  %v3877_v29 = vunpack.c.l.bf16 %v3997_v12 }
  0xa1   : > { %4248 = vmatpush3.bf16.msra.mxu1 %v5038_v22  ;;  %v498_v22 = vor.u32 %v496_v1, %v495_v14  ;;  %v505_v33 = vor.u32 %v503_v17, %v502_v24  ;;  %v516_v43 = vrot.slane %v514_v35, 7  ;;  %v445_v61 = vmax.f32 %v413_v39, 0.0 }
  0xa2   : > { %4440 = vmatpush3.bf16.msra.mxu0 %v5039_v23  ;;  %4249 = vmatprep.subr.bf16.mxu1 %v5040_v34  ;;  %v5649_v23 = vsel %vm5594_vm2, %v495_v14, 0  ;;  %v512_v48 = vor.u32 %v510_v30, %v509_v42  ;;  %v5675_v49 = vsel %vm5594_vm2, %v509_v42, 0  ;;  %v446_v11 = vmax.f32 %v414_v60, 0.0  ;;  %v5048_v30 = vld [vmem:[#allocation5 + $0x150] sm:$0xff]  }
  0xa3   : > { %4441 = vmatprep.subr.bf16.mxu0 %v5041_v36  ;;  %v712_v27 = vshll.u32 %v5649_v23, 16  ;;  %v5656_v32 = vsel %vm5594_vm2, 0, %v498_v22  ;;  %v5669_v41 = vsel %vm5594_vm2, 0, %v505_v33  ;;  %v5679_v51 = vsel %vm5594_vm2, %v516_v43, 0 }
  0xa4   : > { %v707_v37 = vshll.u32 %v5656_v32, 16  ;;  %v717_v45 = vshrl.u32 %v5669_v41, 16  ;;  %v719_v46 = vshll.u32 %v5669_v41, 16  ;;  %v736_v54 = vshll.u32 %v5675_v49, 16 }
  0xa5   : > { %4250 = vmatpush3.bf16.msra.mxu1 %v5040_v34  ;;  %v5660_v34 = vsel %vm5594_vm2, %v502_v24, 0  ;;  %v714_v40 = vrot.slane %v712_v27, 1  ;;  %v748_v56 = vshll.u32 %v5679_v51, 16  ;;  %v5686_v58 = vsel %vm5594_vm2, 0, %v512_v48 }
  0xa6   : > { %4442 = vmatpush3.bf16.msra.mxu0 %v5041_v36  ;;  %4251 = vmatprep.subr.bf16.mxu1 %v5042_v50  ;;  %v705_v36 = vshrl.u32 %v5656_v32, 16  ;;  %v724_v38 = vshll.u32 %v5660_v34, 16  ;;  %v709_v44 = vrot.slane %v707_v37, 1  ;;  %v721_v53 = vrot.slane %v719_v46, 1 }
  0xa7   : > { %4443 = vmatprep.subr.bf16.mxu0 %v5043_v55  ;;  %v729_v0 = vshrl.u32 %v5686_v58, 16  ;;  %v731_v1 = vshll.u32 %v5686_v58, 16  ;;  %v738_v6 = vrot.slane %v736_v54, 1  ;;  %v750_v10 = vrot.slane %v748_v56, 1 }
  0xa8   : > { %v726_v47 = vrot.slane %v724_v38, 1  ;;  %v710_v52 = vor.u32 %v709_v44, %v705_v36  ;;  %v722_v63 = vor.u32 %v721_v53, %v717_v45  ;;  %v473_v19 = vpack.c.bf16 %v446_v11, %v445_v61  ;;  %v5056_v61 = vld [vmem:[#allocation5 + $0x20] sm:$0xff]  }
  0xa9   : > { %4252 = vmatpush3.bf16.msra.mxu1 %v5042_v50  ;;  %v517_v50 = vshll.u32 %v472_v26, 16  ;;  %v733_v16 = vrot.slane %v731_v1, 1  ;;  %v376_v22 = vmul.f32 %v3869_v31, %v5614_v25  ;;  %v3873_v24 = vunpack.c.l.bf16 %v3996_v57 }
  0xaa   : > { %4444 = vmatpush3.bf16.msra.mxu0 %v5043_v55  ;;  %4285 = vmatprep.subr.bf16.mxu1 %v5638_v7  ;;  %v5047_v55 = vld [vmem:[#allocation5 + $0x8] sm:$0xff]   ;;  %v715_v62 = vsel %vm691_vm3, %v710_v52, %v714_v40  ;;  %v5698_v14 = vsel %vm691_vm3, %v722_v63, %v726_v47  ;;  %v3874_v27 = vunpack.c.h.bf16 %v3996_v57  ;;  %v521_v33 = vshrl.u32 %v473_v19, 16 }
  0xab   : > { %4477 = vmatprep.subr.bf16.mxu0 %v5640_v8  ;;  %v519_v59 = vor.u32 %v517_v50, %v516_v43  ;;  %4445 = vmatprep.mubr.bf16.mxu0 %v715_v62  ;;  %v734_v26 = vor.u32 %v733_v16, %v729_v0  ;;  %v524_v35 = vshll.u32 %v473_v19, 16  ;;  %v377_v36 = vmul.f32 %v3870_v21, %v5614_v25  ;;  %v5053_v43 = vld [vmem:[#allocation5 + $0x18] sm:$0xff]   ;;  %v5051_v0 = vld [vmem:[#allocation5 + $0x160] sm:$0xff]  }
  0xac   : > { %4254 = vmatmul.mubr.bf16.vlgmr.msra.gmra.mrb[0].mxu1 %v715_v62  ;;  %v415_v37 = vadd.f32 %v5616_v28, %v376_v22  ;;  %v379_v38 = vmul.f32 %v3874_v27, %v5614_v25  ;;  %v523_v39 = vrot.slane %v521_v33, 7  ;;  %v3878_v44 = vunpack.c.h.bf16 %v3997_v12  ;;  %v5049_v50 = vld [vmem:[#allocation5 + $0x158] sm:$0xff]   ;;  %v3998_v16 = vld [vmem:[%s5579_s17 + $0x40] sm:$0xff]  }
  0xad   : > { %v5694_v9 = vsel %vm5594_vm2, 0, %v519_v59  ;;  %4286 = vmatpush3.bf16.msra.mxu1 %v5638_v7  ;;  %4446 = vmatmul.mubr.bf16.vlgmr.msra.gmra.mrb[0].mxu0 %v5698_v14  ;;  %v5711_v13 = vsel %vm691_vm3, %v734_v26, %v738_v6  ;;  %v416_v40 = vadd.f32 %v5616_v28, %v377_v36  ;;  %v380_v48 = vmul.f32 %v3877_v29, %v5614_v25 }
  0xae   : > { %v741_v17 = vshrl.u32 %v5694_v9, 16  ;;  %v743_v18 = vshll.u32 %v5694_v9, 16  ;;  %4257 = vmatprep.mubr.bf16.mxu1 %v5698_v14  ;;  %4478 = vmatpush3.bf16.msra.mxu0 %v5640_v8  ;;  %v378_v8 = vmul.f32 %v3873_v24, %v5614_v25  ;;  %v447_v42 = vmax.f32 %v415_v37, 0.0 }
  0xaf   : > { %4287 = vmatprep.subr.bf16.mxu1 %v5047_v55  ;;  %4479 = vmatprep.subr.bf16.mxu0 %v5046_v5  ;;  %v418_v47 = vadd.f32 %v5616_v28, %v379_v38  ;;  %v526_v52 = vor.u32 %v524_v35, %v523_v39  ;;  %v5726_v53 = vsel %vm5594_vm2, %v523_v39, 0  ;;  %v448_v54 = vmax.f32 %v416_v40, 0.0 }
  0xb0   : > { %v745_v7 = vrot.slane %v743_v18, 1  ;;  %4449 = vmatprep.mubr.bf16.mxu0 %v5711_v13  ;;  %v417_v46 = vadd.f32 %v5616_v28, %v378_v8  ;;  %v760_v56 = vshll.u32 %v5726_v53, 16  ;;  %v419_v60 = vadd.f32 %v5616_v28, %v380_v48 }
  0xb1   : > { %4288 = vmatpush3.bf16.msra.mxu1 %v5047_v55  ;;  %v381_v55 = vmul.f32 %v3878_v44, %v5614_v25  ;;  %v450_v59 = vmax.f32 %v418_v47, 0.0  ;;  %v5735_v62 = vsel %vm5594_vm2, 0, %v526_v52  ;;  %v474_v63 = vpack.c.bf16 %v448_v54, %v447_v42  ;;  %v5054_v52 = vld [vmem:[#allocation5 + $0x170] sm:$0xff]  }
  0xb2   : > { %v746_v31 = vor.u32 %v745_v7, %v741_v17  ;;  %4289 = vmatprep.subr.bf16.mxu1 %v5050_v20  ;;  %4480 = vmatpush3.bf16.msra.mxu0 %v5046_v5  ;;  %v449_v57 = vmax.f32 %v417_v46, 0.0  ;;  %v1370_v5 = vrot.slane %v5656_v32, 1  ;;  %v753_v6 = vshrl.u32 %v5735_v62, 16 }
  0xb3   : > { %4481 = vmatprep.subr.bf16.mxu0 %v5048_v30  ;;  %v420_v1 = vadd.f32 %v5616_v28, %v381_v55  ;;  %v762_v11 = vrot.slane %v760_v56, 1  ;;  %v528_v17 = vshrl.u32 %v474_v63, 16  ;;  %v531_v18 = vshll.u32 %v474_v63, 16  ;;  %v5060_v55 = vld [vmem:[#allocation5 + $0x30] sm:$0xff]  }
  0xb4   : > { %v5718_v45 = vsel %vm691_vm3, %v746_v31, %v750_v10  ;;  %4258 = vmatmul.mubr.bf16.gmra.mrb[4].mxu1 %v5711_v13  ;;  %v755_v10 = vshll.u32 %v5735_v62, 16  ;;  %v475_v12 = vpack.c.bf16 %v450_v59, %v449_v57  ;;  %v451_v19 = vmax.f32 %v419_v60, 0.0  ;;  %v5058_v31 = vld [vmem:[#allocation5 + $0x28] sm:$0xff]  }
  0xb5   : > { %4261 = vmatprep.mubr.bf16.mxu1 %v5718_v45  ;;  %4290 = vmatpush3.bf16.msra.mxu1 %v5050_v20  ;;  %v452_v20 = vmax.f32 %v420_v1, 0.0  ;;  %v1371_v26 = vrot.slane %v5649_v23, 1  ;;  %v1374_v7 = vrot.slane %v5660_v34, 1  ;;  %v530_v27 = vrot.slane %v528_v17, 7  ;;  %v5052_v23 = vld [vmem:[#allocation5 + $0x168] sm:$0xff]  }
  0xb6   : > { %4450 = vmatmul.mubr.bf16.gmra.mrb[4].mxu0 %v5718_v45  ;;  %4291 = vmatprep.subr.bf16.mxu1 %v5053_v43  ;;  %v757_v21 = vrot.slane %v755_v10, 1  ;;  %v535_v22 = vshrl.u32 %v475_v12, 16  ;;  %v538_v24 = vshll.u32 %v475_v12, 16  ;;  %v3882_v37 = vunpack.c.h.bf16 %v3998_v16 }
  0xb7   : > { %4482 = vmatpush3.bf16.msra.mxu0 %v5048_v30  ;;  %v476_v29 = vpack.c.bf16 %v452_v20, %v451_v19  ;;  %v3881_v30 = vunpack.c.l.bf16 %v3998_v16  ;;  %v5745_v36 = vsel %vm1366_vm4, %v1370_v5, %v1371_v26  ;;  %v533_v8 = vor.u32 %v531_v18, %v530_v27 }
  0xb8   : > { %4483 = vmatprep.subr.bf16.mxu0 %v5049_v50  ;;  %v758_v33 = vor.u32 %v757_v21, %v753_v6  ;;  %v537_v35 = vrot.slane %v535_v22, 7  ;;  %v5749_v38 = vsel %vm5594_vm2, %v530_v27, 0  ;;  %v1373_v60 = vrot.slane %v5669_v41, 1  ;;  %v3999_v6 = vld [vmem:[%s5579_s17 + $0x48] sm:$0xff]   ;;  %v4000_v27 = vld [vmem:[%s5579_s17 + $0x50] sm:$0xff]  }
  0xb9   : > { %4292 = vmatpush3.bf16.msra.mxu1 %v5053_v43  ;;  %v542_v39 = vshrl.u32 %v476_v29, 16  ;;  %v545_v40 = vshll.u32 %v476_v29, 16  ;;  %v772_v43 = vshll.u32 %v5749_v38, 16  ;;  %v5763_v47 = vsel %vm5594_vm2, 0, %v533_v8  ;;  %v5062_v29 = vld [vmem:[#allocation5 + $0x38] sm:$0xff]  }
  0xba   : > { %4293 = vmatprep.subr.bf16.mxu1 %v5056_v61  ;;  %v5752_v42 = vsel %vm691_vm3, %v758_v33, %v762_v11  ;;  %v540_v44 = vor.u32 %v538_v24, %v537_v35  ;;  %v5757_v46 = vsel %vm5594_vm2, %v537_v35, 0  ;;  %v382_v54 = vmul.f32 %v3881_v30, %v5614_v25  ;;  %v5055_v24 = vld [vmem:[#allocation5 + $0x178] sm:$0xff]  }
  0xbb   : > { %4484 = vmatpush3.bf16.msra.mxu0 %v5049_v50  ;;  %4453 = vmatprep.mubr.bf16.mxu0 %v5752_v42  ;;  %v784_v48 = vshll.u32 %v5757_v46, 16  ;;  %v544_v50 = vrot.slane %v542_v39, 7  ;;  %v765_v56 = vshrl.u32 %v5763_v47, 16  ;;  %v767_v57 = vshll.u32 %v5763_v47, 16 }
  0xbc   : > { %4485 = vmatprep.subr.bf16.mxu0 %v5051_v0  ;;  %4262 = vmatmul.mubr.bf16.gmra.mrb[8].mxu1 %v5752_v42  ;;  %v5771_v59 = vsel %vm5594_vm2, 0, %v540_v44  ;;  %v383_v11 = vmul.f32 %v3882_v37, %v5614_v25  ;;  %v421_v12 = vadd.f32 %v5616_v28, %v382_v54  ;;  %v3885_v37 = vunpack.c.l.bf16 %v3999_v6  ;;  %v5808_v54 = vld [vmem:[#allocation5 + $0x80] sm:$0xff]  }
  0xbd   : > { %4294 = vmatpush3.bf16.msra.mxu1 %v5056_v61  ;;  %v774_v61 = vrot.slane %v772_v43, 1  ;;  %v777_v63 = vshrl.u32 %v5771_v59, 16  ;;  %v779_v1 = vshll.u32 %v5771_v59, 16  ;;  %v547_v5 = vor.u32 %v545_v40, %v544_v50 }
  0xbe   : > { %4295 = vmatprep.subr.bf16.mxu1 %v5058_v31  ;;  %v769_v10 = vrot.slane %v767_v57, 1  ;;  %v786_v17 = vrot.slane %v784_v48, 1  ;;  %v422_v26 = vadd.f32 %v5616_v28, %v383_v11  ;;  %v453_v35 = vmax.f32 %v421_v12, 0.0 }
  0xbf   : > { %4486 = vmatpush3.bf16.msra.mxu0 %v5051_v0  ;;  %v5779_v0 = vsel %vm5594_vm2, %v544_v50, 0  ;;  %v781_v16 = vrot.slane %v779_v1, 1  ;;  %v5785_v18 = vsel %vm5594_vm2, 0, %v547_v5  ;;  %v3886_v39 = vunpack.c.h.bf16 %v3999_v6  ;;  %v4001_v50 = vld [vmem:[%s5579_s17 + $0x58] sm:$0xff]  }
  0xc0   : > { %4487 = vmatprep.subr.bf16.mxu0 %v5052_v23  ;;  %v796_v19 = vshll.u32 %v5779_v0, 16  ;;  %v770_v20 = vor.u32 %v769_v10, %v765_v56  ;;  %v789_v21 = vshrl.u32 %v5785_v18, 16  ;;  %v791_v22 = vshll.u32 %v5785_v18, 16  ;;  %v5819_v10 = vld [vmem:[#allocation5 + $0x180] sm:$0xff]  }
  0xc1   : > { %4296 = vmatpush3.bf16.msra.mxu1 %v5058_v31  ;;  %v782_v30 = vor.u32 %v781_v16, %v777_v63  ;;  %v5803_v43 = vsel %vm1366_vm4, %v1373_v60, %v1374_v7  ;;  %v384_v44 = vmul.f32 %v3885_v37, %v5614_v25  ;;  %v1376_v48 = vrot.slane %v5686_v58, 1 }
  0xc2   : > { %4297 = vmatprep.subr.bf16.mxu1 %v5060_v55  ;;  %v798_v33 = vrot.slane %v796_v19, 1  ;;  %v5793_v31 = vsel %vm691_vm3, %v770_v20, %v774_v61  ;;  %v793_v8 = vrot.slane %v791_v22, 1  ;;  %v385_v57 = vmul.f32 %v3886_v39, %v5614_v25 }
  0xc3   : > { %4488 = vmatpush3.bf16.msra.mxu0 %v5052_v23  ;;  %v454_v23 = vmax.f32 %v422_v26, 0.0  ;;  %4265 = vmatprep.mubr.bf16.mxu1 %v5793_v31  ;;  %v5798_v40 = vsel %vm691_vm3, %v782_v30, %v786_v17  ;;  %v3889_v61 = vunpack.c.l.bf16 %v4000_v27  ;;  %v423_v34 = vadd.f32 %v5616_v28, %v384_v44 }
  0xc4   : > { %4489 = vmatprep.subr.bf16.mxu0 %v5054_v52  ;;  %4454 = vmatmul.mubr.bf16.gmra.mrb[8].mxu0 %v5793_v31  ;;  %v1377_v7 = vrot.slane %v5675_v49, 1  ;;  %v3890_v60 = vunpack.c.h.bf16 %v4000_v27  ;;  %v1379_v63 = vrot.slane %v5694_v9, 1  ;;  %v424_v11 = vadd.f32 %v5616_v28, %v385_v57 }
  0xc5   : > { %4298 = vmatpush3.bf16.msra.mxu1 %v5060_v55  ;;  %4457 = vmatprep.mubr.bf16.mxu0 %v5798_v40  ;;  %v794_v55 = vor.u32 %v793_v8, %v789_v21  ;;  %v477_v56 = vpack.c.bf16 %v454_v23, %v453_v35  ;;  %v386_v49 = vmul.f32 %v3889_v61, %v5614_v25  ;;  %v1380_v16 = vrot.slane %v5679_v51, 1 }
  0xc6   : > { %4266 = vmatmul.mubr.bf16.gmra.mrb[12].mxu1 %v5798_v40  ;;  %4299 = vmatprep.subr.bf16.mxu1 %v5062_v29  ;;  %v387_v12 = vmul.f32 %v3890_v60, %v5614_v25  ;;  %v456_v19 = vmax.f32 %v424_v11, 0.0  ;;  %v3893_v20 = vunpack.c.l.bf16 %v4001_v50  ;;  %v3894_v21 = vunpack.c.h.bf16 %v4001_v50 }
  0xc7   : > { %4490 = vmatpush3.bf16.msra.mxu0 %v5054_v52  ;;  %v5817_v1 = vsel %vm691_vm3, %v794_v55, %v798_v33  ;;  %v549_v5 = vshrl.u32 %v477_v56, 16  ;;  %v552_v6 = vshll.u32 %v477_v56, 16  ;;  %v455_v52 = vmax.f32 %v423_v34, 0.0  ;;  %v4002_v55 = vld [vmem:[%s5579_s17 + $0x60] sm:$0xff]  }
  0xc8   : > { %4491 = vmatprep.subr.bf16.mxu0 %v5055_v24  ;;  %4269 = vmatprep.mubr.bf16.mxu1 %v5817_v1  ;;  %v5828_v22 = vsel %vm1366_vm4, %v1376_v48, %v1377_v7  ;;  %v425_v26 = vadd.f32 %v5616_v28, %v386_v49  ;;  %v426_v27 = vadd.f32 %v5616_v28, %v387_v12  ;;  %v1382_v34 = vrot.slane %v5735_v62, 1 }
  0xc9   : > { %4300 = vmatpush3.bf16.msra.mxu1 %v5062_v29  ;;  %v551_v17 = vrot.slane %v549_v5, 7  ;;  %v5833_v29 = vsel %vm1366_vm4, %v1379_v63, %v1380_v16  ;;  %v478_v33 = vpack.c.bf16 %v456_v19, %v455_v52  ;;  %v389_v23 = vmul.f32 %v3894_v21, %v5614_v25  ;;  %v5059_v19 = vld [vmem:[#allocation5 + $0x188] sm:$0xff]  }
  0xca   : > { %4333 = vmatprep.subr.bf16.mxu1 %v5808_v54  ;;  %v457_v37 = vmax.f32 %v425_v26, 0.0  ;;  %v458_v8 = vmax.f32 %v426_v27, 0.0  ;;  %v1383_v52 = vrot.slane %v5726_v53, 1  ;;  %v3897_v49 = vunpack.c.l.bf16 %v4002_v55 }
  0xcb   : > { %4492 = vmatpush3.bf16.msra.mxu0 %v5055_v24  ;;  %v554_v30 = vor.u32 %v552_v6, %v551_v17  ;;  %v5837_v51 = vsel %vm5594_vm2, %v551_v17, 0  ;;  %v388_v24 = vmul.f32 %v3893_v20, %v5614_v25  ;;  %v556_v44 = vshrl.u32 %v478_v33, 16 }
  0xcc   : > { %4525 = vmatprep.subr.bf16.mxu0 %v5819_v10  ;;  %4458 = vmatmul.mubr.bf16.gmra.mrb[12].mxu0 %v5817_v1  ;;  %v808_v35 = vshll.u32 %v5837_v51, 16  ;;  %v559_v48 = vshll.u32 %v478_v33, 16  ;;  %v479_v61 = vpack.c.bf16 %v458_v8, %v457_v37  ;;  %v428_v63 = vadd.f32 %v5616_v28, %v389_v23 }
  0xcd   : > { %4493 = vmatprep.mubr.bf16.mxu0 %v5745_v36  ;;  %v5847_v39 = vsel %vm5594_vm2, 0, %v554_v30  ;;  %v427_v50 = vadd.f32 %v5616_v28, %v388_v24  ;;  %v558_v60 = vrot.slane %v556_v44, 7  ;;  %v3898_v30 = vunpack.c.h.bf16 %v4002_v55 }
  0xce   : > { %v801_v56 = vshrl.u32 %v5847_v39, 16  ;;  %v803_v57 = vshll.u32 %v5847_v39, 16  ;;  %v810_v7 = vrot.slane %v808_v35, 1  ;;  %v563_v11 = vshrl.u32 %v479_v61, 16 }
  0xcf   : > { %v459_v5 = vmax.f32 %v427_v50, 0.0  ;;  %v561_v12 = vor.u32 %v559_v48, %v558_v60  ;;  %v5858_v16 = vsel %vm5594_vm2, %v558_v60, 0  ;;  %v566_v17 = vshll.u32 %v479_v61, 16  ;;  %v4003_v48 = vld [vmem:[%s5579_s17 + $0x68] sm:$0xff]   ;;  %v5061_v61 = vld [vmem:[#allocation5 + $0x190] sm:$0xff]  }
  0xd0   : > { %v805_v6 = vrot.slane %v803_v57, 1  ;;  %v460_v20 = vmax.f32 %v428_v63, 0.0  ;;  %v820_v26 = vshll.u32 %v5858_v16, 16  ;;  %v565_v27 = vrot.slane %v563_v11, 7 }
  0xd1   : > { %v5863_v33 = vsel %vm5594_vm2, 0, %v561_v12  ;;  %v390_v24 = vmul.f32 %v3897_v49, %v5614_v25  ;;  %v1385_v35 = vrot.slane %v5763_v47, 1  ;;  %v391_v63 = vmul.f32 %v3898_v30, %v5614_v25 }
  0xd2   : > { %v806_v21 = vor.u32 %v805_v6, %v801_v56  ;;  %v480_v53 = vpack.c.bf16 %v460_v20, %v459_v5  ;;  %v813_v8 = vshrl.u32 %v5863_v33, 16  ;;  %v815_v23 = vshll.u32 %v5863_v33, 16 }
  0xd3   : > { %v822_v44 = vrot.slane %v820_v26, 1  ;;  %v568_v50 = vor.u32 %v566_v17, %v565_v27  ;;  %v5878_v55 = vsel %vm5594_vm2, %v565_v27, 0  ;;  %v429_v5 = vadd.f32 %v5616_v28, %v390_v24  ;;  %v4004_v24 = vld [vmem:[%s5579_s17 + $0x70] sm:$0xff]  }
  0xd4   : > { %v5868_v37 = vsel %vm691_vm3, %v806_v21, %v810_v7  ;;  %4494 = vmatmul.mubr.bf16.vlgmr.msra.gmra.mrb[0].mxu0 %v5803_v43  ;;  %v570_v56 = vshrl.u32 %v480_v53, 16  ;;  %v573_v57 = vshll.u32 %v480_v53, 16  ;;  %v817_v7 = vrot.slane %v815_v23, 1  ;;  %v5063_v23 = vld [vmem:[#allocation5 + $0x198] sm:$0xff]  }
  0xd5   : > { %4270 = vmatmul.mubr.bf16.gmra.mrb[16].mxu1 %v5868_v37  ;;  %4526 = vmatpush3.bf16.msra.mxu0 %v5819_v10  ;;  %v832_v60 = vshll.u32 %v5878_v55, 16  ;;  %v5886_v10 = vsel %vm5594_vm2, 0, %v568_v50  ;;  %v1386_v11 = vrot.slane %v5749_v38, 1  ;;  %v3901_v49 = vunpack.c.l.bf16 %v4003_v48 }
  0xd6   : > { %4497 = vmatprep.mubr.bf16.mxu0 %v5828_v22  ;;  %4527 = vmatprep.subr.bf16.mxu0 %v5059_v19  ;;  %v572_v6 = vrot.slane %v570_v56, 7  ;;  %v818_v12 = vor.u32 %v817_v7, %v813_v8  ;;  %v825_v17 = vshrl.u32 %v5886_v10, 16  ;;  %v827_v20 = vshll.u32 %v5886_v10, 16 }
  0xd7   : > { %v834_v21 = vrot.slane %v832_v60, 1  ;;  %v430_v30 = vadd.f32 %v5616_v28, %v391_v63  ;;  %v461_v53 = vmax.f32 %v429_v5, 0.0  ;;  %v5902_v56 = vsel %vm1366_vm4, %v1382_v34, %v1383_v52 }
  0xd8   : > { %v575_v26 = vor.u32 %v573_v57, %v572_v6  ;;  %v5893_v27 = vsel %vm5594_vm2, %v572_v6, 0  ;;  %v5898_v38 = vsel %vm691_vm3, %v818_v12, %v822_v44  ;;  %v829_v8 = vrot.slane %v827_v20, 1  ;;  %v5914_v6 = vld [vmem:[#allocation7] ss:$0 sm:$0xff] }
  0xd9   : > { %4528 = vmatpush3.bf16.msra.mxu0 %v5059_v19  ;;  %6319 = vst [vmem:[#allocation19_spill] sm:$0xff] %v5898_v38  ;;  %v844_v50 = vshll.u32 %v5893_v27, 16  ;;  %4273 = vmatprep.mubr.bf16.mxu1 %v5898_v38  ;;  %v462_v57 = vmax.f32 %v430_v30, 0.0  ;;  %v3902_v7 = vunpack.c.h.bf16 %v4003_v48  ;;  %v392_v60 = vmul.f32 %v3901_v49, %v5614_v25  ;;  %v5065_v49 = vld [vmem:[#allocation5 + $0x1a0] sm:$0xff]  }
  0xda   : > { %4529 = vmatprep.subr.bf16.mxu0 %v5061_v61  ;;  %v5907_v19 = vsel %vm5594_vm2, 0, %v575_v26  ;;  %v830_v63 = vor.u32 %v829_v8, %v825_v17  ;;  %v1388_v25 = vrot.slane %v5771_v59, 1  ;;  %v1389_v26 = vrot.slane %v5757_v46, 1  ;;  %v5924_v8 = vld [vmem:[#allocation8] ss:$0 sm:$0xff] }
  0xdb   : > { %v837_v44 = vshrl.u32 %v5907_v19, 16  ;;  %v839_v5 = vshll.u32 %v5907_v19, 16  ;;  %v846_v34 = vrot.slane %v844_v50, 1  ;;  %v481_v52 = vpack.c.bf16 %v462_v57, %v461_v53 }
  0xdc   : > { %4498 = vmatmul.mubr.bf16.gmra.mrb[4].mxu0 %v5833_v29  ;;  %v393_v12 = vmul.f32 %v5914_v6, %v3902_v7  ;;  %v431_v48 = vadd.f32 %v5616_v28, %v392_v60  ;;  %v5920_v17 = vsel %vm691_vm3, %v830_v63, %v834_v21  ;;  %v3905_v30 = vunpack.c.l.bf16 %v4004_v24 }
  0xdd   : > { %4501 = vmatprep.mubr.bf16.mxu0 %v5902_v56  ;;  %4530 = vmatpush3.bf16.msra.mxu0 %v5061_v61  ;;  %6320 = vst [vmem:[#allocation20_spill] sm:$0xff] %v5920_v17  ;;  %v841_v20 = vrot.slane %v839_v5, 1  ;;  %v577_v61 = vshrl.u32 %v481_v52, 16  ;;  %v580_v53 = vshll.u32 %v481_v52, 16  ;;  %v3906_v7 = vunpack.c.h.bf16 %v4004_v24 }
  0xde   : > { %4531 = vmatprep.subr.bf16.mxu0 %v5063_v23  ;;  %4274 = vmatmul.mubr.bf16.gmra.mrb[20].mxu1 %v5920_v17  ;;  %v432_v50 = vadd.f32 %v5924_v8, %v393_v12  ;;  %v463_v28 = vmax.f32 %v431_v48, 0.0  ;;  %v394_v60 = vmul.f32 %v5914_v6, %v3905_v30  ;;  %v5931_v46 = vsel %vm1366_vm4, %v1385_v35, %v1386_v11 }
  0xdf   : > { %v842_v57 = vor.u32 %v841_v20, %v837_v44  ;;  %v579_v21 = vrot.slane %v577_v61, 7  ;;  %v5937_v52 = vsel %vm1366_vm4, %v1388_v25, %v1389_v26  ;;  %v395_v12 = vmul.f32 %v5914_v6, %v3906_v7  ;;  %v5067_v44 = vld [vmem:[#allocation5 + $0x1a8] sm:$0xff]  }
  0xe0   : > { %v464_v63 = vmax.f32 %v432_v50, 0.0  ;;  %v433_v24 = vadd.f32 %v5924_v8, %v394_v60  ;;  %v1392_v26 = vrot.slane %v5779_v0, 1  ;;  %v1394_v50 = vrot.slane %v5847_v39, 1  ;;  %v5069_v0 = vld [vmem:[#allocation5 + $0x1b0] sm:$0xff]  }
  0xe1   : > { %4532 = vmatpush3.bf16.msra.mxu0 %v5063_v23  ;;  %v5934_v5 = vsel %vm691_vm3, %v842_v57, %v846_v34  ;;  %v582_v48 = vor.u32 %v580_v53, %v579_v21  ;;  %v5944_v35 = vsel %vm5594_vm2, %v579_v21, 0  ;;  %v1391_v23 = vrot.slane %v5785_v18, 1 }
  0xe2   : > { %6321 = vst [vmem:[#allocation21_spill] sm:$0xff] %v5934_v5  ;;  %4533 = vmatprep.subr.bf16.mxu0 %v5065_v49  ;;  %4277 = vmatprep.mubr.bf16.mxu1 %v5934_v5  ;;  %v482_v11 = vpack.c.bf16 %v464_v63, %v463_v28  ;;  %v856_v34 = vshll.u32 %v5944_v35, 16  ;;  %v434_v25 = vadd.f32 %v5924_v8, %v395_v12  ;;  %v465_v20 = vmax.f32 %v433_v24, 0.0 }
  0xe3   : > { %v5953_v30 = vsel %vm5594_vm2, 0, %v582_v48  ;;  %v1395_v60 = vrot.slane %v5837_v51, 1 }
  0xe4   : > { %4502 = vmatmul.mubr.bf16.gmra.mrb[8].mxu0 %v5931_v46  ;;  %v584_v61 = vshrl.u32 %v482_v11, 16  ;;  %v587_v53 = vshll.u32 %v482_v11, 16  ;;  %v849_v28 = vshrl.u32 %v5953_v30, 16  ;;  %v851_v57 = vshll.u32 %v5953_v30, 16 }
  0xe5   : > { %4505 = vmatprep.mubr.bf16.mxu0 %v5937_v52  ;;  %4534 = vmatpush3.bf16.msra.mxu0 %v5065_v49  ;;  %v466_v7 = vmax.f32 %v434_v25, 0.0  ;;  %v858_v12 = vrot.slane %v856_v34, 1  ;;  %v5965_v49 = vsel %vm1366_vm4, %v1391_v23, %v1392_v26  ;;  %v5969_v5 = vsel %vm1366_vm4, %v1394_v50, %v1395_v60 }
  0xe6   : > { %4535 = vmatprep.subr.bf16.mxu0 %v5067_v44  ;;  %v586_v21 = vrot.slane %v584_v61, 7  ;;  %v853_v63 = vrot.slane %v851_v57, 1  ;;  %v4005_v61 = vld [vmem:[%s5579_s17 + $0x78] sm:$0xff]   ;;  %v1397_v26 = vrot.slane %v5863_v33, 1 }
  0xe7   : > { %v483_v24 = vpack.c.bf16 %v466_v7, %v465_v20  ;;  %v1400_v7 = vrot.slane %v5886_v10, 1 }
  0xe8   : > { %v589_v48 = vor.u32 %v587_v53, %v586_v21  ;;  %v5962_v11 = vsel %vm5594_vm2, %v586_v21, 0  ;;  %v854_v15 = vor.u32 %v853_v63, %v849_v28  ;;  %v5071_v53 = vld [vmem:[#allocation5 + $0x1b8] sm:$0xff]   ;;  %v1398_v28 = vrot.slane %v5858_v16, 1 }
  0xe9   : > { %4536 = vmatpush3.bf16.msra.mxu0 %v5067_v44  ;;  %v868_v25 = vshll.u32 %v5962_v11, 16  ;;  %v591_v51 = vshrl.u32 %v483_v24, 16  ;;  %v594_v20 = vshll.u32 %v483_v24, 16  ;;  %v3909_v63 = vunpack.c.l.bf16 %v4005_v61 }
  0xea   : > { %4537 = vmatprep.subr.bf16.mxu0 %v5069_v0  ;;  %v5973_v34 = vsel %vm5594_vm2, 0, %v589_v48  ;;  %v5977_v57 = vsel %vm691_vm3, %v854_v15, %v858_v12  ;;  %v1401_v15 = vrot.slane %v5878_v55, 1  ;;  %v3910_v12 = vunpack.c.h.bf16 %v4005_v61 }
  0xeb   : > { %6322 = vst [vmem:[#allocation22_spill] sm:$0xff] %v5977_v57  ;;  %v861_v44 = vshrl.u32 %v5973_v34, 16  ;;  %v863_v23 = vshll.u32 %v5973_v34, 16  ;;  %4278 = vmatmul.mubr.bf16.gmra.mrb[24].mxu1 %v5977_v57  ;;  %v593_v50 = vrot.slane %v591_v51, 7  ;;  %v870_v21 = vrot.slane %v868_v25, 1  ;;  %v5990_v57 = vld [vmem:[#allocation5 + $0x1c0] sm:$0xff]  }
  0xec   : > { %4506 = vmatmul.mubr.bf16.gmra.mrb[12].mxu0 %v5965_v49  ;;  %v396_v16 = vmul.f32 %v5914_v6, %v3909_v63  ;;  %v5998_v55 = vsel %vm1366_vm4, %v1397_v26, %v1398_v28  ;;  %v1403_v28 = vrot.slane %v5907_v19, 1  ;;  %v1407_v63 = vrot.slane %v5944_v35, 1 }
  0xed   : > { %4509 = vmatprep.mubr.bf16.mxu0 %v5969_v5  ;;  %v865_v60 = vrot.slane %v863_v23, 1  ;;  %4538 = vmatpush3.bf16.msra.mxu0 %v5069_v0  ;;  %v596_v24 = vor.u32 %v594_v20, %v593_v50  ;;  %v673_v48 = vsel %vm5594_vm2, %v593_v50, 0  ;;  %v397_v0 = vmul.f32 %v5914_v6, %v3910_v12 }
  0xee   : > { %4539 = vmatprep.subr.bf16.mxu0 %v5071_v53  ;;  %v880_v17 = vshll.u32 %v673_v48, 16  ;;  %v435_v23 = vadd.f32 %v5924_v8, %v396_v16  ;;  %v1409_v35 = vrot.slane %v5973_v34, 1 }
  0xef   : > { %v866_v51 = vor.u32 %v865_v60, %v861_v44  ;;  %v5995_v38 = vsel %vm5594_vm2, 0, %v596_v24  ;;  %v6007_v44 = vsel %vm1366_vm4, %v1400_v7, %v1401_v15  ;;  %v436_v26 = vadd.f32 %v5924_v8, %v397_v0 }
  0xf0   : > { %v873_v20 = vshrl.u32 %v5995_v38, 16  ;;  %v875_v61 = vshll.u32 %v5995_v38, 16  ;;  %v882_v50 = vrot.slane %v880_v17, 1  ;;  %v1404_v7 = vrot.slane %v5893_v27, 1 }
  0xf1   : > { %v6002_v25 = vsel %vm691_vm3, %v866_v51, %v870_v21  ;;  %4540 = vmatpush3.bf16.msra.mxu0 %v5071_v53  ;;  %v467_v15 = vmax.f32 %v435_v23, 0.0  ;;  %v468_v53 = vmax.f32 %v436_v26, 0.0  ;;  %v1406_v21 = vrot.slane %v5953_v30, 1  ;;  %v5066_v26 = vld [vmem:[#allocation5 + $0x88] sm:$0xff]  }
  0xf2   : > { %4281 = vmatprep.mubr.bf16.mxu1 %v6002_v25  ;;  %4573 = vmatprep.subr.bf16.mxu0 %v5990_v57  ;;  %v877_v6 = vrot.slane %v875_v61, 1  ;;  %v6024_v17 = vsel %vm1366_vm4, %v1403_v28, %v1404_v7  ;;  %v1410_v0 = vrot.slane %v5962_v11, 1  ;;  %v1413_v61 = vrot.slane %v673_v48, 1  ;;  %v5068_v28 = vld [vmem:[#allocation5 + $0x90] sm:$0xff]  }
  0xf3   : > { %v484_v8 = vpack.c.bf16 %v468_v53, %v467_v15  ;;  %v6028_v27 = vsel %vm1366_vm4, %v1406_v21, %v1407_v63  ;;  %v5070_v15 = vld [vmem:[#allocation5 + $0x98] sm:$0xff]   ;;  %v5075_v21 = vld [vmem:[#allocation5 + $0x1c8] sm:$0xff]   ;;  %v5076_v63 = vld [vmem:[#allocation5 + $0xb0] sm:$0xff]  }
  0xf4   : > { %4510 = vmatmul.mubr.bf16.gmra.mrb[16].mxu0 %v5998_v55  ;;  %v878_v60 = vor.u32 %v877_v6, %v873_v20  ;;  %v1412_v20 = vrot.slane %v5995_v38, 1  ;;  %v6037_v6 = vsel %vm1366_vm4, %v1409_v35, %v1410_v0  ;;  %v5083_v35 = vld [vmem:[#allocation5 + $0x1e8] sm:$0xff]   ;;  %v5085_v0 = vld [vmem:[#allocation5 + $0x1f0] sm:$0xff]  }
  0xf5   : > { %4513 = vmatprep.mubr.bf16.mxu0 %v6007_v44  ;;  %v598_v24 = vshrl.u32 %v484_v8, 16  ;;  %v601_v51 = vshll.u32 %v484_v8, 16  ;;  %v5077_v8 = vld [vmem:[#allocation5 + $0x1d0] sm:$0xff]  }
  0xf6   : > { %v6020_v12 = vsel %vm691_vm3, %v878_v60, %v882_v50  ;;  %v6042_v50 = vsel %vm1366_vm4, %v1412_v20, %v1413_v61  ;;  %v5074_v60 = vld [vmem:[#allocation5 + $0xa8] sm:$0xff]   ;;  %v5087_v20 = vld [vmem:[#allocation5 + $0x1f8] sm:$0xff]   ;;  %v5089_v61 = vld [vmem:[#allocation5 + $0x200] sm:$0xff]  }
  0xf7   : > { %4282 = vmatmul.mubr.bf16.gmra.mrb[28].mxu1 %v6020_v12  ;;  %v600_v16 = vrot.slane %v598_v24, 7  ;;  %v5078_v24 = vld [vmem:[#allocation5 + $0xb8] sm:$0xff]  }
  0xf8   : > { %4301 = vmatprep.mubr.bf16.mxu1 %v5600_v3 }
  0xf9   : > { %v603_v23 = vor.u32 %v601_v51, %v600_v16  ;;  %v6050_v48 = vsel %vm5594_vm2, %v600_v16, 0  ;;  %v5079_v51 = vld [vmem:[#allocation5 + $0x1d8] sm:$0xff]   ;;  %v5080_v16 = vld [vmem:[#allocation5 + $0xc0] sm:$0xff]  }
  0xfa   : > { %v2218_v7 = vrot.slane %v6050_v48, 1 }
  0xfb   : > { %v6046_v11 = vsel %vm5594_vm2, 0, %v603_v23  ;;  %v1367_v23 = vrot.slane %v5600_v3, 1 }
  0xfc   : > { %4514 = vmatmul.mubr.bf16.gmra.mrb[20].mxu0 %v6024_v17 }
  0xfd   : > { %4517 = vmatprep.mubr.bf16.mxu0 %v6028_v27 }
  0xff   : > { %4302 = vmatmul.mubr.bf16.vlgmr.msra.gmra.mrb[0].mxu1 %v5656_v32 }
 0x100   : > { %4334 = vmatpush3.bf16.msra.mxu1 %v5808_v54  ;;  %4305 = vmatprep.mubr.bf16.mxu1 %v5669_v41  ;;  %v2217_v54 = vrot.slane %v6046_v11, 1 }
 0x101   : > { %4335 = vmatprep.subr.bf16.mxu1 %v5066_v26 }
 0x102   : > { %v6058_v53 = vsel %vm1366_vm4, %v2217_v54, %v2218_v7  ;;  %v5082_v54 = vld [vmem:[#allocation5 + $0xc8] sm:$0xff]   ;;  %v5086_v7 = vld [vmem:[#allocation5 + $0xd8] sm:$0xff]  }
 0x104   : > { %4518 = vmatmul.mubr.bf16.gmra.mrb[24].mxu0 %v6037_v6  ;;  %4336 = vmatpush3.bf16.msra.mxu1 %v5066_v26  ;;  %v1368_v26 = vrot.slane %v5604_v4, 1  ;;  %v5084_v4 = vld [vmem:[#allocation5 + $0xd0] sm:$0xff]  }
 0x105   : > { %4521 = vmatprep.mubr.bf16.mxu0 %v6042_v50  ;;  %4337 = vmatprep.subr.bf16.mxu1 %v5068_v28 }
 0x107   : > { %4306 = vmatmul.mubr.bf16.gmra.mrb[4].mxu1 %v5686_v58 }
 0x108   : > { %4309 = vmatprep.mubr.bf16.mxu1 %v5694_v9  ;;  %4338 = vmatpush3.bf16.msra.mxu1 %v5068_v28  ;;  %v6087_v28 = vsel %vm1366_vm4, %v1367_v23, %v1368_v26  ;;  %v5103_v23 = vld [vmem:[#allocation5 + $0x108] sm:$0xff]  }
 0x109   : > { %4339 = vmatprep.subr.bf16.mxu1 %v5070_v15  ;;  %v5107_v26 = vld [vmem:[#allocation5 + $0x128] sm:$0xff]  }
 0x10c   : > { %4522 = vmatmul.mubr.bf16.gmra.mrb[28].mxu0 %v6058_v53  ;;  %4340 = vmatpush3.bf16.msra.mxu1 %v5070_v15  ;;  %v5088_v15 = vld [vmem:[#allocation5 + $0xe0] sm:$0xff]  }
 0x10d   : > { %4541 = vmatprep.mubr.bf16.mxu0 %v5669_v41  ;;  %4341 = vmatprep.subr.bf16.mxu1 %v5072_v2 }
 0x10f   : > { %4310 = vmatmul.mubr.bf16.gmra.mrb[8].mxu1 %v5735_v62 }
 0x110   : > { %4313 = vmatprep.mubr.bf16.mxu1 %v5763_v47  ;;  %4342 = vmatpush3.bf16.msra.mxu1 %v5072_v2  ;;  %v5091_v2 = vld [vmem:[#allocation5 + $0x208] sm:$0xff]  }
 0x111   : > { %4343 = vmatprep.subr.bf16.mxu1 %v5074_v60 }
 0x114   : > { %4542 = vmatmul.mubr.bf16.vlgmr.msra.gmra.mrb[0].mxu0 %v5686_v58  ;;  %4344 = vmatpush3.bf16.msra.mxu1 %v5074_v60  ;;  %v5092_v60 = vld [vmem:[#allocation5 + $0xf0] sm:$0xff]  }
 0x115   : > { %4574 = vmatpush3.bf16.msra.mxu0 %v5990_v57  ;;  %4545 = vmatprep.mubr.bf16.mxu0 %v5694_v9  ;;  %v5081_v57 = vld [vmem:[#allocation5 + $0x1e0] sm:$0xff]  }
 0x116   : > { %4575 = vmatprep.subr.bf16.mxu0 %v5075_v21  ;;  %4345 = vmatprep.subr.bf16.mxu1 %v5076_v63 }
 0x117   : > { %4314 = vmatmul.mubr.bf16.gmra.mrb[12].mxu1 %v5771_v59 }
 0x118   : > { %4317 = vmatprep.mubr.bf16.mxu1 %v5785_v18  ;;  %4346 = vmatpush3.bf16.msra.mxu1 %v5076_v63  ;;  %v5097_v63 = vld [vmem:[#allocation5 + $0x228] sm:$0xff]  }
 0x119   : > { %4576 = vmatpush3.bf16.msra.mxu0 %v5075_v21  ;;  %4347 = vmatprep.subr.bf16.mxu1 %v5078_v24  ;;  %v5095_v21 = vld [vmem:[#allocation5 + $0x218] sm:$0xff]  }
 0x11a   : > { %4577 = vmatprep.subr.bf16.mxu0 %v5077_v8 }
 0x11c   : > { %4546 = vmatmul.mubr.bf16.gmra.mrb[4].mxu0 %v5735_v62  ;;  %4348 = vmatpush3.bf16.msra.mxu1 %v5078_v24  ;;  %v1948_v24 = vshll.u32 %v6046_v11, 16 }
 0x11d   : > { %4549 = vmatprep.mubr.bf16.mxu0 %v5763_v47  ;;  %4578 = vmatpush3.bf16.msra.mxu0 %v5077_v8  ;;  %v6323_v8 = vld [vmem:[#allocation19_spill] sm:$0xff] }
 0x11e   : > { %4579 = vmatprep.subr.bf16.mxu0 %v5079_v51  ;;  %4381 = vmatprep.subr.bf16.mxu1 %v5080_v16 }
 0x11f   : > { %4318 = vmatmul.mubr.bf16.gmra.mrb[16].mxu1 %v5847_v39 }
 0x120   : > { %4321 = vmatprep.mubr.bf16.mxu1 %v5863_v33 }
 0x121   : > { %4580 = vmatpush3.bf16.msra.mxu0 %v5079_v51  ;;  %v1946_v51 = vshrl.u32 %v6046_v11, 16 }
 0x122   : > { %4581 = vmatprep.subr.bf16.mxu0 %v5081_v57 }
 0x124   : > { %4550 = vmatmul.mubr.bf16.gmra.mrb[8].mxu0 %v5771_v59 }
 0x125   : > { %4553 = vmatprep.mubr.bf16.mxu0 %v5785_v18  ;;  %4582 = vmatpush3.bf16.msra.mxu0 %v5081_v57  ;;  %v1953_v57 = vshll.u32 %v6050_v48, 16  ;;  %v5105_v48 = vld [vmem:[#allocation5 + $0x118] sm:$0xff]  }
 0x126   : > { %4583 = vmatprep.subr.bf16.mxu0 %v5083_v35 }
 0x127   : > { %4322 = vmatmul.mubr.bf16.gmra.mrb[20].mxu1 %v5886_v10 }
 0x128   : > { %4325 = vmatprep.mubr.bf16.mxu1 %v5907_v19 }
 0x129   : > { %4584 = vmatpush3.bf16.msra.mxu0 %v5083_v35  ;;  %v6326_v35 = vld [vmem:[#allocation22_spill] sm:$0xff] }
 0x12a   : > { %4585 = vmatprep.subr.bf16.mxu0 %v5085_v0 }
 0x12c   : > { %4554 = vmatmul.mubr.bf16.gmra.mrb[12].mxu0 %v5847_v39 }
 0x12d   : > { %4557 = vmatprep.mubr.bf16.mxu0 %v5863_v33  ;;  %4586 = vmatpush3.bf16.msra.mxu0 %v5085_v0 }
 0x12e   : > { %4587 = vmatprep.subr.bf16.mxu0 %v5087_v20 }
 0x12f   : > { %4326 = vmatmul.mubr.bf16.gmra.mrb[24].mxu1 %v5953_v30 }
 0x130   : > { %4329 = vmatprep.mubr.bf16.mxu1 %v5973_v34 }
 0x131   : > { %4588 = vmatpush3.bf16.msra.mxu0 %v5087_v20  ;;  %v1955_v20 = vrot.slane %v1953_v57, 1 }
 0x132   : > { %4621 = vmatprep.subr.bf16.mxu0 %v5089_v61 }
 0x134   : > { %4558 = vmatmul.mubr.bf16.gmra.mrb[16].mxu0 %v5886_v10 }
 0x135   : > { %4561 = vmatprep.mubr.bf16.mxu0 %v5907_v19 }
 0x137   : > { %4330 = vmatmul.mubr.bf16.gmra.mrb[28].mxu1 %v5995_v38 }
 0x138   : > { %4349 = vmatprep.mubr.bf16.mxu1 %v6087_v28 }
 0x13c   : > { %4562 = vmatmul.mubr.bf16.gmra.mrb[20].mxu0 %v5953_v30 }
 0x13d   : > { %4565 = vmatprep.mubr.bf16.mxu0 %v5973_v34 }
 0x13f   : > { %4350 = vmatmul.mubr.bf16.vlgmr.msra.gmra.mrb[0].mxu1 %v5745_v36  ;;  %v5090_v36 = vld [vmem:[#allocation5 + $0xe8] sm:$0xff]  }
 0x140   : > { %4382 = vmatpush3.bf16.msra.mxu1 %v5080_v16  ;;  %4353 = vmatprep.mubr.bf16.mxu1 %v5803_v43  ;;  %v1950_v16 = vrot.slane %v1948_v24, 1 }
 0x141   : > { %4383 = vmatprep.subr.bf16.mxu1 %v5082_v54 }
 0x142   : > { %v1951_v0 = vor.u32 %v1950_v16, %v1946_v51 }
 0x144   : > { %4566 = vmatmul.mubr.bf16.gmra.mrb[24].mxu0 %v5995_v38  ;;  %4384 = vmatpush3.bf16.msra.mxu1 %v5082_v54 }
 0x145   : > { %4569 = vmatprep.mubr.bf16.mxu0 %v6046_v11  ;;  %4385 = vmatprep.subr.bf16.mxu1 %v5084_v4 }
 0x147   : > { %4354 = vmatmul.mubr.bf16.gmra.mrb[4].mxu1 %v5828_v22 }
 0x148   : > { %4357 = vmatprep.mubr.bf16.mxu1 %v5833_v29  ;;  %4386 = vmatpush3.bf16.msra.mxu1 %v5084_v4 }
 0x149   : > { %4387 = vmatprep.subr.bf16.mxu1 %v5086_v7 }
 0x14c   : > { %4570 = vmatmul.mubr.bf16.gmra.mrb[28].mxu0 %v5600_v3  ;;  %4388 = vmatpush3.bf16.msra.mxu1 %v5086_v7  ;;  %v5093_v3 = vld [vmem:[#allocation5 + $0x210] sm:$0xff]  }
 0x14d   : > { %4589 = vmatprep.mubr.bf16.mxu0 %v5698_v14  ;;  %4389 = vmatprep.subr.bf16.mxu1 %v5088_v15  ;;  %v5094_v14 = vld [vmem:[#allocation5 + $0xf8] sm:$0xff]  }
 0x14f   : > { %4358 = vmatmul.mubr.bf16.gmra.mrb[8].mxu1 %v5902_v56 }
 0x150   : > { %4361 = vmatprep.mubr.bf16.mxu1 %v5931_v46  ;;  %4390 = vmatpush3.bf16.msra.mxu1 %v5088_v15 }
 0x151   : > { %4391 = vmatprep.subr.bf16.mxu1 %v5090_v36 }
 0x154   : > { %4590 = vmatmul.mubr.bf16.vlgmr.msra.gmra.mrb[0].mxu0 %v5711_v13  ;;  %4392 = vmatpush3.bf16.msra.mxu1 %v5090_v36  ;;  %v5096_v13 = vld [vmem:[#allocation5 + $0x220] sm:$0xff]  }
 0x155   : > { %4622 = vmatpush3.bf16.msra.mxu0 %v5089_v61  ;;  %4593 = vmatprep.mubr.bf16.mxu0 %v5718_v45  ;;  %v5102_v45 = vld [vmem:[#allocation5 + $0x100] sm:$0xff]   ;;  %v1956_v61 = vsel %vm691_vm3, %v1951_v0, %v1955_v20 }
 0x156   : > { %4623 = vmatprep.subr.bf16.mxu0 %v5091_v2  ;;  %4393 = vmatprep.subr.bf16.mxu1 %v5092_v60 }
 0x157   : > { %4362 = vmatmul.mubr.bf16.gmra.mrb[12].mxu1 %v5937_v52 }
 0x158   : > { %4365 = vmatprep.mubr.bf16.mxu1 %v5965_v49  ;;  %4394 = vmatpush3.bf16.msra.mxu1 %v5092_v60 }
 0x159   : > { %4624 = vmatpush3.bf16.msra.mxu0 %v5091_v2  ;;  %4395 = vmatprep.subr.bf16.mxu1 %v5094_v14 }
 0x15a   : > { %4625 = vmatprep.subr.bf16.mxu0 %v5093_v3 }
 0x15c   : > { %4594 = vmatmul.mubr.bf16.gmra.mrb[4].mxu0 %v5752_v42  ;;  %4396 = vmatpush3.bf16.msra.mxu1 %v5094_v14  ;;  %v5098_v42 = vld [vmem:[#allocation5 + $0x230] sm:$0xff]  }
 0x15d   : > { %4597 = vmatprep.mubr.bf16.mxu0 %v5793_v31  ;;  %4626 = vmatpush3.bf16.msra.mxu0 %v5093_v3  ;;  %v5099_v31 = vld [vmem:[#allocation5 + $0x238] sm:$0xff]  }
 0x15e   : > { %4627 = vmatprep.subr.bf16.mxu0 %v5095_v21  ;;  %4669 = vmatprep.subr.bf16.mxu1 %v5102_v45 }
 0x15f   : > { %4366 = vmatmul.mubr.bf16.gmra.mrb[16].mxu1 %v5969_v5 }
 0x160   : > { %4369 = vmatprep.mubr.bf16.mxu1 %v5998_v55 }
 0x161   : > { %4628 = vmatpush3.bf16.msra.mxu0 %v5095_v21 }
 0x162   : > { %4629 = vmatprep.subr.bf16.mxu0 %v5096_v13 }
 0x164   : > { %4598 = vmatmul.mubr.bf16.gmra.mrb[8].mxu0 %v5798_v40  ;;  %v6324_v40 = vld [vmem:[#allocation20_spill] sm:$0xff] }
 0x165   : > { %4601 = vmatprep.mubr.bf16.mxu0 %v5817_v1  ;;  %4630 = vmatpush3.bf16.msra.mxu0 %v5096_v13  ;;  %v6325_v1 = vld [vmem:[#allocation21_spill] sm:$0xff] }
 0x166   : > { %4631 = vmatprep.subr.bf16.mxu0 %v5097_v63 }
 0x167   : > { %4370 = vmatmul.mubr.bf16.gmra.mrb[20].mxu1 %v6007_v44 }
 0x168   : > { %4373 = vmatprep.mubr.bf16.mxu1 %v6024_v17 }
 0x169   : > { %4632 = vmatpush3.bf16.msra.mxu0 %v5097_v63 }
 0x16a   : > { %4633 = vmatprep.subr.bf16.mxu0 %v5098_v42 }
 0x16c   : > { %4602 = vmatmul.mubr.bf16.gmra.mrb[12].mxu0 %v5868_v37 }
 0x16d   : > { %4605 = vmatprep.mubr.bf16.mxu0 %v6323_v8  ;;  %4634 = vmatpush3.bf16.msra.mxu0 %v5098_v42 }
 0x16e   : > { %4635 = vmatprep.subr.bf16.mxu0 %v5099_v31 }
 0x16f   : > { %4374 = vmatmul.mubr.bf16.gmra.mrb[24].mxu1 %v6028_v27 }
 0x170   : > { %4377 = vmatprep.mubr.bf16.mxu1 %v6037_v6 }
 0x171   : > { %4636 = vmatpush3.bf16.msra.mxu0 %v5099_v31 }
 0x174   : > { %4606 = vmatmul.mubr.bf16.gmra.mrb[16].mxu0 %v6324_v40 }
 0x175   : > { %4609 = vmatprep.mubr.bf16.mxu0 %v6325_v1 }
 0x177   : > { %4378 = vmatmul.mubr.bf16.gmra.mrb[28].mxu1 %v6042_v50 }
 0x178   : > { %4397 = vmatprep.mubr.bf16.mxu1 %v5656_v32  ;;  %v5104_v32 = vld [vmem:[#allocation5 + $0x110] sm:$0xff]  }
 0x17c   : > { %4610 = vmatmul.mubr.bf16.gmra.mrb[20].mxu0 %v6326_v35 }
 0x17d   : > { %4613 = vmatprep.mubr.bf16.mxu0 %v6002_v25 }
 0x17f   : > { %4398 = vmatmul.mubr.bf16.vlgmr.msra.gmra.mrb[0].mxu1 %v5669_v41  ;;  %v6327_v41 = vld [vmem:[#allocation18_spill] sm:$0xff] }
 0x180   : > { %4677 = vmatpush3.bf16.msra.mxu1 %v5102_v45  ;;  %4401 = vmatprep.mubr.bf16.mxu1 %v5686_v58  ;;  %v5106_v58 = vld [vmem:[#allocation5 + $0x120] sm:$0xff]  }
 0x181   : > { %4670 = vmatprep.subr.bf16.mxu1 %v5103_v23 }
 0x184   : > { %4614 = vmatmul.mubr.bf16.gmra.mrb[24].mxu0 %v6020_v12  ;;  %4678 = vmatpush3.bf16.msra.mxu1 %v5103_v23 }
 0x185   : > { %4617 = vmatprep.mubr.bf16.mxu0 %v1956_v61  ;;  %4671 = vmatprep.subr.bf16.mxu1 %v5104_v32 }
 0x187   : > { %4402 = vmatmul.mubr.bf16.gmra.mrb[4].mxu1 %v5694_v9  ;;  %v5108_v9 = vld [vmem:[#allocation5 + $0x130] sm:$0xff]  }
 0x188   : > { %4405 = vmatprep.mubr.bf16.mxu1 %v5735_v62  ;;  %4679 = vmatpush3.bf16.msra.mxu1 %v5104_v32  ;;  %v5109_v62 = vld [vmem:[#allocation5 + $0x138] sm:$0xff]  }
 0x189   : > { %4672 = vmatprep.subr.bf16.mxu1 %v5105_v48 }
 0x18c   : > { %4618 = vmatmul.mubr.bf16.gmra.mrb[28].mxu0 %v6327_v41  ;;  %4680 = vmatpush3.bf16.msra.mxu1 %v5105_v48 }
 0x18d   : > { %4637 = vmatprep.mubr.bf16.mxu0 %v5803_v43  ;;  %4673 = vmatprep.subr.bf16.mxu1 %v5106_v58 }
 0x18f   : > { %4406 = vmatmul.mubr.bf16.gmra.mrb[8].mxu1 %v5763_v47 }
 0x190   : > { %4409 = vmatprep.mubr.bf16.mxu1 %v5771_v59  ;;  %4681 = vmatpush3.bf16.msra.mxu1 %v5106_v58 }
 0x191   : > { %4674 = vmatprep.subr.bf16.mxu1 %v5107_v26 }
 0x194   : > { %4638 = vmatmul.mubr.bf16.vlgmr.msra.gmra.mrb[0].mxu0 %v5828_v22  ;;  %4682 = vmatpush3.bf16.msra.mxu1 %v5107_v26 }
 0x195   : > { %4641 = vmatprep.mubr.bf16.mxu0 %v5833_v29  ;;  %4675 = vmatprep.subr.bf16.mxu1 %v5108_v9 }
 0x197   : > { %4410 = vmatmul.mubr.bf16.gmra.mrb[12].mxu1 %v5785_v18 }
 0x198   : > { %4413 = vmatprep.mubr.bf16.mxu1 %v5847_v39  ;;  %4683 = vmatpush3.bf16.msra.mxu1 %v5108_v9 }
 0x199   : > { %4676 = vmatprep.subr.bf16.mxu1 %v5109_v62 }
 0x19c   : > { %4642 = vmatmul.mubr.bf16.gmra.mrb[4].mxu0 %v5902_v56  ;;  %4684 = vmatpush3.bf16.msra.mxu1 %v5109_v62 }
 0x19d   : > { %4645 = vmatprep.mubr.bf16.mxu0 %v5931_v46 }
 0x19f   : > { %4414 = vmatmul.mubr.bf16.gmra.mrb[16].mxu1 %v5863_v33 }
 0x1a0   : > { %4417 = vmatprep.mubr.bf16.mxu1 %v5886_v10 }
 0x1a4   : > { %4646 = vmatmul.mubr.bf16.gmra.mrb[8].mxu0 %v5937_v52 }
 0x1a5   : > { %4649 = vmatprep.mubr.bf16.mxu0 %v5965_v49 }
 0x1a7   : > { %4418 = vmatmul.mubr.bf16.gmra.mrb[20].mxu1 %v5907_v19 }
 0x1a8   : > { %4421 = vmatprep.mubr.bf16.mxu1 %v5953_v30 }
 0x1ac   : > { %4650 = vmatmul.mubr.bf16.gmra.mrb[12].mxu0 %v5969_v5 }
 0x1ad   : > { %4653 = vmatprep.mubr.bf16.mxu0 %v5998_v55 }
 0x1af   : > { %4422 = vmatmul.mubr.bf16.gmra.mrb[24].mxu1 %v5973_v34 }
 0x1b0   : > { %4425 = vmatprep.mubr.bf16.mxu1 %v5995_v38 }
 0x1b4   : > { %4654 = vmatmul.mubr.bf16.gmra.mrb[16].mxu0 %v6007_v44 }
 0x1b5   : > { %4657 = vmatprep.mubr.bf16.mxu0 %v6024_v17 }
 0x1b7   : > { %4426 = vmatmul.mubr.bf16.gmra.mrb[28].mxu1 %v6046_v11 }
 0x1b8   : > { %4461 = vmatprep.mubr.bf16.mxu1 %v5868_v37 }
 0x1bc   : > { %4658 = vmatmul.mubr.bf16.gmra.mrb[20].mxu0 %v6028_v27 }
 0x1bd   : > { %4661 = vmatprep.mubr.bf16.mxu0 %v6037_v6 }
 0x1bf   : > { %4462 = vmatmul.mubr.bf16.vlgmr.msra.gmra.mrb[16].mxu1 %v6323_v8 }
 0x1c0   : > { %4465 = vmatprep.mubr.bf16.mxu1 %v6324_v40 }
 0x1c4   : > { %4662 = vmatmul.mubr.bf16.gmra.mrb[24].mxu0 %v6042_v50 }
 0x1c5   : > { %4665 = vmatprep.mubr.bf16.mxu0 %v6058_v53 }
 0x1c7   : > { %4466 = vmatmul.mubr.bf16.gmra.mrb[20].mxu1 %v6325_v1 }
 0x1c8   : > { %4469 = vmatprep.mubr.bf16.mxu1 %v6326_v35 }
 0x1cc   : > { %4666 = vmatmul.mubr.bf16.gmra.mrb[28].mxu0 %v6087_v28 }
 0x1cf   : > { %4470 = vmatmul.mubr.bf16.gmra.mrb[24].mxu1 %v6002_v25 }
 0x1d0   : > { %4473 = vmatprep.mubr.bf16.mxu1 %v6020_v12 }
 0x1d7   : > { %4474 = vmatmul.mubr.bf16.gmra.mrb[28].mxu1 %v1956_v61 }
 0x252   : > { %v4399_v47 = vpop.f32.mrb[0].mxu1 }
 0x253   : > { %v1786_v59 = vpop.f32.mrb[1].mxu1 }
 0x254   : > { %v4400_v18 = vpop.f32.mrb[2].mxu1 }
 0x255   : > { %v1789_v43 = vpop.f32.mrb[3].mxu1 }
 0x25a   : > { %v4403_v22 = vpop.f32.mrb[4].mxu1 }
 0x25b   : > { %v1802_v29 = vpop.f32.mrb[5].mxu1 }
 0x25c   : > { %v4404_v39 = vpop.f32.mrb[6].mxu1 }
 0x25d   : > { %v1805_v33 = vpop.f32.mrb[7].mxu1 }
 0x262   : > { %v4407_v37 = vpop.f32.mrb[8].mxu1 }
 0x263   : > { %v1818_v10 = vpop.f32.mrb[9].mxu1 }
 0x264   : > { %v4408_v38 = vpop.f32.mrb[10].mxu1 }
 0x265   : > { %v1821_v56 = vpop.f32.mrb[11].mxu1 }
 0x267   : > { %v4639_v19 = vpop.f32.mrb[0].mxu0 }
 0x268   : > { %v4685_v46 = vadd.f32 %v4639_v19, %v4399_v47  ;;  %v3090_v5 = vpop.f32.mrb[1].mxu0 }
 0x269   : > { %v4686_v52 = vadd.f32 %v3090_v5, %v1786_v59  ;;  %v4640_v30 = vpop.f32.mrb[2].mxu0 }
 0x26a   : > { %v4687_v49 = vadd.f32 %v4640_v30, %v4400_v18  ;;  %v3093_v34 = vpop.f32.mrb[3].mxu0  ;;  %v6169_v25 = vpop.f32.mrb[12].mxu1  ;;  %v3448_v28 = vmul.f32 %v4685_v46, %v4685_v46 }
 0x26b   : > { %v4688_v55 = vadd.f32 %v3093_v34, %v1789_v43  ;;  %v6171_v12 = vpop.f32.mrb[13].mxu1  ;;  %v3446_v17 = vmul.f32 %v4686_v52, %v4686_v52 }
 0x26c   : > { %v3919_v44 = vpack.c.bf16 %v4687_v49, %v4685_v46  ;;  %v6173_v11 = vpop.f32.mrb[14].mxu1  ;;  %v3449_v2 = vmul.f32 %v4687_v49, %v4687_v49 }
 0x26d   : > { %v3914_v27 = vpack.c.bf16 %v4688_v55, %v4686_v52  ;;  %v3409_v6 = vadd.f32 %v4688_v55, %v4686_v52  ;;  %v3447_v50 = vmul.f32 %v4688_v55, %v4688_v55  ;;  %v6180_v53 = vpop.f32.mrb[15].mxu1 }
 0x26e   : > { %4006 = vst [vmem:[%s6177_s24 + $0x8] sm:$0xff] %v3919_v44  }
 0x26f   : > { %3915 = vst [vmem:[%s6177_s24] sm:$0xff] %v3914_v27   ;;  %v3410_v54 = vadd.f32 %v4685_v46, %v3409_v6  ;;  %v3478_v4 = vadd.f32 %v3447_v50, %v3446_v17  ;;  %v4643_v7 = vpop.f32.mrb[4].mxu0 }
 0x270   : > { %v4689_v15 = vadd.f32 %v4643_v7, %v4403_v22  ;;  %v3106_v36 = vpop.f32.mrb[5].mxu0 }
 0x271   : > { %v3479_v60 = vadd.f32 %v3478_v4, %v3448_v28  ;;  %v4690_v3 = vadd.f32 %v3106_v36, %v1802_v29  ;;  %v3411_v14 = vadd.f32 %v4687_v49, %v3410_v54  ;;  %v4644_v21 = vpop.f32.mrb[6].mxu0 }
 0x272   : > { %v4691_v13 = vadd.f32 %v4644_v21, %v4404_v39  ;;  %v3109_v45 = vpop.f32.mrb[7].mxu0  ;;  %v3452_v57 = vmul.f32 %v4689_v15, %v4689_v15 }
 0x273   : > { %v3412_v63 = vadd.f32 %v4690_v3, %v3411_v14  ;;  %v3450_v42 = vmul.f32 %v4690_v3, %v4690_v3  ;;  %v3480_v31 = vadd.f32 %v3479_v60, %v3449_v2  ;;  %v4692_v8 = vadd.f32 %v3109_v45, %v1805_v33 }
 0x274   : > { %v3929_v40 = vpack.c.bf16 %v4691_v13, %v4689_v15  ;;  %v3453_v32 = vmul.f32 %v4691_v13, %v4691_v13 }
 0x275   : > { %v3481_v1 = vadd.f32 %v3480_v31, %v3450_v42  ;;  %v3924_v24 = vpack.c.bf16 %v4692_v8, %v4690_v3  ;;  %v3413_v51 = vadd.f32 %v4692_v8, %v3412_v63  ;;  %v3451_v16 = vmul.f32 %v4692_v8, %v4692_v8 }
 0x276   : > { %4008 = vst [vmem:[%s6177_s24 + $0x18] sm:$0xff] %v3929_v40  }
 0x277   : > { %4007 = vst [vmem:[%s6177_s24 + $0x10] sm:$0xff] %v3924_v24   ;;  %v3414_v35 = vadd.f32 %v4689_v15, %v3413_v51  ;;  %v3482_v0 = vadd.f32 %v3481_v1, %v3451_v16  ;;  %v4647_v20 = vpop.f32.mrb[8].mxu0 }
 0x278   : > { %v4693_v61 = vadd.f32 %v4647_v20, %v4407_v37  ;;  %v3122_v23 = vpop.f32.mrb[9].mxu0 }
 0x279   : > { %v3483_v48 = vadd.f32 %v3482_v0, %v3452_v57  ;;  %v4694_v41 = vadd.f32 %v3122_v23, %v1818_v10  ;;  %v3415_v58 = vadd.f32 %v4691_v13, %v3414_v35  ;;  %v4648_v26 = vpop.f32.mrb[10].mxu0 }
 0x27a   : > { %v4695_v9 = vadd.f32 %v4648_v26, %v4408_v38  ;;  %v3125_v62 = vpop.f32.mrb[11].mxu0  ;;  %v3456_v37 = vmul.f32 %v4693_v61, %v4693_v61 }
 0x27b   : > { %v3416_v47 = vadd.f32 %v4694_v41, %v3415_v58  ;;  %v3454_v59 = vmul.f32 %v4694_v41, %v4694_v41  ;;  %v3484_v18 = vadd.f32 %v3483_v48, %v3453_v32  ;;  %v4696_v43 = vadd.f32 %v3125_v62, %v1821_v56 }
 0x27c   : > { %v3939_v22 = vpack.c.bf16 %v4695_v9, %v4693_v61  ;;  %v3457_v38 = vmul.f32 %v4695_v9, %v4695_v9 }
 0x27d   : > { %v3485_v29 = vadd.f32 %v3484_v18, %v3454_v59  ;;  %v3934_v39 = vpack.c.bf16 %v4696_v43, %v4694_v41  ;;  %v3417_v33 = vadd.f32 %v4696_v43, %v3416_v47  ;;  %v3455_v19 = vmul.f32 %v4696_v43, %v4696_v43 }
 0x27e   : > { %4010 = vst [vmem:[%s6177_s24 + $0x28] sm:$0xff] %v3939_v22  }
 0x27f   : > { %4009 = vst [vmem:[%s6177_s24 + $0x20] sm:$0xff] %v3934_v39   ;;  %v3418_v46 = vadd.f32 %v4693_v61, %v3417_v33  ;;  %v3486_v5 = vadd.f32 %v3485_v29, %v3455_v19  ;;  %v4651_v10 = vpop.f32.mrb[12].mxu0 }
 0x280   : > { %v4697_v52 = vadd.f32 %v4651_v10, %v6169_v25  ;;  %v3138_v30 = vpop.f32.mrb[13].mxu0 }
 0x281   : > { %v3487_v49 = vadd.f32 %v3486_v5, %v3456_v37  ;;  %v4698_v34 = vadd.f32 %v3138_v30, %v6171_v12  ;;  %v3419_v56 = vadd.f32 %v4695_v9, %v3418_v46  ;;  %v4652_v55 = vpop.f32.mrb[14].mxu0 }
 0x282   : > { %v4699_v44 = vadd.f32 %v4652_v55, %v6173_v11  ;;  %v3141_v17 = vpop.f32.mrb[15].mxu0  ;;  %v3460_v36 = vmul.f32 %v4697_v52, %v4697_v52 }
 0x283   : > { %v3420_v27 = vadd.f32 %v4698_v34, %v3419_v56  ;;  %v3458_v6 = vmul.f32 %v4698_v34, %v4698_v34  ;;  %v3488_v50 = vadd.f32 %v3487_v49, %v3457_v38  ;;  %v4700_v28 = vadd.f32 %v3141_v17, %v6180_v53 }
 0x284   : > { %v3949_v54 = vpack.c.bf16 %v4699_v44, %v4697_v52  ;;  %v3461_v14 = vmul.f32 %v4699_v44, %v4699_v44 }
 0x285   : > { %v3489_v4 = vadd.f32 %v3488_v50, %v3458_v6  ;;  %v3944_v25 = vpack.c.bf16 %v4700_v28, %v4698_v34  ;;  %v3421_v7 = vadd.f32 %v4700_v28, %v3420_v27  ;;  %v3459_v15 = vmul.f32 %v4700_v28, %v4700_v28 }
 0x286   : > { %4012 = vst [vmem:[%s6177_s24 + $0x38] sm:$0xff] %v3949_v54  }
 0x287   : > { %4011 = vst [vmem:[%s6177_s24 + $0x30] sm:$0xff] %v3944_v25   ;;  %v3422_v12 = vadd.f32 %v4697_v52, %v3421_v7  ;;  %v3490_v2 = vadd.f32 %v3489_v4, %v3459_v15  ;;  %v4655_v60 = vpop.f32.mrb[16].mxu0 }
 0x288   : > { %v3154_v3 = vpop.f32.mrb[17].mxu0 }
 0x289   : > { %v3491_v11 = vadd.f32 %v3490_v2, %v3460_v36  ;;  %v3423_v21 = vadd.f32 %v4699_v44, %v3422_v12  ;;  %v4656_v13 = vpop.f32.mrb[18].mxu0 }
 0x28a   : > { %v3157_v45 = vpop.f32.mrb[19].mxu0 }
 0x28b   : > { %v3492_v63 = vadd.f32 %v3491_v11, %v3461_v14 }
 0x28f   : > { %v4659_v42 = vpop.f32.mrb[20].mxu0 }
 0x290   : > { %v3170_v53 = vpop.f32.mrb[21].mxu0 }
 0x291   : > { %v4660_v31 = vpop.f32.mrb[22].mxu0 }
 0x292   : > { %v3173_v8 = vpop.f32.mrb[23].mxu0  ;;  %v4463_v40 = vpop.f32.mrb[16].mxu1 }
 0x293   : > { %v4701_v1 = vadd.f32 %v4655_v60, %v4463_v40  ;;  %v2120_v24 = vpop.f32.mrb[17].mxu1 }
 0x294   : > { %v4702_v51 = vadd.f32 %v3154_v3, %v2120_v24  ;;  %v4464_v16 = vpop.f32.mrb[18].mxu1 }
 0x295   : > { %v4703_v57 = vadd.f32 %v4656_v13, %v4464_v16  ;;  %v2123_v35 = vpop.f32.mrb[19].mxu1  ;;  %v3464_v59 = vmul.f32 %v4701_v1, %v4701_v1 }
 0x296   : > { %v3424_v20 = vadd.f32 %v4702_v51, %v3423_v21  ;;  %v3462_v61 = vmul.f32 %v4702_v51, %v4702_v51  ;;  %v4704_v23 = vadd.f32 %v3157_v45, %v2123_v35 }
 0x297   : > { %v4663_v0 = vpop.f32.mrb[24].mxu0  ;;  %v3959_v48 = vpack.c.bf16 %v4703_v57, %v4701_v1  ;;  %v3465_v33 = vmul.f32 %v4703_v57, %v4703_v57 }
 0x298   : > { %v3186_v32 = vpop.f32.mrb[25].mxu0  ;;  %v3493_v58 = vadd.f32 %v3492_v63, %v3462_v61  ;;  %v3954_v26 = vpack.c.bf16 %v4704_v23, %v4702_v51  ;;  %v3425_v9 = vadd.f32 %v4704_v23, %v3424_v20  ;;  %v3463_v62 = vmul.f32 %v4704_v23, %v4704_v23 }
 0x299   : > { %v4664_v41 = vpop.f32.mrb[26].mxu0  ;;  %4014 = vst [vmem:[%s6177_s24 + $0x48] sm:$0xff] %v3959_v48  }
 0x29a   : > { %v3189_v47 = vpop.f32.mrb[27].mxu0  ;;  %4013 = vst [vmem:[%s6177_s24 + $0x40] sm:$0xff] %v3954_v26   ;;  %v3426_v18 = vadd.f32 %v4701_v1, %v3425_v9  ;;  %v3494_v43 = vadd.f32 %v3493_v58, %v3463_v62  ;;  %v4467_v22 = vpop.f32.mrb[20].mxu1 }
 0x29b   : > { %v4705_v29 = vadd.f32 %v4659_v42, %v4467_v22  ;;  %v2136_v39 = vpop.f32.mrb[21].mxu1 }
 0x29c   : > { %v3495_v19 = vadd.f32 %v3494_v43, %v3464_v59  ;;  %v4706_v37 = vadd.f32 %v3170_v53, %v2136_v39  ;;  %v3427_v46 = vadd.f32 %v4703_v57, %v3426_v18  ;;  %v4468_v5 = vpop.f32.mrb[22].mxu1 }
 0x29d   : > { %v4707_v10 = vadd.f32 %v4660_v31, %v4468_v5  ;;  %v2139_v52 = vpop.f32.mrb[23].mxu1  ;;  %v3468_v4 = vmul.f32 %v4705_v29, %v4705_v29 }
 0x29e   : > { %v3428_v38 = vadd.f32 %v4706_v37, %v3427_v46  ;;  %v3466_v49 = vmul.f32 %v4706_v37, %v4706_v37  ;;  %v3496_v34 = vadd.f32 %v3495_v19, %v3465_v33  ;;  %v4708_v56 = vadd.f32 %v3173_v8, %v2139_v52 }
 0x29f   : > { %v4667_v30 = vpop.f32.mrb[28].mxu0  ;;  %v3969_v44 = vpack.c.bf16 %v4707_v10, %v4705_v29  ;;  %v3469_v2 = vmul.f32 %v4707_v10, %v4707_v10 }
 0x2a0   : > { %v3202_v55 = vpop.f32.mrb[29].mxu0  ;;  %v3497_v27 = vadd.f32 %v3496_v34, %v3466_v49  ;;  %v3964_v6 = vpack.c.bf16 %v4708_v56, %v4706_v37  ;;  %v3429_v50 = vadd.f32 %v4708_v56, %v3428_v38  ;;  %v3467_v28 = vmul.f32 %v4708_v56, %v4708_v56 }
 0x2a1   : > { %v4668_v17 = vpop.f32.mrb[30].mxu0  ;;  %4016 = vst [vmem:[%s6177_s24 + $0x58] sm:$0xff] %v3969_v44  }
 0x2a2   : > { %v3205_v54 = vpop.f32.mrb[31].mxu0  ;;  %4015 = vst [vmem:[%s6177_s24 + $0x50] sm:$0xff] %v3964_v6   ;;  %v3430_v25 = vadd.f32 %v4705_v29, %v3429_v50  ;;  %v3498_v7 = vadd.f32 %v3497_v27, %v3467_v28  ;;  %v4471_v15 = vpop.f32.mrb[24].mxu1 }
 0x2a3   : > { %v4709_v36 = vadd.f32 %v4663_v0, %v4471_v15  ;;  %v2152_v12 = vpop.f32.mrb[25].mxu1 }
 0x2a4   : > { %v3499_v60 = vadd.f32 %v3498_v7, %v3468_v4  ;;  %v4710_v3 = vadd.f32 %v3186_v32, %v2152_v12  ;;  %v3431_v14 = vadd.f32 %v4707_v10, %v3430_v25  ;;  %v4472_v11 = vpop.f32.mrb[26].mxu1 }
 0x2a5   : > { %v4711_v21 = vadd.f32 %v4664_v41, %v4472_v11  ;;  %v2155_v13 = vpop.f32.mrb[27].mxu1  ;;  %v3472_v51 = vmul.f32 %v4709_v36, %v4709_v36 }
 0x2a6   : > { %v3432_v45 = vadd.f32 %v4710_v3, %v3431_v14  ;;  %v3470_v63 = vmul.f32 %v4710_v3, %v4710_v3  ;;  %v3500_v42 = vadd.f32 %v3499_v60, %v3469_v2  ;;  %v4712_v53 = vadd.f32 %v3189_v47, %v2155_v13 }
 0x2a7   : > { %v3979_v31 = vpack.c.bf16 %v4711_v21, %v4709_v36  ;;  %v3473_v61 = vmul.f32 %v4711_v21, %v4711_v21 }
 0x2a8   : > { %v3501_v8 = vadd.f32 %v3500_v42, %v3470_v63  ;;  %v3974_v40 = vpack.c.bf16 %v4712_v53, %v4710_v3  ;;  %v3433_v1 = vadd.f32 %v4712_v53, %v3432_v45  ;;  %v3471_v24 = vmul.f32 %v4712_v53, %v4712_v53 }
 0x2a9   : > { %4018 = vst [vmem:[%s6177_s24 + $0x68] sm:$0xff] %v3979_v31  }
 0x2aa   : > { %4017 = vst [vmem:[%s6177_s24 + $0x60] sm:$0xff] %v3974_v40   ;;  %v3434_v16 = vadd.f32 %v4709_v36, %v3433_v1  ;;  %v3502_v57 = vadd.f32 %v3501_v8, %v3471_v24  ;;  %v4475_v35 = vpop.f32.mrb[28].mxu1 }
 0x2ab   : > { %v4713_v0 = vadd.f32 %v4667_v30, %v4475_v35  ;;  %v2168_v20 = vpop.f32.mrb[29].mxu1 }
 0x2ac   : > { %v3503_v23 = vadd.f32 %v3502_v57, %v3472_v51  ;;  %v4714_v32 = vadd.f32 %v3202_v55, %v2168_v20  ;;  %v3435_v48 = vadd.f32 %v4711_v21, %v3434_v16  ;;  %v4476_v41 = vpop.f32.mrb[30].mxu1 }
 0x2ad   : > { %v4715_v58 = vadd.f32 %v4668_v17, %v4476_v41  ;;  %v2171_v26 = vpop.f32.mrb[31].mxu1  ;;  %v3476_v33 = vmul.f32 %v4713_v0, %v4713_v0 }
 0x2ae   : > { %v3436_v9 = vadd.f32 %v4714_v32, %v3435_v48  ;;  %v3474_v62 = vmul.f32 %v4714_v32, %v4714_v32  ;;  %v3504_v47 = vadd.f32 %v3503_v23, %v3473_v61  ;;  %v4716_v59 = vadd.f32 %v3205_v54, %v2171_v26 }
 0x2af   : > { %v3989_v18 = vpack.c.bf16 %v4715_v58, %v4713_v0 }
 0x2b0   : > { %v3505_v43 = vadd.f32 %v3504_v47, %v3474_v62  ;;  %v3984_v22 = vpack.c.bf16 %v4716_v59, %v4714_v32  ;;  %v3437_v29 = vadd.f32 %v4716_v59, %v3436_v9  ;;  %v3475_v39 = vmul.f32 %v4716_v59, %v4716_v59 }
 0x2b1   : > { %4020 = vst [vmem:[%s6177_s24 + $0x78] sm:$0xff] %v3989_v18  }
 0x2b2   : > { %4019 = vst [vmem:[%s6177_s24 + $0x70] sm:$0xff] %v3984_v22   ;;  %v3438_v19 = vadd.f32 %v4713_v0, %v3437_v29  ;;  %v3506_v37 = vadd.f32 %v3505_v43, %v3475_v39 }
 0x2b3   : > { %5237 = shalt.err (!%p5234_p4)
}
 0x2b4   : > { %s5238_s12 = scalar_lea.hbm %s6204_s6, 2048  ;;  %s5242_s17 = scalar_lea.hbm %s6288_s4, 4096 }
 0x2b5   : > { %p5239_p9 = scmp.ne.s32.totalorder %s6204_s6, %s5238_s12  ;;  %p5243_p8 = scmp.lt.u32.totalorder %s6204_s6, %s6288_s4 }
 0x2b6   : > { %p5244_p13 = scmp.lt.u32.totalorder %s5242_s17, %s5238_s12  ;;  %p5246_p10 = scmp.lt.u32.totalorder %s5238_s12, %s6204_s6 }
 0x2b7   : > { %p5240_p0 = pnand %p5239_p9, %p5522_p5 }
 0x2b8   : > { %p5245_p6 = por %p5244_p13, %p5243_p8 }
 0x2b9   : > { %p5241_p11 = pneg %p5240_p0 }
 0x2ba   : > { %p5247_p3 = por %p5246_p10, %p5245_p6 }
 0x2bc   : > { %p5248_p7 = pnand %p5247_p3, %p5241_p11 }
 0x2be   : > { %5251 = shalt.err (!%p5248_p7)
}
 0x2bf   : > { %s5340_s27 = smov 64   ;;  %s5341_s16 = smov 4   ;;  %v3477_v46 = vmul.f32 %v4715_v58, %v4715_v58  ;;  %v3439_v5 = vadd.f32 %v4715_v58, %v3438_v19  ;;  %v3507_v10 = vadd.f32 %v3506_v37, %v3476_v33 }
 0x2c0   : > { %4955 = dma.vmem_to_hbm [thread:$0]  (%p5522_p5), %s6206_s23, 2048, %s6204_s6, %s3519_s30, %s5340_s27, %s5340_s27, %s5341_s16  }
 0x2c1   : > { %v3440_v52 = vrot.slane %v3439_v5, 4  ;;  %v3508_v30 = vadd.f32 %v3507_v10, %v3477_v46  ;;  %s3699_s15 = sshll.u32 %s5573_s7, 1  ;;  %s3810_s11 = sshll.u32 %s5394_s22, 5 }
 0x2c2   : > { %s293_s23 = scalar_lea.vmem [#allocation11], %s3699_s15  ;;  %s6239_s29 = scalar_lea.hbm %s6289_s5, %s3810_s11 }
 0x2c3   : > { %v3441_v38 = vadd.f32 %v3440_v52, %v3439_v5  ;;  %v3509_v49 = vrot.slane %v3508_v30, 4  ;;  %s3553_s6 = sshll.u32 %s293_s23, 4  ;;  %s3524_s12 = scalar_lea.sflag [#allocation12], %s5573_s7  ;;  %s6241_s6 = int_to_ptr.vmem [resolvable:$true] %s3553_s6 }
 0x2c4   : > { %s5252_s8 = scalar_lea.vmem %s6241_s6, 32  ;;  %s5342_s22 = smov [#allocation11]  }
 0x2c5   : > { %v3442_v34 = vrot.slane %v3441_v38, 2  ;;  %v3510_v56 = vadd.f32 %v3509_v49, %v3508_v30  ;;  %p5253_p12 = scmp.ne.s32.totalorder %s6241_s6, %s5252_s8  ;;  %s5256_s13 = sshll.u32 %s5342_s22, 4  ;;  %s5257_s13 = int_to_ptr.vmem [resolvable:$false] %s5256_s13 }
 0x2c6   : > { %s5258_s17 = scalar_lea.vmem %s5257_s13, 64  ;;  %p5259_p4 = scmp.lt.s32.totalorder %s6241_s6, %s5257_s13 }
 0x2c7   : > { %v3443_v55 = vadd.f32 %v3442_v34, %v3441_v38  ;;  %v3511_v44 = vrot.slane %v3510_v56, 2  ;;  %p5254_p1 = pnand %p5253_p12, %p5522_p5  ;;  %p5260_p9 = scmp.lt.s32.totalorder %s5258_s17, %s5252_s8 }
 0x2c9   : > { %v3444_v17 = vrot.slane %v3443_v55, 1  ;;  %v3512_v27 = vadd.f32 %v3511_v44, %v3510_v56  ;;  %p5255_p2 = pneg %p5254_p1  ;;  %p5261_p0 = por %p5260_p9, %p5259_p4 }
 0x2cb   : > { %v3513_v6 = vrot.slane %v3512_v27, 1  ;;  %v3445_v50 = vadd.f32 %v3444_v17, %v3443_v55  ;;  %p5262_p11 = pnand %p5261_p0, %p5255_p2 }
 0x2cd   : > { %v3514_v28 = vadd.f32 %v3513_v6, %v3512_v27 }
 0x2cf   : > { %v3516_v54 = vsel %vm638_vm0, %v3445_v50, %v3514_v28 }
 0x2d0   : > { %3517 = vst [vmem:[%s293_s23] sm:$0x3] %v3516_v54 }
 0x2d1   : > { %5265 = shalt.err (!%p5262_p11)
}
 0x2d2   : > { %s5266_s7 = scalar_lea.hbm %s6239_s29, 32  ;;  %s5270_s27 = scalar_lea.hbm %s6289_s5, 64 }
 0x2d3   : > { %p5267_p8 = scmp.ne.s32.totalorder %s6239_s29, %s5266_s7  ;;  %p5271_p10 = scmp.lt.u32.totalorder %s6239_s29, %s6289_s5 }
 0x2d4   : > { %p5272_p3 = scmp.lt.u32.totalorder %s5270_s27, %s5266_s7  ;;  %p5274_p12 = scmp.lt.u32.totalorder %s5266_s7, %s6239_s29 }
 0x2d5   : > { %p5268_p13 = pnand %p5267_p8, %p5522_p5 }
 0x2d6   : > { %p5273_p7 = por %p5272_p3, %p5271_p10 }
 0x2d7   : > { %p5269_p6 = pneg %p5268_p13 }
 0x2d8   : > { %p5275_p1 = por %p5274_p12, %p5273_p7 }
 0x2da   : > { %p5276_p2 = pnand %p5275_p1, %p5269_p6 }
 0x2dc   : > { %5279 = shalt.err (!%p5276_p2)
}
 0x2dd   : > { %4956 = dma.vmem_to_hbm [thread:$0]  (%p5522_p5), %s6241_s6, 32, %s6239_s29, %s3524_s12  }
 0x2de PF: > { %s3565_s11 = sand.u32 1, %s5318_s18   ;;  %p6328_p4 = scmp.ne.s32.totalorder %s6303_s25, 0 }
 0x2df   : > { %p6329_p9 = scmp.ge.s32.totalorder %s5330_s21, 2  ;;  %s3566_s23 = scalar_lea.sflag [#allocation4], %s3565_s11 }
 0x2e1   : > { %p4974_p0 = pnand %p6329_p9, %p6328_p4 }
 0x2e3   : > { %5309 = dma.done.wait (!%p4974_p0), %s3566_s23, 2048  }
 0x2e4   : > { %5311 = vsyncadd (!%p4974_p0), %s3566_s23, 4294965248  ;;  %s3575_s30 = scalar_lea.sflag [#allocation12], %s3565_s11 }
 0x2e5   : > { %5313 = dma.done.wait (!%p4974_p0), %s3575_s30, 32  }
 0x2e6   : > { %5315 = vsyncadd (!%p4974_p0), %s3575_s30, 4294967264  ;;  %p24_p5 = scmp.ge.s32.totalorder %s5508_s14, 4   ;;  %s6330_s18 = smov %s5322_s19 }
 0x2e7   : > { %s6331_s19 = smov %s5326_s20  ;;  %s6332_s20 = smov %s5518_s9 }
 0x2e8   : > { %s6333_s21 = smov %s5508_s14  ;;  %26 = sbr.rel (!%p24_p5) target bundleno = 9 (0x9), region = 110 }
 0x2ef   :  { %3580 = vsyncpa [#allocation3], 1 }
 0x2f0   :  { %3582 = vsyncpa [#allocation3 + $0x1], 1 }
 0x2f1   :  { %3583 = vsyncpa [#allocation6], 1 }
 0x2f2   :  { %3584 = vsyncpa [#allocation9], 1 }
 0x2f3   :  { %3585 = vsyncpa [#allocation4], 1 }
 0x2f4   :  { %3587 = vsyncpa [#allocation4 + $0x1], 1 }
 0x2f5   :  { %3588 = vsyncpa [#allocation12], 1 }
 0x2f6   :  { %3590 = vsyncpa [#allocation12 + $0x1], 1 }

// kernel: basic_block_forward.3
= control target key start
LH: loop header
LB: loop body
LE: loop exit
PB: predicated region body
PF: predicated region fallthrough
CT: control target
= control target key end

     0   :  { %s11267_s0 = inlined_call_operand.hbm [shape: bf16[2,18,18,128], index: 0, kind: input, shape index: {}]   ;;  %s11268_s1 = inlined_call_operand.hbm [shape: bf16[1152,128], index: 1, kind: input, shape index: {}]   ;;  %s11269_s2 = inlined_call_operand.hbm [shape: bf16[128,128], index: 2, kind: input, shape index: {}]   ;;  %s11270_s3 = inlined_call_operand.hbm [shape: bf16[2,256,128], index: 3, kind: output, shape index: {0}]   ;;  %s11271_s4 = inlined_call_operand.hbm [shape: f32[2,2,128], index: 4, kind: output, shape index: {1}]   ;;  %s11272_s5 = inlined_call_operand.hbm [shape: bf16[2,256,128], index: 5, kind: output, shape index: {2}]   ;;  %s11273_s6 = inlined_call_operand.hbm [shape: f32[2,2,128], index: 6, kind: output, shape index: {3}]  }
   0x1   :  { %11287 = sst [smem:[#allocation23_spill]] %s11267_s0 }
   0x2   :  { %12 = vsyncpa [#allocation3], 0 }
   0x3   :  { %14 = vsyncpa [#allocation3 + $0x1], 0 }
   0x4   :  { %15 = vsyncpa [#allocation6], 0 }
   0x5   :  { %16 = vsyncpa [#allocation4], 0 }
   0x6   :  { %18 = vsyncpa [#allocation4 + $0x1], 0 }
   0x7   :  { %19 = vsyncpa [#allocation10], 0 }
   0x8   :  { %21 = vsyncpa [#allocation10 + $0x1], 0 }
   0x9   :  { %22 = vsyncpa [#allocation13], 0 }
   0xa   :  { %24 = vsyncpa [#allocation13 + $0x1], 0  ;;  %s9088_s21 = smov 0   ;;  %s9090_s22 = smov 0  }
   0xb   :  { %s9092_s23 = smov 0   ;;  %s9094_s24 = smov 0  }
   0xc LB: > { %s9109_s25 = sadd.s32 4294967295, %s9040_s24   ;;  %s11275_s26 = sadd.s32 4294967294, %s9040_s24   ;;  %s9040_s24 = sphi %s9094_s24, %s11332_s24   ;;  %s9036_s23 = sphi %s9092_s23, %s11331_s23   ;;  %s9032_s22 = sphi %s9090_s22, %s11330_s22   ;;  %s9028_s21 = sphi %s9088_s21, %s11329_s21  }
   0xd   : > { %p50_p0 = scmp.ne.s32.totalorder %s9032_s22, %s9028_s21  ;;  %p11274_p1 = scmp.eq.s32.totalorder %s9109_s25, 0 }
   0xe   : > { %p122_p3 = scmp.eq.s32.totalorder %s11275_s26, 1  ;;  %p6644_p5 = scmp.ge.s32.totalorder %s9040_s24, 1 }
   0xf   : > { %p9120_p4 = por %p11274_p1, %p50_p0  ;;  %p207_p7 = scmp.lt.s32.totalorder %s9040_s24, 3 }
  0x10   : > { %p9125_p6 = por %p122_p3, %p50_p0  ;;  %s9042_s30 = smov [#allocation5]  }
  0x11   : > { %s11288_s27 = scalar_select %p9120_p4, 1, 0 }
  0x12   : > { %s11289_s28 = scalar_select %p9125_p6, 1, 0 }
  0x13   : > { %p9130_p8 = pnand %p6644_p5, %p207_p7  ;;  %s219_s7 = sshll.u32 %s9042_s30, 4  ;;  %s9134_s7 = int_to_ptr.vmem [resolvable:$true] %s219_s7 }
  0x14   : > { %s9043_s9 = smov [#allocation7]   ;;  %s8792_s13 = scalar_lea.hbm %s11268_s1, 9216 }
  0x15   : > { %p8513_p9 = pneg %p9130_p8  ;;  %s232_s10 = sshll.u32 %s9043_s9, 4  ;;  %s9145_s10 = int_to_ptr.vmem [resolvable:$true] %s232_s10 }
  0x16   : > { %p8793_p12 = scmp.ne.s32.totalorder %s11268_s1, %s8792_s13  ;;  %p8799_p5 = scmp.lt.u32.totalorder %s8792_s13, %s11268_s1 }
  0x17   : > { %p9141_p11 = pnand %p8513_p9, %p11274_p1 }
  0x19   : > { %p8794_p13 = pneg %p9141_p11 }
  0x1b   : > { %p8795_p0 = pnand %p8794_p13, %p8793_p12 }
  0x1d   : > { %p8796_p3 = pneg %p8795_p0 }
  0x1f   : > { %p8801_p7 = pnand %p8799_p5, %p8796_p3 }
  0x21   : > { %8804 = shalt.err (!%p8801_p7)
}
  0x22   : > { %s8805_s18 = scalar_lea.vmem %s9134_s7, 9216  ;;  %p8813_p2 = scmp.lt.s32.totalorder %s9134_s7, %s9134_s7 }
  0x23   : > { %p8806_p9 = scmp.ne.s32.totalorder %s9134_s7, %s8805_s18  ;;  %p8814_p12 = scmp.lt.s32.totalorder %s8805_s18, %s8805_s18 }
  0x25   : > { %p8808_p10 = pnand %p8806_p9, %p8794_p13  ;;  %p8815_p0 = por %p8814_p12, %p8813_p2 }
  0x27   : > { %p8809_p1 = pneg %p8808_p10 }
  0x29   : > { %p8816_p6 = pnand %p8815_p0, %p8809_p1 }
  0x2b   : > { %8819 = shalt.err (!%p8816_p6)
}
  0x2c   : > { %s11276_s19 = smov 64   ;;  %s11277_s20 = smov 4  }
  0x2d   : > { %8516 = dma.hbm_to_vmem [thread:$0]  (!%p9141_p11), %s11268_s1, 9216, %s9134_s7, [#allocation6], %s11276_s19, %s11276_s19, %s11277_s20  }
  0x2e   : > { %s8820_s13 = scalar_lea.hbm %s11269_s2, 1024 }
  0x2f   : > { %p8821_p1 = scmp.ne.s32.totalorder %s11269_s2, %s8820_s13  ;;  %p8827_p10 = scmp.lt.u32.totalorder %s8820_s13, %s11269_s2 }
  0x31   : > { %p8823_p2 = pnand %p8821_p1, %p8794_p13 }
  0x33   : > { %p8824_p6 = pneg %p8823_p2 }
  0x35   : > { %p8829_p3 = pnand %p8827_p10, %p8824_p6 }
  0x37   : > { %8832 = shalt.err (!%p8829_p3)
}
  0x38   : > { %s8833_s7 = scalar_lea.vmem %s9145_s10, 1024  ;;  %p8841_p12 = scmp.lt.s32.totalorder %s9145_s10, %s9145_s10 }
  0x39   : > { %p8834_p5 = scmp.ne.s32.totalorder %s9145_s10, %s8833_s7  ;;  %p8842_p0 = scmp.lt.s32.totalorder %s8833_s7, %s8833_s7 }
  0x3b   : > { %p8836_p7 = pnand %p8834_p5, %p8794_p13  ;;  %p8843_p1 = por %p8842_p0, %p8841_p12 }
  0x3d   : > { %p8837_p9 = pneg %p8836_p7 }
  0x3f   : > { %p8844_p2 = pnand %p8843_p1, %p8837_p9 }
  0x41   : > { %8847 = shalt.err (!%p8844_p2)
}
  0x42   : > { %8519 = dma.hbm_to_vmem [thread:$0]  (!%p9141_p11), %s11269_s2, 1024, %s9145_s10, [#allocation6], %s11276_s19, %s11276_s19, %s11277_s20  }
  0x43   : > { %s9206_s8 = sadd.s32 1, %s9040_s24   ;;  %s37_s9 = sadd.s32 1, %s9036_s23 }
  0x44   : > { %s34_s11 = ssub.s32 %s9040_s24, %s9206_s8  ;;  %p44_p13 = scmp.ne.s32.totalorder %s9036_s23, %s9032_s22 }
  0x45   : > { %p35_p6 = scmp.eq.s32.totalorder %s34_s11, 0  ;;  %p45_p10 = scmp.eq.s32.totalorder %s9040_s24, 0 }
  0x46   : > { %p11292_p3 = scmp.eq.s32.totalorder %s9109_s25, 1  ;;  %p8539_p7 = scmp.lt.s32.totalorder %s9040_s24, 2 }
  0x47   : > { %s9222_s13 = scalar_select %p35_p6, %s9036_s23, %s37_s9  }
  0x48   : > { %p9216_p5 = por %p11292_p3, %p44_p13  ;;  %p46_p9 = por %p45_p10, %p44_p13 }
  0x49   : > { %s246_s14 = sand.u32 1, %s9036_s23   ;;  %s8493_s10 = smul.u32 3456, %s9040_s24 }
  0x4a   : > { %s11293_s12 = scalar_select %p9216_p5, 1, 0 }
  0x4b   : > { %s8492_s15 = smul.u32 216, %s246_s14  ;;  %p9226_p11 = pnand %p8539_p7, %p46_p9 }
  0x4c   : > { %s11295_s0 = sld [smem:[#allocation23_spill]]  ;;  %s9237_s11 = scalar_lea.sflag [#allocation3], %s246_s14 }
  0x4d   : > { %s250_s30 = scalar_lea.vmem [#allocation2], %s8492_s15  ;;  %p8850_p0 = pneg %p9226_p11 }
  0x4e   : > { %s257_s9 = sshll.u32 %s250_s30, 4  ;;  %s9235_s9 = int_to_ptr.vmem [resolvable:$true] %s257_s9 }
  0x52   : > { %s9233_s18 = scalar_lea.hbm %s11295_s0, %s8493_s10  ;;  %s8853_s7 = scalar_lea.hbm %s11295_s0, 6912 }
  0x53   : > { %s8848_s26 = scalar_lea.hbm %s9233_s18, 3456  ;;  %p8854_p13 = scmp.lt.u32.totalorder %s9233_s18, %s11295_s0 }
  0x54   : > { %p8849_p12 = scmp.ne.s32.totalorder %s9233_s18, %s8848_s26  ;;  %p8855_p6 = scmp.lt.u32.totalorder %s8853_s7, %s8848_s26 }
  0x55   : > { %p8857_p3 = scmp.lt.u32.totalorder %s8848_s26, %s9233_s18 }
  0x56   : > { %p8851_p1 = pnand %p8850_p0, %p8849_p12  ;;  %p8856_p10 = por %p8855_p6, %p8854_p13 }
  0x58   : > { %p8852_p2 = pneg %p8851_p1  ;;  %p8858_p7 = por %p8857_p3, %p8856_p10 }
  0x5a   : > { %p8859_p9 = pnand %p8858_p7, %p8852_p2 }
  0x5c   : > { %8862 = shalt.err (!%p8859_p9)
}
  0x5d   : > { %s8863_s14 = scalar_lea.vmem %s9235_s9, 3456  ;;  %s9046_s15 = smov [#allocation2]  }
  0x5e   : > { %p8864_p12 = scmp.ne.s32.totalorder %s9235_s9, %s8863_s14  ;;  %s8868_s30 = sshll.u32 %s9046_s15, 4  ;;  %s8869_s30 = int_to_ptr.vmem [resolvable:$false] %s8868_s30 }
  0x5f   : > { %s8870_s19 = scalar_lea.vmem %s8869_s30, 6912  ;;  %p8871_p4 = scmp.lt.s32.totalorder %s9235_s9, %s8869_s30 }
  0x60   : > { %p8866_p1 = pnand %p8864_p12, %p8850_p0  ;;  %p8872_p13 = scmp.lt.s32.totalorder %s8870_s19, %s8863_s14 }
  0x62   : > { %p8867_p5 = pneg %p8866_p1  ;;  %p8873_p6 = por %p8872_p13, %p8871_p4 }
  0x64   : > { %p8874_p10 = pnand %p8873_p6, %p8867_p5 }
  0x66   : > { %8877 = shalt.err (!%p8874_p10)
}
  0x67   : > { %s11296_s26 = smov 4   ;;  %s11297_s20 = smov 64  }
  0x68   : > { %8523 = dma.hbm_to_vmem [thread:$0]  (!%p9226_p11), %s9233_s18, 3456, %s9235_s9, %s9237_s11, %s11297_s20, %s11297_s20, %s11296_s26  }
  0x69   : > { %269 = sbr.rel (%p9130_p8) target bundleno = 834 (0x342), region = 32 }
  0x70   : > { %s9271_s10 = sand.u32 1, %s9032_s22   ;;  %p11298_p4 = scmp.ne.s32.totalorder %s11288_s27, 0 }
  0x71   : > { %s8494_s17 = smul.u32 216, %s9271_s10  ;;  %s272_s7 = scalar_lea.sflag [#allocation3], %s9271_s10 }
  0x73   : > { %s9275_s14 = scalar_lea.vmem [#allocation2], %s8494_s17 }
  0x74   : > { %9007 = dma.done.wait (%p11298_p4), %s272_s7, 3456  }
  0x75   : > { %9009 = vsyncadd (%p11298_p4), %s272_s7, 4294963840  ;;  %p11299_p5 = scmp.eq.s32.totalorder %s9109_s25, 0 }
  0x77   : > { %9011 = dma.done.wait (%p11299_p5), [#allocation6], 10240   ;;  %p11300_p8 = pmov %p11299_p5 }
  0x78   : > { %v8581_v0 = vld [vmem:[#allocation5 + $0x40] sm:$0xff]   ;;  %v8583_v2 = vld [vmem:[#allocation5 + $0x48] sm:$0xff]   ;;  %v8585_v4 = vld [vmem:[#allocation5 + $0x50] sm:$0xff]   ;;  %vm392_vm0 = vsmask.f32 3328  ;;  %vm1421_vm3 = vcmask 1042432  }
  0x79   : > { %9013 = vsyncadd (%p11300_p8), [#allocation6], 4294957056  ;;  %v8582_v1 = vld [vmem:[#allocation5 + $0x100] sm:$0xff]   ;;  %7756 = vmatprep.subr.bf16.mxu1 %v8581_v0  ;;  %v8584_v3 = vld [vmem:[#allocation5 + $0x108] sm:$0xff]   ;;  %vm393_vm1 = vsmask.f32 7440 }
  0x7a   : > { %7948 = vmatprep.subr.bf16.mxu0 %v8582_v1  ;;  %7757 = vmatpush3.bf16.msra.mxu1 %v8581_v0  ;;  %v8586_v5 = vld [vmem:[#allocation5 + $0x110] sm:$0xff]   ;;  %v8587_v6 = vld [vmem:[#allocation5 + $0x58] sm:$0xff]   ;;  %v8589_v8 = vld [vmem:[#allocation5 + $0x60] sm:$0xff]   ;;  %vm1422_vm4 = vcmask 1046532   ;;  %s6652_s27 = sshll.u32 %s9271_s10, 7  ;;  %s11286_s18 = sshll.u32 %s9109_s25, 11 }
  0x7b   : > { %7949 = vmatpush3.bf16.msra.mxu0 %v8582_v1  ;;  %7758 = vmatprep.subr.bf16.mxu1 %v8583_v2  ;;  %v8588_v7 = vld [vmem:[#allocation5 + $0x118] sm:$0xff]   ;;  %v8590_v9 = vld [vmem:[#allocation5 + $0x120] sm:$0xff]   ;;  %v8591_v10 = vld [vmem:[#allocation5 + $0x68] sm:$0xff]   ;;  %s11035_s29 = scalar_lea.vmem [#allocation11], %s6652_s27  ;;  %s11041_s16 = scalar_lea.vmem [#allocation8], %s6652_s27 }
  0x7c   : > { %7950 = vmatprep.subr.bf16.mxu0 %v8584_v3  ;;  %v8592_v11 = vld [vmem:[#allocation5 + $0x128] sm:$0xff]   ;;  %v376_v14 = vld [vmem:[%s9275_s14 + $0x8] sm:$0x1]  ;;  %v6800_v19 = vld [vmem:[%s9275_s14 + $0xc] sm:$0xf]  ;;  %s6416_s9 = sshll.u32 %s11041_s16, 4  ;;  %s11106_s30 = scalar_lea.hbm %s11270_s3, %s11286_s18  ;;  %s11108_s9 = int_to_ptr.vmem [resolvable:$true] %s6416_s9 }
  0x7d   : > { %v328_v12 = vld [vmem:[%s9275_s14] sm:$0xf]  ;;  %v329_v13 = vld [vmem:[%s9275_s14 + $0x4] sm:$0xf]  ;;  %v415_v20 = vshll.u32 %v376_v14, 16  ;;  %v2292_v30 = vshrl.u32 %v6800_v19, 16  ;;  %vm9298_vm2 = vmor %vm392_vm0, %vm393_vm1 }
  0x7e   : > { %7759 = vmatpush3.bf16.msra.mxu1 %v8583_v2  ;;  %v396_v15 = vshrl.u32 %v328_v12, 16  ;;  %v399_v16 = vshll.u32 %v328_v12, 16  ;;  %v405_v17 = vshll.u32 %v329_v13, 16  ;;  %v409_v18 = vshrl.u32 %v329_v13, 16  ;;  %v6801_v21 = vld [vmem:[%s9275_s14 + $0x10] sm:$0xf]  ;;  %vm9617_vm5 = vmor %vm1421_vm3, %vm1422_vm4 }
  0x7f   : > { %7951 = vmatpush3.bf16.msra.mxu0 %v8584_v3  ;;  %7760 = vmatprep.subr.bf16.mxu1 %v8585_v4  ;;  %v9291_v22 = vld [vmem:[%s9275_s14 + $0x14] sm:$0x1]  ;;  %v8593_v27 = vld [vmem:[#allocation5 + $0x70] sm:$0xff]   ;;  %v417_v29 = vrot.slane %v415_v20, 5  ;;  %v2295_v31 = vshll.u32 %v6800_v19, 16  ;;  %v2301_v32 = vshll.u32 %v6801_v21, 16 }
  0x80   : > { %7952 = vmatprep.subr.bf16.mxu0 %v8586_v5  ;;  %v398_v23 = vrot.slane %v396_v15, 4  ;;  %v401_v24 = vrot.slane %v399_v16, 5  ;;  %v407_v25 = vrot.slane %v405_v17, 5  ;;  %v411_v26 = vrot.slane %v409_v18, 4  ;;  %v8594_v28 = vld [vmem:[#allocation5 + $0x130] sm:$0xff]   ;;  %v8595_v49 = vld [vmem:[#allocation5 + $0x78] sm:$0xff]  }
  0x81   : > { %v2305_v35 = vshrl.u32 %v6801_v21, 16  ;;  %v2311_v36 = vshll.u32 %v9291_v22, 16  ;;  %v330_v37 = vld [vmem:[%s9275_s14 + $0xc] sm:$0xf]  ;;  %v331_v38 = vld [vmem:[%s9275_s14 + $0x10] sm:$0xf] }
  0x82   : > { %7761 = vmatpush3.bf16.msra.mxu1 %v8585_v4  ;;  %v402_v33 = vor.u32 %v401_v24, %v398_v23  ;;  %v412_v34 = vor.u32 %v411_v26, %v407_v25  ;;  %v2294_v40 = vrot.slane %v2292_v30, 4  ;;  %v2297_v41 = vrot.slane %v2295_v31, 5  ;;  %v377_v43 = vld [vmem:[%s9275_s14 + $0x14] sm:$0x1]  ;;  %v6803_v48 = vld [vmem:[%s9275_s14 + $0x18] sm:$0xf] }
  0x83   : > { %7953 = vmatpush3.bf16.msra.mxu0 %v8586_v5  ;;  %7762 = vmatprep.subr.bf16.mxu1 %v8587_v6  ;;  %v2303_v42 = vrot.slane %v2301_v32, 5  ;;  %v2307_v46 = vrot.slane %v2305_v35, 4  ;;  %v2313_v47 = vrot.slane %v2311_v36, 5  ;;  %v420_v51 = vshrl.u32 %v330_v37, 16  ;;  %v8596_v54 = vld [vmem:[#allocation5 + $0x138] sm:$0xff]   ;;  %v9319_v13 = vld [vmem:[#allocation5 + $0x140] sm:$0xff]  }
  0x84   : > { %7954 = vmatprep.subr.bf16.mxu0 %v8588_v7  ;;  %v403_v44 = vrot.slane %v402_v33, 4  ;;  %v413_v45 = vrot.slane %v412_v34, 4  ;;  %v2298_v50 = vor.u32 %v2297_v41, %v2294_v40  ;;  %v423_v52 = vshll.u32 %v330_v37, 16  ;;  %v9309_v3 = vld [vmem:[%s9275_s14 + $0x1c] sm:$0xf]  ;;  %s6388_s19 = scalar_lea.sflag [#allocation4], %s9271_s10 }
  0x85   : > { %v429_v53 = vshll.u32 %v331_v38, 16  ;;  %v2308_v57 = vor.u32 %v2307_v46, %v2303_v42  ;;  %v433_v58 = vshrl.u32 %v331_v38, 16  ;;  %v422_v61 = vrot.slane %v420_v51, 4  ;;  %v8598_v14 = vld [vmem:[#allocation5] sm:$0xff]   ;;  %v378_v34 = vld [vmem:[%s9275_s14 + $0x20] sm:$0x1] }
  0x86   : > { %7763 = vmatpush3.bf16.msra.mxu1 %v8587_v6  ;;  %v408_v55 = vsel %vm9298_vm2, %v403_v44, %v407_v25  ;;  %v418_v56 = vsel %vm9298_vm2, %v413_v45, %v417_v29  ;;  %v2299_v60 = vrot.slane %v2298_v50, 4  ;;  %v425_v62 = vrot.slane %v423_v52, 5  ;;  %v332_v24 = vld [vmem:[%s9275_s14 + $0x18] sm:$0xf]  ;;  %v333_v29 = vld [vmem:[%s9275_s14 + $0x1c] sm:$0xf] }
  0x87   : > { %7955 = vmatpush3.bf16.msra.mxu0 %v8588_v7  ;;  %7764 = vmatprep.subr.bf16.mxu1 %v8589_v8  ;;  %v6656_v59 = vcombine.low %v408_v55, %v418_v56  ;;  %v2309_v63 = vrot.slane %v2308_v57, 4  ;;  %v431_v0 = vrot.slane %v429_v53, 5  ;;  %v435_v1 = vrot.slane %v433_v58, 4  ;;  %v9315_v7 = vld [vmem:[%s9275_s14 + $0x20] sm:$0x1]  ;;  %s8878_s26 = scalar_lea.vmem %s11108_s9, 2048 }
  0x88   : > { %7956 = vmatprep.subr.bf16.mxu0 %v8590_v9  ;;  %v439_v2 = vshll.u32 %v377_v43, 16  ;;  %v2304_v4 = vsel %vm9298_vm2, %v2299_v60, %v2303_v42  ;;  %v3065_v5 = vrot.slane %v9291_v22, 5  ;;  %v426_v6 = vor.u32 %v425_v62, %v422_v61  ;;  %v6806_v35 = vld [vmem:[%s9275_s14 + $0x24] sm:$0xf]  ;;  %v6807_v41 = vld [vmem:[%s9275_s14 + $0x28] sm:$0xf]  ;;  %p8879_p11 = scmp.ne.s32.totalorder %s11108_s9, %s8878_s26 }
  0x89   : > { %7772 = vmatprep.mubr.bf16.mxu1 %v6656_v59  ;;  %v2319_v12 = vshll.u32 %v6803_v48, 16  ;;  %v2325_v18 = vshll.u32 %v9309_v3, 16  ;;  %v2329_v21 = vshrl.u32 %v9309_v3, 16  ;;  %v2335_v23 = vshll.u32 %v9315_v7, 16  ;;  %v8600_v42 = vld [vmem:[#allocation5 + $0x8] sm:$0xff]   ;;  %v8602_v61 = vld [vmem:[#allocation5 + $0x10] sm:$0xff]  }
  0x8a   : > { %7765 = vmatpush3.bf16.msra.mxu1 %v8589_v8  ;;  %v2316_v8 = vshrl.u32 %v6803_v48, 16  ;;  %v427_v16 = vrot.slane %v426_v6, 4  ;;  %v444_v38 = vshrl.u32 %v332_v24, 16  ;;  %v447_v40 = vshll.u32 %v332_v24, 16  ;;  %v334_v52 = vld [vmem:[%s9275_s14 + $0x24] sm:$0xf] }
  0x8b   : > { %7957 = vmatpush3.bf16.msra.mxu0 %v8590_v9  ;;  %7766 = vmatprep.subr.bf16.mxu1 %v8591_v10  ;;  %v2314_v9 = vsel %vm9298_vm2, %v2309_v63, %v2313_v47  ;;  %v2321_v20 = vrot.slane %v2319_v12, 5  ;;  %v2327_v26 = vrot.slane %v2325_v18, 5  ;;  %v2331_v32 = vrot.slane %v2329_v21, 4  ;;  %v6808_v47 = vld [vmem:[%s9275_s14 + $0x2c] sm:$0x1]  ;;  %p11320_p0 = scmp.ne.s32.totalorder %s11293_s12, 0 }
  0x8c   : > { %7958 = vmatprep.subr.bf16.mxu0 %v8592_v11  ;;  %v6848_v15 = vcombine.low %v2304_v4, %v2314_v9  ;;  %v2318_v17 = vrot.slane %v2316_v8, 4  ;;  %v432_v25 = vsel %vm9298_vm2, %v427_v16, %v431_v0  ;;  %v2337_v33 = vrot.slane %v2335_v23, 5  ;;  %v335_v9 = vld [vmem:[%s9275_s14 + $0x28] sm:$0xf]  ;;  %v6809_v21 = vld [vmem:[%s9275_s14 + $0x30] sm:$0xf] }
  0x8d   : > { %v2332_v44 = vor.u32 %v2331_v32, %v2327_v26  ;;  %v453_v45 = vshll.u32 %v333_v29, 16  ;;  %v457_v46 = vshrl.u32 %v333_v29, 16  ;;  %v446_v48 = vrot.slane %v444_v38, 4  ;;  %v8604_v23 = vld [vmem:[#allocation5 + $0x18] sm:$0xff]   ;;  %p8880_p2 = pnand %p8879_p11, %p11320_p0  ;;  %s9047_s20 = smov [#allocation8]  }
  0x8e   : > { %7767 = vmatpush3.bf16.msra.mxu1 %v8591_v10  ;;  %v436_v10 = vor.u32 %v435_v1, %v431_v0  ;;  %7964 = vmatprep.mubr.bf16.mxu0 %v6848_v15  ;;  %v2322_v31 = vor.u32 %v2321_v20, %v2318_v17  ;;  %v463_v50 = vshll.u32 %v378_v34, 16  ;;  %v2340_v51 = vshrl.u32 %v6806_v35, 16  ;;  %v379_v15 = vld [vmem:[%s9275_s14 + $0x2c] sm:$0x1]  ;;  %v6810_v34 = vld [vmem:[%s9275_s14 + $0x34] sm:$0xf] }
  0x8f   : > { %7959 = vmatpush3.bf16.msra.mxu0 %v8592_v11  ;;  %7768 = vmatprep.subr.bf16.mxu1 %v8593_v27  ;;  %v441_v11 = vrot.slane %v439_v2, 5  ;;  %v455_v55 = vrot.slane %v453_v45, 5  ;;  %v459_v56 = vrot.slane %v457_v46, 4  ;;  %v2343_v60 = vshll.u32 %v6806_v35, 16  ;;  %v8601_v35 = vld [vmem:[#allocation5 + $0x150] sm:$0xff]   ;;  %p8881_p3 = pneg %p8880_p2  ;;  %s8882_s17 = sshll.u32 %s9047_s20, 4  ;;  %s8883_s17 = int_to_ptr.vmem [resolvable:$false] %s8882_s17 }
  0x90   : > { %7960 = vmatprep.subr.bf16.mxu0 %v8594_v28  ;;  %v437_v19 = vrot.slane %v436_v10, 4  ;;  %v2323_v43 = vrot.slane %v2322_v31, 4  ;;  %v465_v58 = vrot.slane %v463_v50, 5  ;;  %v2342_v59 = vrot.slane %v2340_v51, 4  ;;  %v8599_v10 = vld [vmem:[#allocation5 + $0x148] sm:$0xff]   ;;  %s8884_s7 = scalar_lea.vmem %s8883_s17, 4096  ;;  %p8885_p7 = scmp.lt.s32.totalorder %s11108_s9, %s8883_s17 }
  0x91   : > { %v460_v63 = vor.u32 %v459_v56, %v455_v55  ;;  %v2349_v0 = vshll.u32 %v6807_v41, 16  ;;  %v2353_v1 = vshrl.u32 %v6807_v41, 16  ;;  %v2345_v6 = vrot.slane %v2343_v60, 5  ;;  %v6811_v41 = vld [vmem:[%s9275_s14 + $0x38] sm:$0x1]  ;;  %p8886_p9 = scmp.lt.s32.totalorder %s8884_s7, %s8878_s26 }
  0x92   : > { %7769 = vmatpush3.bf16.msra.mxu1 %v8593_v27  ;;  %v3069_v27 = vrot.slane %v9309_v3, 5  ;;  %v442_v30 = vsel %vm9298_vm2, %v437_v19, %v441_v11  ;;  %v2328_v53 = vsel %vm9298_vm2, %v2323_v43, %v2327_v26  ;;  %v2359_v8 = vshll.u32 %v6808_v47, 16  ;;  %v336_v46 = vld [vmem:[%s9275_s14 + $0x30] sm:$0xf] }
  0x93   : > { %7961 = vmatpush3.bf16.msra.mxu0 %v8594_v28  ;;  %7770 = vmatprep.subr.bf16.mxu1 %v8595_v49  ;;  %v3072_v28 = vrot.slane %v9315_v7, 5  ;;  %v6657_v36 = vcombine.low %v432_v25, %v442_v30  ;;  %v461_v11 = vrot.slane %v460_v63, 4  ;;  %v2351_v12 = vrot.slane %v2349_v0, 5  ;;  %v8606_v47 = vld [vmem:[#allocation5 + $0x20] sm:$0xff]   ;;  %p8887_p12 = por %p8886_p9, %p8885_p7 }
  0x94   : > { %7962 = vmatprep.subr.bf16.mxu0 %v8596_v54  ;;  %v9337_v37 = vrot.slane %v3069_v27, 4  ;;  %v468_v16 = vshrl.u32 %v334_v52, 16  ;;  %v2346_v18 = vor.u32 %v2345_v6, %v2342_v59  ;;  %v2361_v19 = vrot.slane %v2359_v8, 5 }
  0x95   : > { %v471_v20 = vshll.u32 %v334_v52, 16  ;;  %v466_v24 = vsel %vm9298_vm2, %v461_v11, %v465_v58  ;;  %v477_v29 = vshll.u32 %v335_v9, 16  ;;  %v2367_v45 = vshll.u32 %v6809_v21, 16  ;;  %v337_v52 = vld [vmem:[%s9275_s14 + $0x34] sm:$0xf]  ;;  %p8888_p1 = pnand %p8887_p12, %p8881_p3 }
  0x96   : > { %7771 = vmatpush3.bf16.msra.mxu1 %v8595_v49  ;;  %v449_v49 = vrot.slane %v447_v40, 5  ;;  %v470_v26 = vrot.slane %v468_v16, 4  ;;  %v2347_v31 = vrot.slane %v2346_v18, 4  ;;  %v487_v40 = vshll.u32 %v379_v15, 16  ;;  %v380_v58 = vld [vmem:[%s9275_s14 + $0x38] sm:$0x1] }
  0x97   : > { %7963 = vmatpush3.bf16.msra.mxu0 %v8596_v54  ;;  %7804 = vmatprep.subr.bf16.mxu1 %v8598_v14  ;;  %v2333_v54 = vrot.slane %v2332_v44, 4  ;;  %v473_v32 = vrot.slane %v471_v20, 5  ;;  %v479_v38 = vrot.slane %v477_v29, 5  ;;  %v2373_v51 = vshll.u32 %v6810_v34, 16  ;;  %v6812_v11 = vld [vmem:[%s9275_s14 + $0x3c] sm:$0xf] }
  0x98   : > { %7996 = vmatprep.subr.bf16.mxu0 %v9319_v13  ;;  %v450_v57 = vor.u32 %v449_v49, %v446_v48  ;;  %v489_v49 = vrot.slane %v487_v40, 5  ;;  %v2377_v60 = vshrl.u32 %v6810_v34, 16  ;;  %v505_v16 = vshrl.u32 %v337_v52, 16  ;;  %v8605_v18 = vld [vmem:[#allocation5 + $0x160] sm:$0xff]   ;;  %v6814_v29 = vld [vmem:[%s9275_s14 + $0x44] sm:$0x1] }
  0x99   : > { %7773 = vmatmul.mubr.bf16.vlgmr.msra.gmra.mrb[0].mxu1 %v6657_v36  ;;  %v2338_v62 = vsel %vm9298_vm2, %v2333_v54, %v2337_v33  ;;  %v481_v33 = vshrl.u32 %v335_v9, 16  ;;  %v474_v43 = vor.u32 %v473_v32, %v470_v26  ;;  %v2375_v59 = vrot.slane %v2373_v51, 5 }
  0x9a   : > { %7805 = vmatpush3.bf16.msra.mxu1 %v8598_v14  ;;  %v6849_v2 = vcombine.low %v2328_v53, %v2338_v62  ;;  %v451_v4 = vrot.slane %v450_v57, 4  ;;  %v2355_v14 = vrot.slane %v2353_v1, 4  ;;  %v8603_v53 = vld [vmem:[#allocation5 + $0x158] sm:$0xff]   ;;  %v2369_v57 = vrot.slane %v2367_v45, 5 }
  0x9b   : > { %7806 = vmatprep.subr.bf16.mxu1 %v8600_v42  ;;  %v483_v44 = vrot.slane %v481_v33, 4  ;;  %v492_v62 = vshrl.u32 %v336_v46, 16  ;;  %v2379_v6 = vrot.slane %v2377_v60, 4  ;;  %v507_v26 = vrot.slane %v505_v16, 4  ;;  %v8612_v60 = vld [vmem:[#allocation5 + $0x38] sm:$0xff]  }
  0x9c   : > { %7965 = vmatmul.mubr.bf16.vlgmr.msra.gmra.mrb[0].mxu0 %v6849_v2  ;;  %v456_v17 = vsel %vm9298_vm2, %v451_v4, %v455_v55  ;;  %v2356_v25 = vor.u32 %v2355_v14, %v2351_v12  ;;  %v475_v55 = vrot.slane %v474_v43, 4  ;;  %v495_v2 = vshll.u32 %v336_v46, 16  ;;  %v8608_v4 = vld [vmem:[#allocation5 + $0x28] sm:$0xff]   ;;  %v8610_v43 = vld [vmem:[#allocation5 + $0x30] sm:$0xff]  }
  0x9d   : > { %7997 = vmatpush3.bf16.msra.mxu0 %v9319_v13  ;;  %v6658_v30 = vcombine.low %v456_v17, %v466_v24  ;;  %v2364_v13 = vshrl.u32 %v6809_v21, 16  ;;  %v484_v56 = vor.u32 %v483_v44, %v479_v38  ;;  %v494_v9 = vrot.slane %v492_v62, 4  ;;  %v6813_v17 = vld [vmem:[%s9275_s14 + $0x40] sm:$0xf] }
  0x9e   : > { %7807 = vmatpush3.bf16.msra.mxu1 %v8600_v42  ;;  %7998 = vmatprep.subr.bf16.mxu0 %v8599_v10  ;;  %v2357_v36 = vrot.slane %v2356_v25, 4  ;;  %v2352_v42 = vsel %vm9298_vm2, %v2347_v31, %v2351_v12  ;;  %v480_v63 = vsel %vm9298_vm2, %v475_v55, %v479_v38  ;;  %v497_v15 = vrot.slane %v495_v2, 5  ;;  %v338_v31 = vld [vmem:[%s9275_s14 + $0x3c] sm:$0xf] }
  0x9f   : > { %7808 = vmatprep.subr.bf16.mxu1 %v8602_v61  ;;  %7776 = vmatprep.mubr.bf16.mxu1 %v6658_v30  ;;  %v2366_v50 = vrot.slane %v2364_v13, 4  ;;  %v485_v0 = vrot.slane %v484_v56, 4  ;;  %v2380_v20 = vor.u32 %v2379_v6, %v2375_v59  ;;  %v2388_v30 = vshrl.u32 %v6812_v11, 16 }
  0xa0   : > { %v2362_v48 = vsel %vm9298_vm2, %v2357_v36, %v2361_v19  ;;  %v498_v25 = vor.u32 %v497_v15, %v494_v9  ;;  %v2391_v34 = vshll.u32 %v6812_v11, 16  ;;  %v339_v36 = vld [vmem:[%s9275_s14 + $0x40] sm:$0xf]  ;;  %v2401_v13 = vshrl.u32 %v6813_v17, 16  ;;  %v6817_v15 = vld [vmem:[%s9275_s14 + $0x50] sm:$0x1] }
  0xa1   : > { %7999 = vmatpush3.bf16.msra.mxu0 %v8599_v10  ;;  %v6850_v54 = vcombine.low %v2352_v42, %v2362_v48  ;;  %v2370_v1 = vor.u32 %v2369_v57, %v2366_v50  ;;  %v501_v10 = vshll.u32 %v337_v52, 16  ;;  %v490_v12 = vsel %vm9298_vm2, %v485_v0, %v489_v49  ;;  %v8607_v42 = vld [vmem:[#allocation5 + $0x168] sm:$0xff]  }
  0xa2   : > { %7809 = vmatpush3.bf16.msra.mxu1 %v8602_v61  ;;  %8000 = vmatprep.subr.bf16.mxu0 %v8601_v35  ;;  %v2383_v61 = vshll.u32 %v6811_v41, 16  ;;  %v6659_v19 = vcombine.low %v480_v63, %v490_v12  ;;  %v2381_v32 = vrot.slane %v2380_v20, 4  ;;  %v499_v38 = vrot.slane %v498_v25, 4  ;;  %v381_v48 = vld [vmem:[%s9275_s14 + $0x44] sm:$0x1] }
  0xa3   : > { %7810 = vmatprep.subr.bf16.mxu1 %v8604_v23  ;;  %7968 = vmatprep.mubr.bf16.mxu0 %v6850_v54  ;;  %v2371_v14 = vrot.slane %v2370_v1, 4  ;;  %v503_v21 = vrot.slane %v501_v10, 5  ;;  %v2390_v41 = vrot.slane %v2388_v30, 4  ;;  %v2393_v45 = vrot.slane %v2391_v34, 5  ;;  %v8609_v54 = vld [vmem:[#allocation5 + $0x170] sm:$0xff]  }
  0xa4   : > { %v2385_v8 = vrot.slane %v2383_v61, 5  ;;  %7777 = vmatmul.mubr.bf16.gmra.mrb[4].mxu1 %v6659_v19  ;;  %v2403_v52 = vrot.slane %v2401_v13, 4  ;;  %v516_v57 = vshrl.u32 %v338_v31, 16  ;;  %v525_v63 = vshll.u32 %v339_v36, 16 }
  0xa5   : > { %8001 = vmatpush3.bf16.msra.mxu0 %v8601_v35  ;;  %v2376_v24 = vsel %vm9298_vm2, %v2371_v14, %v2375_v59  ;;  %v2397_v35 = vshll.u32 %v6813_v17, 16  ;;  %v508_v40 = vor.u32 %v507_v26, %v503_v21  ;;  %v504_v50 = vsel %vm9298_vm2, %v499_v38, %v503_v21  ;;  %v6816_v59 = vld [vmem:[%s9275_s14 + $0x4c] sm:$0xf] }
  0xa6   : > { %7811 = vmatpush3.bf16.msra.mxu1 %v8604_v23  ;;  %8002 = vmatprep.subr.bf16.mxu0 %v8603_v53  ;;  %v511_v23 = vshll.u32 %v380_v58, 16  ;;  %v2386_v44 = vsel %vm9298_vm2, %v2381_v32, %v2385_v8  ;;  %v2394_v55 = vor.u32 %v2393_v45, %v2390_v41  ;;  %v519_v58 = vshll.u32 %v338_v31, 16  ;;  %v341_v31 = vld [vmem:[%s9275_s14 + $0x4c] sm:$0xf]  ;;  %v8616_v32 = vld [vmem:[#allocation5 + $0x80] sm:$0xff]  }
  0xa7   : > { %7812 = vmatprep.subr.bf16.mxu1 %v8606_v47  ;;  %v2399_v46 = vrot.slane %v2397_v35, 5  ;;  %v6851_v49 = vcombine.low %v2376_v24, %v2386_v44  ;;  %v509_v51 = vrot.slane %v508_v40, 4  ;;  %v529_v0 = vshrl.u32 %v339_v36, 16  ;;  %v8611_v24 = vld [vmem:[#allocation5 + $0x178] sm:$0xff]  }
  0xa8   : > { %v513_v33 = vrot.slane %v511_v23, 5  ;;  %v2395_v2 = vrot.slane %v2394_v55, 4  ;;  %v521_v6 = vrot.slane %v519_v58, 5  ;;  %v527_v9 = vrot.slane %v525_v63, 5  ;;  %v340_v23 = vld [vmem:[%s9275_s14 + $0x48] sm:$0xf] }
  0xa9   : > { %8003 = vmatpush3.bf16.msra.mxu0 %v8603_v53  ;;  %v6815_v53 = vld [vmem:[%s9275_s14 + $0x48] sm:$0xf]  ;;  %v2404_v62 = vor.u32 %v2403_v52, %v2399_v46  ;;  %v531_v10 = vrot.slane %v529_v0, 4  ;;  %v535_v11 = vshll.u32 %v381_v48, 16  ;;  %v2421_v21 = vshll.u32 %v6816_v59, 16  ;;  %v8615_v48 = vld [vmem:[#allocation5 + $0x180] sm:$0xff]  }
  0xaa   : > { %7813 = vmatpush3.bf16.msra.mxu1 %v8606_v47  ;;  %8004 = vmatprep.subr.bf16.mxu0 %v8605_v18  ;;  %v2407_v47 = vshll.u32 %v6814_v29, 16  ;;  %v514_v61 = vsel %vm9298_vm2, %v509_v51, %v513_v33  ;;  %v2400_v12 = vsel %vm9298_vm2, %v2395_v2, %v2399_v46  ;;  %v2412_v16 = vshrl.u32 %v6815_v53, 16  ;;  %v382_v41 = vld [vmem:[%s9275_s14 + $0x50] sm:$0x1]  ;;  %v6820_v58 = vld [vmem:[%s9275_s14 + $0x5c] sm:$0x1] }
  0xab   : > { %7814 = vmatprep.subr.bf16.mxu1 %v8608_v4  ;;  %7969 = vmatmul.mubr.bf16.gmra.mrb[4].mxu0 %v6851_v49  ;;  %v6660_v1 = vcombine.low %v504_v50, %v514_v61  ;;  %v2405_v8 = vrot.slane %v2404_v62, 4  ;;  %v2415_v17 = vshll.u32 %v6815_v53, 16  ;;  %v532_v19 = vor.u32 %v531_v10, %v527_v9  ;;  %v6819_v53 = vld [vmem:[%s9275_s14 + $0x58] sm:$0xf]  ;;  %v342_v63 = vld [vmem:[%s9275_s14 + $0x54] sm:$0xf] }
  0xac   : > { %v2409_v56 = vrot.slane %v2407_v47, 5  ;;  %v537_v20 = vrot.slane %v535_v11, 5  ;;  %v2414_v29 = vrot.slane %v2412_v16, 4  ;;  %v2423_v34 = vrot.slane %v2421_v21, 5  ;;  %v6818_v47 = vld [vmem:[%s9275_s14 + $0x54] sm:$0xf] }
  0xad   : > { %8005 = vmatpush3.bf16.msra.mxu0 %v8605_v18  ;;  %7780 = vmatprep.mubr.bf16.mxu1 %v6660_v1  ;;  %v2417_v30 = vrot.slane %v2415_v17, 5  ;;  %v533_v33 = vrot.slane %v532_v19, 4  ;;  %v2425_v35 = vshrl.u32 %v6816_v59, 16  ;;  %v2431_v36 = vshll.u32 %v6817_v15, 16  ;;  %v343_v16 = vld [vmem:[%s9275_s14 + $0x58] sm:$0xf] }
  0xae   : > { %7815 = vmatpush3.bf16.msra.mxu1 %v8608_v4  ;;  %8006 = vmatprep.subr.bf16.mxu0 %v8607_v42  ;;  %v518_v4 = vrot.slane %v516_v57, 4  ;;  %v2410_v18 = vsel %vm9298_vm2, %v2405_v8, %v2409_v56  ;;  %v540_v13 = vshrl.u32 %v340_v23, 16  ;;  %v549_v46 = vshll.u32 %v341_v31, 16  ;;  %v383_v21 = vld [vmem:[%s9275_s14 + $0x5c] sm:$0x1] }
  0xaf   : > { %7816 = vmatprep.subr.bf16.mxu1 %v8610_v43  ;;  %v6852_v25 = vcombine.low %v2400_v12, %v2410_v18  ;;  %v2418_v40 = vor.u32 %v2417_v30, %v2414_v29  ;;  %v2427_v44 = vrot.slane %v2425_v35, 4  ;;  %v2433_v45 = vrot.slane %v2431_v36, 5 }
  0xb0   : > { %v522_v14 = vor.u32 %v521_v6, %v518_v4  ;;  %v542_v51 = vrot.slane %v540_v13, 4  ;;  %v551_v56 = vrot.slane %v549_v46, 5  ;;  %v559_v57 = vshll.u32 %v382_v41, 16 }
  0xb1   : > { %8007 = vmatpush3.bf16.msra.mxu0 %v8607_v42  ;;  %7972 = vmatprep.mubr.bf16.mxu0 %v6852_v25  ;;  %v543_v42 = vshll.u32 %v340_v23, 16  ;;  %v2419_v50 = vrot.slane %v2418_v40, 4  ;;  %v2428_v55 = vor.u32 %v2427_v44, %v2423_v34  ;;  %v2436_v61 = vshrl.u32 %v6818_v47, 16  ;;  %v6822_v40 = vld [vmem:[%s9275_s14 + $0x64] sm:$0xf] }
  0xb2   : > { %7817 = vmatpush3.bf16.msra.mxu1 %v8610_v43  ;;  %8008 = vmatprep.subr.bf16.mxu0 %v8609_v54  ;;  %v523_v26 = vrot.slane %v522_v14, 4  ;;  %v538_v43 = vsel %vm9298_vm2, %v533_v33, %v537_v20  ;;  %v2439_v62 = vshll.u32 %v6818_v47, 16  ;;  %v561_v2 = vrot.slane %v559_v57, 5  ;;  %v6821_v33 = vld [vmem:[%s9275_s14 + $0x60] sm:$0xf] }
  0xb3   : > { %7818 = vmatprep.subr.bf16.mxu1 %v8612_v60  ;;  %v545_v52 = vrot.slane %v543_v42, 5  ;;  %v2424_v59 = vsel %vm9298_vm2, %v2419_v50, %v2423_v34  ;;  %v2429_v0 = vrot.slane %v2428_v55, 4  ;;  %v2445_v4 = vshll.u32 %v6819_v53, 16  ;;  %v6823_v47 = vld [vmem:[%s9275_s14 + $0x68] sm:$0x1] }
  0xb4   : > { %v528_v38 = vsel %vm9298_vm2, %v523_v26, %v527_v9  ;;  %v2438_v8 = vrot.slane %v2436_v61, 4  ;;  %v2441_v9 = vrot.slane %v2439_v62, 5  ;;  %v2449_v10 = vshrl.u32 %v6819_v53, 16  ;;  %v344_v53 = vld [vmem:[%s9275_s14 + $0x60] sm:$0xf] }
  0xb5   : > { %8009 = vmatpush3.bf16.msra.mxu0 %v8609_v54  ;;  %v6661_v49 = vcombine.low %v528_v38, %v538_v43  ;;  %v553_v54 = vshrl.u32 %v341_v31, 16  ;;  %v2434_v11 = vsel %vm9298_vm2, %v2429_v0, %v2433_v45  ;;  %v2447_v14 = vrot.slane %v2445_v4, 5 }
  0xb6   : > { %7819 = vmatpush3.bf16.msra.mxu1 %v8612_v60  ;;  %8010 = vmatprep.subr.bf16.mxu0 %v8611_v24  ;;  %v546_v60 = vor.u32 %v545_v52, %v542_v51  ;;  %v2455_v15 = vshll.u32 %v6820_v58, 16  ;;  %v6853_v17 = vcombine.low %v2424_v59, %v2434_v11  ;;  %v2442_v19 = vor.u32 %v2441_v9, %v2438_v8  ;;  %v345_v58 = vld [vmem:[%s9275_s14 + $0x64] sm:$0xf]  ;;  %v6824_v11 = vld [vmem:[%s9275_s14 + $0x6c] sm:$0xf] }
  0xb7   : > { %7852 = vmatprep.subr.bf16.mxu1 %v8616_v32  ;;  %7781 = vmatmul.mubr.bf16.gmra.mrb[8].mxu1 %v6661_v49  ;;  %v555_v1 = vrot.slane %v553_v54, 4  ;;  %v2451_v20 = vrot.slane %v2449_v10, 4  ;;  %v564_v25 = vshrl.u32 %v342_v63, 16  ;;  %v567_v26 = vshll.u32 %v342_v63, 16  ;;  %v384_v63 = vld [vmem:[%s9275_s14 + $0x68] sm:$0x1] }
  0xb8   : > { %v547_v6 = vrot.slane %v546_v60, 4  ;;  %7973 = vmatmul.mubr.bf16.gmra.mrb[8].mxu0 %v6853_v17  ;;  %v2443_v29 = vrot.slane %v2442_v19, 4  ;;  %v573_v31 = vshll.u32 %v343_v16, 16  ;;  %v577_v32 = vshrl.u32 %v343_v16, 16  ;;  %v9425_v17 = vld [vmem:[%s9275_s14 + $0x70] sm:$0xf] }
  0xb9   : > { %8011 = vmatpush3.bf16.msra.mxu0 %v8611_v24  ;;  %v556_v12 = vor.u32 %v555_v1, %v551_v56  ;;  %v2457_v24 = vrot.slane %v2455_v15, 5  ;;  %v2452_v30 = vor.u32 %v2451_v20, %v2447_v14  ;;  %v566_v35 = vrot.slane %v564_v25, 4 }
  0xba   : > { %8044 = vmatprep.subr.bf16.mxu0 %v8615_v48  ;;  %v552_v18 = vsel %vm9298_vm2, %v547_v6, %v551_v56  ;;  %v569_v36 = vrot.slane %v567_v26, 5  ;;  %v583_v38 = vshll.u32 %v383_v21, 16  ;;  %v2448_v13 = vsel %vm9298_vm2, %v2443_v29, %v2447_v14 }
  0xbb   : > { %v557_v23 = vrot.slane %v556_v12, 4  ;;  %v2453_v42 = vrot.slane %v2452_v30, 4  ;;  %v575_v43 = vrot.slane %v573_v31, 5  ;;  %v579_v45 = vrot.slane %v577_v32, 4  ;;  %v9432_v31 = vld [vmem:[%s9275_s14 + $0x74] sm:$0x1] }
  0xbc   : > { %v570_v44 = vor.u32 %v569_v36, %v566_v35  ;;  %v585_v46 = vrot.slane %v583_v38, 5  ;;  %v2460_v48 = vshrl.u32 %v6821_v33, 16  ;;  %v2463_v50 = vshll.u32 %v6821_v33, 16 }
  0xbd   : > { %v562_v34 = vsel %vm9298_vm2, %v557_v23, %v561_v2  ;;  %v2458_v49 = vsel %vm9298_vm2, %v2453_v42, %v2457_v24  ;;  %v2469_v51 = vshll.u32 %v6822_v40, 16  ;;  %v2473_v52 = vshrl.u32 %v6822_v40, 16 }
  0xbe   : > { %v6662_v41 = vcombine.low %v552_v18, %v562_v34  ;;  %v6854_v55 = vcombine.low %v2448_v13, %v2458_v49  ;;  %v571_v56 = vrot.slane %v570_v44, 4  ;;  %v580_v54 = vor.u32 %v579_v45, %v575_v43  ;;  %v346_v34 = vld [vmem:[%s9275_s14 + $0x6c] sm:$0xf] }
  0xbf   : > { %v2462_v57 = vrot.slane %v2460_v48, 4  ;;  %v2465_v59 = vrot.slane %v2463_v50, 5  ;;  %v2471_v60 = vrot.slane %v2469_v51, 5  ;;  %v2475_v61 = vrot.slane %v2473_v52, 4  ;;  %v385_v48 = vld [vmem:[%s9275_s14 + $0x74] sm:$0x1] }
  0xc0   : > { %7784 = vmatprep.mubr.bf16.mxu1 %v6662_v41  ;;  %v2479_v62 = vshll.u32 %v6823_v47, 16  ;;  %7976 = vmatprep.mubr.bf16.mxu0 %v6854_v55  ;;  %v576_v0 = vsel %vm9298_vm2, %v571_v56, %v575_v43  ;;  %v581_v1 = vrot.slane %v580_v54, 4  ;;  %v588_v2 = vshrl.u32 %v344_v53, 16  ;;  %v347_v41 = vld [vmem:[%s9275_s14 + $0x70] sm:$0xf] }
  0xc1   : > { %v591_v4 = vshll.u32 %v344_v53, 16  ;;  %v2466_v6 = vor.u32 %v2465_v59, %v2462_v57  ;;  %v2476_v8 = vor.u32 %v2475_v61, %v2471_v60  ;;  %v597_v10 = vshll.u32 %v345_v58, 16  ;;  %v6827_v55 = vld [vmem:[%s9275_s14 + $0x78] sm:$0xf]  ;;  %v6828_v59 = vld [vmem:[%s9275_s14 + $0x7c] sm:$0xf] }
  0xc2   : > { %v2481_v9 = vrot.slane %v2479_v62, 5  ;;  %v586_v12 = vsel %vm9298_vm2, %v581_v1, %v585_v46  ;;  %v590_v14 = vrot.slane %v588_v2, 4  ;;  %v601_v16 = vshrl.u32 %v345_v58, 16 }
  0xc3   : > { %v593_v15 = vrot.slane %v591_v4, 5  ;;  %v6663_v18 = vcombine.low %v576_v0, %v586_v12  ;;  %v2467_v19 = vrot.slane %v2466_v6, 4  ;;  %v2477_v20 = vrot.slane %v2476_v8, 4 }
  0xc4   : > { %v599_v21 = vrot.slane %v597_v10, 5  ;;  %v603_v24 = vrot.slane %v601_v16, 4  ;;  %v607_v25 = vshll.u32 %v384_v63, 16  ;;  %v2484_v26 = vshrl.u32 %v6824_v11, 16  ;;  %v6829_v10 = vld [vmem:[%s9275_s14 + $0x80] sm:$0x1] }
  0xc5   : > { %v594_v23 = vor.u32 %v593_v15, %v590_v14  ;;  %7785 = vmatmul.mubr.bf16.gmra.mrb[12].mxu1 %v6663_v18  ;;  %v2472_v29 = vsel %vm9298_vm2, %v2467_v19, %v2471_v60  ;;  %v2482_v30 = vsel %vm9298_vm2, %v2477_v20, %v2481_v9  ;;  %v2487_v32 = vshll.u32 %v6824_v11, 16  ;;  %v348_v18 = vld [vmem:[%s9275_s14 + $0x78] sm:$0xf] }
  0xc6   : > { %v2493_v33 = vshll.u32 %v9425_v17, 16  ;;  %v6855_v35 = vcombine.low %v2472_v29, %v2482_v30  ;;  %v604_v38 = vor.u32 %v603_v24, %v599_v21  ;;  %v609_v40 = vrot.slane %v607_v25, 5  ;;  %v349_v24 = vld [vmem:[%s9275_s14 + $0x7c] sm:$0xf] }
  0xc7   : > { %v595_v36 = vrot.slane %v594_v23, 4  ;;  %v2486_v13 = vrot.slane %v2484_v26, 4  ;;  %v2489_v42 = vrot.slane %v2487_v32, 5  ;;  %v2497_v44 = vshrl.u32 %v9425_v17, 16 }
  0xc8   : > { %v2495_v43 = vrot.slane %v2493_v33, 5  ;;  %7977 = vmatmul.mubr.bf16.gmra.mrb[12].mxu0 %v6855_v35  ;;  %v605_v46 = vrot.slane %v604_v38, 4  ;;  %v2503_v47 = vshll.u32 %v9432_v31, 16  ;;  %v612_v49 = vshrl.u32 %v346_v34, 16  ;;  %v386_v35 = vld [vmem:[%s9275_s14 + $0x80] sm:$0x1] }
  0xc9   : > { %v600_v45 = vsel %vm9298_vm2, %v595_v36, %v599_v21  ;;  %v2490_v50 = vor.u32 %v2489_v42, %v2486_v13  ;;  %v2499_v51 = vrot.slane %v2497_v44, 4  ;;  %v615_v52 = vshll.u32 %v346_v34, 16  ;;  %v6830_v42 = vld [vmem:[%s9275_s14 + $0x84] sm:$0xf] }
  0xca   : > { %v621_v53 = vshll.u32 %v347_v41, 16  ;;  %v610_v56 = vsel %vm9298_vm2, %v605_v46, %v609_v40  ;;  %v2505_v54 = vrot.slane %v2503_v47, 5  ;;  %v614_v57 = vrot.slane %v612_v49, 4  ;;  %v9460_v47 = vld [vmem:[%s9275_s14 + $0x88] sm:$0xf] }
  0xcb   : > { %v625_v58 = vshrl.u32 %v347_v41, 16  ;;  %v6664_v60 = vcombine.low %v600_v45, %v610_v56  ;;  %v2491_v61 = vrot.slane %v2490_v50, 4  ;;  %v2500_v62 = vor.u32 %v2499_v51, %v2495_v43 }
  0xcc   : > { %v617_v63 = vrot.slane %v615_v52, 5  ;;  %v623_v0 = vrot.slane %v621_v53, 5  ;;  %v631_v2 = vshll.u32 %v385_v48, 16  ;;  %v2508_v4 = vshrl.u32 %v6827_v55, 16  ;;  %v6832_v52 = vld [vmem:[%s9275_s14 + $0x8c] sm:$0x1] }
  0xcd   : > { %v627_v1 = vrot.slane %v625_v58, 4  ;;  %7788 = vmatprep.mubr.bf16.mxu1 %v6664_v60  ;;  %v2496_v6 = vsel %vm9298_vm2, %v2491_v61, %v2495_v43  ;;  %v2501_v8 = vrot.slane %v2500_v62, 4  ;;  %v2511_v11 = vshll.u32 %v6827_v55, 16  ;;  %v351_v62 = vld [vmem:[%s9275_s14 + $0x88] sm:$0xf] }
  0xce   : > { %v618_v9 = vor.u32 %v617_v63, %v614_v57  ;;  %v633_v14 = vrot.slane %v631_v2, 5  ;;  %v2510_v15 = vrot.slane %v2508_v4, 4  ;;  %v2517_v16 = vshll.u32 %v6828_v59, 16  ;;  %v350_v57 = vld [vmem:[%s9275_s14 + $0x84] sm:$0xf] }
  0xcf   : > { %v628_v12 = vor.u32 %v627_v1, %v623_v0  ;;  %v2506_v19 = vsel %vm9298_vm2, %v2501_v8, %v2505_v54  ;;  %v2513_v21 = vrot.slane %v2511_v11, 5  ;;  %v2521_v23 = vshrl.u32 %v6828_v59, 16 }
  0xd0   : > { %v619_v20 = vrot.slane %v618_v9, 4  ;;  %v6856_v25 = vcombine.low %v2496_v6, %v2506_v19  ;;  %v2519_v29 = vrot.slane %v2517_v16, 5  ;;  %v2527_v30 = vshll.u32 %v6829_v10, 16  ;;  %v387_v10 = vld [vmem:[%s9275_s14 + $0x8c] sm:$0x1] }
  0xd1   : > { %v629_v26 = vrot.slane %v628_v12, 4  ;;  %v2514_v33 = vor.u32 %v2513_v21, %v2510_v15  ;;  %v2523_v34 = vrot.slane %v2521_v23, 4  ;;  %v636_v36 = vshrl.u32 %v348_v18, 16  ;;  %v6833_v21 = vld [vmem:[%s9275_s14 + $0x90] sm:$0xf] }
  0xd2   : > { %v624_v32 = vsel %vm9298_vm2, %v619_v20, %v623_v0  ;;  %7980 = vmatprep.mubr.bf16.mxu0 %v6856_v25  ;;  %v2529_v40 = vrot.slane %v2527_v30, 5  ;;  %v639_v41 = vshll.u32 %v348_v18, 16  ;;  %v645_v13 = vshll.u32 %v349_v24, 16 }
  0xd3   : > { %v634_v38 = vsel %vm9298_vm2, %v629_v26, %v633_v14  ;;  %v2515_v44 = vrot.slane %v2514_v33, 4  ;;  %v2524_v45 = vor.u32 %v2523_v34, %v2519_v29  ;;  %v638_v46 = vrot.slane %v636_v36, 4 }
  0xd4   : > { %v6665_v43 = vcombine.low %v624_v32, %v634_v38  ;;  %v641_v48 = vrot.slane %v639_v41, 5  ;;  %v647_v49 = vrot.slane %v645_v13, 5  ;;  %v649_v50 = vshrl.u32 %v349_v24, 16 }
  0xd5   : > { %v655_v51 = vshll.u32 %v386_v35, 16  ;;  %v2520_v53 = vsel %vm9298_vm2, %v2515_v44, %v2519_v29  ;;  %v2525_v55 = vrot.slane %v2524_v45, 4  ;;  %v2532_v56 = vshrl.u32 %v6830_v42, 16  ;;  %v9476_v29 = vld [vmem:[%s9275_s14 + $0x94] sm:$0xf] }
  0xd6   : > { %7789 = vmatmul.mubr.bf16.gmra.mrb[16].mxu1 %v6665_v43  ;;  %v2535_v54 = vshll.u32 %v6830_v42, 16  ;;  %v642_v58 = vor.u32 %v641_v48, %v638_v46  ;;  %v651_v59 = vrot.slane %v649_v50, 4  ;;  %v2541_v61 = vshll.u32 %v9460_v47, 16  ;;  %v9481_v35 = vld [vmem:[%s9275_s14 + $0x98] sm:$0x1] }
  0xd7   : > { %v657_v60 = vrot.slane %v655_v51, 5  ;;  %v2530_v63 = vsel %vm9298_vm2, %v2525_v55, %v2529_v40  ;;  %v2534_v0 = vrot.slane %v2532_v56, 4  ;;  %v2545_v2 = vshrl.u32 %v9460_v47, 16  ;;  %v9490_v50 = vld [vmem:[%s9275_s14 + $0x90] sm:$0xf] }
  0xd8   : > { %v2537_v1 = vrot.slane %v2535_v54, 5  ;;  %v6857_v4 = vcombine.low %v2520_v53, %v2530_v63  ;;  %v643_v6 = vrot.slane %v642_v58, 4  ;;  %v652_v8 = vor.u32 %v651_v59, %v647_v49  ;;  %v9493_v56 = vld [vmem:[%s9275_s14 + $0x94] sm:$0xf] }
  0xd9   : > { %v2543_v9 = vrot.slane %v2541_v61, 5  ;;  %v2547_v12 = vrot.slane %v2545_v2, 4  ;;  %v2551_v14 = vshll.u32 %v6832_v52, 16  ;;  %v660_v15 = vshrl.u32 %v350_v57, 16 }
  0xda   : > { %v2538_v11 = vor.u32 %v2537_v1, %v2534_v0  ;;  %7981 = vmatmul.mubr.bf16.gmra.mrb[16].mxu0 %v6857_v4  ;;  %v648_v16 = vsel %vm9298_vm2, %v643_v6, %v647_v49  ;;  %v653_v18 = vrot.slane %v652_v8, 4  ;;  %v663_v19 = vshll.u32 %v350_v57, 16  ;;  %v6836_v8 = vld [vmem:[%s9275_s14 + $0x9c] sm:$0xf] }
  0xdb   : > { %v669_v20 = vshll.u32 %v351_v62, 16  ;;  %v2548_v24 = vor.u32 %v2547_v12, %v2543_v9  ;;  %v2553_v25 = vrot.slane %v2551_v14, 5  ;;  %v662_v26 = vrot.slane %v660_v15, 4  ;;  %v9507_v14 = vld [vmem:[%s9275_s14 + $0xa0] sm:$0xf] }
  0xdc   : > { %v2539_v23 = vrot.slane %v2538_v11, 4  ;;  %v658_v30 = vsel %vm9298_vm2, %v653_v18, %v657_v60  ;;  %v665_v32 = vrot.slane %v663_v19, 5  ;;  %v673_v34 = vshrl.u32 %v351_v62, 16  ;;  %v388_v60 = vld [vmem:[%s9275_s14 + $0x98] sm:$0x1] }
  0xdd   : > { %v671_v33 = vrot.slane %v669_v20, 5  ;;  %v6666_v36 = vcombine.low %v648_v16, %v658_v30  ;;  %v2549_v40 = vrot.slane %v2548_v24, 4  ;;  %v679_v41 = vshll.u32 %v387_v10, 16  ;;  %v9510_v20 = vld [vmem:[%s9275_s14 + $0xa4] sm:$0x1] }
  0xde   : > { %v2544_v38 = vsel %vm9298_vm2, %v2539_v23, %v2543_v9  ;;  %v666_v13 = vor.u32 %v665_v32, %v662_v26  ;;  %v675_v42 = vrot.slane %v673_v34, 4  ;;  %v2556_v43 = vshrl.u32 %v6833_v21, 16 }
  0xdf   : > { %v2559_v44 = vshll.u32 %v6833_v21, 16  ;;  %7792 = vmatprep.mubr.bf16.mxu1 %v6666_v36  ;;  %v2554_v45 = vsel %vm9298_vm2, %v2549_v40, %v2553_v25  ;;  %v681_v46 = vrot.slane %v679_v41, 5  ;;  %v2565_v48 = vshll.u32 %v9476_v29, 16  ;;  %v9513_v21 = vld [vmem:[%s9275_s14 + $0x9c] sm:$0xf] }
  0xe0   : > { %v2569_v49 = vshrl.u32 %v9476_v29, 16  ;;  %v6858_v51 = vcombine.low %v2544_v38, %v2554_v45  ;;  %v667_v52 = vrot.slane %v666_v13, 4  ;;  %v676_v53 = vor.u32 %v675_v42, %v671_v33  ;;  %v9521_v13 = vld [vmem:[%s9275_s14 + $0xa0] sm:$0xf] }
  0xe1   : > { %v2558_v55 = vrot.slane %v2556_v43, 4  ;;  %v2561_v54 = vrot.slane %v2559_v44, 5  ;;  %v2567_v57 = vrot.slane %v2565_v48, 5  ;;  %v2575_v59 = vshll.u32 %v9481_v35, 16  ;;  %v6839_v48 = vld [vmem:[%s9275_s14 + $0xa8] sm:$0xf] }
  0xe2   : > { %v2571_v58 = vrot.slane %v2569_v49, 4  ;;  %7984 = vmatprep.mubr.bf16.mxu0 %v6858_v51  ;;  %v672_v61 = vsel %vm9298_vm2, %v667_v52, %v671_v33  ;;  %v677_v62 = vrot.slane %v676_v53, 4  ;;  %v684_v63 = vshrl.u32 %v9490_v50, 16 }
  0xe3   : > { %v687_v0 = vshll.u32 %v9490_v50, 16  ;;  %v2562_v1 = vor.u32 %v2561_v54, %v2558_v55  ;;  %v2577_v4 = vrot.slane %v2575_v59, 5  ;;  %v693_v6 = vshll.u32 %v9493_v56, 16 }
  0xe4   : > { %v2572_v2 = vor.u32 %v2571_v58, %v2567_v57  ;;  %v682_v9 = vsel %vm9298_vm2, %v677_v62, %v681_v46  ;;  %v686_v10 = vrot.slane %v684_v63, 4  ;;  %v697_v12 = vshrl.u32 %v9493_v56, 16  ;;  %v389_v46 = vld [vmem:[%s9275_s14 + $0xa4] sm:$0x1] }
  0xe5   : > { %v689_v11 = vrot.slane %v687_v0, 5  ;;  %v6667_v15 = vcombine.low %v672_v61, %v682_v9  ;;  %v2563_v16 = vrot.slane %v2562_v1, 4  ;;  %v695_v19 = vrot.slane %v693_v6, 5  ;;  %v9539_v6 = vld [vmem:[%s9275_s14 + $0xb0] sm:$0x1] }
  0xe6   : > { %v2573_v18 = vrot.slane %v2572_v2, 4  ;;  %v699_v24 = vrot.slane %v697_v12, 4  ;;  %v703_v25 = vshll.u32 %v388_v60, 16  ;;  %v2580_v26 = vshrl.u32 %v6836_v8, 16  ;;  %v9542_v12 = vld [vmem:[%s9275_s14 + $0xa8] sm:$0xf] }
  0xe7   : > { %v690_v23 = vor.u32 %v689_v11, %v686_v10  ;;  %7793 = vmatmul.mubr.bf16.gmra.mrb[20].mxu1 %v6667_v15  ;;  %v2568_v30 = vsel %vm9298_vm2, %v2563_v16, %v2567_v57  ;;  %v2583_v33 = vshll.u32 %v6836_v8, 16  ;;  %v2589_v34 = vshll.u32 %v9507_v14, 16 }
  0xe8   : > { %v2578_v32 = vsel %vm9298_vm2, %v2573_v18, %v2577_v4  ;;  %v700_v40 = vor.u32 %v699_v24, %v695_v19  ;;  %v705_v41 = vrot.slane %v703_v25, 5  ;;  %v2582_v42 = vrot.slane %v2580_v26, 4  ;;  %v9536_v4 = vld [vmem:[%s9275_s14 + $0xac] sm:$0xf] }
  0xe9   : > { %v6859_v36 = vcombine.low %v2568_v30, %v2578_v32  ;;  %v691_v38 = vrot.slane %v690_v23, 4  ;;  %v2585_v43 = vrot.slane %v2583_v33, 5  ;;  %v2591_v44 = vrot.slane %v2589_v34, 5  ;;  %v9547_v23 = vld [vmem:[%s9275_s14 + $0xac] sm:$0xf] }
  0xea   : > { %v2593_v45 = vshrl.u32 %v9507_v14, 16  ;;  %v701_v51 = vrot.slane %v700_v40, 4  ;;  %v2599_v52 = vshll.u32 %v9510_v20, 16  ;;  %v708_v53 = vshrl.u32 %v9513_v21, 16 }
  0xeb   : > { %7985 = vmatmul.mubr.bf16.gmra.mrb[20].mxu0 %v6859_v36  ;;  %v696_v49 = vsel %vm9298_vm2, %v691_v38, %v695_v19  ;;  %v2586_v55 = vor.u32 %v2585_v43, %v2582_v42  ;;  %v711_v57 = vshll.u32 %v9513_v21, 16  ;;  %v717_v58 = vshll.u32 %v9521_v13, 16  ;;  %v390_v38 = vld [vmem:[%s9275_s14 + $0xb0] sm:$0x1] }
  0xec   : > { %v2595_v54 = vrot.slane %v2593_v45, 4  ;;  %v706_v59 = vsel %vm9298_vm2, %v701_v51, %v705_v41  ;;  %v2601_v60 = vrot.slane %v2599_v52, 5  ;;  %v710_v61 = vrot.slane %v708_v53, 4 }
  0xed   : > { %v721_v62 = vshrl.u32 %v9521_v13, 16  ;;  %v6668_v63 = vcombine.low %v696_v49, %v706_v59  ;;  %v2587_v0 = vrot.slane %v2586_v55, 4  ;;  %v713_v2 = vrot.slane %v711_v57, 5 }
  0xee   : > { %v2596_v1 = vor.u32 %v2595_v54, %v2591_v44  ;;  %v719_v8 = vrot.slane %v717_v58, 5  ;;  %v727_v10 = vshll.u32 %v389_v46, 16  ;;  %v2604_v11 = vshrl.u32 %v6839_v48, 16 }
  0xef   : > { %v723_v9 = vrot.slane %v721_v62, 4  ;;  %7796 = vmatprep.mubr.bf16.mxu1 %v6668_v63  ;;  %v2592_v15 = vsel %vm9298_vm2, %v2587_v0, %v2591_v44  ;;  %v714_v18 = vor.u32 %v713_v2, %v710_v61  ;;  %v2607_v19 = vshll.u32 %v6839_v48, 16  ;;  %v6842_v44 = vld [vmem:[%s9275_s14 + $0xb4] sm:$0xf] }
  0xf0   : > { %v2597_v16 = vrot.slane %v2596_v1, 4  ;;  %v729_v25 = vrot.slane %v727_v10, 5  ;;  %v2606_v26 = vrot.slane %v2604_v11, 4  ;;  %v2613_v30 = vshll.u32 %v9536_v4, 16  ;;  %v9568_v1 = vld [vmem:[%s9275_s14 + $0xbc] sm:$0x1] }
  0xf1   : > { %v724_v24 = vor.u32 %v723_v9, %v719_v8  ;;  %v715_v33 = vrot.slane %v714_v18, 4  ;;  %v2609_v34 = vrot.slane %v2607_v19, 5  ;;  %v2617_v36 = vshrl.u32 %v9536_v4, 16  ;;  %v9571_v2 = vld [vmem:[%s9275_s14 + $0xb4] sm:$0xf] }
  0xf2   : > { %v2602_v32 = vsel %vm9298_vm2, %v2597_v16, %v2601_v60  ;;  %v2615_v42 = vrot.slane %v2613_v30, 5  ;;  %v2623_v43 = vshll.u32 %v9539_v6, 16  ;;  %v732_v49 = vshrl.u32 %v9542_v12, 16  ;;  %v9564_v60 = vld [vmem:[%s9275_s14 + $0xb8] sm:$0xf] }
  0xf3   : > { %v6860_v40 = vcombine.low %v2592_v15, %v2602_v32  ;;  %v725_v41 = vrot.slane %v724_v24, 4  ;;  %v720_v45 = vsel %vm9298_vm2, %v715_v33, %v719_v8  ;;  %v2610_v46 = vor.u32 %v2609_v34, %v2606_v26  ;;  %v9576_v15 = vld [vmem:[%s9275_s14 + $0xb8] sm:$0xf] }
  0xf4   : > { %v2619_v48 = vrot.slane %v2617_v36, 4  ;;  %v2625_v52 = vrot.slane %v2623_v43, 5  ;;  %v735_v53 = vshll.u32 %v9542_v12, 16  ;;  %v741_v55 = vshll.u32 %v9547_v23, 16 }
  0xf5   : > { %7988 = vmatprep.mubr.bf16.mxu0 %v6860_v40  ;;  %v730_v51 = vsel %vm9298_vm2, %v725_v41, %v729_v25  ;;  %v2611_v57 = vrot.slane %v2610_v46, 4  ;;  %v734_v59 = vrot.slane %v732_v49, 4  ;;  %v745_v63 = vshrl.u32 %v9547_v23, 16  ;;  %v391_v40 = vld [vmem:[%s9275_s14 + $0xbc] sm:$0x1] }
  0xf6   : > { %v6669_v54 = vcombine.low %v720_v45, %v730_v51  ;;  %v2620_v58 = vor.u32 %v2619_v48, %v2615_v42  ;;  %v737_v61 = vrot.slane %v735_v53, 5  ;;  %v743_v62 = vrot.slane %v741_v55, 5  ;;  %v6845_v45 = vld [vmem:[%s9275_s14 + $0xc0] sm:$0xf] }
  0xf7   : > { %v751_v0 = vshll.u32 %v390_v38, 16  ;;  %v2616_v8 = vsel %vm9298_vm2, %v2611_v57, %v2615_v42  ;;  %v2628_v10 = vshrl.u32 %v6842_v44, 16  ;;  %v2631_v11 = vshll.u32 %v6842_v44, 16 }
  0xf8   : > { %7797 = vmatmul.mubr.bf16.gmra.mrb[24].mxu1 %v6669_v54  ;;  %v2621_v9 = vrot.slane %v2620_v58, 4  ;;  %v738_v16 = vor.u32 %v737_v61, %v734_v59  ;;  %v747_v18 = vrot.slane %v745_v63, 4  ;;  %v2637_v24 = vshll.u32 %v9564_v60, 16 }
  0xf9   : > { %v753_v19 = vrot.slane %v751_v0, 5  ;;  %v2630_v26 = vrot.slane %v2628_v10, 4  ;;  %v2633_v30 = vrot.slane %v2631_v11, 5  ;;  %v2641_v32 = vshrl.u32 %v9564_v60, 16  ;;  %v9599_v10 = vld [vmem:[%s9275_s14 + $0xc8] sm:$0x1] }
  0xfa   : > { %v2626_v25 = vsel %vm9298_vm2, %v2621_v9, %v2625_v52  ;;  %v739_v34 = vrot.slane %v738_v16, 4  ;;  %v748_v36 = vor.u32 %v747_v18, %v743_v62  ;;  %v2639_v38 = vrot.slane %v2637_v24, 5  ;;  %v9591_v52 = vld [vmem:[%s9275_s14 + $0xc4] sm:$0xf] }
  0xfb   : > { %v6861_v33 = vcombine.low %v2616_v8, %v2626_v25  ;;  %v2634_v41 = vor.u32 %v2633_v30, %v2630_v26  ;;  %v2643_v42 = vrot.slane %v2641_v32, 4  ;;  %v2647_v43 = vshll.u32 %v9568_v1, 16  ;;  %v6872_v32 = vld [vmem:[%s9275_s14 + $0xc] sm:$0xe] }
  0xfc   : > { %v756_v44 = vshrl.u32 %v9571_v2, 16  ;;  %v744_v46 = vsel %vm9298_vm2, %v739_v34, %v743_v62  ;;  %v749_v48 = vrot.slane %v748_v36, 4  ;;  %v759_v49 = vshll.u32 %v9571_v2, 16 }
  0xfd   : > { %7989 = vmatmul.mubr.bf16.gmra.mrb[24].mxu0 %v6861_v33  ;;  %v765_v51 = vshll.u32 %v9576_v15, 16  ;;  %v2635_v53 = vrot.slane %v2634_v41, 4  ;;  %v2644_v55 = vor.u32 %v2643_v42, %v2639_v38  ;;  %v2649_v54 = vrot.slane %v2647_v43, 5 }
  0xfe   : > { %v758_v57 = vrot.slane %v756_v44, 4  ;;  %v754_v58 = vsel %vm9298_vm2, %v749_v48, %v753_v19  ;;  %v761_v59 = vrot.slane %v759_v49, 5  ;;  %v769_v62 = vshrl.u32 %v9576_v15, 16 }
  0xff   : > { %v767_v61 = vrot.slane %v765_v51, 5  ;;  %v6670_v63 = vcombine.low %v744_v46, %v754_v58  ;;  %v2640_v0 = vsel %vm9298_vm2, %v2635_v53, %v2639_v38  ;;  %v2645_v8 = vrot.slane %v2644_v55, 4  ;;  %v8709_v55 = vld [vmem:[%s9275_s14] sm:$0xf] }
 0x100   : > { %v775_v9 = vshll.u32 %v391_v40, 16  ;;  %v762_v11 = vor.u32 %v761_v59, %v758_v57  ;;  %v771_v16 = vrot.slane %v769_v62, 4  ;;  %v2652_v18 = vshrl.u32 %v6845_v45, 16  ;;  %v6873_v40 = vld [vmem:[%s9275_s14 + $0x18] sm:$0xe] }
 0x101   : > { %v2655_v24 = vshll.u32 %v6845_v45, 16  ;;  %7800 = vmatprep.mubr.bf16.mxu1 %v6670_v63  ;;  %v2650_v19 = vsel %vm9298_vm2, %v2645_v8, %v2649_v54  ;;  %v2661_v26 = vshll.u32 %v9591_v52, 16  ;;  %v2665_v30 = vshrl.u32 %v9591_v52, 16  ;;  %v9614_v54 = vld [vmem:[%s9275_s14 + $0x4] sm:$0xf] }
 0x102   : > { %v777_v25 = vrot.slane %v775_v9, 5  ;;  %v6862_v33 = vcombine.low %v2640_v0, %v2650_v19  ;;  %v763_v34 = vrot.slane %v762_v11, 4  ;;  %v772_v36 = vor.u32 %v771_v16, %v767_v61  ;;  %v6874_v63 = vld [vmem:[%s9275_s14 + $0x24] sm:$0xe] }
 0x103   : > { %v2654_v38 = vrot.slane %v2652_v18, 4  ;;  %v2657_v41 = vrot.slane %v2655_v24, 5  ;;  %v2663_v42 = vrot.slane %v2661_v26, 5  ;;  %v2667_v43 = vrot.slane %v2665_v30, 4 }
 0x104   : > { %v2671_v44 = vshll.u32 %v9599_v10, 16  ;;  %7992 = vmatprep.mubr.bf16.mxu0 %v6862_v33  ;;  %v768_v45 = vsel %vm9298_vm2, %v763_v34, %v767_v61  ;;  %v773_v46 = vrot.slane %v772_v36, 4  ;;  %v6680_v57 = vcombine.low %v8709_v55, %v9614_v54  ;;  %v8711_v61 = vld [vmem:[%s9275_s14 + $0x10] sm:$0xf]  ;;  %v8713_v34 = vld [vmem:[%s9275_s14 + $0x2c] sm:$0x1] }
 0x105   : > { %v2658_v48 = vor.u32 %v2657_v41, %v2654_v38  ;;  %v2668_v49 = vor.u32 %v2667_v43, %v2663_v42  ;;  %v6888_v59 = vrot.slane %v6872_v32, 9  ;;  %v3062_v62 = vrot.slane %v8711_v61, 5  ;;  %v8712_v32 = vld [vmem:[%s9275_s14 + $0x28] sm:$0xf]  ;;  %v8714_v38 = vld [vmem:[%s9275_s14 + $0xc] sm:$0xf] }
 0x106   : > { %v2673_v51 = vrot.slane %v2671_v44, 5  ;;  %v778_v53 = vsel %vm9298_vm2, %v773_v46, %v777_v25  ;;  %v6889_v11 = vrot.slane %v6873_v40, 9  ;;  %v3073_v24 = vsel %vm9617_vm5, %v9337_v37, %v3072_v28  ;;  %v9646_v40 = vld [vmem:[%s9275_s14 + $0x10] sm:$0xf]  ;;  %v8716_v41 = vld [vmem:[%s9275_s14 + $0x34] sm:$0xf] }
 0x107   : > { %v6671_v0 = vcombine.low %v768_v45, %v778_v53  ;;  %v2659_v8 = vrot.slane %v2658_v48, 4  ;;  %v2669_v9 = vrot.slane %v2668_v49, 4  ;;  %v3063_v16 = vsel %vm9617_vm5, %v6888_v59, %v3062_v62  ;;  %v8717_v43 = vld [vmem:[%s9275_s14 + $0x18] sm:$0xf]  ;;  %v9653_v44 = vld [vmem:[%s9275_s14 + $0x1c] sm:$0xf] }
 0x108   : > { %v3064_v18 = vrot.slane %v3062_v62, 4  ;;  %v3070_v26 = vsel %vm9617_vm5, %v6889_v11, %v3069_v27  ;;  %v6890_v30 = vrot.slane %v6874_v63, 9  ;;  %v3076_v33 = vrot.slane %v8712_v32, 5  ;;  %v8620_v49 = vld [vmem:[#allocation5 + $0x88] sm:$0xff]   ;;  %v8721_v11 = vld [vmem:[%s9275_s14 + $0x4c] sm:$0xf] }
 0x109   : > { %7801 = vmatmul.mubr.bf16.gmra.mrb[28].mxu1 %v6671_v0  ;;  %v2664_v19 = vsel %vm9298_vm2, %v2659_v8, %v2663_v42  ;;  %v2674_v25 = vsel %vm9298_vm2, %v2669_v9, %v2673_v51  ;;  %v6905_v37 = vcombine.low %v3070_v26, %v3073_v24  ;;  %v3079_v36 = vrot.slane %v8713_v34, 5  ;;  %v6876_v51 = vld [vmem:[%s9275_s14 + $0x3c] sm:$0xe]  ;;  %v8719_v53 = vld [vmem:[%s9275_s14 + $0x40] sm:$0xf] }
 0x10a   : > { %v6863_v7 = vcombine.low %v2664_v19, %v2674_v25  ;;  %7820 = vmatprep.mubr.bf16.mxu1 %v6680_v57  ;;  %v3066_v28 = vsel %vm9617_vm5, %v3064_v18, %v3065_v5  ;;  %v3078_v27 = vrot.slane %v3076_v33, 4  ;;  %v6681_v22 = vcombine.low %v8714_v38, %v9646_v40  ;;  %v6875_v5 = vld [vmem:[%s9275_s14 + $0x30] sm:$0xe]  ;;  %v9663_v57 = vld [vmem:[%s9275_s14 + $0x48] sm:$0xe]  ;;  %v8619_v8 = vld [vmem:[#allocation5 + $0x188] sm:$0xff]  }
 0x10b   : > { %v6904_v3 = vcombine.low %v3063_v16, %v3066_v28  ;;  %v3083_v42 = vrot.slane %v8716_v41, 5  ;;  %v6682_v45 = vcombine.low %v8717_v43, %v9653_v44  ;;  %v3077_v46 = vsel %vm9617_vm5, %v6890_v30, %v3076_v33  ;;  %v8720_v61 = vld [vmem:[%s9275_s14 + $0x38] sm:$0x1]  ;;  %v8723_v19 = vld [vmem:[%s9275_s14 + $0x44] sm:$0x1] }
 0x10c   : > { %7993 = vmatmul.mubr.bf16.gmra.mrb[28].mxu0 %v6863_v7  ;;  %v3080_v48 = vsel %vm9617_vm5, %v3078_v27, %v3079_v36  ;;  %v3090_v55 = vrot.slane %v8719_v53, 5  ;;  %v6891_v59 = vrot.slane %v6875_v5, 9  ;;  %v3086_v62 = vrot.slane %v8720_v61, 5  ;;  %v8722_v18 = vld [vmem:[#allocation5 + $0x80] sm:$0xff]   ;;  %v8624_v26 = vld [vmem:[#allocation5 + $0x90] sm:$0xff]  }
 0x10d   : > { %8012 = vmatprep.mubr.bf16.mxu0 %v6904_v3  ;;  %v6906_v63 = vcombine.low %v3077_v46, %v3080_v48  ;;  %v3085_v0 = vrot.slane %v3083_v42, 4  ;;  %v6892_v9 = vrot.slane %v6876_v51, 9  ;;  %v3097_v16 = vrot.slane %v8721_v11, 5  ;;  %v6878_v30 = vld [vmem:[%s9275_s14 + $0x54] sm:$0xe]  ;;  %v9676_v36 = vld [vmem:[#allocation5 + $0x190] sm:$0xff]  }
 0x10e   : > { %v3092_v24 = vrot.slane %v3090_v55, 4  ;;  %v3093_v25 = vrot.slane %v8723_v19, 5  ;;  %v8724_v7 = vld [vmem:[%s9275_s14 + $0x58] sm:$0xf]  ;;  %v8725_v32 = vld [vmem:[%s9275_s14 + $0x24] sm:$0xf]  ;;  %v3084_v38 = vsel %vm9617_vm5, %v6891_v59, %v3083_v42 }
 0x10f   : > { %v3104_v28 = vrot.slane %v8724_v7, 5  ;;  %v9672_v33 = vld [vmem:[%s9275_s14 + $0x28] sm:$0xf]  ;;  %v6893_v34 = vrot.slane %v9663_v57, 9  ;;  %v8727_v27 = vld [vmem:[#allocation5 + $0x180] sm:$0xff]   ;;  %v3091_v48 = vsel %vm9617_vm5, %v6892_v9, %v3090_v55  ;;  %v6894_v53 = vrot.slane %v6878_v30, 9 }
 0x110   : > { %v6683_v3 = vcombine.low %v8725_v32, %v9672_v33  ;;  %v8728_v5 = vld [vmem:[%s9275_s14 + $0x50] sm:$0x1]  ;;  %v9684_v43 = vld [vmem:[%s9275_s14 + $0x60] sm:$0xe]  ;;  %v9688_v46 = vld [vmem:[%s9275_s14 + $0x34] sm:$0xf]  ;;  %v3094_v51 = vsel %vm9617_vm5, %v3092_v24, %v3093_v25 }
 0x111   : > { %7821 = vmatmul.mubr.bf16.vlgmr.msra.gmra.mrb[0].mxu1 %v6681_v22  ;;  %v3099_v22 = vrot.slane %v3097_v16, 4  ;;  %v3100_v41 = vrot.slane %v8728_v5, 5  ;;  %v9695_v57 = vld [vmem:[#allocation5 + $0x98] sm:$0xff]   ;;  %v8731_v61 = vld [vmem:[%s9275_s14 + $0x5c] sm:$0x1]  ;;  %v6908_v30 = vcombine.low %v3091_v48, %v3094_v51  ;;  %v9721_v7 = vsel %vm9617_vm5, %v6893_v34, %v3097_v16 }
 0x112   : > { %7853 = vmatpush3.bf16.msra.mxu1 %v8722_v18  ;;  %7824 = vmatprep.mubr.bf16.mxu1 %v6682_v45  ;;  %v8729_v45 = vld [vmem:[%s9275_s14 + $0x30] sm:$0xf]  ;;  %v9698_v59 = vld [vmem:[%s9275_s14 + $0x6c] sm:$0xe]  ;;  %v9705_v11 = vld [vmem:[%s9275_s14 + $0x40] sm:$0xf] }
 0x113   : > { %7854 = vmatprep.subr.bf16.mxu1 %v8620_v49  ;;  %v6684_v42 = vcombine.low %v8729_v45, %v9688_v46  ;;  %v9710_v9 = vld [vmem:[%s9275_s14 + $0x48] sm:$0xf]  ;;  %v9713_v18 = vld [vmem:[%s9275_s14 + $0x4c] sm:$0xf]  ;;  %v6883_v19 = vld [vmem:[%s9275_s14 + $0x90] sm:$0xe]  ;;  %v9725_v32 = vsel %vm9617_vm5, %v3099_v22, %v3100_v41 }
 0x114   : > { %8013 = vmatmul.mubr.bf16.vlgmr.msra.gmra.mrb[0].mxu0 %v6905_v37  ;;  %v3087_v37 = vsel %vm9617_vm5, %v3085_v0, %v3086_v62  ;;  %v3107_v62 = vrot.slane %v8731_v61, 5  ;;  %v9702_v0 = vld [vmem:[%s9275_s14 + $0x3c] sm:$0xf]  ;;  %v6686_v24 = vcombine.low %v9710_v9, %v9713_v18  ;;  %v9737_v5 = vld [vmem:[%s9275_s14 + $0x58] sm:$0xf]  ;;  %v6895_v34 = vrot.slane %v9684_v43, 9 }
 0x115   : > { %8045 = vmatpush3.bf16.msra.mxu0 %v8727_v27  ;;  %8016 = vmatprep.mubr.bf16.mxu0 %v6906_v63  ;;  %v6907_v63 = vcombine.low %v3084_v38, %v3087_v37  ;;  %v6685_v55 = vcombine.low %v9702_v0, %v9705_v11  ;;  %v6884_v25 = vld [vmem:[%s9275_s14 + $0x9c] sm:$0xe]  ;;  %v8736_v27 = vld [vmem:[%s9275_s14 + $0x64] sm:$0xf]  ;;  %v8627_v37 = vld [vmem:[#allocation5 + $0x198] sm:$0xff]   ;;  %v3118_v48 = vrot.slane %v9425_v17, 5  ;;  %v6909_v43 = vcombine.low %v9721_v7, %v9725_v32 }
 0x116   : > { %8046 = vmatprep.subr.bf16.mxu0 %v8619_v8  ;;  %7855 = vmatpush3.bf16.msra.mxu1 %v8620_v49  ;;  %v3106_v49 = vrot.slane %v3104_v28, 4  ;;  %v3111_v38 = vrot.slane %v8736_v27, 5  ;;  %v9743_v22 = vld [vmem:[%s9275_s14 + $0x68] sm:$0x1]  ;;  %v6885_v45 = vld [vmem:[%s9275_s14 + $0xa8] sm:$0xe] }
 0x117   : > { %7856 = vmatprep.subr.bf16.mxu1 %v8624_v26  ;;  %v3114_v41 = vrot.slane %v9743_v22, 5  ;;  %v8632_v51 = vld [vmem:[#allocation5 + $0xa0] sm:$0xff]   ;;  %v9757_v61 = vld [vmem:[%s9275_s14 + $0x60] sm:$0xf]  ;;  %v9760_v0 = vld [vmem:[%s9275_s14 + $0x64] sm:$0xf] }
 0x118   : > { %v3142_v17 = vrot.slane %v9481_v35, 5  ;;  %v6900_v7 = vrot.slane %v6884_v25, 9  ;;  %v3146_v32 = vrot.slane %v9507_v14, 5  ;;  %v3149_v35 = vrot.slane %v9510_v20, 5  ;;  %v8636_v20 = vld [vmem:[#allocation5 + $0xa8] sm:$0xff]  }
 0x119   : > { %7825 = vmatmul.mubr.bf16.gmra.mrb[4].mxu1 %v6683_v3  ;;  %8047 = vmatpush3.bf16.msra.mxu0 %v8619_v8  ;;  %v9731_v3 = vsel %vm9617_vm5, %v6894_v53, %v3104_v28  ;;  %v9734_v8 = vld [vmem:[%s9275_s14 + $0x54] sm:$0xf]  ;;  %v9749_v28 = vsel %vm9617_vm5, %v3106_v49, %v3107_v62  ;;  %v6899_v53 = vrot.slane %v6883_v19, 9  ;;  %v3121_v19 = vrot.slane %v9432_v31, 5 }
 0x11a   : > { %7828 = vmatprep.mubr.bf16.mxu1 %v6684_v42  ;;  %8048 = vmatprep.subr.bf16.mxu0 %v9676_v36  ;;  %v6687_v16 = vcombine.low %v9734_v8, %v9737_v5  ;;  %v6896_v42 = vrot.slane %v9698_v59, 9  ;;  %v8631_v49 = vld [vmem:[#allocation5 + $0x1a0] sm:$0xff]   ;;  %v3139_v59 = vrot.slane %v9476_v29, 5  ;;  %v6910_v27 = vcombine.low %v9731_v3, %v9749_v28 }
 0x11b   : > { %7857 = vmatpush3.bf16.msra.mxu1 %v8624_v26  ;;  %v6688_v26 = vcombine.low %v9757_v61, %v9760_v0  ;;  %v6886_v62 = vld [vmem:[%s9275_s14 + $0xb4] sm:$0xe]  ;;  %v9785_v31 = vsel %vm9617_vm5, %v6900_v7, %v3146_v32  ;;  %v3148_v14 = vrot.slane %v3146_v32, 4  ;;  %v6901_v25 = vrot.slane %v6885_v45, 9 }
 0x11c   : > { %8017 = vmatmul.mubr.bf16.gmra.mrb[4].mxu0 %v6907_v63  ;;  %7858 = vmatprep.subr.bf16.mxu1 %v9695_v57  ;;  %v3113_v63 = vrot.slane %v3111_v38, 4  ;;  %v9774_v22 = vsel %vm9617_vm5, %v6899_v53, %v3139_v59  ;;  %v3141_v29 = vrot.slane %v3139_v59, 4  ;;  %v3120_v3 = vrot.slane %v3118_v48, 4  ;;  %v9857_v8 = vld [vmem:[#allocation5 + $0xc0] sm:$0xff]  }
 0x11d   : > { %8020 = vmatprep.mubr.bf16.mxu0 %v6908_v30  ;;  %8049 = vmatpush3.bf16.msra.mxu0 %v9676_v36  ;;  %v6887_v30 = vld [vmem:[%s9275_s14 + $0xc0] sm:$0xe]  ;;  %v9780_v36 = vsel %vm9617_vm5, %v6895_v34, %v3111_v38  ;;  %v3153_v53 = vrot.slane %v9536_v4, 5  ;;  %v3156_v38 = vrot.slane %v9539_v6, 5  ;;  %v9797_v34 = vsel %vm9617_vm5, %v3148_v14, %v3149_v35  ;;  %v8742_v35 = vld [vmem:[%s9275_s14 + $0x7c] sm:$0xf] }
 0x11e   : > { %8050 = vmatprep.subr.bf16.mxu0 %v8627_v37  ;;  %v9789_v28 = vsel %vm9617_vm5, %v3141_v29, %v3142_v17  ;;  %v6902_v45 = vrot.slane %v6886_v62, 9  ;;  %v3160_v59 = vrot.slane %v9564_v60, 5  ;;  %v8635_v4 = vld [vmem:[#allocation5 + $0x1a8] sm:$0xff]   ;;  %v6916_v6 = vcombine.low %v9785_v31, %v9797_v34  ;;  %v8640_v17 = vld [vmem:[#allocation5 + $0xb0] sm:$0xff]  }
 0x11f   : > { %7859 = vmatpush3.bf16.msra.mxu1 %v9695_v57  ;;  %v6915_v57 = vcombine.low %v9774_v22, %v9789_v28  ;;  %v3163_v62 = vrot.slane %v9568_v1, 5  ;;  %v3119_v60 = vsel %vm9617_vm5, %v6896_v42, %v3118_v48  ;;  %v6903_v7 = vrot.slane %v6887_v30, 9  ;;  %v6881_v29 = vld [vmem:[%s9275_s14 + $0x78] sm:$0xe]  ;;  %v6882_v14 = vld [vmem:[%s9275_s14 + $0x84] sm:$0xe] }
 0x120   : > { %7860 = vmatprep.subr.bf16.mxu1 %v8632_v51  ;;  %v9814_v9 = vsel %vm9617_vm5, %v6902_v45, %v3160_v59  ;;  %v3115_v32 = vsel %vm9617_vm5, %v3113_v63, %v3114_v41  ;;  %v3167_v42 = vrot.slane %v9591_v52, 5  ;;  %v3170_v48 = vrot.slane %v9599_v10, 5  ;;  %v8639_v63 = vld [vmem:[#allocation5 + $0x1b0] sm:$0xff]   ;;  %v8644_v45 = vld [vmem:[#allocation5 + $0xb8] sm:$0xff]  }
 0x121   : > { %7829 = vmatmul.mubr.bf16.gmra.mrb[8].mxu1 %v6685_v55  ;;  %8051 = vmatpush3.bf16.msra.mxu0 %v8627_v37  ;;  %v9807_v55 = vsel %vm9617_vm5, %v6901_v25, %v3153_v53  ;;  %v3155_v37 = vrot.slane %v3153_v53, 4  ;;  %v3132_v52 = vrot.slane %v9460_v47, 5  ;;  %v6897_v25 = vrot.slane %v6881_v29, 9  ;;  %v9870_v29 = vld [vmem:[%s9275_s14 + $0x7c] sm:$0xf] }
 0x122   : > { %7832 = vmatprep.mubr.bf16.mxu1 %v6686_v24  ;;  %8052 = vmatprep.subr.bf16.mxu0 %v8631_v49  ;;  %v3162_v24 = vrot.slane %v3160_v59, 4  ;;  %v6694_v22 = vcombine.low %v9542_v12, %v9547_v23  ;;  %v1376_v34 = vld [vmem:[%s9275_s14 + $0x24] sm:$0xe] }
 0x123   : > { %7861 = vmatpush3.bf16.msra.mxu1 %v8632_v51  ;;  %v9821_v1 = vsel %vm9617_vm5, %v3155_v37, %v3156_v38  ;;  %v3122_v51 = vsel %vm9617_vm5, %v3120_v3, %v3121_v19  ;;  %v9840_v19 = vsel %vm9617_vm5, %v6903_v7, %v3167_v42  ;;  %v8743_v3 = vld [vmem:[%s9275_s14 + $0x80] sm:$0x1]  ;;  %v8643_v38 = vld [vmem:[#allocation5 + $0x1b8] sm:$0xff]  }
 0x124   : > { %8021 = vmatmul.mubr.bf16.gmra.mrb[8].mxu0 %v6909_v43  ;;  %7862 = vmatprep.subr.bf16.mxu1 %v8636_v20  ;;  %v3125_v43 = vrot.slane %v8742_v35, 5  ;;  %v6917_v41 = vcombine.low %v9807_v55, %v9821_v1  ;;  %v9832_v30 = vsel %vm9617_vm5, %v3162_v24, %v3163_v62  ;;  %v3128_v53 = vrot.slane %v8743_v3, 5  ;;  %v8744_v24 = vld [vmem:[%s9275_s14 + $0x8c] sm:$0x1]  ;;  %v1374_v3 = vld [vmem:[%s9275_s14 + $0xc] sm:$0xe] }
 0x125   : > { %8024 = vmatprep.mubr.bf16.mxu0 %v6910_v27  ;;  %8053 = vmatpush3.bf16.msra.mxu0 %v8631_v49  ;;  %v6918_v10 = vcombine.low %v9814_v9, %v9832_v30  ;;  %v3169_v49 = vrot.slane %v3167_v42, 4  ;;  %v6911_v27 = vcombine.low %v9780_v36, %v3115_v32  ;;  %v6912_v59 = vcombine.low %v3119_v60, %v3122_v51  ;;  %v8747_v32 = vld [vmem:[%s9275_s14 + $0x78] sm:$0xf]  ;;  %v8754_v1 = vld [vmem:[%s9275_s14 + $0x2c] sm:$0x1] }
 0x126   : > { %8054 = vmatprep.subr.bf16.mxu0 %v8635_v4  ;;  %v6898_v36 = vrot.slane %v6882_v14, 9  ;;  %v3134_v62 = vrot.slane %v3132_v52, 4  ;;  %v3135_v7 = vrot.slane %v8744_v24, 5  ;;  %v3126_v61 = vsel %vm9617_vm5, %v6897_v25, %v3125_v43  ;;  %v9877_v51 = vld [vmem:[#allocation5 + $0x1c0] sm:$0xff]   ;;  %v9883_v14 = vld [vmem:[%s9275_s14 + $0x88] sm:$0xf] }
 0x127   : > { %7863 = vmatpush3.bf16.msra.mxu1 %v8636_v20  ;;  %v9846_v47 = vsel %vm9617_vm5, %v3169_v49, %v3170_v48  ;;  %v3127_v20 = vrot.slane %v3125_v43, 4  ;;  %v6692_v49 = vcombine.low %v9490_v50, %v9493_v56  ;;  %v1426_v25 = vrot.slane %v9614_v54, 5  ;;  %v8753_v24 = vld [vmem:[%s9275_s14 + $0x20] sm:$0x1]  ;;  %v1381_v30 = vld [vmem:[%s9275_s14 + $0x60] sm:$0xe] }
 0x128   : > { %7864 = vmatprep.subr.bf16.mxu1 %v8640_v17  ;;  %v6919_v37 = vcombine.low %v9840_v19, %v9846_v47  ;;  %v3133_v42 = vsel %vm9617_vm5, %v6898_v36, %v3132_v52  ;;  %v3136_v48 = vsel %vm9617_vm5, %v3134_v62, %v3135_v7  ;;  %v6693_v56 = vcombine.low %v9513_v21, %v9521_v13 }
 0x129   : > { %7833 = vmatmul.mubr.bf16.gmra.mrb[12].mxu1 %v6687_v16  ;;  %8055 = vmatpush3.bf16.msra.mxu0 %v8635_v4  ;;  %v8745_v16 = vld [vmem:[%s9275_s14 + $0x6c] sm:$0xf]  ;;  %v9861_v4 = vld [vmem:[%s9275_s14 + $0x70] sm:$0xf]  ;;  %v6914_v43 = vcombine.low %v3133_v42, %v3136_v48  ;;  %v6705_v28 = vrot.slane %v1374_v3, 9  ;;  %v1443_v31 = vrot.slane %v8753_v24, 5 }
 0x12a   : > { %7836 = vmatprep.mubr.bf16.mxu1 %v6688_v26  ;;  %8056 = vmatprep.subr.bf16.mxu0 %v8639_v63  ;;  %v6689_v60 = vcombine.low %v8745_v16, %v9861_v4  ;;  %v3129_v26 = vsel %vm9617_vm5, %v3127_v20, %v3128_v53  ;;  %v1433_v53 = vrot.slane %v9646_v40, 5  ;;  %v1428_v40 = vrot.slane %v1426_v25, 4  ;;  %v8752_v20 = vld [vmem:[%s9275_s14 + $0x14] sm:$0x1]  ;;  %v1377_v16 = vld [vmem:[%s9275_s14 + $0x30] sm:$0xe] }
 0x12b   : > { %7865 = vmatpush3.bf16.msra.mxu1 %v8640_v17  ;;  %v6690_v17 = vcombine.low %v8747_v32, %v9870_v29  ;;  %v6913_v35 = vcombine.low %v3126_v61, %v3129_v26  ;;  %v1447_v7 = vrot.slane %v9672_v33, 5  ;;  %v1378_v26 = vld [vmem:[%s9275_s14 + $0x3c] sm:$0xe]  ;;  %v1379_v32 = vld [vmem:[%s9275_s14 + $0x48] sm:$0xe]  ;;  %v1454_v42 = vrot.slane %v9688_v46, 5 }
 0x12c   : > { %8025 = vmatmul.mubr.bf16.gmra.mrb[12].mxu0 %v6911_v27  ;;  %7866 = vmatprep.subr.bf16.mxu1 %v8644_v45  ;;  %v1373_v27 = vld [vmem:[%s9275_s14] sm:$0xe]  ;;  %v9914_v12 = vsel %vm9617_vm5, %v6705_v28, %v1433_v53  ;;  %v1461_v48 = vrot.slane %v9705_v11, 5  ;;  %v6708_v9 = vrot.slane %v1377_v16, 9  ;;  %v6710_v3 = vrot.slane %v1379_v32, 9  ;;  %v8646_v16 = vld [vmem:[%s9275_s14 + $0x24] sm:$0xff]  }
 0x12d   : > { %8028 = vmatprep.mubr.bf16.mxu0 %v6912_v59  ;;  %8057 = vmatpush3.bf16.msra.mxu0 %v8639_v63  ;;  %v8749_v63 = vld [vmem:[%s9275_s14 + $0x84] sm:$0xf]  ;;  %v8751_v59 = vld [vmem:[%s9275_s14 + $0x8] sm:$0x1]  ;;  %v6704_v54 = vrot.slane %v1373_v27, 9  ;;  %v1449_v11 = vrot.slane %v1447_v7, 4 }
 0x12e   : > { %8058 = vmatprep.subr.bf16.mxu0 %v8643_v38  ;;  %v6691_v52 = vcombine.low %v8749_v63, %v9883_v14  ;;  %v1429_v50 = vrot.slane %v8751_v59, 5  ;;  %v1482_v27 = vrot.slane %v9760_v0, 5  ;;  %v1489_v28 = vrot.slane %v9861_v4, 5  ;;  %v8759_v24 = vld [vmem:[%s9275_s14 + $0x68] sm:$0x1] }
 0x12f   : > { %7867 = vmatpush3.bf16.msra.mxu1 %v8644_v45  ;;  %v1375_v45 = vld [vmem:[%s9275_s14 + $0x18] sm:$0xe]  ;;  %v1427_v21 = vsel %vm9617_vm5, %v6704_v54, %v1426_v25  ;;  %v1463_v25 = vrot.slane %v1461_v48, 4  ;;  %v8758_v54 = vld [vmem:[%s9275_s14 + $0x5c] sm:$0x1] }
 0x130   : > { %7900 = vmatprep.subr.bf16.mxu1 %v9857_v8  ;;  %v6706_v36 = vrot.slane %v1375_v45, 9  ;;  %v1430_v13 = vsel %vm9617_vm5, %v1428_v40, %v1429_v50  ;;  %v8645_v45 = vld [vmem:[%s9275_s14 + $0x18] sm:$0xff]   ;;  %v1478_v40 = vrot.slane %v8758_v54, 5  ;;  %v8760_v32 = vld [vmem:[%s9275_s14 + $0x74] sm:$0x1] }
 0x131   : > { %7837 = vmatmul.mubr.bf16.gmra.mrb[16].mxu1 %v6689_v60  ;;  %8059 = vmatpush3.bf16.msra.mxu0 %v8643_v38  ;;  %v1440_v38 = vrot.slane %v9653_v44, 5  ;;  %v1436_v44 = vrot.slane %v8752_v20, 5  ;;  %v6720_v33 = vcombine.low %v1427_v21, %v1430_v13  ;;  %v9967_v20 = vsel %vm9617_vm5, %v6708_v9, %v1454_v42 }
 0x132   : > { %7840 = vmatprep.mubr.bf16.mxu1 %v6690_v17  ;;  %8092 = vmatprep.subr.bf16.mxu0 %v9877_v51  ;;  %v6695_v17 = vcombine.low %v9571_v2, %v9576_v15  ;;  %v1475_v2 = vrot.slane %v9737_v5, 5  ;;  %v1456_v5 = vrot.slane %v1454_v42, 4  ;;  %v8652_v42 = vld [vmem:[#allocation5 + $0xc8] sm:$0xff]  }
 0x133   : > { %v1442_v62 = vrot.slane %v1440_v38, 4  ;;  %v9924_v60 = vsel %vm9617_vm5, %v6706_v36, %v1440_v38 }
 0x134   : > { %8029 = vmatmul.mubr.bf16.gmra.mrb[16].mxu0 %v6913_v35  ;;  %v1380_v35 = vld [vmem:[%s9275_s14 + $0x54] sm:$0xe] }
 0x135   : > { %8032 = vmatprep.mubr.bf16.mxu0 %v6914_v43  ;;  %v9928_v61 = vsel %vm9617_vm5, %v1442_v62, %v1443_v31  ;;  %v1468_v43 = vrot.slane %v9713_v18, 5  ;;  %v6711_v50 = vrot.slane %v1380_v35, 9  ;;  %v1484_v62 = vrot.slane %v1482_v27, 4 }
 0x136   : > { %v6722_v15 = vcombine.low %v9924_v60, %v9928_v61  ;;  %v1485_v31 = vrot.slane %v8759_v24, 5  ;;  %v8764_v24 = vld [vmem:[%s9275_s14 + $0xa0] sm:$0xf] }
 0x137   : > { %v1470_v59 = vrot.slane %v1468_v43, 4  ;;  %v9991_v13 = vsel %vm9617_vm5, %v6710_v3, %v1468_v43  ;;  %v10001_v47 = vsel %vm9617_vm5, %v6711_v50, %v1475_v2  ;;  %v1385_v3 = vld [vmem:[%s9275_s14 + $0x90] sm:$0xe]  ;;  %v1386_v50 = vld [vmem:[%s9275_s14 + $0x9c] sm:$0xe] }
 0x139   : > { %7841 = vmatmul.mubr.bf16.gmra.mrb[20].mxu1 %v6691_v52  ;;  %v6709_v52 = vrot.slane %v1378_v26, 9  ;;  %v1491_v26 = vrot.slane %v1489_v28, 4 }
 0x13a   : > { %7844 = vmatprep.mubr.bf16.mxu1 %v6692_v49  ;;  %v8756_v49 = vld [vmem:[%s9275_s14 + $0x44] sm:$0x1] }
 0x13b   : > { %v1464_v18 = vrot.slane %v8756_v49, 5  ;;  %v9974_v36 = vsel %vm9617_vm5, %v6709_v52, %v1461_v48  ;;  %v10015_v48 = vsel %vm9617_vm5, %v1484_v62, %v1485_v31  ;;  %v10083_v31 = vld [vmem:[%s9275_s14 + $0xa8] sm:$0xe] }
 0x13c   : > { %8033 = vmatmul.mubr.bf16.gmra.mrb[20].mxu0 %v6915_v57  ;;  %v1435_v57 = vrot.slane %v1433_v53, 4  ;;  %v8757_v53 = vld [vmem:[%s9275_s14 + $0x50] sm:$0x1] }
 0x13d   : > { %8036 = vmatprep.mubr.bf16.mxu0 %v6916_v6  ;;  %v6707_v6 = vrot.slane %v1376_v34, 9  ;;  %v1471_v38 = vrot.slane %v8757_v53, 5  ;;  %v1496_v34 = vrot.slane %v9870_v29, 5  ;;  %v9987_v4 = vsel %vm9617_vm5, %v1463_v25, %v1464_v18  ;;  %v6988_v53 = vld [vmem:[%s9275_s14 + $0x28] sm:$0xf] }
 0x13e   : > { %v9918_v23 = vsel %vm9617_vm5, %v1435_v57, %v1436_v44  ;;  %v6712_v44 = vrot.slane %v1381_v30, 9  ;;  %v1383_v57 = vld [vmem:[%s9275_s14 + $0x78] sm:$0xe]  ;;  %v1503_v29 = vrot.slane %v9883_v14, 5  ;;  %v8762_v30 = vld [vmem:[%s9275_s14 + $0x8c] sm:$0x1]  ;;  %v6725_v49 = vcombine.low %v9974_v36, %v9987_v4 }
 0x13f   : > { %v6721_v55 = vcombine.low %v9914_v12, %v9918_v23  ;;  %v9952_v46 = vsel %vm9617_vm5, %v6707_v6, %v1447_v7  ;;  %v1384_v6 = vld [vmem:[%s9275_s14 + $0x84] sm:$0xe]  ;;  %v9997_v19 = vsel %vm9617_vm5, %v1470_v59, %v1471_v38  ;;  %v1498_v35 = vrot.slane %v1496_v34, 4 }
 0x140   : > { %v10010_v14 = vsel %vm9617_vm5, %v6712_v44, %v1482_v27  ;;  %v6715_v43 = vrot.slane %v1384_v6, 9  ;;  %v1505_v9 = vrot.slane %v1503_v29, 4  ;;  %v6726_v18 = vcombine.low %v9991_v13, %v9997_v19  ;;  %v6984_v27 = vld [vmem:[%s9275_s14 + $0x18] sm:$0xf] }
 0x141   : > { %7845 = vmatmul.mubr.bf16.gmra.mrb[24].mxu1 %v6693_v56  ;;  %v1477_v56 = vrot.slane %v1475_v2, 4  ;;  %v8649_v2 = vld [vmem:[%s9275_s14 + $0x30] sm:$0xff]   ;;  %v6728_v23 = vcombine.low %v10010_v14, %v10015_v48  ;;  %v3931_v54 = vshll.u32 %v6984_v27, 16  ;;  %v3965_v6 = vshrl.u32 %v6988_v53, 16 }
 0x142   : > { %7848 = vmatprep.mubr.bf16.mxu1 %v6694_v22  ;;  %v1382_v22 = vld [vmem:[%s9275_s14 + $0x6c] sm:$0xe]  ;;  %v10064_v25 = vsel %vm9617_vm5, %v6715_v43, %v1503_v29 }
 0x143   : > { %v6713_v7 = vrot.slane %v1382_v22, 9  ;;  %v8653_v29 = vld [vmem:[%s9275_s14 + $0x48] sm:$0xff]  }
 0x144   : > { %8037 = vmatmul.mubr.bf16.gmra.mrb[24].mxu0 %v6917_v41  ;;  %v1450_v41 = vrot.slane %v8754_v1, 5  ;;  %v8761_v1 = vld [vmem:[%s9275_s14 + $0x80] sm:$0x1] }
 0x145   : > { %8040 = vmatprep.mubr.bf16.mxu0 %v6918_v10  ;;  %v8755_v10 = vld [vmem:[%s9275_s14 + $0x38] sm:$0x1] }
 0x146   : > { %v1457_v63 = vrot.slane %v8755_v10, 5  ;;  %v9963_v0 = vsel %vm9617_vm5, %v1449_v11, %v1450_v41  ;;  %v1499_v41 = vrot.slane %v8761_v1, 5  ;;  %v10019_v11 = vld [vmem:[#allocation5 + $0x1c8] sm:$0xff]   ;;  %v1506_v10 = vrot.slane %v8762_v30, 5  ;;  %v10100_v30 = vld [vmem:[%s9275_s14 + $0x30] sm:$0xf] }
 0x148   : > { %v9983_v21 = vsel %vm9617_vm5, %v1456_v5, %v1457_v63  ;;  %v6723_v63 = vcombine.low %v9952_v46, %v9963_v0  ;;  %v10047_v46 = vld [vmem:[%s9275_s14 + $0x1c] sm:$0xf]  ;;  %v6987_v5 = vld [vmem:[%s9275_s14 + $0x24] sm:$0xf]  ;;  %v10070_v38 = vsel %vm9617_vm5, %v1505_v9, %v1506_v10  ;;  %v10097_v9 = vld [vmem:[%s9275_s14 + $0x2c] sm:$0x1] }
 0x149   : > { %7849 = vmatmul.mubr.bf16.gmra.mrb[28].mxu1 %v6695_v17  ;;  %v1492_v17 = vrot.slane %v8760_v32, 5  ;;  %v6724_v52 = vcombine.low %v9967_v20, %v9983_v21  ;;  %v3941_v0 = vshrl.u32 %v10047_v46, 16  ;;  %v3952_v44 = vshrl.u32 %v6987_v5, 16 }
 0x14a   : > { %7868 = vmatprep.mubr.bf16.mxu1 %v6720_v33  ;;  %v6714_v33 = vrot.slane %v1383_v57, 9  ;;  %v3955_v22 = vshll.u32 %v6987_v5, 16  ;;  %v8655_v57 = vld [vmem:[#allocation5 + $0x1d0] sm:$0xff]   ;;  %v6718_v21 = vrot.slane %v10083_v31, 9 }
 0x14b   : > { %v10052_v60 = vsel %vm9617_vm5, %v1491_v26, %v1492_v17  ;;  %v8765_v26 = vld [vmem:[%s9275_s14 + $0x98] sm:$0x1]  ;;  %v6717_v17 = vrot.slane %v1386_v50, 9  ;;  %v3954_v5 = vrot.slane %v3952_v44, 4 }
 0x14c   : > { %8041 = vmatmul.mubr.bf16.gmra.mrb[28].mxu0 %v6919_v37  ;;  %v10005_v37 = vsel %vm9617_vm5, %v1477_v56, %v1478_v40  ;;  %v10056_v61 = vsel %vm9617_vm5, %v6714_v33, %v1496_v34  ;;  %v3928_v56 = vshrl.u32 %v6984_v27, 16  ;;  %v3937_v40 = vshll.u32 %v10047_v46, 16  ;;  %v10090_v33 = vld [vmem:[%s9275_s14 + $0x20] sm:$0x1] }
 0x14d   : > { %8060 = vmatprep.mubr.bf16.mxu0 %v8645_v45  ;;  %v6727_v12 = vcombine.low %v10001_v47, %v10005_v37  ;;  %v8763_v45 = vld [vmem:[%s9275_s14 + $0x94] sm:$0xf]  ;;  %v3961_v34 = vshll.u32 %v6988_v53, 16  ;;  %v1513_v32 = vrot.slane %v8765_v26, 5  ;;  %v3943_v27 = vrot.slane %v3941_v0, 4 }
 0x14e   : > { %v1510_v59 = vrot.slane %v8763_v45, 5  ;;  %v3930_v43 = vrot.slane %v3928_v56, 4  ;;  %v10103_v10 = vrot.slane %v3937_v40, 5  ;;  %v10106_v53 = vld [vmem:[%s9275_s14 + $0x34] sm:$0xf] }
 0x14f   : > { %v8664_v45 = vld [vmem:[#allocation5 + $0xe0] sm:$0xff]   ;;  %v10117_v56 = vrot.slane %v3961_v34, 5 }
 0x150   : > { %v3944_v31 = vor.u32 %v3943_v27, %v10103_v10  ;;  %v8663_v26 = vld [vmem:[#allocation5 + $0x1e0] sm:$0xff]  }
 0x151   : > { %7869 = vmatmul.mubr.bf16.vlgmr.msra.gmra.mrb[0].mxu1 %v6721_v55  ;;  %v10044_v55 = vsel %vm9617_vm5, %v6713_v7, %v1489_v28  ;;  %v8650_v28 = vld [vmem:[%s9275_s14 + $0x3c] sm:$0xff]  }
 0x152   : > { %7901 = vmatpush3.bf16.msra.mxu1 %v9857_v8  ;;  %7872 = vmatprep.mubr.bf16.mxu1 %v6722_v15  ;;  %v8656_v8 = vld [vmem:[#allocation5 + $0xd0] sm:$0xff]   ;;  %v10060_v15 = vsel %vm9617_vm5, %v1498_v35, %v1499_v41  ;;  %v6729_v62 = vcombine.low %v10044_v55, %v10052_v60  ;;  %v8660_v35 = vld [vmem:[#allocation5 + $0xd8] sm:$0xff]   ;;  %v1512_v41 = vrot.slane %v1510_v59, 4 }
 0x153   : > { %7902 = vmatprep.subr.bf16.mxu1 %v8652_v42  ;;  %v7007_v55 = vld [vmem:[%s9275_s14 + $0x74] sm:$0x1] }
 0x154   : > { %8061 = vmatmul.mubr.bf16.vlgmr.msra.gmra.mrb[0].mxu0 %v8646_v16  ;;  %v6716_v16 = vrot.slane %v1385_v3, 9  ;;  %v3957_v3 = vrot.slane %v3955_v22, 5  ;;  %v10131_v44 = vsel %vm9617_vm5, %v1512_v41, %v1513_v32  ;;  %v8768_v22 = vld [vmem:[%s9275_s14 + $0xb8] sm:$0xf]  ;;  %v6993_v41 = vld [vmem:[%s9275_s14 + $0x3c] sm:$0xf] }
 0x155   : > { %8093 = vmatpush3.bf16.msra.mxu0 %v9877_v51  ;;  %8064 = vmatprep.mubr.bf16.mxu0 %v8649_v2  ;;  %v1517_v51 = vrot.slane %v8764_v24, 5  ;;  %v3933_v2 = vrot.slane %v3931_v54, 5  ;;  %v3967_v54 = vrot.slane %v3965_v6, 4  ;;  %v1531_v24 = vrot.slane %v8768_v22, 5 }
 0x156   : > { %8094 = vmatprep.subr.bf16.mxu0 %v10019_v11  ;;  %7903 = vmatpush3.bf16.msra.mxu1 %v8652_v42  ;;  %v10092_v42 = vld [vmem:[#allocation5 + $0x1d8] sm:$0xff]   ;;  %v10121_v40 = vsel %vm9617_vm5, %v6716_v16, %v1510_v59  ;;  %v3958_v34 = vor.u32 %v3957_v3, %v3954_v5  ;;  %v3976_v6 = vshrl.u32 %v10100_v30, 16  ;;  %v4000_v13 = vshrl.u32 %v6993_v41, 16 }
 0x157   : > { %7904 = vmatprep.subr.bf16.mxu1 %v8656_v8  ;;  %v10111_v50 = vrot.slane %v1517_v51, 4  ;;  %v10125_v20 = vsel %vm9617_vm5, %v6717_v17, %v1517_v51  ;;  %v3934_v59 = vor.u32 %v3933_v2, %v3930_v43  ;;  %v3947_v51 = vshll.u32 %v10090_v33, 16  ;;  %v8654_v16 = vld [vmem:[%s9275_s14 + $0x54] sm:$0xff]   ;;  %v8657_v43 = vld [vmem:[%s9275_s14 + $0x60] sm:$0xff]   ;;  %v8769_v5 = vld [vmem:[%s9275_s14 + $0xb0] sm:$0x1] }
 0x158   : > { %v3968_v32 = vor.u32 %v3967_v54, %v10117_v56  ;;  %v3979_v17 = vshll.u32 %v10100_v30, 16  ;;  %v8668_v2 = vld [vmem:[#allocation5 + $0xe8] sm:$0xff]   ;;  %v1527_v3 = vrot.slane %v8769_v5, 5  ;;  %v4003_v19 = vshll.u32 %v6993_v41, 16 }
 0x159   : > { %7873 = vmatmul.mubr.bf16.gmra.mrb[4].mxu1 %v6723_v63  ;;  %8095 = vmatpush3.bf16.msra.mxu0 %v10019_v11  ;;  %v10114_v63 = vld [vmem:[%s9275_s14 + $0xa4] sm:$0x1]  ;;  %v8770_v30 = vld [vmem:[%s9275_s14 + $0xbc] sm:$0x1]  ;;  %v10151_v1 = vrot.slane %v3934_v59, 4 }
 0x15a   : > { %7876 = vmatprep.mubr.bf16.mxu1 %v6724_v52  ;;  %8096 = vmatprep.subr.bf16.mxu0 %v8655_v57  ;;  %v1520_v11 = vrot.slane %v10114_v63, 5  ;;  %v8767_v52 = vld [vmem:[%s9275_s14 + $0xac] sm:$0xf]  ;;  %v8667_v54 = vld [vmem:[#allocation5 + $0x1e8] sm:$0xff]   ;;  %v1534_v22 = vrot.slane %v8770_v30, 5  ;;  %v3969_v59 = vrot.slane %v3968_v32, 4 }
 0x15b   : > { %7905 = vmatpush3.bf16.msra.mxu1 %v8656_v8  ;;  %v1524_v0 = vrot.slane %v8767_v52, 5  ;;  %v1388_v8 = vld [vmem:[%s9275_s14 + $0xb4] sm:$0xe]  ;;  %v1533_v52 = vrot.slane %v1531_v24, 4  ;;  %v10158_v5 = vld [vmem:[%s9275_s14 + $0x38] sm:$0x1] }
 0x15c   : > { %8065 = vmatmul.mubr.bf16.gmra.mrb[4].mxu0 %v8650_v28  ;;  %7906 = vmatprep.subr.bf16.mxu1 %v8660_v35  ;;  %v3971_v28 = vshll.u32 %v10097_v9, 16  ;;  %v6719_v63 = vrot.slane %v1388_v8, 9  ;;  %v3959_v9 = vrot.slane %v3958_v34, 4  ;;  %v3978_v8 = vrot.slane %v3976_v6, 4  ;;  %v10201_v6 = vld [vmem:[%s9275_s14 + $0x44] sm:$0x1] }
 0x15d   : > { %8068 = vmatprep.mubr.bf16.mxu0 %v8653_v29  ;;  %8097 = vmatpush3.bf16.msra.mxu0 %v8655_v57  ;;  %v3985_v29 = vshll.u32 %v10106_v53, 16  ;;  %v3989_v57 = vshrl.u32 %v10106_v53, 16  ;;  %v1526_v27 = vrot.slane %v1524_v0, 4  ;;  %v3949_v53 = vrot.slane %v3947_v51, 5  ;;  %11305 = vst [vmem:[#allocation19_spill] sm:$0xff] %v10201_v6  ;;  %v8676_v32 = vld [vmem:[#allocation5 + $0xf8] sm:$0xff]  }
 0x15e   : > { %8098 = vmatprep.subr.bf16.mxu0 %v10092_v42  ;;  %v3973_v7 = vrot.slane %v3971_v28, 5  ;;  %v3981_v51 = vrot.slane %v3979_v17, 5  ;;  %v10168_v4 = vsel %vm9617_vm5, %v10111_v50, %v1520_v11  ;;  %v10183_v50 = vsel %vm9617_vm5, %v6719_v63, %v1531_v24 }
 0x15f   : > { %7907 = vmatpush3.bf16.msra.mxu1 %v8660_v35  ;;  %v3945_v35 = vrot.slane %v3944_v31, 4  ;;  %v10163_v30 = vrot.slane %v3985_v29, 5  ;;  %v3991_v36 = vrot.slane %v3989_v57, 4  ;;  %v10187_v11 = vsel %vm9617_vm5, %v1533_v52, %v1534_v22  ;;  %v8661_v29 = vld [vmem:[%s9275_s14 + $0x78] sm:$0xff]   ;;  %v7002_v22 = vld [vmem:[%s9275_s14 + $0x60] sm:$0xf] }
 0x160   : > { %7908 = vmatprep.subr.bf16.mxu1 %v8664_v45  ;;  %v3940_v31 = vsel %vm9298_vm2, %v10151_v1, %v10103_v10  ;;  %v3964_v24 = vsel %vm9298_vm2, %v3959_v9, %v10117_v56  ;;  %v3995_v28 = vshll.u32 %v10158_v5, 16  ;;  %v3974_v1 = vsel %vm9298_vm2, %v3969_v59, %v3973_v7  ;;  %v7000_v52 = vld [vmem:[%s9275_s14 + $0x58] sm:$0xf] }
 0x161   : > { %7877 = vmatmul.mubr.bf16.gmra.mrb[8].mxu1 %v6725_v49  ;;  %8099 = vmatpush3.bf16.msra.mxu0 %v10092_v42  ;;  %v10172_v49 = vsel %vm9617_vm5, %v6718_v21, %v1524_v0  ;;  %v10175_v42 = vld [vmem:[%s9275_s14 + $0x40] sm:$0xf]  ;;  %v6996_v21 = vld [vmem:[%s9275_s14 + $0x48] sm:$0xf]  ;;  %v3950_v34 = vsel %vm9298_vm2, %v3945_v35, %v3949_v53  ;;  %v3982_v10 = vor.u32 %v3981_v51, %v3978_v8  ;;  %v10212_v57 = vrot.slane %v4000_v13, 4 }
 0x162   : > { %7880 = vmatprep.mubr.bf16.mxu1 %v6726_v18  ;;  %8100 = vmatprep.subr.bf16.mxu0 %v8663_v26  ;;  %v8672_v18 = vld [vmem:[#allocation5 + $0xf0] sm:$0xff]   ;;  %v3992_v17 = vor.u32 %v3991_v36, %v10163_v30  ;;  %v4009_v56 = vshll.u32 %v10175_v42, 16  ;;  %v10214_v41 = vrot.slane %v4003_v19, 5  ;;  %v4024_v9 = vshrl.u32 %v6996_v21, 16  ;;  %v8675_v35 = vld [vmem:[#allocation5 + $0x1f8] sm:$0xff]  }
 0x163   : > { %7909 = vmatpush3.bf16.msra.mxu1 %v8664_v45  ;;  %v10179_v45 = vsel %vm9617_vm5, %v1526_v27, %v1527_v3  ;;  %v8671_v0 = vld [vmem:[#allocation5 + $0x1f0] sm:$0xff]   ;;  %v6999_v27 = vld [vmem:[%s9275_s14 + $0x54] sm:$0xf]  ;;  %v4027_v63 = vshll.u32 %v6996_v21, 16  ;;  %v10230_v8 = vcombine.low %v3940_v31, %v3950_v34  ;;  %v10232_v59 = vcombine.low %v3964_v24, %v3974_v1  ;;  %v10249_v19 = vld [vmem:[%s9275_s14 + $0x50] sm:$0x1] }
 0x164   : > { %8069 = vmatmul.mubr.bf16.gmra.mrb[8].mxu0 %v8654_v16  ;;  %7910 = vmatprep.subr.bf16.mxu1 %v8668_v2  ;;  %v10204_v16 = vld [vmem:[%s9275_s14 + $0x4c] sm:$0xf]  ;;  %v10234_v51 = vrot.slane %v3995_v28, 5  ;;  %v7003_v36 = vld [vmem:[%s9275_s14 + $0x64] sm:$0xf]  ;;  %v10241_v47 = vrot.slane %v3982_v10, 4  ;;  %v4006_v31 = vor.u32 %v10214_v41, %v10212_v57 }
 0x165   : > { %8072 = vmatprep.mubr.bf16.mxu0 %v8657_v43  ;;  %8101 = vmatpush3.bf16.msra.mxu0 %v8663_v26  ;;  %v8658_v26 = vld [vmem:[%s9275_s14 + $0x6c] sm:$0xff]   ;;  %v4013_v43 = vshrl.u32 %v10175_v42, 16  ;;  %v10243_v37 = vrot.slane %v3992_v17, 4  ;;  %11306 = vst [vmem:[#allocation20_spill] sm:$0xff] %v10249_v19  ;;  %v4026_v48 = vrot.slane %v4024_v9, 4  ;;  %v4029_v24 = vrot.slane %v4027_v63, 5 }
 0x166   : > { %8102 = vmatprep.subr.bf16.mxu0 %v8667_v54  ;;  %v7005_v13 = vld [vmem:[%s9275_s14 + $0x6c] sm:$0xf]  ;;  %v10251_v21 = vld [vmem:[#allocation7] sm:$0xff]   ;;  %v4048_v1 = vshrl.u32 %v6999_v27, 16  ;;  %v4057_v17 = vshll.u32 %v7000_v52, 16  ;;  %v4072_v57 = vshrl.u32 %v7002_v22, 16 }
 0x167   : > { %7911 = vmatpush3.bf16.msra.mxu1 %v8668_v2  ;;  %v4033_v2 = vshll.u32 %v10204_v16, 16  ;;  %v4015_v14 = vrot.slane %v4013_v43, 4  ;;  %v10256_v34 = vld [vmem:[#allocation5 + $0x200] sm:$0xff]   ;;  %v4075_v41 = vshll.u32 %v7002_v22, 16  ;;  %v8662_v43 = vld [vmem:[%s9275_s14 + $0x84] sm:$0xff]   ;;  %v4096_v9 = vshrl.u32 %v7005_v13, 16 }
 0x168   : > { %7912 = vmatprep.subr.bf16.mxu1 %v8672_v18  ;;  %v7006_v10 = vld [vmem:[%s9275_s14 + $0x70] sm:$0xf]  ;;  %v4099_v53 = vshll.u32 %v7005_v13, 16  ;;  %v10267_v22 = vld [vmem:[%s9275_s14 + $0x5c] sm:$0x1]  ;;  %v4050_v7 = vrot.slane %v4048_v1, 4 }
 0x169   : > { %7881 = vmatmul.mubr.bf16.gmra.mrb[12].mxu1 %v6727_v12  ;;  %8103 = vmatpush3.bf16.msra.mxu0 %v8667_v54  ;;  %v10245_v12 = vrot.slane %v4009_v56, 5  ;;  %v4019_v54 = vshll.u32 %v10201_v6, 16  ;;  %v10258_v28 = vrot.slane %v4033_v2, 5  ;;  %v4061_v56 = vshrl.u32 %v7000_v52, 16  ;;  %v8665_v63 = vld [vmem:[%s9275_s14 + $0x90] sm:$0xff]   ;;  %11307 = vst [vmem:[#allocation21_spill] sm:$0xff] %v10267_v22 }
 0x16a   : > { %7884 = vmatprep.mubr.bf16.mxu1 %v6728_v23  ;;  %8104 = vmatprep.subr.bf16.mxu0 %v8671_v0  ;;  %v4037_v23 = vshrl.u32 %v10204_v16, 16  ;;  %v4081_v16 = vshll.u32 %v7003_v36, 16  ;;  %v4105_v3 = vshll.u32 %v7006_v10, 16  ;;  %v4030_v52 = vor.u32 %v4029_v24, %v4026_v48 }
 0x16b   : > { %7913 = vmatpush3.bf16.msra.mxu1 %v8672_v18  ;;  %v4051_v18 = vshll.u32 %v6999_v27, 16  ;;  %v4043_v27 = vshll.u32 %v10249_v19, 16  ;;  %v4063_v13 = vrot.slane %v4061_v56, 4  ;;  %v4077_v19 = vrot.slane %v4075_v41, 5 }
 0x16c   : > { %8073 = vmatmul.mubr.bf16.gmra.mrb[12].mxu0 %v8658_v26  ;;  %7914 = vmatprep.subr.bf16.mxu1 %v8676_v32  ;;  %v4085_v26 = vshrl.u32 %v7003_v36, 16  ;;  %v4039_v2 = vrot.slane %v4037_v23, 4  ;;  %v10275_v23 = vld [vmem:[%s9275_s14 + $0x68] sm:$0x1]  ;;  %v10281_v48 = vrot.slane %v4081_v16, 5  ;;  %v4098_v60 = vrot.slane %v4096_v9, 4 }
 0x16d   : > { %8076 = vmatprep.mubr.bf16.mxu0 %v8661_v29  ;;  %8105 = vmatpush3.bf16.msra.mxu0 %v8671_v0  ;;  %v4109_v29 = vshrl.u32 %v7006_v10, 16  ;;  %v4016_v0 = vor.u32 %v4015_v14, %v10245_v12  ;;  %v4053_v36 = vrot.slane %v4051_v18, 5  ;;  %11308 = vst [vmem:[#allocation22_spill] sm:$0xff] %v10275_v23  ;;  %v4074_v10 = vrot.slane %v4072_v57, 4 }
 0x16e   : > { %8106 = vmatprep.subr.bf16.mxu0 %v8675_v35  ;;  %v11309_v14 = vcombine.low %v10056_v61, %v10060_v15  ;;  %v4087_v24 = vrot.slane %v4085_v26, 4  ;;  %v10288_v1 = vrot.slane %v4019_v54, 5  ;;  %v10290_v18 = vrot.slane %v4105_v3, 5  ;;  %v7008_v15 = vld [vmem:[%s9275_s14 + $0x78] sm:$0xf] }
 0x16f   : > { %7915 = vmatpush3.bf16.msra.mxu1 %v8676_v32  ;;  %v10272_v32 = vrot.slane %v4057_v17, 5  ;;  %v4111_v61 = vrot.slane %v4109_v29, 4  ;;  %v10293_v17 = vrot.slane %v4006_v31, 4  ;;  %v10295_v56 = vrot.slane %v4016_v0, 4  ;;  %v7009_v26 = vld [vmem:[%s9275_s14 + $0x7c] sm:$0xf] }
 0x170   : > { %8188 = vmatprep.subr.bf16.mxu1 %v10251_v21  ;;  %v10299_v57 = vrot.slane %v4043_v27, 5  ;;  %v4040_v41 = vor.u32 %v4039_v2, %v10258_v28  ;;  %v4054_v54 = vor.u32 %v4053_v36, %v4050_v7  ;;  %v4067_v16 = vshll.u32 %v10267_v22, 16  ;;  %v8669_v27 = vld [vmem:[%s9275_s14 + $0xa8] sm:$0xff]   ;;  %v7011_v7 = vld [vmem:[%s9275_s14 + $0x84] sm:$0xf] }
 0x171   : > { %7885 = vmatmul.mubr.bf16.gmra.mrb[16].mxu1 %v6729_v62  ;;  %8107 = vmatpush3.bf16.msra.mxu0 %v8675_v35  ;;  %v4101_v62 = vrot.slane %v4099_v53, 5  ;;  %v10297_v53 = vrot.slane %v4030_v52, 4  ;;  %v4064_v3 = vor.u32 %v4063_v13, %v10272_v32  ;;  %v4078_v31 = vor.u32 %v4077_v19, %v4074_v10 }
 0x172   : > { %7888 = vmatprep.mubr.bf16.mxu1 %v11309_v14  ;;  %8140 = vmatprep.subr.bf16.mxu0 %v10256_v34  ;;  %v4088_v9 = vor.u32 %v4087_v24, %v10281_v48  ;;  %v4091_v29 = vshll.u32 %v10275_v23, 16  ;;  %v4115_v52 = vshll.u32 %v7007_v55, 16  ;;  %v4120_v14 = vshrl.u32 %v7008_v15, 16  ;;  %v7012_v24 = vld [vmem:[%s9275_s14 + $0x88] sm:$0xf] }
 0x173   : > { %v4102_v0 = vor.u32 %v4101_v62, %v4098_v60  ;;  %v4123_v2 = vshll.u32 %v7008_v15, 16  ;;  %v3998_v36 = vsel %vm9298_vm2, %v10243_v37, %v10234_v51  ;;  %v4012_v19 = vsel %vm9298_vm2, %v10293_v17, %v10245_v12 }
 0x174   : > { %8077 = vmatmul.mubr.bf16.gmra.mrb[16].mxu0 %v8662_v43  ;;  %v8666_v43 = vld [vmem:[%s9275_s14 + $0x9c] sm:$0xff]   ;;  %v4129_v13 = vshll.u32 %v7009_v26, 16  ;;  %v4133_v10 = vshrl.u32 %v7009_v26, 16  ;;  %v11310_v60 = vcombine.low %v10064_v25, %v10070_v38  ;;  %v4041_v55 = vrot.slane %v4040_v41, 4 }
 0x175   : > { %8080 = vmatprep.mubr.bf16.mxu0 %v8665_v63  ;;  %v4112_v63 = vor.u32 %v4111_v61, %v10290_v18  ;;  %v4055_v62 = vrot.slane %v4054_v54, 4  ;;  %v4065_v61 = vrot.slane %v4064_v3, 4  ;;  %v4069_v15 = vrot.slane %v4067_v16, 5  ;;  %v10327_v25 = vld [vmem:[%s9275_s14 + $0x80] sm:$0x1] }
 0x176   : > { %v11311_v51 = vcombine.low %v10121_v40, %v10131_v44  ;;  %v4079_v37 = vrot.slane %v4078_v31, 4  ;;  %v4089_v35 = vrot.slane %v4088_v9, 4  ;;  %v4093_v23 = vrot.slane %v4091_v29, 5 }
 0x177   : > { %v4103_v12 = vrot.slane %v4102_v0, 4  ;;  %v4113_v17 = vrot.slane %v4112_v63, 4  ;;  %v4117_v26 = vrot.slane %v4115_v52, 5  ;;  %v4122_v22 = vrot.slane %v4120_v14, 4  ;;  %v7015_v0 = vld [vmem:[%s9275_s14 + $0x94] sm:$0xf] }
 0x178   : > { %v4125_v6 = vrot.slane %v4123_v2, 5  ;;  %v10329_v38 = vrot.slane %v4129_v13, 5  ;;  %v4135_v41 = vrot.slane %v4133_v10, 4  ;;  %v4144_v54 = vshrl.u32 %v7011_v7, 16  ;;  %v8673_v63 = vld [vmem:[%s9275_s14 + $0xc0] sm:$0xff]  }
 0x179   : > { %7889 = vmatmul.mubr.bf16.gmra.mrb[20].mxu1 %v11310_v60  ;;  %v4147_v3 = vshll.u32 %v7011_v7, 16  ;;  %v4022_v40 = vsel %vm9298_vm2, %v10295_v56, %v10288_v1  ;;  %v4036_v44 = vsel %vm9298_vm2, %v10297_v53, %v10258_v28  ;;  %v4153_v16 = vshll.u32 %v7012_v24, 16  ;;  %v7014_v56 = vld [vmem:[%s9275_s14 + $0x90] sm:$0xf] }
 0x17a   : > { %7892 = vmatprep.mubr.bf16.mxu1 %v11311_v51  ;;  %v4046_v31 = vsel %vm9298_vm2, %v4041_v55, %v10299_v57  ;;  %v4060_v9 = vsel %vm9298_vm2, %v4055_v62, %v10272_v32  ;;  %v4070_v29 = vsel %vm9298_vm2, %v4065_v61, %v4069_v15  ;;  %v4084_v1 = vsel %vm9298_vm2, %v4079_v37, %v10281_v48  ;;  %v7020_v51 = vld [vmem:[%s9275_s14 + $0xa8] sm:$0xf]  ;;  %v8677_v37 = vld [vmem:[%s9275_s14 + $0xc] sm:$0xff]  }
 0x17b   : > { %v4094_v28 = vsel %vm9298_vm2, %v4089_v35, %v4093_v23  ;;  %v4108_v53 = vsel %vm9298_vm2, %v4103_v12, %v10290_v18  ;;  %v4118_v57 = vsel %vm9298_vm2, %v4113_v17, %v4117_v26  ;;  %v4139_v32 = vshll.u32 %v10327_v25, 16  ;;  %v10367_v35 = vld [vmem:[%s9275_s14 + $0x8c] sm:$0x1] }
 0x17c   : > { %8081 = vmatmul.mubr.bf16.gmra.mrb[20].mxu0 %v8666_v43  ;;  %v4157_v43 = vshrl.u32 %v7012_v24, 16  ;;  %v4126_v52 = vor.u32 %v4125_v6, %v4122_v22  ;;  %v4136_v14 = vor.u32 %v4135_v41, %v10329_v38  ;;  %v4146_v48 = vrot.slane %v4144_v54, 4  ;;  %v7021_v54 = vld [vmem:[%s9275_s14 + $0xac] sm:$0xf] }
 0x17d   : > { %8084 = vmatprep.mubr.bf16.mxu0 %v8669_v27  ;;  %v8670_v27 = vld [vmem:[%s9275_s14 + $0xb4] sm:$0xff]   ;;  %v4149_v2 = vrot.slane %v4147_v3, 5  ;;  %v11312_v23 = vcombine.low %v10125_v20, %v10168_v4  ;;  %v10369_v18 = vrot.slane %v4153_v16, 5  ;;  %v4168_v13 = vshrl.u32 %v7014_v56, 16 }
 0x17e   : > { %v4159_v7 = vrot.slane %v4157_v43, 4  ;;  %v4171_v10 = vshll.u32 %v7014_v56, 16  ;;  %v11313_v6 = vcombine.low %v10172_v49, %v10179_v45  ;;  %v11314_v22 = vsel %vm9298_vm2, %v10241_v47, %v10163_v30  ;;  %v7017_v45 = vld [vmem:[%s9275_s14 + $0x9c] sm:$0xf]  ;;  %v7018_v30 = vld [vmem:[%s9275_s14 + $0xa0] sm:$0xf] }
 0x17f   : > { %v10379_v20 = vcombine.low %v11314_v22, %v3998_v36  ;;  %v10381_v4 = vcombine.low %v4012_v19, %v4022_v40  ;;  %v4177_v24 = vshll.u32 %v7015_v0, 16  ;;  %v4181_v60 = vshrl.u32 %v7015_v0, 16  ;;  %v10403_v3 = vld [vmem:[%s9275_s14 + $0x98] sm:$0x1]  ;;  %v8674_v56 = vld [vmem:[%s9275_s14 + $0xcc] sm:$0xff]  }
 0x180   : > { %v10383_v55 = vcombine.low %v4036_v44, %v4046_v31  ;;  %v10385_v62 = vcombine.low %v4060_v9, %v4070_v29  ;;  %v10387_v61 = vcombine.low %v4084_v1, %v4094_v28  ;;  %v10389_v49 = vcombine.low %v4108_v53, %v4118_v57 }
 0x181   : > { %7893 = vmatmul.mubr.bf16.gmra.mrb[24].mxu1 %v11312_v23  ;;  %v10393_v47 = vrot.slane %v4126_v52, 4  ;;  %v10395_v36 = vrot.slane %v4139_v32, 5  ;;  %v4150_v19 = vor.u32 %v4149_v2, %v4146_v48  ;;  %v4163_v15 = vshll.u32 %v10367_v35, 16  ;;  %v7023_v48 = vld [vmem:[%s9275_s14 + $0xb4] sm:$0xf] }
 0x182   : > { %7896 = vmatprep.mubr.bf16.mxu1 %v11313_v6  ;;  %v4137_v12 = vrot.slane %v4136_v14, 4  ;;  %v4160_v17 = vor.u32 %v4159_v7, %v10369_v18  ;;  %v4170_v26 = vrot.slane %v4168_v13, 4  ;;  %v4173_v41 = vrot.slane %v4171_v10, 5  ;;  %v7024_v13 = vld [vmem:[%s9275_s14 + $0xb8] sm:$0xf] }
 0x183   : > { %v10405_v40 = vrot.slane %v4177_v24, 5  ;;  %v4183_v44 = vrot.slane %v4181_v60, 4  ;;  %v4192_v16 = vshrl.u32 %v7017_v45, 16  ;;  %v4195_v43 = vshll.u32 %v7017_v45, 16  ;;  %v7022_v24 = vld [vmem:[%s9275_s14 + $0xb0] sm:$0x1] }
 0x184   : > { %8085 = vmatmul.mubr.bf16.gmra.mrb[24].mxu0 %v8670_v27  ;;  %v4201_v31 = vshll.u32 %v7018_v30, 16  ;;  %v4205_v9 = vshrl.u32 %v7018_v30, 16  ;;  %v4216_v29 = vshrl.u32 %v7020_v51, 16  ;;  %v4219_v1 = vshll.u32 %v7020_v51, 16 }
 0x185   : > { %8088 = vmatprep.mubr.bf16.mxu0 %v8673_v63  ;;  %v4132_v28 = vsel %vm9298_vm2, %v10393_v47, %v10329_v38  ;;  %v4151_v53 = vrot.slane %v4150_v19, 4  ;;  %v4225_v57 = vshll.u32 %v7021_v54, 16  ;;  %v4229_v32 = vshrl.u32 %v7021_v54, 16 }
 0x186   : > { %v11315_v0 = vcombine.low %v10183_v50, %v10187_v11  ;;  %v4142_v27 = vsel %vm9298_vm2, %v4137_v12, %v10395_v36  ;;  %v4165_v63 = vrot.slane %v4163_v15, 5  ;;  %v4174_v52 = vor.u32 %v4173_v41, %v4170_v26  ;;  %v7019_v50 = vld [vmem:[%s9275_s14 + $0xa4] sm:$0x1]  ;;  %v8678_v36 = vld [vmem:[%s9275_s14 + $0x18] sm:$0xff]  }
 0x187   : > { %v4187_v14 = vshll.u32 %v10403_v3, 16  ;;  %v4161_v38 = vrot.slane %v4160_v17, 4  ;;  %v4184_v2 = vor.u32 %v4183_v44, %v10405_v40  ;;  %v4194_v23 = vrot.slane %v4192_v16, 4  ;;  %v8681_v12 = vld [vmem:[%s9275_s14 + $0x24] sm:$0xff]  }
 0x188   : > { %v4197_v7 = vrot.slane %v4195_v43, 5  ;;  %v10423_v11 = vrot.slane %v4201_v31, 5  ;;  %v4207_v10 = vrot.slane %v4205_v9, 4  ;;  %v4218_v6 = vrot.slane %v4216_v29, 4  ;;  %v8684_v44 = vld [vmem:[#allocation7 + $0x8] sm:$0xff]  }
 0x189   : > { %7897 = vmatmul.mubr.bf16.gmra.mrb[28].mxu1 %v11315_v0  ;;  %v4221_v22 = vrot.slane %v4219_v1, 5  ;;  %v10426_v60 = vrot.slane %v4225_v57, 5  ;;  %v4231_v45 = vrot.slane %v4229_v32, 4  ;;  %v4240_v30 = vshrl.u32 %v7023_v48, 16  ;;  %v7026_v9 = vld [vmem:[%s9275_s14 + $0xc0] sm:$0xf] }
 0x18a   : > { %7916 = vmatprep.mubr.bf16.mxu1 %v8677_v37  ;;  %v4243_v47 = vshll.u32 %v7023_v48, 16  ;;  %v4156_v19 = vsel %vm9298_vm2, %v4151_v53, %v10369_v18  ;;  %v4175_v15 = vrot.slane %v4174_v52, 4  ;;  %v4249_v51 = vshll.u32 %v7024_v13, 16  ;;  %v8683_v18 = vld [vmem:[#allocation5 + $0x208] sm:$0xff]  }
 0x18b   : > { %v4253_v37 = vshrl.u32 %v7024_v13, 16  ;;  %v4166_v17 = vsel %vm9298_vm2, %v4161_v38, %v4165_v63  ;;  %v4185_v26 = vrot.slane %v4184_v2, 4  ;;  %v4189_v41 = vrot.slane %v4187_v14, 5  ;;  %v7025_v0 = vld [vmem:[%s9275_s14 + $0xbc] sm:$0x1] }
 0x18c   : > { %8089 = vmatmul.mubr.bf16.gmra.mrb[28].mxu0 %v8674_v56  ;;  %v4198_v54 = vor.u32 %v4197_v7, %v4194_v23  ;;  %v4211_v16 = vshll.u32 %v7019_v50, 16  ;;  %v4222_v43 = vor.u32 %v4221_v22, %v4218_v6  ;;  %v4235_v31 = vshll.u32 %v7022_v24, 16  ;;  %v7027_v14 = vld [vmem:[%s9275_s14 + $0xc4] sm:$0xf]  ;;  %v7029_v23 = vld [vmem:[%s9275_s14 + $0xcc] sm:$0xf] }
 0x18d   : > { %8108 = vmatprep.mubr.bf16.mxu0 %v10230_v8  ;;  %v4208_v8 = vor.u32 %v4207_v10, %v10423_v11  ;;  %v10438_v29 = vcombine.low %v4132_v28, %v4142_v27  ;;  %v4232_v1 = vor.u32 %v4231_v45, %v10426_v60  ;;  %v4242_v56 = vrot.slane %v4240_v30, 4  ;;  %v8688_v28 = vld [vmem:[#allocation7 + $0x10] sm:$0xff]   ;;  %v7030_v10 = vld [vmem:[%s9275_s14 + $0xd0] sm:$0xf] }
 0x18e   : > { %v4245_v53 = vrot.slane %v4243_v47, 5  ;;  %v10441_v57 = vcombine.low %v4156_v19, %v4166_v17  ;;  %v4180_v32 = vsel %vm9298_vm2, %v4175_v15, %v10405_v40  ;;  %v10447_v63 = vrot.slane %v4249_v51, 5  ;;  %v8682_v45 = vld [vmem:[%s9275_s14 + $0x30] sm:$0xff]   ;;  %v8685_v15 = vld [vmem:[%s9275_s14 + $0x3c] sm:$0xff]  }
 0x18f   : > { %v4255_v52 = vrot.slane %v4253_v37, 4  ;;  %v4190_v27 = vsel %vm9298_vm2, %v4185_v26, %v4189_v41  ;;  %v10453_v48 = vrot.slane %v4198_v54, 4  ;;  %v4264_v38 = vshrl.u32 %v7026_v9, 16  ;;  %v7028_v54 = vld [vmem:[%s9275_s14 + $0xc8] sm:$0x1] }
 0x190   : > { %v4267_v2 = vshll.u32 %v7026_v9, 16  ;;  %v4209_v40 = vrot.slane %v4208_v8, 4  ;;  %v4213_v7 = vrot.slane %v4211_v16, 5  ;;  %v4223_v13 = vrot.slane %v4222_v43, 4  ;;  %v8692_v8 = vld [vmem:[#allocation7 + $0x18] sm:$0xff]  }
 0x191   : > { %7917 = vmatmul.mubr.bf16.vlgmr.msra.gmra.mrb[0].mxu1 %v8678_v36  ;;  %v4237_v50 = vrot.slane %v4235_v31, 5  ;;  %v4246_v6 = vor.u32 %v4245_v53, %v4242_v56  ;;  %v4259_v22 = vshll.u32 %v7025_v0, 16  ;;  %v4273_v24 = vshll.u32 %v7027_v14, 16 }
 0x192   : > { %8189 = vmatpush3.bf16.msra.mxu1 %v10251_v21  ;;  %7920 = vmatprep.mubr.bf16.mxu1 %v8681_v12  ;;  %v4233_v21 = vrot.slane %v4232_v1, 4  ;;  %v4256_v30 = vor.u32 %v4255_v52, %v10447_v63  ;;  %v4277_v47 = vshrl.u32 %v7027_v14, 16  ;;  %v4288_v36 = vshrl.u32 %v7029_v23, 16  ;;  %v7145_v1 = vld [vmem:[%s9275_s14 + $0x10] sm:$0xf] }
 0x193   : > { %8190 = vmatprep.subr.bf16.mxu1 %v8684_v44  ;;  %v4291_v19 = vshll.u32 %v7029_v23, 16  ;;  %v4266_v51 = vrot.slane %v4264_v38, 4  ;;  %v4269_v37 = vrot.slane %v4267_v2, 5  ;;  %v4297_v12 = vshll.u32 %v7030_v10, 16 }
 0x194   : > { %8109 = vmatmul.mubr.bf16.vlgmr.msra.gmra.mrb[0].mxu0 %v10232_v59  ;;  %v8687_v59 = vld [vmem:[#allocation5 + $0x210] sm:$0xff]   ;;  %v4301_v17 = vshrl.u32 %v7030_v10, 16  ;;  %v4214_v26 = vsel %vm9298_vm2, %v4209_v40, %v4213_v7  ;;  %v4228_v41 = vsel %vm9298_vm2, %v4223_v13, %v10426_v60  ;;  %v4238_v16 = vsel %vm9298_vm2, %v4233_v21, %v4237_v50  ;;  %v8691_v60 = vld [vmem:[#allocation5 + $0x218] sm:$0xff]   ;;  %v8696_v40 = vld [vmem:[#allocation7 + $0x20] sm:$0xff]  }
 0x195   : > { %8141 = vmatpush3.bf16.msra.mxu0 %v10256_v34  ;;  %8112 = vmatprep.mubr.bf16.mxu0 %v10379_v20  ;;  %v10463_v34 = vcombine.low %v4180_v32, %v4190_v27  ;;  %v4204_v20 = vsel %vm9298_vm2, %v10453_v48, %v10423_v11  ;;  %v4247_v43 = vrot.slane %v4246_v6, 4  ;;  %v4261_v31 = vrot.slane %v4259_v22, 5  ;;  %v7031_v48 = vld [vmem:[%s9275_s14 + $0xd4] sm:$0x1]  ;;  %v8686_v50 = vld [vmem:[%s9275_s14 + $0x48] sm:$0xff]  }
 0x196   : > { %8142 = vmatprep.subr.bf16.mxu0 %v8683_v18  ;;  %8191 = vmatpush3.bf16.msra.mxu1 %v8684_v44  ;;  %v7144_v44 = vld [vmem:[%s9275_s14 + $0xc] sm:$0xf]  ;;  %v10478_v9 = vrot.slane %v4273_v24, 5  ;;  %v4257_v11 = vrot.slane %v4256_v30, 4  ;;  %v4279_v56 = vrot.slane %v4277_v47, 4  ;;  %v4290_v53 = vrot.slane %v4288_v36, 4 }
 0x197   : > { %8192 = vmatprep.subr.bf16.mxu1 %v8688_v28  ;;  %v4293_v32 = vrot.slane %v4291_v19, 5  ;;  %v4270_v0 = vor.u32 %v4269_v37, %v4266_v51  ;;  %v4283_v52 = vshll.u32 %v7028_v54, 16  ;;  %v10481_v14 = vrot.slane %v4297_v12, 5  ;;  %v7056_v6 = vld [vmem:[%s9275_s14 + $0x18] sm:$0xe] }
 0x198   : > { %v4303_v27 = vrot.slane %v4301_v17, 4  ;;  %v5447_v38 = vshrl.u32 %v7144_v44, 16  ;;  %v5450_v2 = vshll.u32 %v7144_v44, 16  ;;  %v5456_v23 = vshll.u32 %v7145_v1, 16  ;;  %v7147_v24 = vld [vmem:[%s9275_s14 + $0x18] sm:$0xf] }
 0x199   : > { %7921 = vmatmul.mubr.bf16.gmra.mrb[4].mxu1 %v8682_v45  ;;  %8143 = vmatpush3.bf16.msra.mxu0 %v8683_v18  ;;  %v5460_v18 = vshrl.u32 %v7145_v1, 16  ;;  %v10485_v7 = vcombine.low %v4204_v20, %v4214_v26  ;;  %v10487_v13 = vcombine.low %v4228_v41, %v4238_v16  ;;  %v4262_v10 = vsel %vm9298_vm2, %v4257_v11, %v4261_v31  ;;  %v8689_v45 = vld [vmem:[%s9275_s14 + $0x54] sm:$0xff]   ;;  %v7148_v20 = vld [vmem:[%s9275_s14 + $0x1c] sm:$0xf] }
 0x19a   : > { %7924 = vmatprep.mubr.bf16.mxu1 %v8685_v15  ;;  %8144 = vmatprep.subr.bf16.mxu0 %v8687_v59  ;;  %v4294_v21 = vor.u32 %v4293_v32, %v4290_v53  ;;  %v4698_v22 = vrot.slane %v10047_v46, 5  ;;  %v8695_v30 = vld [vmem:[#allocation5 + $0x220] sm:$0xff]   ;;  %v4304_v47 = vor.u32 %v4303_v27, %v10481_v14  ;;  %v4307_v36 = vshll.u32 %v7031_v48, 16  ;;  %v8700_v46 = vld [vmem:[#allocation7 + $0x28] sm:$0xff]   ;;  %v8704_v27 = vld [vmem:[#allocation7 + $0x30] sm:$0xff]  }
 0x19b   : > { %8193 = vmatpush3.bf16.msra.mxu1 %v8688_v28  ;;  %v4252_v28 = vsel %vm9298_vm2, %v4247_v43, %v10447_v63  ;;  %v10501_v63 = vrot.slane %v4270_v0, 4  ;;  %v7146_v19 = vld [vmem:[%s9275_s14 + $0x14] sm:$0x1]  ;;  %v5449_v15 = vrot.slane %v5447_v38, 4  ;;  %v10507_v51 = vrot.slane %v5456_v23, 5  ;;  %v8699_v43 = vld [vmem:[#allocation5 + $0x228] sm:$0xff]  }
 0x19c   : > { %8113 = vmatmul.mubr.bf16.gmra.mrb[4].mxu0 %v10381_v4  ;;  %8194 = vmatprep.subr.bf16.mxu1 %v8692_v8  ;;  %v4280_v4 = vor.u32 %v4279_v56, %v10478_v9  ;;  %v5462_v37 = vrot.slane %v5460_v18, 4  ;;  %v10509_v12 = vcombine.low %v4252_v28, %v4262_v10  ;;  %v7072_v17 = vrot.slane %v7056_v6, 9  ;;  %v8771_v56 = vld [vmem:[%s9275_s14 + $0x28] sm:$0xf]  ;;  %v8690_v23 = vld [vmem:[%s9275_s14 + $0x60] sm:$0xff]   ;;  %v8693_v18 = vld [vmem:[%s9275_s14 + $0x6c] sm:$0xff]  }
 0x19d   : > { %8116 = vmatprep.mubr.bf16.mxu0 %v10383_v55  ;;  %8145 = vmatpush3.bf16.msra.mxu0 %v8687_v59  ;;  %v10503_v55 = vrot.slane %v4283_v52, 5  ;;  %v5452_v59 = vrot.slane %v5450_v2, 5  ;;  %v5471_v26 = vshrl.u32 %v7147_v24, 16  ;;  %v5474_v41 = vshll.u32 %v7147_v24, 16  ;;  %v8703_v10 = vld [vmem:[#allocation5 + $0x230] sm:$0xff]  }
 0x19e   : > { %8146 = vmatprep.subr.bf16.mxu0 %v8691_v60  ;;  %v4281_v54 = vrot.slane %v4280_v4, 4  ;;  %v4295_v44 = vrot.slane %v4294_v21, 4  ;;  %v4701_v16 = vrot.slane %v10090_v33, 5  ;;  %v4276_v31 = vsel %vm9298_vm2, %v10501_v63, %v10478_v9  ;;  %v7057_v33 = vld [vmem:[%s9275_s14 + $0x24] sm:$0xe] }
 0x19f   : > { %8195 = vmatpush3.bf16.msra.mxu1 %v8692_v8  ;;  %v4700_v8 = vrot.slane %v4698_v22, 4  ;;  %v4305_v1 = vrot.slane %v4304_v47, 4  ;;  %v4309_v11 = vrot.slane %v4307_v36, 5  ;;  %v4705_v53 = vrot.slane %v8771_v56, 5  ;;  %v8772_v6 = vld [vmem:[%s9275_s14 + $0x2c] sm:$0x1] }
 0x1a0   : > { %8196 = vmatprep.subr.bf16.mxu1 %v8696_v40  ;;  %v5453_v32 = vor.u32 %v5452_v59, %v5449_v15  ;;  %v5466_v0 = vshll.u32 %v7146_v19, 16  ;;  %v5480_v52 = vshll.u32 %v7148_v20, 16  ;;  %v10523_v9 = vsel %vm9617_vm5, %v7072_v17, %v4698_v22  ;;  %v7151_v24 = vld [vmem:[%s9275_s14 + $0x28] sm:$0xf]  ;;  %v7149_v63 = vld [vmem:[%s9275_s14 + $0x20] sm:$0x1] }
 0x1a1   : > { %7925 = vmatmul.mubr.bf16.gmra.mrb[8].mxu1 %v8686_v50  ;;  %8147 = vmatpush3.bf16.msra.mxu0 %v8691_v60  ;;  %v5463_v60 = vor.u32 %v5462_v37, %v10507_v51  ;;  %v5473_v48 = vrot.slane %v5471_v26, 4  ;;  %v5476_v38 = vrot.slane %v5474_v41, 5  ;;  %v5484_v2 = vshrl.u32 %v7148_v20, 16  ;;  %v7150_v50 = vld [vmem:[%s9275_s14 + $0x24] sm:$0xf]  ;;  %v8708_v47 = vld [vmem:[#allocation7 + $0x38] sm:$0xff]  }
 0x1a2   : > { %7928 = vmatprep.mubr.bf16.mxu1 %v8689_v45  ;;  %8148 = vmatprep.subr.bf16.mxu0 %v8695_v30  ;;  %v10536_v28 = vsel %vm9617_vm5, %v4700_v8, %v4701_v16  ;;  %v7073_v4 = vrot.slane %v7057_v33, 9  ;;  %v4707_v21 = vrot.slane %v4705_v53, 4  ;;  %v4708_v22 = vrot.slane %v8772_v6, 5  ;;  %v7058_v15 = vld [vmem:[%s9275_s14 + $0x30] sm:$0xe] }
 0x1a3   : > { %8197 = vmatpush3.bf16.msra.mxu1 %v8696_v40  ;;  %v4300_v40 = vsel %vm9298_vm2, %v4295_v44, %v10481_v14  ;;  %v5454_v45 = vrot.slane %v5453_v32, 4  ;;  %v5468_v14 = vrot.slane %v5466_v0, 5  ;;  %v5477_v36 = vor.u32 %v5476_v38, %v5473_v48  ;;  %v8773_v56 = vld [vmem:[%s9275_s14 + $0x34] sm:$0xf] }
 0x1a4   : > { %8117 = vmatmul.mubr.bf16.gmra.mrb[8].mxu0 %v10385_v62  ;;  %8198 = vmatprep.subr.bf16.mxu1 %v8700_v46  ;;  %v4286_v62 = vsel %vm9298_vm2, %v4281_v54, %v10503_v55  ;;  %v10544_v55 = vrot.slane %v5480_v52, 5  ;;  %v5486_v19 = vrot.slane %v5484_v2, 4  ;;  %v5495_v59 = vshrl.u32 %v7150_v50, 16  ;;  %v8707_v54 = vld [vmem:[#allocation5 + $0x238] sm:$0xff]  }
 0x1a5   : > { %8120 = vmatprep.mubr.bf16.mxu0 %v10387_v61  ;;  %8149 = vmatpush3.bf16.msra.mxu0 %v8695_v30  ;;  %v4310_v61 = vsel %vm9298_vm2, %v4305_v1, %v4309_v11  ;;  %v5464_v30 = vrot.slane %v5463_v60, 4  ;;  %v5498_v37 = vshll.u32 %v7150_v50, 16  ;;  %v10547_v17 = vcombine.low %v4276_v31, %v4286_v62  ;;  %v7154_v32 = vld [vmem:[%s9275_s14 + $0x34] sm:$0xf]  ;;  %v7152_v62 = vld [vmem:[%s9275_s14 + $0x2c] sm:$0x1] }
 0x1a6   : > { %8150 = vmatprep.subr.bf16.mxu0 %v8699_v43  ;;  %v5504_v20 = vshll.u32 %v7151_v24, 16  ;;  %v5508_v26 = vshrl.u32 %v7151_v24, 16  ;;  %v10551_v41 = vcombine.low %v4300_v40, %v4310_v61  ;;  %v10555_v44 = vsel %vm9617_vm5, %v7073_v4, %v4705_v53 }
 0x1a7   : > { %8199 = vmatpush3.bf16.msra.mxu1 %v8700_v46  ;;  %v7088_v46 = vcombine.low %v10523_v9, %v10536_v28  ;;  %v10559_v8 = vsel %vm9617_vm5, %v4707_v21, %v4708_v22  ;;  %v5490_v16 = vshll.u32 %v7149_v63, 16  ;;  %v5459_v31 = vsel %vm9298_vm2, %v5454_v45, %v10507_v51  ;;  %v8694_v51 = vld [vmem:[%s9275_s14 + $0x78] sm:$0xff]  }
 0x1a8   : > { %8200 = vmatprep.subr.bf16.mxu1 %v8704_v27  ;;  %v5469_v1 = vsel %vm9298_vm2, %v5464_v30, %v5468_v14  ;;  %v7074_v11 = vrot.slane %v7058_v15, 9  ;;  %v4712_v53 = vrot.slane %v8773_v56, 5  ;;  %v10570_v60 = vrot.slane %v5477_v36, 4  ;;  %v7156_v21 = vld [vmem:[%s9275_s14 + $0x3c] sm:$0xf]  ;;  %v8698_v56 = vld [vmem:[%s9275_s14 + $0x90] sm:$0xff]  }
 0x1a9   : > { %7929 = vmatmul.mubr.bf16.gmra.mrb[12].mxu1 %v8690_v23  ;;  %8151 = vmatpush3.bf16.msra.mxu0 %v8699_v43  ;;  %v7153_v43 = vld [vmem:[%s9275_s14 + $0x30] sm:$0xf]  ;;  %v5487_v0 = vor.u32 %v5486_v19, %v10544_v55  ;;  %v5497_v33 = vrot.slane %v5495_v59, 4  ;;  %v5500_v52 = vrot.slane %v5498_v37, 5  ;;  %v5510_v48 = vrot.slane %v5508_v26, 4  ;;  %v8697_v23 = vld [vmem:[%s9275_s14 + $0x84] sm:$0xff]  }
 0x1aa   : > { %7932 = vmatprep.mubr.bf16.mxu1 %v8693_v18  ;;  %8152 = vmatprep.subr.bf16.mxu0 %v8703_v10  ;;  %v5519_v38 = vshrl.u32 %v7153_v43, 16  ;;  %v5522_v2 = vshll.u32 %v7153_v43, 16  ;;  %v10580_v18 = vrot.slane %v5490_v16, 5  ;;  %v5528_v40 = vshll.u32 %v7154_v32, 16  ;;  %v7059_v45 = vld [vmem:[%s9275_s14 + $0x3c] sm:$0xe] }
 0x1ab   : > { %8201 = vmatpush3.bf16.msra.mxu1 %v8704_v27  ;;  %v10575_v27 = vrot.slane %v5504_v20, 5  ;;  %v10583_v50 = vcombine.low %v5459_v31, %v5469_v1  ;;  %v4714_v61 = vrot.slane %v4712_v53, 4  ;;  %v4715_v4 = vrot.slane %v10158_v5, 5  ;;  %v7157_v14 = vld [vmem:[%s9275_s14 + $0x40] sm:$0xf] }
 0x1ac   : > { %8121 = vmatmul.mubr.bf16.gmra.mrb[12].mxu0 %v10389_v49  ;;  %8202 = vmatprep.subr.bf16.mxu1 %v8708_v47  ;;  %v7089_v49 = vcombine.low %v10555_v44, %v10559_v8  ;;  %v5483_v6 = vsel %vm9298_vm2, %v10570_v60, %v10544_v55  ;;  %v5488_v22 = vrot.slane %v5487_v0, 4  ;;  %v5501_v24 = vor.u32 %v5500_v52, %v5497_v33  ;;  %v7155_v5 = vld [vmem:[%s9275_s14 + $0x38] sm:$0x1]  ;;  %v7159_v33 = vld [vmem:[%s9275_s14 + $0x48] sm:$0xf]  ;;  %v8701_v52 = vld [vmem:[%s9275_s14 + $0x9c] sm:$0xff]  }
 0x1ad   : > { %8124 = vmatprep.mubr.bf16.mxu0 %v10438_v29  ;;  %8153 = vmatpush3.bf16.msra.mxu0 %v8703_v10  ;;  %v5532_v29 = vshrl.u32 %v7154_v32, 16  ;;  %v10587_v10 = vsel %vm9617_vm5, %v7074_v11, %v4712_v53  ;;  %v4719_v30 = vrot.slane %v10175_v42, 5  ;;  %v5511_v63 = vor.u32 %v5510_v48, %v10575_v27  ;;  %v11316_v1 = vld [vmem:[#allocation19_spill] sm:$0xff]  ;;  %v8774_v48 = vld [vmem:[%s9275_s14 + $0x4c] sm:$0xf] }
 0x1ae   : > { %8154 = vmatprep.subr.bf16.mxu0 %v8707_v54  ;;  %v5521_v36 = vrot.slane %v5519_v38, 4  ;;  %v5524_v19 = vrot.slane %v5522_v2, 5  ;;  %v10600_v15 = vrot.slane %v5528_v40, 5  ;;  %v5543_v55 = vshrl.u32 %v7156_v21, 16  ;;  %v7173_v44 = vld [vmem:[%s9275_s14 + $0x80] sm:$0x1] }
 0x1af   : > { %8203 = vmatpush3.bf16.msra.mxu1 %v8708_v47  ;;  %v5514_v47 = vshll.u32 %v7152_v62, 16  ;;  %v5534_v59 = vrot.slane %v5532_v29, 4  ;;  %v5546_v37 = vshll.u32 %v7156_v21, 16  ;;  %v10604_v42 = vsel %vm9617_vm5, %v4714_v61, %v4715_v4  ;;  %v7158_v4 = vld [vmem:[%s9275_s14 + $0x44] sm:$0x1] }
 0x1b0   : > { %v7075_v20 = vrot.slane %v7059_v45, 9  ;;  %v5552_v26 = vshll.u32 %v7157_v14, 16  ;;  %v5493_v16 = vsel %vm9298_vm2, %v5488_v22, %v10580_v18  ;;  %v5502_v43 = vrot.slane %v5501_v24, 4 }
 0x1b1   : > { %7933 = vmatmul.mubr.bf16.gmra.mrb[16].mxu1 %v8694_v51  ;;  %8155 = vmatpush3.bf16.msra.mxu0 %v8707_v54  ;;  %v5556_v54 = vshrl.u32 %v7157_v14, 16  ;;  %v4721_v31 = vrot.slane %v4719_v30, 4  ;;  %v4722_v11 = vrot.slane %v11316_v1, 5  ;;  %v5512_v53 = vrot.slane %v5511_v63, 4  ;;  %v7060_v51 = vld [vmem:[%s9275_s14 + $0x48] sm:$0xe] }
 0x1b2   : > { %7936 = vmatprep.mubr.bf16.mxu1 %v8697_v23  ;;  %v5516_v32 = vrot.slane %v5514_v47, 5  ;;  %v5525_v60 = vor.u32 %v5524_v19, %v5521_v36  ;;  %v5538_v0 = vshll.u32 %v7155_v5, 16  ;;  %v4726_v38 = vrot.slane %v8774_v48, 5  ;;  %v7160_v63 = vld [vmem:[%s9275_s14 + $0x4c] sm:$0xf] }
 0x1b3   : > { %v5545_v2 = vrot.slane %v5543_v55, 4  ;;  %v5548_v23 = vrot.slane %v5546_v37, 5  ;;  %v7090_v18 = vcombine.low %v10587_v10, %v10604_v42  ;;  %v10624_v62 = vrot.slane %v5552_v26, 5  ;;  %v11317_v36 = vld [vmem:[#allocation20_spill] sm:$0xff]  ;;  %v8775_v26 = vld [vmem:[%s9275_s14 + $0x58] sm:$0xf] }
 0x1b4   : > { %8125 = vmatmul.mubr.bf16.gmra.mrb[16].mxu0 %v10441_v57  ;;  %v5535_v57 = vor.u32 %v5534_v59, %v10600_v15  ;;  %v5558_v40 = vrot.slane %v5556_v54, 4  ;;  %v5507_v29 = vsel %vm9298_vm2, %v5502_v43, %v10575_v27  ;;  %v10631_v61 = vsel %vm9617_vm5, %v4721_v31, %v4722_v11 }
 0x1b5   : > { %8128 = vmatprep.mubr.bf16.mxu0 %v10463_v34  ;;  %v10622_v34 = vsel %vm9617_vm5, %v7075_v20, %v4719_v30  ;;  %v5567_v21 = vshrl.u32 %v7159_v33, 16  ;;  %v5570_v22 = vshll.u32 %v7159_v33, 16  ;;  %v5517_v24 = vsel %vm9298_vm2, %v5512_v53, %v5516_v32  ;;  %v7061_v20 = vld [vmem:[%s9275_s14 + $0x54] sm:$0xe] }
 0x1b6   : > { %v5526_v45 = vrot.slane %v5525_v60, 4  ;;  %v5540_v30 = vrot.slane %v5538_v0, 5  ;;  %v7076_v14 = vrot.slane %v7060_v51, 9  ;;  %v5536_v47 = vrot.slane %v5535_v57, 4  ;;  %v7163_v57 = vld [vmem:[%s9275_s14 + $0x58] sm:$0xf] }
 0x1b7   : > { %v4728_v27 = vrot.slane %v4726_v38, 4  ;;  %v4729_v19 = vrot.slane %v11317_v36, 5  ;;  %v5549_v5 = vor.u32 %v5548_v23, %v5545_v2  ;;  %v10638_v59 = vcombine.low %v5483_v6, %v5493_v16  ;;  %v8705_v6 = vld [vmem:[%s9275_s14 + $0xb4] sm:$0xff]  }
 0x1b8   : > { %v5559_v55 = vor.u32 %v5558_v40, %v10624_v62  ;;  %v5562_v37 = vshll.u32 %v7158_v4, 16  ;;  %v4733_v54 = vrot.slane %v8775_v26, 5  ;;  %v5569_v43 = vrot.slane %v5567_v21, 4  ;;  %v11318_v2 = vld [vmem:[#allocation21_spill] sm:$0xff]  ;;  %v7062_v21 = vld [vmem:[%s9275_s14 + $0x60] sm:$0xe] }
 0x1b9   : > { %7937 = vmatmul.mubr.bf16.gmra.mrb[20].mxu1 %v8698_v56  ;;  %v5572_v31 = vrot.slane %v5570_v22, 5  ;;  %v5576_v1 = vshll.u32 %v7160_v63, 16  ;;  %v5580_v11 = vshrl.u32 %v7160_v63, 16  ;;  %v8702_v56 = vld [vmem:[%s9275_s14 + $0xa8] sm:$0xff]   ;;  %v10647_v16 = vcombine.low %v5507_v29, %v5517_v24  ;;  %v7161_v40 = vld [vmem:[%s9275_s14 + $0x50] sm:$0x1] }
 0x1ba   : > { %7940 = vmatprep.mubr.bf16.mxu1 %v8701_v52  ;;  %v7091_v53 = vcombine.low %v10622_v34, %v10631_v61  ;;  %v10656_v32 = vsel %vm9617_vm5, %v7076_v14, %v4726_v38  ;;  %v10662_v60 = vsel %vm9617_vm5, %v4728_v27, %v4729_v19  ;;  %v5550_v0 = vrot.slane %v5549_v5, 4  ;;  %v7162_v52 = vld [vmem:[%s9275_s14 + $0x54] sm:$0xf]  ;;  %v8776_v22 = vld [vmem:[%s9275_s14 + $0x64] sm:$0xf] }
 0x1bb   : > { %v7077_v33 = vrot.slane %v7061_v20, 9  ;;  %v5560_v51 = vrot.slane %v5559_v55, 4  ;;  %v5564_v48 = vrot.slane %v5562_v37, 5  ;;  %v4736_v23 = vrot.slane %v11318_v2, 5  ;;  %v7165_v26 = vld [vmem:[%s9275_s14 + $0x60] sm:$0xf] }
 0x1bc   : > { %8129 = vmatmul.mubr.bf16.gmra.mrb[20].mxu0 %v10485_v7  ;;  %v5531_v7 = vsel %vm9298_vm2, %v5526_v45, %v10600_v15  ;;  %v4735_v15 = vrot.slane %v4733_v54, 4  ;;  %v5573_v38 = vor.u32 %v5572_v31, %v5569_v43  ;;  %v10668_v29 = vrot.slane %v5576_v1, 5  ;;  %v7166_v43 = vld [vmem:[%s9275_s14 + $0x64] sm:$0xf] }
 0x1bd   : > { %8132 = vmatprep.mubr.bf16.mxu0 %v10487_v13  ;;  %v5541_v13 = vsel %vm9298_vm2, %v5536_v47, %v5540_v30  ;;  %v5582_v4 = vrot.slane %v5580_v11, 4  ;;  %v4740_v24 = vrot.slane %v8776_v22, 5  ;;  %v5591_v45 = vshrl.u32 %v7162_v52, 16  ;;  %v8706_v31 = vld [vmem:[%s9275_s14 + $0xc0] sm:$0xff]   ;;  %v11319_v11 = vld [vmem:[#allocation22_spill] sm:$0xff] }
 0x1be   : > { %v5594_v30 = vshll.u32 %v7162_v52, 16  ;;  %v5600_v14 = vshll.u32 %v7163_v57, 16  ;;  %v5604_v63 = vshrl.u32 %v7163_v57, 16  ;;  %v10672_v47 = vcombine.low %v5531_v7, %v5541_v13  ;;  %v7063_v52 = vld [vmem:[%s9275_s14 + $0x6c] sm:$0xe] }
 0x1bf   : > { %v7092_v27 = vcombine.low %v10656_v32, %v10662_v60  ;;  %v5555_v36 = vsel %vm9298_vm2, %v5550_v0, %v10624_v62  ;;  %v10681_v19 = vsel %vm9617_vm5, %v7077_v33, %v4733_v54  ;;  %v5565_v5 = vsel %vm9298_vm2, %v5560_v51, %v5564_v48 }
 0x1c0   : > { %v10687_v55 = vsel %vm9617_vm5, %v4735_v15, %v4736_v23  ;;  %v5586_v37 = vshll.u32 %v7161_v40, 16  ;;  %v7078_v20 = vrot.slane %v7062_v21, 9  ;;  %v10693_v62 = vrot.slane %v5573_v38, 4  ;;  %v8777_v23 = vld [vmem:[%s9275_s14 + $0x70] sm:$0xf] }
 0x1c1   : > { %7941 = vmatmul.mubr.bf16.gmra.mrb[24].mxu1 %v8702_v56  ;;  %v5583_v54 = vor.u32 %v5582_v4, %v10668_v29  ;;  %v4742_v1 = vrot.slane %v4740_v24, 4  ;;  %v4743_v56 = vrot.slane %v11319_v11, 5  ;;  %v5593_v7 = vrot.slane %v5591_v45, 4  ;;  %v7168_v45 = vld [vmem:[%s9275_s14 + $0x6c] sm:$0xf] }
 0x1c2   : > { %7944 = vmatprep.mubr.bf16.mxu1 %v8705_v6  ;;  %v7164_v6 = vld [vmem:[%s9275_s14 + $0x5c] sm:$0x1]  ;;  %v5596_v13 = vrot.slane %v5594_v30, 5  ;;  %v10699_v0 = vrot.slane %v5600_v14, 5  ;;  %v5606_v33 = vrot.slane %v5604_v63, 4  ;;  %v5618_v57 = vshll.u32 %v7165_v26, 16 }
 0x1c3   : > { %v5624_v51 = vshll.u32 %v7166_v43, 16  ;;  %v5628_v48 = vshrl.u32 %v7166_v43, 16  ;;  %v10702_v15 = vcombine.low %v5555_v36, %v5565_v5  ;;  %v7093_v2 = vcombine.low %v10681_v19, %v10687_v55  ;;  %v7167_v5 = vld [vmem:[%s9275_s14 + $0x68] sm:$0x1]  ;;  %v7182_v55 = vld [vmem:[%s9275_s14 + $0xa4] sm:$0x1] }
 0x1c4   : > { %8133 = vmatmul.mubr.bf16.gmra.mrb[24].mxu0 %v10509_v12  ;;  %v5615_v12 = vshrl.u32 %v7165_v26, 16  ;;  %v4747_v40 = vrot.slane %v8777_v23, 5  ;;  %v5579_v38 = vsel %vm9298_vm2, %v10693_v62, %v10668_v29  ;;  %v5584_v4 = vrot.slane %v5583_v54, 4  ;;  %v7169_v29 = vld [vmem:[%s9275_s14 + $0x70] sm:$0xf] }
 0x1c5   : > { %8136 = vmatprep.mubr.bf16.mxu0 %v10547_v17  ;;  %v10706_v17 = vrot.slane %v5586_v37, 5  ;;  %v10715_v21 = vsel %vm9617_vm5, %v7078_v20, %v4740_v24  ;;  %v10719_v22 = vsel %vm9617_vm5, %v4742_v1, %v4743_v56  ;;  %v5597_v30 = vor.u32 %v5596_v13, %v5593_v7  ;;  %v8778_v62 = vld [vmem:[%s9275_s14 + $0x74] sm:$0x1]  ;;  %v7064_v56 = vld [vmem:[%s9275_s14 + $0x78] sm:$0xe] }
 0x1c6   : > { %v5607_v14 = vor.u32 %v5606_v33, %v10699_v0  ;;  %v5610_v63 = vshll.u32 %v7164_v6, 16  ;;  %v7079_v36 = vrot.slane %v7063_v52, 9  ;;  %v5617_v37 = vrot.slane %v5615_v12, 4  ;;  %v7171_v23 = vld [vmem:[%s9275_s14 + $0x78] sm:$0xf] }
 0x1c7   : > { %v5620_v24 = vrot.slane %v5618_v57, 5  ;;  %v10726_v20 = vrot.slane %v5624_v51, 5  ;;  %v5630_v26 = vrot.slane %v5628_v48, 4  ;;  %v4749_v43 = vrot.slane %v4747_v40, 4  ;;  %v8779_v48 = vld [vmem:[%s9275_s14 + $0x7c] sm:$0xf] }
 0x1c8   : > { %v4750_v54 = vrot.slane %v8778_v62, 5  ;;  %v5639_v1 = vshrl.u32 %v7168_v45, 16  ;;  %v5589_v11 = vsel %vm9298_vm2, %v5584_v4, %v10706_v17  ;;  %v5648_v6 = vshll.u32 %v7169_v29, 16  ;;  %v7172_v4 = vld [vmem:[%s9275_s14 + $0x7c] sm:$0xf] }
 0x1c9   : > { %7945 = vmatmul.mubr.bf16.gmra.mrb[28].mxu1 %v8706_v31  ;;  %v5642_v31 = vshll.u32 %v7168_v45, 16  ;;  %v5652_v7 = vshrl.u32 %v7169_v29, 16  ;;  %v7094_v13 = vcombine.low %v10715_v21, %v10719_v22  ;;  %v10739_v33 = vrot.slane %v5597_v30, 4  ;;  %v7184_v21 = vld [vmem:[%s9275_s14 + $0xac] sm:$0xf] }
 0x1ca   : > { %8204 = vmatprep.mubr.bf16.mxu1 %v10583_v50  ;;  %v5634_v50 = vshll.u32 %v7167_v5, 16  ;;  %v10743_v52 = vsel %vm9617_vm5, %v7079_v36, %v4747_v40  ;;  %v5608_v12 = vrot.slane %v5607_v14, 4  ;;  %v5621_v57 = vor.u32 %v5620_v24, %v5617_v37 }
 0x1cb   : > { %v5631_v51 = vor.u32 %v5630_v26, %v10726_v20  ;;  %v4754_v17 = vrot.slane %v8779_v48, 5  ;;  %v10751_v9 = vsel %vm9617_vm5, %v4749_v43, %v4750_v54  ;;  %v7080_v28 = vrot.slane %v7064_v56, 9 }
 0x1cc   : > { %8137 = vmatmul.mubr.bf16.gmra.mrb[28].mxu0 %v10551_v41  ;;  %v5612_v41 = vrot.slane %v5610_v63, 5  ;;  %v5641_v45 = vrot.slane %v5639_v1, 4  ;;  %v5644_v30 = vrot.slane %v5642_v31, 5  ;;  %v5636_v63 = vrot.slane %v5634_v50, 5  ;;  %v7065_v50 = vld [vmem:[%s9275_s14 + $0x84] sm:$0xe] }
 0x1cd   : > { %8156 = vmatprep.mubr.bf16.mxu0 %v7088_v46  ;;  %v7170_v46 = vld [vmem:[%s9275_s14 + $0x74] sm:$0x1]  ;;  %v4757_v40 = vrot.slane %v10327_v25, 5  ;;  %v10755_v36 = vrot.slane %v5648_v6, 5  ;;  %v5654_v14 = vrot.slane %v5652_v7, 4  ;;  %v5663_v5 = vshrl.u32 %v7171_v23, 16 }
 0x1ce   : > { %v5666_v29 = vshll.u32 %v7171_v23, 16  ;;  %v5672_v37 = vshll.u32 %v7172_v4, 16  ;;  %v5676_v24 = vshrl.u32 %v7172_v4, 16  ;;  %v5622_v26 = vrot.slane %v5621_v57, 4  ;;  %v7174_v6 = vld [vmem:[%s9275_s14 + $0x84] sm:$0xf] }
 0x1cf   : > { %v5632_v43 = vrot.slane %v5631_v51, 4  ;;  %v4756_v62 = vrot.slane %v4754_v17, 4  ;;  %v5658_v54 = vshll.u32 %v7170_v46, 16  ;;  %v10759_v25 = vcombine.low %v5579_v38, %v5589_v11  ;;  %v7175_v51 = vld [vmem:[%s9275_s14 + $0x88] sm:$0xf] }
 0x1d0   : > { %v5613_v1 = vsel %vm9298_vm2, %v5608_v12, %v5612_v41  ;;  %v5645_v31 = vor.u32 %v5644_v30, %v5641_v45  ;;  %v10774_v38 = vsel %vm9617_vm5, %v7080_v28, %v4754_v17  ;;  %v5655_v11 = vor.u32 %v5654_v14, %v10755_v36  ;;  %v7066_v46 = vld [vmem:[%s9275_s14 + $0x90] sm:$0xe] }
 0x1d1   : > { %8205 = vmatmul.mubr.bf16.vlgmr.msra.gmra.mrb[32].mxu1 %v10638_v59  ;;  %v5603_v59 = vsel %vm9298_vm2, %v10739_v33, %v10699_v0  ;;  %v8780_v0 = vld [vmem:[%s9275_s14 + $0x88] sm:$0xf]  ;;  %v5665_v8 = vrot.slane %v5663_v5, 4  ;;  %v10784_v7 = vrot.slane %v5672_v37, 5  ;;  %v5678_v33 = vrot.slane %v5676_v24, 4 }
 0x1d2   : > { %8208 = vmatprep.mubr.bf16.mxu1 %v10647_v16  ;;  %v7095_v16 = vcombine.low %v10743_v52, %v10751_v9  ;;  %v4761_v56 = vrot.slane %v8780_v0, 5  ;;  %v5627_v41 = vsel %vm9298_vm2, %v5622_v26, %v10726_v20  ;;  %v5637_v12 = vsel %vm9298_vm2, %v5632_v43, %v5636_v63  ;;  %v7176_v0 = vld [vmem:[%s9275_s14 + $0x8c] sm:$0x1] }
 0x1d3   : > { %v10793_v57 = vsel %vm9617_vm5, %v4756_v62, %v4757_v40  ;;  %v10795_v10 = vrot.slane %v5658_v54, 5  ;;  %v10797_v42 = vrot.slane %v5645_v31, 4  ;;  %v5687_v48 = vshrl.u32 %v7174_v6, 16  ;;  %v8781_v40 = vld [vmem:[%s9275_s14 + $0x94] sm:$0xf] }
 0x1d4   : > { %8157 = vmatmul.mubr.bf16.vlgmr.msra.gmra.mrb[0].mxu0 %v7089_v49  ;;  %v5668_v49 = vrot.slane %v5666_v29, 5  ;;  %v5690_v17 = vshll.u32 %v7174_v6, 16  ;;  %v10800_v23 = vrot.slane %v5655_v11, 4  ;;  %v4763_v4 = vrot.slane %v4761_v56, 4  ;;  %v7177_v62 = vld [vmem:[%s9275_s14 + $0x90] sm:$0xf] }
 0x1d5   : > { %8160 = vmatprep.mubr.bf16.mxu0 %v7090_v18  ;;  %v7081_v18 = vrot.slane %v7065_v50, 9  ;;  %v4764_v20 = vrot.slane %v10367_v35, 5  ;;  %v5682_v28 = vshll.u32 %v7173_v44, 16  ;;  %v7198_v45 = vcombine.low %v5603_v59, %v5613_v1  ;;  %v7178_v31 = vld [vmem:[%s9275_s14 + $0x94] sm:$0xf] }
 0x1d6   : > { %v5669_v30 = vor.u32 %v5668_v49, %v5665_v8  ;;  %v5679_v63 = vor.u32 %v5678_v33, %v10784_v7  ;;  %v4768_v14 = vrot.slane %v8781_v40, 5  ;;  %v10808_v5 = vcombine.low %v5627_v41, %v5637_v12  ;;  %v7180_v11 = vld [vmem:[%s9275_s14 + $0x9c] sm:$0xf]  ;;  %v7181_v50 = vld [vmem:[%s9275_s14 + $0xa0] sm:$0xf] }
 0x1d7   : > { %v7096_v35 = vcombine.low %v10774_v38, %v10793_v57  ;;  %v5696_v29 = vshll.u32 %v7175_v51, 16  ;;  %v5700_v37 = vshrl.u32 %v7175_v51, 16  ;;  %v7082_v24 = vrot.slane %v7066_v46, 9  ;;  %v7067_v41 = vld [vmem:[%s9275_s14 + $0x9c] sm:$0xe] }
 0x1d8   : > { %v5689_v26 = vrot.slane %v5687_v48, 4  ;;  %v5692_v43 = vrot.slane %v5690_v17, 5  ;;  %v5661_v54 = vsel %vm9298_vm2, %v10800_v23, %v10795_v10  ;;  %v10830_v59 = vsel %vm9617_vm5, %v4763_v4, %v4764_v20 }
 0x1d9   : > { %8209 = vmatmul.mubr.bf16.gmra.mrb[36].mxu1 %v10672_v47  ;;  %v10814_v47 = vsel %vm9617_vm5, %v7081_v18, %v4761_v56  ;;  %v5684_v1 = vrot.slane %v5682_v28, 5  ;;  %v5670_v34 = vrot.slane %v5669_v30, 4  ;;  %v5680_v61 = vrot.slane %v5679_v63, 4 }
 0x1da   : > { %8212 = vmatprep.mubr.bf16.mxu1 %v10702_v15  ;;  %v5651_v15 = vsel %vm9298_vm2, %v10797_v42, %v10755_v36  ;;  %v4771_v36 = vrot.slane %v10403_v3, 5  ;;  %v10840_v56 = vrot.slane %v5696_v29, 5  ;;  %v5702_v6 = vrot.slane %v5700_v37, 4 }
 0x1db   : > { %v5711_v44 = vshrl.u32 %v7177_v62, 16  ;;  %v5714_v8 = vshll.u32 %v7177_v62, 16  ;;  %v10844_v49 = vsel %vm9617_vm5, %v7082_v24, %v4768_v14  ;;  %v5693_v33 = vor.u32 %v5692_v43, %v5689_v26 }
 0x1dc   : > { %8161 = vmatmul.mubr.bf16.gmra.mrb[4].mxu0 %v7091_v53  ;;  %v4770_v53 = vrot.slane %v4768_v14, 4  ;;  %v5720_v32 = vshll.u32 %v7178_v31, 16  ;;  %v5724_v60 = vshrl.u32 %v7178_v31, 16  ;;  %v5738_v12 = vshll.u32 %v7180_v11, 16 }
 0x1dd   : > { %8164 = vmatprep.mubr.bf16.mxu0 %v7092_v27  ;;  %v5735_v27 = vshrl.u32 %v7180_v11, 16  ;;  %v5744_v3 = vshll.u32 %v7181_v50, 16  ;;  %v5748_v10 = vshrl.u32 %v7181_v50, 16  ;;  %v5675_v42 = vsel %vm9298_vm2, %v5670_v34, %v10784_v7  ;;  %v7179_v7 = vld [vmem:[%s9275_s14 + $0x98] sm:$0x1] }
 0x1de   : > { %v5685_v18 = vsel %vm9298_vm2, %v5680_v61, %v5684_v1  ;;  %v10855_v51 = vsel %vm9617_vm5, %v4770_v53, %v4771_v36  ;;  %v5706_v48 = vshll.u32 %v7176_v0, 16  ;;  %v5703_v17 = vor.u32 %v5702_v6, %v10840_v56  ;;  %v7186_v50 = vld [vmem:[%s9275_s14 + $0xb4] sm:$0xf]  ;;  %v7187_v0 = vld [vmem:[%s9275_s14 + $0xb8] sm:$0xf] }
 0x1df   : > { %v7083_v23 = vrot.slane %v7067_v41, 9  ;;  %v5713_v4 = vrot.slane %v5711_v44, 4  ;;  %v5716_v20 = vrot.slane %v5714_v8, 5  ;;  %v5694_v28 = vrot.slane %v5693_v33, 4 }
 0x1e0   : > { %v10860_v30 = vrot.slane %v5720_v32, 5  ;;  %v5726_v63 = vrot.slane %v5724_v60, 4  ;;  %v5740_v40 = vrot.slane %v5738_v12, 5  ;;  %v10865_v14 = vrot.slane %v5744_v3, 5  ;;  %v8784_v60 = vld [vmem:[%s9275_s14 + $0xac] sm:$0xf] }
 0x1e1   : > { %8213 = vmatmul.mubr.bf16.gmra.mrb[40].mxu1 %v10759_v25  ;;  %v8782_v25 = vld [vmem:[%s9275_s14 + $0xa0] sm:$0xf]  ;;  %v5750_v29 = vrot.slane %v5748_v10, 4  ;;  %v7200_v37 = vcombine.low %v5651_v15, %v5661_v54  ;;  %v7097_v24 = vcombine.low %v10814_v47, %v10830_v59  ;;  %v10872_v26 = vcombine.low %v5675_v42, %v5685_v18  ;;  %v8783_v54 = vld [vmem:[%s9275_s14 + $0xa4] sm:$0x1] }
 0x1e2   : > { %8216 = vmatprep.mubr.bf16.mxu1 %v7198_v45  ;;  %v4775_v46 = vrot.slane %v8782_v25, 5  ;;  %v5737_v45 = vrot.slane %v5735_v27, 4  ;;  %v7098_v19 = vcombine.low %v10844_v49, %v10855_v51  ;;  %v5704_v43 = vrot.slane %v5703_v17, 4  ;;  %v7068_v12 = vld [vmem:[%s9275_s14 + $0xa8] sm:$0xe] }
 0x1e3   : > { %v5708_v62 = vrot.slane %v5706_v48, 5  ;;  %v5717_v1 = vor.u32 %v5716_v20, %v5713_v4  ;;  %v5730_v31 = vshll.u32 %v7179_v7, 16  ;;  %v5699_v22 = vsel %vm9298_vm2, %v5694_v28, %v10840_v56  ;;  %v7070_v59 = vld [vmem:[%s9275_s14 + $0xc0] sm:$0xe] }
 0x1e4   : > { %8165 = vmatmul.mubr.bf16.gmra.mrb[8].mxu0 %v7093_v2  ;;  %v7183_v2 = vld [vmem:[%s9275_s14 + $0xa8] sm:$0xf]  ;;  %v4777_v15 = vrot.slane %v4775_v46, 4  ;;  %v4778_v11 = vrot.slane %v8783_v54, 5  ;;  %v5727_v34 = vor.u32 %v5726_v63, %v10860_v30  ;;  %v5741_v61 = vor.u32 %v5740_v40, %v5737_v45  ;;  %v7185_v63 = vld [vmem:[%s9275_s14 + $0xb0] sm:$0x1] }
 0x1e5   : > { %8168 = vmatprep.mubr.bf16.mxu0 %v7094_v13  ;;  %v10884_v13 = vsel %vm9617_vm5, %v7083_v23, %v4775_v46  ;;  %v5751_v53 = vor.u32 %v5750_v29, %v10865_v14  ;;  %v5754_v36 = vshll.u32 %v7182_v55, 16  ;;  %v5759_v56 = vshrl.u32 %v7183_v2, 16  ;;  %v7189_v45 = vld [vmem:[%s9275_s14 + $0xc0] sm:$0xf]  ;;  %v7190_v29 = vld [vmem:[%s9275_s14 + $0xc4] sm:$0xf] }
 0x1e6   : > { %v5762_v6 = vshll.u32 %v7183_v2, 16  ;;  %v5768_v44 = vshll.u32 %v7184_v21, 16  ;;  %v5772_v8 = vshrl.u32 %v7184_v21, 16  ;;  %v5709_v33 = vsel %vm9298_vm2, %v5704_v43, %v5708_v62  ;;  %v7188_v62 = vld [vmem:[%s9275_s14 + $0xbc] sm:$0x1] }
 0x1e7   : > { %v5718_v41 = vrot.slane %v5717_v1, 4  ;;  %v5732_v32 = vrot.slane %v5730_v31, 5  ;;  %v4782_v27 = vrot.slane %v8784_v60, 5  ;;  %v5783_v3 = vshrl.u32 %v7186_v50, 16 }
 0x1e8   : > { %v5786_v10 = vshll.u32 %v7186_v50, 16  ;;  %v5792_v42 = vshll.u32 %v7187_v0, 16  ;;  %v5796_v18 = vshrl.u32 %v7187_v0, 16  ;;  %v5742_v48 = vrot.slane %v5741_v61, 4  ;;  %v8786_v0 = vld [vmem:[%s9275_s14 + $0xb8] sm:$0xf] }
 0x1e9   : > { %8217 = vmatmul.mubr.bf16.gmra.mrb[44].mxu1 %v10808_v5  ;;  %v5728_v5 = vrot.slane %v5727_v34, 4  ;;  %v5752_v17 = vrot.slane %v5751_v53, 4  ;;  %v5756_v23 = vrot.slane %v5754_v36, 5  ;;  %v5761_v4 = vrot.slane %v5759_v56, 4 }
 0x1ea   : > { %8220 = vmatprep.mubr.bf16.mxu1 %v7200_v37  ;;  %v5764_v20 = vrot.slane %v5762_v6, 5  ;;  %v10902_v28 = vrot.slane %v5768_v44, 5  ;;  %v5774_v25 = vrot.slane %v5772_v8, 4  ;;  %v7202_v46 = vcombine.low %v5699_v22, %v5709_v33  ;;  %v7069_v6 = vld [vmem:[%s9275_s14 + $0xb4] sm:$0xe] }
 0x1eb   : > { %v10906_v52 = vsel %vm9617_vm5, %v4777_v15, %v4778_v11  ;;  %v7084_v9 = vrot.slane %v7068_v12, 9  ;;  %v5785_v40 = vrot.slane %v5783_v3, 4  ;;  %v5788_v38 = vrot.slane %v5786_v10, 5 }
 0x1ec   : > { %8169 = vmatmul.mubr.bf16.gmra.mrb[12].mxu0 %v7095_v16  ;;  %v8785_v16 = vld [vmem:[%s9275_s14 + $0xb0] sm:$0x1]  ;;  %v10911_v57 = vrot.slane %v5792_v42, 5  ;;  %v5723_v37 = vsel %vm9298_vm2, %v5718_v41, %v10860_v30  ;;  %v5733_v55 = vsel %vm9298_vm2, %v5728_v5, %v5732_v32  ;;  %v4784_v2 = vrot.slane %v4782_v27, 4  ;;  %v8787_v41 = vld [vmem:[%s9275_s14 + $0xc4] sm:$0xf] }
 0x1ed   : > { %8172 = vmatprep.mubr.bf16.mxu0 %v7096_v35  ;;  %v4785_v7 = vrot.slane %v8785_v16, 5  ;;  %v5798_v35 = vrot.slane %v5796_v18, 4  ;;  %v5747_v43 = vsel %vm9298_vm2, %v5742_v48, %v10865_v14  ;;  %v5757_v1 = vsel %vm9298_vm2, %v5752_v17, %v5756_v23  ;;  %v8788_v5 = vld [vmem:[%s9275_s14 + $0xbc] sm:$0x1] }
 0x1ee   : > { %v5765_v31 = vor.u32 %v5764_v20, %v5761_v4  ;;  %v5775_v21 = vor.u32 %v5774_v25, %v10902_v28  ;;  %v5778_v22 = vshll.u32 %v7185_v63, 16  ;;  %v5807_v30 = vshrl.u32 %v7189_v45, 16  ;;  %v8789_v20 = vld [vmem:[%s9275_s14 + $0xc8] sm:$0x1] }
 0x1ef   : > { %v5810_v15 = vshll.u32 %v7189_v45, 16  ;;  %v5816_v54 = vshll.u32 %v7190_v29, 16  ;;  %v5820_v11 = vshrl.u32 %v7190_v29, 16  ;;  %v4783_v14 = vsel %vm9617_vm5, %v7084_v9, %v4782_v27 }
 0x1f0   : > { %v5789_v34 = vor.u32 %v5788_v38, %v5785_v40  ;;  %v5802_v61 = vshll.u32 %v7188_v62, 16  ;;  %v7203_v53 = vcombine.low %v5723_v37, %v5733_v55  ;;  %v4786_v36 = vsel %vm9617_vm5, %v4784_v2, %v4785_v7  ;;  %v7071_v37 = vld [vmem:[%s9275_s14 + $0xcc] sm:$0xe] }
 0x1f1   : > { %8221 = vmatmul.mubr.bf16.gmra.mrb[48].mxu1 %v10872_v26  ;;  %v5799_v26 = vor.u32 %v5798_v35, %v10911_v57  ;;  %v7204_v50 = vcombine.low %v5747_v43, %v5757_v1  ;;  %v4789_v56 = vrot.slane %v8786_v0, 5  ;;  %v5766_v44 = vrot.slane %v5765_v31, 4 }
 0x1f2   : > { %8224 = vmatprep.mubr.bf16.mxu1 %v7202_v46  ;;  %v5776_v8 = vrot.slane %v5775_v21, 4  ;;  %v5780_v33 = vrot.slane %v5778_v22, 5  ;;  %v4796_v47 = vrot.slane %v8787_v41, 5  ;;  %v5812_v32 = vrot.slane %v5810_v15, 5  ;;  %v8791_v22 = vld [vmem:[%s9275_s14 + $0xd4] sm:$0x1] }
 0x1f3   : > { %v5818_v60 = vrot.slane %v5816_v54, 5  ;;  %v5822_v27 = vrot.slane %v5820_v11, 4  ;;  %v7099_v12 = vcombine.low %v10884_v13, %v10906_v52  ;;  %v5790_v3 = vrot.slane %v5789_v34, 4 }
 0x1f4   : > { %8173 = vmatmul.mubr.bf16.gmra.mrb[16].mxu0 %v7097_v24  ;;  %v5809_v24 = vrot.slane %v5807_v30, 4  ;;  %v5800_v49 = vrot.slane %v5799_v26, 4  ;;  %v5804_v51 = vrot.slane %v5802_v61, 5  ;;  %v7100_v10 = vcombine.low %v4783_v14, %v4786_v36 }
 0x1f5   : > { %8176 = vmatprep.mubr.bf16.mxu0 %v7098_v19  ;;  %v7191_v19 = vld [vmem:[%s9275_s14 + $0xc8] sm:$0x1]  ;;  %v7085_v42 = vrot.slane %v7069_v6, 9  ;;  %v4791_v18 = vrot.slane %v4789_v56, 4  ;;  %v4792_v48 = vrot.slane %v8788_v5, 5  ;;  %v5771_v17 = vsel %vm9298_vm2, %v5766_v44, %v10902_v28 }
 0x1f6   : > { %v7086_v23 = vrot.slane %v7070_v59, 9  ;;  %v4798_v4 = vrot.slane %v4796_v47, 4  ;;  %v4799_v25 = vrot.slane %v8789_v20, 5  ;;  %v5781_v13 = vsel %vm9298_vm2, %v5776_v8, %v5780_v33 }
 0x1f7   : > { %v5813_v46 = vor.u32 %v5812_v32, %v5809_v24  ;;  %v5823_v52 = vor.u32 %v5822_v27, %v5818_v60  ;;  %v5826_v9 = vshll.u32 %v7191_v19, 16  ;;  %v5795_v16 = vsel %vm9298_vm2, %v5790_v3, %v10911_v57  ;;  %v8790_v57 = vld [vmem:[%s9275_s14 + $0xd0] sm:$0xf] }
 0x1f8   : > { %v5805_v28 = vsel %vm9298_vm2, %v5800_v49, %v5804_v51  ;;  %v4790_v7 = vsel %vm9617_vm5, %v7085_v42, %v4789_v56  ;;  %v4793_v63 = vsel %vm9617_vm5, %v4791_v18, %v4792_v48  ;;  %v7205_v45 = vcombine.low %v5771_v17, %v5781_v13 }
 0x1f9   : > { %8225 = vmatmul.mubr.bf16.gmra.mrb[52].mxu1 %v7203_v53  ;;  %v4797_v40 = vsel %vm9617_vm5, %v7086_v23, %v4796_v47  ;;  %v4800_v38 = vsel %vm9617_vm5, %v4798_v4, %v4799_v25  ;;  %v4803_v35 = vrot.slane %v8790_v57, 5  ;;  %v7206_v29 = vcombine.low %v5795_v16, %v5805_v28 }
 0x1fa   : > { %8228 = vmatprep.mubr.bf16.mxu1 %v7204_v50  ;;  %v5814_v55 = vrot.slane %v5813_v46, 4  ;;  %v5824_v2 = vrot.slane %v5823_v52, 4  ;;  %v5828_v43 = vrot.slane %v5826_v9, 5  ;;  %v7101_v62 = vcombine.low %v4790_v7, %v4793_v63 }
 0x1fb   : > { %v7102_v1 = vcombine.low %v4797_v40, %v4800_v38  ;;  %v7087_v31 = vrot.slane %v7071_v37, 9  ;;  %v4805_v21 = vrot.slane %v4803_v35, 4  ;;  %v4806_v30 = vrot.slane %v8791_v22, 5 }
 0x1fc   : > { %8177 = vmatmul.mubr.bf16.gmra.mrb[20].mxu0 %v7099_v12  ;;  %v5819_v15 = vsel %vm9298_vm2, %v5814_v55, %v5818_v60  ;;  %v5829_v54 = vsel %vm9298_vm2, %v5824_v2, %v5828_v43 }
 0x1fd   : > { %8180 = vmatprep.mubr.bf16.mxu0 %v7100_v10  ;;  %v4804_v11 = vsel %vm9617_vm5, %v7087_v31, %v4803_v35  ;;  %v4807_v14 = vsel %vm9617_vm5, %v4805_v21, %v4806_v30  ;;  %v7207_v34 = vcombine.low %v5819_v15, %v5829_v54 }
 0x1fe   : > { %v7103_v26 = vcombine.low %v4804_v11, %v4807_v14 }
 0x201   : > { %8229 = vmatmul.mubr.bf16.gmra.mrb[56].mxu1 %v7205_v45 }
 0x202   : > { %8232 = vmatprep.mubr.bf16.mxu1 %v7206_v29 }
 0x204   : > { %8181 = vmatmul.mubr.bf16.gmra.mrb[24].mxu0 %v7101_v62 }
 0x205   : > { %8184 = vmatprep.mubr.bf16.mxu0 %v7102_v1 }
 0x209   : > { %8233 = vmatmul.mubr.bf16.gmra.mrb[60].mxu1 %v7207_v34 }
 0x20c   : > { %8185 = vmatmul.mubr.bf16.gmra.mrb[28].mxu0 %v7103_v26 }
 0x264   : > { %v7918_v61 = vpop.f32.mrb[0].mxu1 }
 0x265   : > { %v2084_v53 = vpop.f32.mrb[1].mxu1 }
 0x266   : > { %v7919_v36 = vpop.f32.mrb[2].mxu1 }
 0x267   : > { %v2087_v50 = vpop.f32.mrb[3].mxu1 }
 0x26c   : > { %v10976_v0 = vpop.f32.mrb[4].mxu1 }
 0x26d   : > { %v10978_v39 = vpop.f32.mrb[5].mxu1 }
 0x26e   : > { %v10980_v56 = vpop.f32.mrb[6].mxu1 }
 0x26f   : > { %v10982_v6 = vpop.f32.mrb[7].mxu1 }
 0x274   : > { %v10984_v44 = vpop.f32.mrb[8].mxu1 }
 0x275   : > { %v10986_v58 = vpop.f32.mrb[9].mxu1 }
 0x276   : > { %v10988_v8 = vpop.f32.mrb[10].mxu1 }
 0x277   : > { %v10990_v33 = vpop.f32.mrb[11].mxu1 }
 0x27c   : > { %v10992_v41 = vpop.f32.mrb[12].mxu1 }
 0x27d   : > { %v10994_v47 = vpop.f32.mrb[13].mxu1 }
 0x27e   : > { %v10996_v59 = vpop.f32.mrb[14].mxu1 }
 0x27f   : > { %v10998_v24 = vpop.f32.mrb[15].mxu1 }
 0x284   : > { %v11000_v32 = vpop.f32.mrb[16].mxu1 }
 0x285   : > { %v11002_v60 = vpop.f32.mrb[17].mxu1 }
 0x286   : > { %v11004_v27 = vpop.f32.mrb[18].mxu1 }
 0x287   : > { %v11006_v12 = vpop.f32.mrb[19].mxu1 }
 0x28c   : > { %v11008_v3 = vpop.f32.mrb[20].mxu1 }
 0x28d   : > { %v11010_v49 = vpop.f32.mrb[21].mxu1 }
 0x28e   : > { %v11012_v51 = vpop.f32.mrb[22].mxu1 }
 0x28f   : > { %v11014_v19 = vpop.f32.mrb[23].mxu1 }
 0x294   : > { %v11016_v10 = vpop.f32.mrb[24].mxu1 }
 0x295   : > { %v11018_v42 = vpop.f32.mrb[25].mxu1 }
 0x296   : > { %v11020_v18 = vpop.f32.mrb[26].mxu1 }
 0x297   : > { %v11022_v5 = vpop.f32.mrb[27].mxu1 }
 0x29c   : > { %v11024_v48 = vpop.f32.mrb[28].mxu1 }
 0x29d   : > { %v11026_v17 = vpop.f32.mrb[29].mxu1 }
 0x29e   : > { %v11028_v23 = vpop.f32.mrb[30].mxu1 }
 0x29f   : > { %v11030_v4 = vpop.f32.mrb[31].mxu1 }
 0x2a4   : > { %v8206_v20 = vpop.f32.mrb[32].mxu1 }
 0x2a5   : > { %v5992_v25 = vpop.f32.mrb[33].mxu1  ;;  %v6318_v35 = vmul.f32 %v8206_v20, %v8206_v20 }
 0x2a6   : > { %v6316_v13 = vmul.f32 %v5992_v25, %v5992_v25  ;;  %v8207_v46 = vpop.f32.mrb[34].mxu1 }
 0x2a7   : > { %v8158_v52 = vpop.f32.mrb[0].mxu0  ;;  %v7414_v9 = vpack.c.bf16 %v8207_v46, %v8206_v20  ;;  %v5995_v16 = vpop.f32.mrb[35].mxu1  ;;  %v6319_v1 = vmul.f32 %v8207_v46, %v8207_v46 }
 0x2a8   : > { %v8236_v28 = vadd.f32 %v8158_v52, %v7918_v61  ;;  %v4970_v7 = vpop.f32.mrb[1].mxu0  ;;  %v7409_v63 = vpack.c.bf16 %v5995_v16, %v5992_v25  ;;  %v6279_v45 = vadd.f32 %v5995_v16, %v5992_v25  ;;  %v6317_v40 = vmul.f32 %v5995_v16, %v5995_v16 }
 0x2a9   : > { %v8237_v38 = vadd.f32 %v4970_v7, %v2084_v53  ;;  %v8159_v57 = vpop.f32.mrb[2].mxu0  ;;  %7501 = vst [vmem:[%s11035_s29 + $0x8] sm:$0xff] %v7414_v9  }
 0x2aa   : > { %v8238_v29 = vadd.f32 %v8159_v57, %v7919_v36  ;;  %v4973_v37 = vpop.f32.mrb[3].mxu0  ;;  %7410 = vst [vmem:[%s11035_s29] sm:$0xff] %v7409_v63   ;;  %v6280_v55 = vadd.f32 %v8206_v20, %v6279_v45  ;;  %v6348_v2 = vadd.f32 %v6317_v40, %v6316_v13  ;;  %v5328_v34 = vmul.f32 %v8236_v28, %v8236_v28 }
 0x2ab   : > { %v8239_v43 = vadd.f32 %v4973_v37, %v2087_v50  ;;  %v5326_v30 = vmul.f32 %v8237_v38, %v8237_v38 }
 0x2ac   : > { %v7334_v62 = vpack.c.bf16 %v8238_v29, %v8236_v28  ;;  %v6349_v31 = vadd.f32 %v6348_v2, %v6318_v35  ;;  %v8210_v21 = vpop.f32.mrb[36].mxu1  ;;  %v6281_v22 = vadd.f32 %v8207_v46, %v6280_v55  ;;  %v5329_v50 = vmul.f32 %v8238_v29, %v8238_v29 }
 0x2ad   : > { %v7329_v15 = vpack.c.bf16 %v8239_v43, %v8237_v38  ;;  %v5289_v54 = vadd.f32 %v8239_v43, %v8237_v38  ;;  %v5327_v11 = vmul.f32 %v8239_v43, %v8239_v43  ;;  %v6008_v14 = vpop.f32.mrb[37].mxu1  ;;  %v6322_v55 = vmul.f32 %v8210_v21, %v8210_v21 }
 0x2ae   : > { %7486 = vst [vmem:[%s11041_s16 + $0x8] sm:$0xff] %v7334_v62   ;;  %v6282_v26 = vadd.f32 %v6281_v22, %v6008_v14  ;;  %v6320_v61 = vmul.f32 %v6008_v14, %v6008_v14  ;;  %v6350_v53 = vadd.f32 %v6349_v31, %v6319_v1  ;;  %v8211_v36 = vpop.f32.mrb[38].mxu1 }
 0x2af   : > { %7330 = vst [vmem:[%s11041_s16] sm:$0xff] %v7329_v15   ;;  %v5290_v20 = vadd.f32 %v8236_v28, %v5289_v54  ;;  %v5358_v25 = vadd.f32 %v5327_v11, %v5326_v30  ;;  %v8162_v13 = vpop.f32.mrb[4].mxu0  ;;  %v7424_v46 = vpack.c.bf16 %v8211_v36, %v8210_v21  ;;  %v6011_v52 = vpop.f32.mrb[39].mxu1  ;;  %v6323_v30 = vmul.f32 %v8211_v36, %v8211_v36 }
 0x2b0   : > { %v8240_v9 = vadd.f32 %v8162_v13, %v10976_v0  ;;  %v4986_v16 = vpop.f32.mrb[5].mxu0  ;;  %v6351_v7 = vadd.f32 %v6350_v53, %v6320_v61  ;;  %v7419_v63 = vpack.c.bf16 %v6011_v52, %v6008_v14  ;;  %v6283_v45 = vadd.f32 %v6282_v26, %v6011_v52 }
 0x2b1   : > { %v5359_v40 = vadd.f32 %v5358_v25, %v5328_v34  ;;  %v8241_v38 = vadd.f32 %v4986_v16, %v10978_v39  ;;  %v5291_v57 = vadd.f32 %v8238_v29, %v5290_v20  ;;  %v8163_v35 = vpop.f32.mrb[6].mxu0  ;;  %7503 = vst [vmem:[%s11035_s29 + $0x18] sm:$0xff] %v7424_v46   ;;  %v6321_v37 = vmul.f32 %v6011_v52, %v6011_v52 }
 0x2b2   : > { %v8242_v28 = vadd.f32 %v8163_v35, %v10980_v56  ;;  %v4989_v2 = vpop.f32.mrb[7].mxu0  ;;  %7502 = vst [vmem:[%s11035_s29 + $0x10] sm:$0xff] %v7419_v63   ;;  %v6284_v43 = vadd.f32 %v8210_v21, %v6283_v45  ;;  %v5332_v26 = vmul.f32 %v8240_v9, %v8240_v9 }
 0x2b3   : > { %v5292_v62 = vadd.f32 %v8241_v38, %v5291_v57  ;;  %v5330_v0 = vmul.f32 %v8241_v38, %v8241_v38  ;;  %v5360_v1 = vadd.f32 %v5359_v40, %v5329_v50  ;;  %v8243_v31 = vadd.f32 %v4989_v2, %v10982_v6 }
 0x2b4   : > { %v7344_v22 = vpack.c.bf16 %v8242_v28, %v8240_v9  ;;  %v6352_v39 = vadd.f32 %v6351_v7, %v6321_v37  ;;  %v8214_v29 = vpop.f32.mrb[40].mxu1  ;;  %v6285_v15 = vadd.f32 %v8211_v36, %v6284_v43  ;;  %v5333_v50 = vmul.f32 %v8242_v28, %v8242_v28 }
 0x2b5   : > { %v5361_v54 = vadd.f32 %v5360_v1, %v5330_v0  ;;  %v7339_v11 = vpack.c.bf16 %v8243_v31, %v8241_v38  ;;  %v5293_v14 = vadd.f32 %v8243_v31, %v5292_v62  ;;  %v5331_v34 = vmul.f32 %v8243_v31, %v8243_v31  ;;  %v6024_v56 = vpop.f32.mrb[41].mxu1 }
 0x2b6   : > { %7488 = vst [vmem:[%s11041_s16 + $0x18] sm:$0xff] %v7344_v22   ;;  %v6353_v21 = vadd.f32 %v6352_v39, %v6322_v55  ;;  %v6286_v61 = vadd.f32 %v6285_v15, %v6024_v56  ;;  %v6324_v53 = vmul.f32 %v6024_v56, %v6024_v56  ;;  %v8215_v20 = vpop.f32.mrb[42].mxu1  ;;  %v6326_v55 = vmul.f32 %v8214_v29, %v8214_v29 }
 0x2b7   : > { %7487 = vst [vmem:[%s11041_s16 + $0x10] sm:$0xff] %v7339_v11   ;;  %v5294_v6 = vadd.f32 %v8240_v9, %v5293_v14  ;;  %v5362_v25 = vadd.f32 %v5361_v54, %v5331_v34  ;;  %v8166_v13 = vpop.f32.mrb[8].mxu0  ;;  %v7434_v46 = vpack.c.bf16 %v8215_v20, %v8214_v29  ;;  %v6027_v52 = vpop.f32.mrb[43].mxu1 }
 0x2b8   : > { %v8244_v36 = vadd.f32 %v8166_v13, %v10984_v44  ;;  %v5002_v16 = vpop.f32.mrb[9].mxu0  ;;  %v6354_v7 = vadd.f32 %v6353_v21, %v6323_v30  ;;  %v7429_v63 = vpack.c.bf16 %v6027_v52, %v6024_v56  ;;  %v6287_v45 = vadd.f32 %v6286_v61, %v6027_v52 }
 0x2b9   : > { %v5363_v40 = vadd.f32 %v5362_v25, %v5332_v26  ;;  %v8245_v38 = vadd.f32 %v5002_v16, %v10986_v58  ;;  %v5295_v57 = vadd.f32 %v8242_v28, %v5294_v6  ;;  %v8167_v35 = vpop.f32.mrb[10].mxu0  ;;  %7505 = vst [vmem:[%s11035_s29 + $0x28] sm:$0xff] %v7434_v46   ;;  %v6325_v37 = vmul.f32 %v6027_v52, %v6027_v52 }
 0x2ba   : > { %v6355_v9 = vadd.f32 %v6354_v7, %v6324_v53  ;;  %v8246_v2 = vadd.f32 %v8167_v35, %v10988_v8  ;;  %v5005_v43 = vpop.f32.mrb[11].mxu0  ;;  %7504 = vst [vmem:[%s11035_s29 + $0x20] sm:$0xff] %v7429_v63   ;;  %v6288_v62 = vadd.f32 %v8214_v29, %v6287_v45  ;;  %v6327_v30 = vmul.f32 %v8215_v20, %v8215_v20 }
 0x2bb   : > { %v5296_v44 = vadd.f32 %v8245_v38, %v5295_v57  ;;  %v5334_v0 = vmul.f32 %v8245_v38, %v8245_v38  ;;  %v5364_v1 = vadd.f32 %v5363_v40, %v5333_v50  ;;  %v8247_v31 = vadd.f32 %v5005_v43, %v10990_v33 }
 0x2bc   : > { %v7354_v22 = vpack.c.bf16 %v8246_v2, %v8244_v36  ;;  %v6356_v58 = vadd.f32 %v6355_v9, %v6325_v37  ;;  %v8218_v28 = vpop.f32.mrb[44].mxu1  ;;  %v6289_v39 = vadd.f32 %v8215_v20, %v6288_v62  ;;  %v5336_v34 = vmul.f32 %v8244_v36, %v8244_v36 }
 0x2bd   : > { %v5365_v15 = vadd.f32 %v5364_v1, %v5334_v0  ;;  %v7349_v54 = vpack.c.bf16 %v8247_v31, %v8245_v38  ;;  %v5297_v11 = vadd.f32 %v8247_v31, %v5296_v44  ;;  %v5335_v14 = vmul.f32 %v8247_v31, %v8247_v31  ;;  %v6040_v8 = vpop.f32.mrb[45].mxu1 }
 0x2be   : > { %7490 = vst [vmem:[%s11041_s16 + $0x28] sm:$0xff] %v7354_v22   ;;  %v6357_v29 = vadd.f32 %v6356_v58, %v6326_v55  ;;  %v6290_v56 = vadd.f32 %v6289_v39, %v6040_v8  ;;  %v6328_v26 = vmul.f32 %v6040_v8, %v6040_v8  ;;  %v8219_v21 = vpop.f32.mrb[46].mxu1  ;;  %v5337_v61 = vmul.f32 %v8246_v2, %v8246_v2 }
 0x2bf   : > { %7489 = vst [vmem:[%s11041_s16 + $0x20] sm:$0xff] %v7349_v54   ;;  %v5298_v33 = vadd.f32 %v8244_v36, %v5297_v11  ;;  %v5366_v53 = vadd.f32 %v5365_v15, %v5335_v14  ;;  %v8170_v50 = vpop.f32.mrb[12].mxu0  ;;  %v7444_v6 = vpack.c.bf16 %v8219_v21, %v8218_v28  ;;  %v6043_v25 = vpop.f32.mrb[47].mxu1  ;;  %v6330_v57 = vmul.f32 %v8218_v28, %v8218_v28 }
 0x2c0   : > { %v8248_v20 = vadd.f32 %v8170_v50, %v10992_v41  ;;  %v5018_v13 = vpop.f32.mrb[13].mxu0  ;;  %v6358_v46 = vadd.f32 %v6357_v29, %v6327_v30  ;;  %v7439_v52 = vpack.c.bf16 %v6043_v25, %v6040_v8  ;;  %v6291_v16 = vadd.f32 %v6290_v56, %v6043_v25 }
 0x2c1   : > { %v5367_v7 = vadd.f32 %v5366_v53, %v5336_v34  ;;  %v8249_v63 = vadd.f32 %v5018_v13, %v10994_v47  ;;  %v5299_v45 = vadd.f32 %v8246_v2, %v5298_v33  ;;  %v8171_v40 = vpop.f32.mrb[14].mxu0  ;;  %7507 = vst [vmem:[%s11035_s29 + $0x38] sm:$0xff] %v7444_v6   ;;  %v6329_v38 = vmul.f32 %v6043_v25, %v6043_v25 }
 0x2c2   : > { %v6359_v36 = vadd.f32 %v6358_v46, %v6328_v26  ;;  %v8250_v35 = vadd.f32 %v8171_v40, %v10996_v59  ;;  %v5021_v37 = vpop.f32.mrb[15].mxu0  ;;  %7506 = vst [vmem:[%s11035_s29 + $0x30] sm:$0xff] %v7439_v52   ;;  %v6292_v55 = vadd.f32 %v8218_v28, %v6291_v16  ;;  %v6331_v0 = vmul.f32 %v8219_v21, %v8219_v21 }
 0x2c3   : > { %v5300_v41 = vadd.f32 %v8249_v63, %v5299_v45  ;;  %v5338_v9 = vmul.f32 %v8249_v63, %v8249_v63  ;;  %v5368_v43 = vadd.f32 %v5367_v7, %v5337_v61  ;;  %v8251_v62 = vadd.f32 %v5021_v37, %v10998_v24 }
 0x2c4   : > { %v7364_v44 = vpack.c.bf16 %v8250_v35, %v8248_v20  ;;  %v6360_v47 = vadd.f32 %v6359_v36, %v6329_v38  ;;  %v8222_v2 = vpop.f32.mrb[48].mxu1  ;;  %v6293_v1 = vadd.f32 %v8219_v21, %v6292_v55  ;;  %v5340_v39 = vmul.f32 %v8248_v20, %v8248_v20 }
 0x2c5   : > { %v5369_v31 = vadd.f32 %v5368_v43, %v5338_v9  ;;  %v7359_v22 = vpack.c.bf16 %v8251_v62, %v8249_v63  ;;  %v5301_v30 = vadd.f32 %v8251_v62, %v5300_v41  ;;  %v5339_v58 = vmul.f32 %v8251_v62, %v8251_v62  ;;  %v6056_v59 = vpop.f32.mrb[49].mxu1 }
 0x2c6   : > { %7492 = vst [vmem:[%s11041_s16 + $0x38] sm:$0xff] %v7364_v44   ;;  %v6361_v28 = vadd.f32 %v6360_v47, %v6330_v57  ;;  %v6294_v15 = vadd.f32 %v6293_v1, %v6056_v59  ;;  %v6332_v54 = vmul.f32 %v6056_v59, %v6056_v59  ;;  %v8223_v11 = vpop.f32.mrb[50].mxu1  ;;  %v5341_v14 = vmul.f32 %v8250_v35, %v8250_v35 }
 0x2c7   : > { %7491 = vst [vmem:[%s11041_s16 + $0x30] sm:$0xff] %v7359_v22   ;;  %v5302_v24 = vadd.f32 %v8248_v20, %v5301_v30  ;;  %v5370_v8 = vadd.f32 %v5369_v31, %v5339_v58  ;;  %v8174_v34 = vpop.f32.mrb[16].mxu0  ;;  %v7454_v29 = vpack.c.bf16 %v8223_v11, %v8222_v2  ;;  %v6059_v56 = vpop.f32.mrb[51].mxu1  ;;  %v6334_v52 = vmul.f32 %v8222_v2, %v8222_v2 }
 0x2c8   : > { %v8252_v26 = vadd.f32 %v8174_v34, %v11000_v32  ;;  %v5034_v21 = vpop.f32.mrb[17].mxu0  ;;  %v6362_v61 = vadd.f32 %v6361_v28, %v6331_v0  ;;  %v7449_v33 = vpack.c.bf16 %v6059_v56, %v6056_v59  ;;  %v6295_v53 = vadd.f32 %v6294_v15, %v6059_v56 }
 0x2c9   : > { %v5371_v50 = vadd.f32 %v5370_v8, %v5340_v39  ;;  %v8253_v6 = vadd.f32 %v5034_v21, %v11002_v60  ;;  %v5303_v25 = vadd.f32 %v8250_v35, %v5302_v24  ;;  %v8175_v13 = vpop.f32.mrb[18].mxu0  ;;  %7509 = vst [vmem:[%s11035_s29 + $0x48] sm:$0xff] %v7454_v29   ;;  %v6333_v46 = vmul.f32 %v6059_v56, %v6059_v56 }
 0x2ca   : > { %v6363_v20 = vadd.f32 %v6362_v61, %v6332_v54  ;;  %v8254_v16 = vadd.f32 %v8175_v13, %v11004_v27  ;;  %v5037_v7 = vpop.f32.mrb[19].mxu0  ;;  %7508 = vst [vmem:[%s11035_s29 + $0x40] sm:$0xff] %v7449_v33   ;;  %v6296_v63 = vadd.f32 %v8222_v2, %v6295_v53  ;;  %v6335_v36 = vmul.f32 %v8223_v11, %v8223_v11 }
 0x2cb   : > { %v5304_v32 = vadd.f32 %v8253_v6, %v5303_v25  ;;  %v5342_v45 = vmul.f32 %v8253_v6, %v8253_v6  ;;  %v5372_v40 = vadd.f32 %v5371_v50, %v5341_v14  ;;  %v8255_v38 = vadd.f32 %v5037_v7, %v11006_v12 }
 0x2cc   : > { %v7374_v57 = vpack.c.bf16 %v8254_v16, %v8252_v26  ;;  %v6364_v60 = vadd.f32 %v6363_v20, %v6333_v46  ;;  %v8226_v35 = vpop.f32.mrb[52].mxu1  ;;  %v6297_v37 = vadd.f32 %v8223_v11, %v6296_v63  ;;  %v5344_v62 = vmul.f32 %v8252_v26, %v8252_v26 }
 0x2cd   : > { %v5373_v55 = vadd.f32 %v5372_v40, %v5342_v45  ;;  %v7369_v41 = vpack.c.bf16 %v8255_v38, %v8253_v6  ;;  %v5305_v9 = vadd.f32 %v8255_v38, %v5304_v32  ;;  %v5343_v43 = vmul.f32 %v8255_v38, %v8255_v38  ;;  %v6072_v27 = vpop.f32.mrb[53].mxu1 }
 0x2ce   : > { %7494 = vst [vmem:[%s11041_s16 + $0x48] sm:$0xff] %v7374_v57   ;;  %v6365_v44 = vadd.f32 %v6364_v60, %v6334_v52  ;;  %v6298_v0 = vadd.f32 %v6297_v37, %v6072_v27  ;;  %v6336_v47 = vmul.f32 %v6072_v27, %v6072_v27  ;;  %v8227_v2 = vpop.f32.mrb[54].mxu1  ;;  %v5345_v1 = vmul.f32 %v8254_v16, %v8254_v16 }
 0x2cf   : > { %7493 = vst [vmem:[%s11041_s16 + $0x40] sm:$0xff] %v7369_v41   ;;  %v5306_v12 = vadd.f32 %v8252_v26, %v5305_v9  ;;  %v5374_v31 = vadd.f32 %v5373_v55, %v5343_v43  ;;  %v8178_v22 = vpop.f32.mrb[20].mxu0  ;;  %v7464_v30 = vpack.c.bf16 %v8227_v2, %v8226_v35  ;;  %v6075_v58 = vpop.f32.mrb[55].mxu1  ;;  %v6338_v29 = vmul.f32 %v8226_v35, %v8226_v35 }
 0x2d0   : > { %v8256_v59 = vadd.f32 %v8178_v22, %v11008_v3  ;;  %v5050_v39 = vpop.f32.mrb[21].mxu0  ;;  %v6366_v28 = vadd.f32 %v6365_v44, %v6335_v36  ;;  %v7459_v15 = vpack.c.bf16 %v6075_v58, %v6072_v27  ;;  %v6299_v54 = vadd.f32 %v6298_v0, %v6075_v58 }
 0x2d1   : > { %v5375_v11 = vadd.f32 %v5374_v31, %v5344_v62  ;;  %v8257_v14 = vadd.f32 %v5050_v39, %v11010_v49  ;;  %v5307_v24 = vadd.f32 %v8254_v16, %v5306_v12  ;;  %v8179_v8 = vpop.f32.mrb[22].mxu0  ;;  %7511 = vst [vmem:[%s11035_s29 + $0x58] sm:$0xff] %v7464_v30   ;;  %v6337_v34 = vmul.f32 %v6075_v58, %v6075_v58 }
 0x2d2   : > { %v6367_v56 = vadd.f32 %v6366_v28, %v6336_v47  ;;  %v8258_v26 = vadd.f32 %v8179_v8, %v11012_v51  ;;  %v5053_v21 = vpop.f32.mrb[23].mxu0  ;;  %7510 = vst [vmem:[%s11035_s29 + $0x50] sm:$0xff] %v7459_v15   ;;  %v6300_v61 = vadd.f32 %v8226_v35, %v6299_v54  ;;  %v6339_v25 = vmul.f32 %v8227_v2, %v8227_v2 }
 0x2d3   : > { %v5308_v3 = vadd.f32 %v8257_v14, %v5307_v24  ;;  %v5346_v33 = vmul.f32 %v8257_v14, %v8257_v14  ;;  %v5376_v53 = vadd.f32 %v5375_v11, %v5345_v1  ;;  %v8259_v50 = vadd.f32 %v5053_v21, %v11014_v19 }
 0x2d4   : > { %v7384_v6 = vpack.c.bf16 %v8258_v26, %v8256_v59  ;;  %v6368_v49 = vadd.f32 %v6367_v56, %v6337_v34  ;;  %v8230_v13 = vpop.f32.mrb[56].mxu1  ;;  %v6301_v46 = vadd.f32 %v8227_v2, %v6300_v61  ;;  %v5348_v63 = vmul.f32 %v8256_v59, %v8256_v59 }
 0x2d5   : > { %v5377_v52 = vadd.f32 %v5376_v53, %v5346_v33  ;;  %v7379_v20 = vpack.c.bf16 %v8259_v50, %v8257_v14  ;;  %v5309_v16 = vadd.f32 %v8259_v50, %v5308_v3  ;;  %v5347_v7 = vmul.f32 %v8259_v50, %v8259_v50  ;;  %v6088_v51 = vpop.f32.mrb[57].mxu1 }
 0x2d6   : > { %7496 = vst [vmem:[%s11041_s16 + $0x58] sm:$0xff] %v7384_v6   ;;  %v6369_v32 = vadd.f32 %v6368_v49, %v6338_v29  ;;  %v6302_v45 = vadd.f32 %v6301_v46, %v6088_v51  ;;  %v6340_v40 = vmul.f32 %v6088_v51, %v6088_v51  ;;  %v8231_v38 = vpop.f32.mrb[58].mxu1  ;;  %v5349_v57 = vmul.f32 %v8258_v26, %v8258_v26 }
 0x2d7   : > { %7495 = vst [vmem:[%s11041_s16 + $0x50] sm:$0xff] %v7379_v20   ;;  %v5310_v19 = vadd.f32 %v8256_v59, %v5309_v16  ;;  %v5378_v36 = vadd.f32 %v5377_v52, %v5347_v7  ;;  %v8182_v60 = vpop.f32.mrb[24].mxu0  ;;  %v7474_v35 = vpack.c.bf16 %v8231_v38, %v8230_v13  ;;  %v6091_v37 = vpop.f32.mrb[59].mxu1  ;;  %v6342_v1 = vmul.f32 %v8230_v13, %v8230_v13 }
 0x2d8   : > { %v8260_v55 = vadd.f32 %v8182_v60, %v11016_v10  ;;  %v5066_v41 = vpop.f32.mrb[25].mxu0  ;;  %v6370_v9 = vadd.f32 %v6369_v32, %v6339_v25  ;;  %v7469_v43 = vpack.c.bf16 %v6091_v37, %v6088_v51  ;;  %v6303_v27 = vadd.f32 %v6302_v45, %v6091_v37 }
 0x2d9   : > { %v5379_v62 = vadd.f32 %v5378_v36, %v5348_v63  ;;  %v8261_v44 = vadd.f32 %v5066_v41, %v11018_v42  ;;  %v5311_v0 = vadd.f32 %v8258_v26, %v5310_v19  ;;  %v8183_v47 = vpop.f32.mrb[26].mxu0  ;;  %7513 = vst [vmem:[%s11035_s29 + $0x68] sm:$0xff] %v7474_v35   ;;  %v6341_v2 = vmul.f32 %v6091_v37, %v6091_v37 }
 0x2da   : > { %v6371_v12 = vadd.f32 %v6370_v9, %v6340_v40  ;;  %v8262_v31 = vadd.f32 %v8183_v47, %v11020_v18  ;;  %v5069_v22 = vpop.f32.mrb[27].mxu0  ;;  %7512 = vst [vmem:[%s11035_s29 + $0x60] sm:$0xff] %v7469_v43   ;;  %v6304_v30 = vadd.f32 %v8230_v13, %v6303_v27  ;;  %v6343_v15 = vmul.f32 %v8231_v38, %v8231_v38 }
 0x2db   : > { %v5312_v10 = vadd.f32 %v8261_v44, %v5311_v0  ;;  %v5350_v58 = vmul.f32 %v8261_v44, %v8261_v44  ;;  %v5380_v59 = vadd.f32 %v5379_v62, %v5349_v57  ;;  %v8263_v39 = vadd.f32 %v5069_v22, %v11022_v5 }
 0x2dc   : > { %v7394_v28 = vpack.c.bf16 %v8262_v31, %v8260_v55  ;;  %v6372_v42 = vadd.f32 %v6371_v12, %v6341_v2  ;;  %v8234_v54 = vpop.f32.mrb[60].mxu1  ;;  %v6305_v11 = vadd.f32 %v8231_v38, %v6304_v30  ;;  %v5352_v29 = vmul.f32 %v8260_v55, %v8260_v55 }
 0x2dd   : > { %v5381_v14 = vadd.f32 %v5380_v59, %v5350_v58  ;;  %v7389_v24 = vpack.c.bf16 %v8263_v39, %v8261_v44  ;;  %v5313_v8 = vadd.f32 %v8263_v39, %v5312_v10  ;;  %v5351_v34 = vmul.f32 %v8263_v39, %v8263_v39  ;;  %v6104_v18 = vpop.f32.mrb[61].mxu1 }
 0x2de   : > { %7498 = vst [vmem:[%s11041_s16 + $0x68] sm:$0xff] %v7394_v28   ;;  %v6373_v56 = vadd.f32 %v6372_v42, %v6342_v1  ;;  %v6306_v26 = vadd.f32 %v6305_v11, %v6104_v18  ;;  %v6344_v21 = vmul.f32 %v6104_v18, %v6104_v18  ;;  %v8235_v61 = vpop.f32.mrb[62].mxu1  ;;  %v5353_v3 = vmul.f32 %v8262_v31, %v8262_v31 }
 0x2df   : > { %7497 = vst [vmem:[%s11041_s16 + $0x60] sm:$0xff] %v7389_v24   ;;  %v5314_v5 = vadd.f32 %v8260_v55, %v5313_v8  ;;  %v5382_v33 = vadd.f32 %v5381_v14, %v5351_v34  ;;  %v8186_v53 = vpop.f32.mrb[28].mxu0  ;;  %v7484_v50 = vpack.c.bf16 %v8235_v61, %v8234_v54  ;;  %v6107_v6 = vpop.f32.mrb[63].mxu1  ;;  %v6347_v9 = vmul.f32 %v8235_v61, %v8235_v61 }
 0x2e0   : > { %v8264_v25 = vadd.f32 %v8186_v53, %v11024_v48  ;;  %v5082_v49 = vpop.f32.mrb[29].mxu0  ;;  %v6374_v13 = vadd.f32 %v6373_v56, %v6343_v15  ;;  %v7479_v46 = vpack.c.bf16 %v6107_v6, %v6104_v18  ;;  %v6307_v52 = vadd.f32 %v6306_v26, %v6107_v6 }
 0x2e1   : > { %v5383_v20 = vadd.f32 %v5382_v33, %v5352_v29  ;;  %v8265_v16 = vadd.f32 %v5082_v49, %v11026_v17  ;;  %v5315_v7 = vadd.f32 %v8262_v31, %v5314_v5  ;;  %v8187_v51 = vpop.f32.mrb[30].mxu0  ;;  %7515 = vst [vmem:[%s11035_s29 + $0x78] sm:$0xff] %v7484_v50   ;;  %v6345_v63 = vmul.f32 %v6107_v6, %v6107_v6 }
 0x2e2   : > { %v6375_v32 = vadd.f32 %v6374_v13, %v6344_v21  ;;  %v8266_v45 = vadd.f32 %v8187_v51, %v11028_v23  ;;  %v5085_v40 = vpop.f32.mrb[31].mxu0  ;;  %7514 = vst [vmem:[%s11035_s29 + $0x70] sm:$0xff] %v7479_v46   ;;  %v6308_v48 = vadd.f32 %v8234_v54, %v6307_v52  ;;  %v6346_v17 = vmul.f32 %v8234_v54, %v8234_v54 }
 0x2e3   : > { %v5316_v38 = vadd.f32 %v8265_v16, %v5315_v7  ;;  %v5354_v57 = vmul.f32 %v8265_v16, %v8265_v16  ;;  %v5384_v19 = vadd.f32 %v5383_v20, %v5353_v3  ;;  %v8267_v36 = vadd.f32 %v5085_v40, %v11030_v4 }
 0x2e4   : > { %v7404_v60 = vpack.c.bf16 %v8266_v45, %v8264_v25  ;;  %v6309_v35 = vadd.f32 %v8235_v61, %v6308_v48  ;;  %v6376_v37 = vadd.f32 %v6375_v32, %v6345_v63  ;;  %v5356_v62 = vmul.f32 %v8264_v25, %v8264_v25 }
 0x2e5   : > { %v5385_v23 = vadd.f32 %v5384_v19, %v5354_v57  ;;  %v7399_v55 = vpack.c.bf16 %v8267_v36, %v8265_v16  ;;  %v5317_v4 = vadd.f32 %v8267_v36, %v5316_v38  ;;  %v5355_v41 = vmul.f32 %v8267_v36, %v8267_v36 }
 0x2e6   : > { %7500 = vst [vmem:[%s11041_s16 + $0x78] sm:$0xff] %v7404_v60   ;;  %v6310_v43 = vrot.slane %v6309_v35, 4  ;;  %v6377_v27 = vadd.f32 %v6376_v37, %v6346_v17 }
 0x2e7   : > { %7499 = vst [vmem:[%s11041_s16 + $0x70] sm:$0xff] %v7399_v55   ;;  %v5318_v44 = vadd.f32 %v8264_v25, %v5317_v4  ;;  %v5386_v0 = vadd.f32 %v5385_v23, %v5355_v41 }
 0x2e8   : > { %v6311_v47 = vadd.f32 %v6310_v43, %v6309_v35  ;;  %v6378_v2 = vadd.f32 %v6377_v27, %v6347_v9 }
 0x2e9   : > { %8891 = shalt.err (!%p8888_p1)
}
 0x2ea   : > { %s8892_s14 = scalar_lea.hbm %s11106_s30, 2048  ;;  %s8896_s11 = scalar_lea.hbm %s11270_s3, 4096 }
 0x2eb   : > { %p8893_p13 = scmp.ne.s32.totalorder %s11106_s30, %s8892_s14  ;;  %p8897_p4 = scmp.lt.u32.totalorder %s11106_s30, %s11270_s3 }
 0x2ec   : > { %p8898_p5 = scmp.lt.u32.totalorder %s8896_s11, %s8892_s14  ;;  %p8900_p11 = scmp.lt.u32.totalorder %s8892_s14, %s11106_s30 }
 0x2ed   : > { %p8894_p6 = pnand %p8893_p13, %p11320_p0 }
 0x2ee   : > { %p8899_p8 = por %p8898_p5, %p8897_p4 }
 0x2ef   : > { %p8895_p10 = pneg %p8894_p6 }
 0x2f0   : > { %p8901_p2 = por %p8900_p11, %p8899_p8 }
 0x2f2   : > { %p8902_p3 = pnand %p8901_p2, %p8895_p10 }
 0x2f4   : > { %8905 = shalt.err (!%p8902_p3)
}
 0x2f5   : > { %s11284_s26 = smov 64   ;;  %s11285_s17 = smov 4   ;;  %v5357_v1 = vmul.f32 %v8266_v45, %v8266_v45  ;;  %v5319_v12 = vadd.f32 %v8266_v45, %v5318_v44  ;;  %v5387_v31 = vadd.f32 %v5386_v0, %v5356_v62  ;;  %v6312_v22 = vrot.slane %v6311_v47, 2 }
 0x2f6   : > { %8505 = dma.vmem_to_hbm [thread:$0]  (%p11320_p0), %s11108_s9, 2048, %s11106_s30, %s6388_s19, %s11284_s26, %s11284_s26, %s11285_s17   ;;  %v6379_v30 = vrot.slane %v6378_v2, 4  ;;  %vm5395_vm6 = vcmask 1040384  }
 0x2f7   : > { %v5320_v10 = vrot.slane %v5319_v12, 4  ;;  %v5388_v58 = vadd.f32 %v5387_v31, %v5357_v1  ;;  %v6313_v59 = vadd.f32 %v6312_v22, %v6311_v47  ;;  %s6653_s7 = sshll.u32 %s9271_s10, 1  ;;  %s7254_s9 = sshll.u32 %s9109_s25, 5 }
 0x2f8   : > { %v6380_v39 = vadd.f32 %v6379_v30, %v6378_v2  ;;  %s326_s30 = scalar_lea.vmem [#allocation12], %s6653_s7  ;;  %s11142_s27 = scalar_lea.vmem [#allocation9], %s6653_s7 }
 0x2f9   : > { %v5321_v28 = vadd.f32 %v5320_v10, %v5319_v12  ;;  %v5389_v15 = vrot.slane %v5388_v58, 4  ;;  %v6314_v14 = vrot.slane %v6313_v59, 1  ;;  %s6461_s19 = sshll.u32 %s326_s30, 4  ;;  %s6432_s16 = sshll.u32 %s11142_s27, 4  ;;  %s11150_s19 = int_to_ptr.vmem [resolvable:$true] %s6461_s19  ;;  %s11159_s16 = int_to_ptr.vmem [resolvable:$true] %s6432_s16 }
 0x2fa   : > { %v6381_v42 = vrot.slane %v6380_v39, 2  ;;  %s11148_s20 = scalar_lea.hbm %s11273_s6, %s7254_s9  ;;  %s11157_s14 = scalar_lea.hbm %s11271_s4, %s7254_s9 }
 0x2fb   : > { %v5322_v54 = vrot.slane %v5321_v28, 2  ;;  %v5390_v11 = vadd.f32 %v5389_v15, %v5388_v58  ;;  %v6315_v26 = vadd.f32 %v6314_v14, %v6313_v59  ;;  %s6403_s11 = scalar_lea.sflag [#allocation13], %s9271_s10  ;;  %s8906_s15 = scalar_lea.vmem %s11150_s19, 32 }
 0x2fc   : > { %v6382_v24 = vadd.f32 %v6381_v42, %v6380_v39  ;;  %p8907_p7 = scmp.ne.s32.totalorder %s11150_s19, %s8906_s15  ;;  %s9050_s26 = smov [#allocation12]  }
 0x2fd   : > { %v5323_v8 = vadd.f32 %v5322_v54, %v5321_v28  ;;  %v5391_v34 = vrot.slane %v5390_v11, 2  ;;  %s8910_s18 = sshll.u32 %s9050_s26, 4  ;;  %s8911_s18 = int_to_ptr.vmem [resolvable:$false] %s8910_s18 }
 0x2fe   : > { %v6383_v18 = vrot.slane %v6382_v24, 1  ;;  %p8908_p9 = pnand %p8907_p7, %p11320_p0  ;;  %s8912_s0 = scalar_lea.vmem %s8911_s18, 64 }
 0x2ff   : > { %v5324_v29 = vrot.slane %v5323_v8, 1  ;;  %v5392_v56 = vadd.f32 %v5391_v34, %v5390_v11  ;;  %p8913_p1 = scmp.lt.s32.totalorder %s11150_s19, %s8911_s18  ;;  %p8914_p13 = scmp.lt.s32.totalorder %s8912_s0, %s8906_s15 }
 0x300   : > { %v6384_v21 = vadd.f32 %v6383_v18, %v6382_v24  ;;  %p8909_p12 = pneg %p8908_p9 }
 0x301   : > { %v5393_v61 = vrot.slane %v5392_v56, 1  ;;  %v5325_v5 = vadd.f32 %v5324_v29, %v5323_v8  ;;  %p8915_p6 = por %p8914_p13, %p8913_p1 }
 0x302   : > { %v6385_v3 = vsel %vm5395_vm6, %v6315_v26, %v6384_v21 }
 0x303   : > { %v5394_v33 = vadd.f32 %v5393_v61, %v5392_v56  ;;  %6386 = vst [vmem:[%s326_s30] sm:$0x3] %v6385_v3  ;;  %p8916_p10 = pnand %p8915_p6, %p8909_p12 }
 0x305   : > { %8919 = shalt.err (!%p8916_p10)
}
 0x306   : > { %s8920_s10 = scalar_lea.hbm %s11148_s20, 32  ;;  %s8924_s26 = scalar_lea.hbm %s11273_s6, 64 }
 0x307   : > { %p8921_p4 = scmp.ne.s32.totalorder %s11148_s20, %s8920_s10  ;;  %p8925_p11 = scmp.lt.u32.totalorder %s11148_s20, %s11273_s6 }
 0x308   : > { %p8926_p2 = scmp.lt.u32.totalorder %s8924_s26, %s8920_s10  ;;  %p8928_p7 = scmp.lt.u32.totalorder %s8920_s10, %s11148_s20 }
 0x309   : > { %p8922_p5 = pnand %p8921_p4, %p11320_p0 }
 0x30a   : > { %p8927_p3 = por %p8926_p2, %p8925_p11 }
 0x30b   : > { %p8923_p8 = pneg %p8922_p5 }
 0x30c   : > { %p8929_p9 = por %p8928_p7, %p8927_p3 }
 0x30e   : > { %p8930_p12 = pnand %p8929_p9, %p8923_p8 }
 0x310   : > { %8933 = shalt.err (!%p8930_p12)
}
 0x311   : > { %8508 = dma.vmem_to_hbm [thread:$0]  (%p11320_p0), %s11150_s19, 32, %s11148_s20, %s6403_s11   ;;  %v5396_v53 = vsel %vm5395_vm6, %v5325_v5, %v5394_v33 }
 0x312   : > { %s11321_s0 = sshll.u32 %s9109_s25, 11  ;;  %s11322_s17 = sshll.u32 %s11035_s29, 4  ;;  %5397 = vst [vmem:[%s11142_s27] sm:$0x3] %v5396_v53  ;;  %s11193_s17 = int_to_ptr.vmem [resolvable:$true] %s11322_s17 }
 0x313   : > { %s11189_s10 = scalar_lea.hbm %s11272_s5, %s11321_s0  ;;  %s11323_s9 = sand.u32 1, %s9109_s25  }
 0x314   : > { %s11198_s26 = scalar_lea.sflag [#allocation10], %s11323_s9  ;;  %s8934_s30 = scalar_lea.vmem %s11159_s16, 32 }
 0x315   : > { %p8935_p1 = scmp.ne.s32.totalorder %s11159_s16, %s8934_s30  ;;  %s9051_s19 = smov [#allocation9]  }
 0x316   : > { %s8938_s20 = sshll.u32 %s9051_s19, 4  ;;  %s8939_s20 = int_to_ptr.vmem [resolvable:$false] %s8938_s20 }
 0x317   : > { %p8936_p13 = pnand %p8935_p1, %p11320_p0  ;;  %s8940_s11 = scalar_lea.vmem %s8939_s20, 64 }
 0x318   : > { %p8941_p10 = scmp.lt.s32.totalorder %s11159_s16, %s8939_s20  ;;  %p8942_p4 = scmp.lt.s32.totalorder %s8940_s11, %s8934_s30 }
 0x319   : > { %p8937_p6 = pneg %p8936_p13 }
 0x31a   : > { %p8943_p5 = por %p8942_p4, %p8941_p10 }
 0x31c   : > { %p8944_p8 = pnand %p8943_p5, %p8937_p6 }
 0x31e   : > { %8947 = shalt.err (!%p8944_p8)
}
 0x31f   : > { %s8948_s25 = scalar_lea.hbm %s11157_s14, 32  ;;  %s8952_s18 = scalar_lea.hbm %s11271_s4, 64 }
 0x320   : > { %p8949_p11 = scmp.ne.s32.totalorder %s11157_s14, %s8948_s25  ;;  %p8953_p7 = scmp.lt.u32.totalorder %s11157_s14, %s11271_s4 }
 0x321   : > { %p8954_p9 = scmp.lt.u32.totalorder %s8952_s18, %s8948_s25  ;;  %p8956_p1 = scmp.lt.u32.totalorder %s8948_s25, %s11157_s14 }
 0x322   : > { %p8950_p2 = pnand %p8949_p11, %p11320_p0 }
 0x323   : > { %p8955_p12 = por %p8954_p9, %p8953_p7 }
 0x324   : > { %p8951_p3 = pneg %p8950_p2 }
 0x325   : > { %p8957_p13 = por %p8956_p1, %p8955_p12 }
 0x327   : > { %p8958_p6 = pnand %p8957_p13, %p8951_p3 }
 0x329   : > { %8961 = shalt.err (!%p8958_p6)
}
 0x32a   : > { %8506 = dma.vmem_to_hbm [thread:$0]  (%p11320_p0), %s11159_s16, 32, %s11157_s14, %s11198_s26  }
 0x32b   : > { %s8962_s15 = scalar_lea.vmem %s11193_s17, 2048  ;;  %s9052_s9 = smov [#allocation11]  }
 0x32c   : > { %p8963_p10 = scmp.ne.s32.totalorder %s11193_s17, %s8962_s15  ;;  %s8966_s30 = sshll.u32 %s9052_s9, 4  ;;  %s8967_s30 = int_to_ptr.vmem [resolvable:$false] %s8966_s30 }
 0x32d   : > { %s8968_s19 = scalar_lea.vmem %s8967_s30, 4096  ;;  %p8969_p8 = scmp.lt.s32.totalorder %s11193_s17, %s8967_s30 }
 0x32e   : > { %p8964_p4 = pnand %p8963_p10, %p11320_p0  ;;  %p8970_p11 = scmp.lt.s32.totalorder %s8968_s19, %s8962_s15 }
 0x330   : > { %p8965_p5 = pneg %p8964_p4  ;;  %p8971_p2 = por %p8970_p11, %p8969_p8 }
 0x332   : > { %p8972_p3 = pnand %p8971_p2, %p8965_p5 }
 0x334   : > { %8975 = shalt.err (!%p8972_p3)
}
 0x335   : > { %s8976_s14 = scalar_lea.hbm %s11189_s10, 2048  ;;  %s8980_s11 = scalar_lea.hbm %s11272_s5, 4096 }
 0x336   : > { %p8977_p7 = scmp.ne.s32.totalorder %s11189_s10, %s8976_s14  ;;  %p8981_p1 = scmp.lt.u32.totalorder %s11189_s10, %s11272_s5 }
 0x337   : > { %p8982_p13 = scmp.lt.u32.totalorder %s8980_s11, %s8976_s14  ;;  %p8984_p10 = scmp.lt.u32.totalorder %s8976_s14, %s11189_s10 }
 0x338   : > { %p8978_p9 = pnand %p8977_p7, %p11320_p0 }
 0x339   : > { %p8983_p6 = por %p8982_p13, %p8981_p1 }
 0x33a   : > { %p8979_p12 = pneg %p8978_p9 }
 0x33b   : > { %p8985_p4 = por %p8984_p10, %p8983_p6 }
 0x33d   : > { %p8986_p5 = pnand %p8985_p4, %p8979_p12 }
 0x33f   : > { %8989 = shalt.err (!%p8986_p5)
}
 0x340   : > { %s11324_s27 = smov 4   ;;  %s11325_s18 = smov 64  }
 0x341   : > { %8507 = dma.vmem_to_hbm [thread:$0]  (%p11320_p0), %s11193_s17, 2048, %s11189_s10, %s11198_s26, %s11325_s18, %s11325_s18, %s11324_s27  }
 0x342 PF: > { %s6473_s0 = sand.u32 1, %s9028_s21   ;;  %p11326_p8 = scmp.ne.s32.totalorder %s11289_s28, 0 }
 0x343   : > { %p11327_p11 = scmp.ge.s32.totalorder %s9040_s24, 2  ;;  %s6474_s7 = scalar_lea.sflag [#allocation4], %s6473_s0 }
 0x345   : > { %p8525_p2 = pnand %p11327_p11, %p11326_p8 }
 0x347   : > { %9015 = dma.done.wait (!%p8525_p2), %s6474_s7, 2048  }
 0x348   : > { %9017 = vsyncadd (!%p8525_p2), %s6474_s7, 4294965248  ;;  %s11328_s12 = sadd.s32 4294967294, %s9040_s24  }
 0x349   : > { %s6482_s15 = sand.u32 1, %s11328_s12  }
 0x34a   : > { %s6483_s9 = scalar_lea.sflag [#allocation10], %s6482_s15 }
 0x34b   : > { %9019 = dma.done.wait (!%p8525_p2), %s6483_s9, 2080  }
 0x34c   : > { %9021 = vsyncadd (!%p8525_p2), %s6483_s9, 4294965216  ;;  %s6501_s30 = scalar_lea.sflag [#allocation13], %s6473_s0 }
 0x34d   : > { %9023 = dma.done.wait (!%p8525_p2), %s6501_s30, 32  }
 0x34e   : > { %9025 = vsyncadd (!%p8525_p2), %s6501_s30, 4294967264  ;;  %p27_p0 = scmp.ge.s32.totalorder %s9206_s8, 4   ;;  %s11329_s21 = smov %s9032_s22 }
 0x34f   : > { %s11330_s22 = smov %s9036_s23  ;;  %s11331_s23 = smov %s9222_s13 }
 0x350   : > { %s11332_s24 = smov %s9206_s8  ;;  %29 = sbr.rel (!%p27_p0) target bundleno = 12 (0xc), region = 136 }
 0x357   :  { %6506 = vsyncpa [#allocation3], 1 }
 0x358   :  { %6508 = vsyncpa [#allocation3 + $0x1], 1 }
 0x359   :  { %6509 = vsyncpa [#allocation6], 1 }
 0x35a   :  { %6510 = vsyncpa [#allocation4], 1 }
 0x35b   :  { %6512 = vsyncpa [#allocation4 + $0x1], 1 }
 0x35c   :  { %6513 = vsyncpa [#allocation10], 1 }
 0x35d   :  { %6515 = vsyncpa [#allocation10 + $0x1], 1 }
 0x35e   :  { %6516 = vsyncpa [#allocation13], 1 }
 0x35f   :  { %6518 = vsyncpa [#allocation13 + $0x1], 1 }

</bundles_post_ra>
